<compile_context>
chip_gen: v6e
topology: v6e:2x2x1
jax: 0.10.0
libtpu: 0.0.40
codegen_flags: <defaults>
</compile_context>

<pallas_src>
import functools

import jax
import jax.numpy as jnp
from jax import lax
from jax.experimental import pallas as pl
from jax.experimental.pallas import tpu as pltpu


def _round_up(x, m):
    return (x + m - 1) // m * m


def _num_tensorcores():
    """Best-effort TensorCore count (v7x has 2/chip); safe fallback of 1."""
    try:
        info = pltpu.get_tpu_info()
        for attr in ("num_cores", "core_count", "num_tensorcores"):
            n = getattr(info, attr, None)
            if n:
                return int(n)
    except Exception:
        pass
    try:
        n = getattr(jax.devices()[0], "num_cores", None)
        if n:
            return int(n)
    except Exception:
        pass
    return 1


def _vmem_limit_bytes(block_bytes, scratch_bytes=0):
    """Scoped-VMEM request: double-buffered blocks + scratch, with headroom."""
    want = 2 * (2 * block_bytes + scratch_bytes) + (4 << 20)
    want = max(want, 32 << 20)
    try:
        cap = int(pltpu.get_tpu_info().vmem_capacity_bytes) * 9 // 10
    except Exception:
        cap = 64 << 20
    return int(min(want, cap))


# ---------------------- Tiled Linear: (N,K) @ (K,Mp) + b ----------------------

def _linear_kernel(x_ref, w_ref, b_ref, o_ref):
    o_ref[...] = (
        jnp.dot(x_ref[...], w_ref[...], preferred_element_type=jnp.float32)
        + b_ref[...]
    )


def linear(x2d, w_t, b_row, *, out_cols=None, tn_max=256, tv_max=1024):
    """x2d: (N, K) @ w_t: (K, Mp) + b_row: (1, Mp) -> (N, out_cols).

    w_t / b_row are pre-padded at init so Mp % 128 == 0 (lane-dense stores for all
    interior column tiles).  out_cols (default Mp) may be < Mp: only the boundary
    column tile is masked; no extra HBM copy is needed to strip padding.
    Grid is (col tiles, row tiles) with rows innermost so the large weight block is
    reused (not re-DMA'd) across consecutive grid steps.
    """
    N, K = x2d.shape
    Mp = w_t.shape[1]
    M = Mp if out_cols is None else out_cols

    tn = N if N <= tn_max else tn_max          # tn_max is a multiple of 8
    tv = Mp if Mp <= tv_max else tv_max        # multiple of 128

    grid = (pl.cdiv(M, tv), pl.cdiv(N, tn))    # columns outer, rows inner

    block_bytes = 4 * (tn * K + K * tv + tv + tn * tv)

    return pl.pallas_call(
        _linear_kernel,
        out_shape=jax.ShapeDtypeStruct((N, M), jnp.float32),
        grid_spec=pltpu.PrefetchScalarGridSpec(
            num_scalar_prefetch=0,
            grid=grid,
            in_specs=[
                pl.BlockSpec((tn, K), lambda j, i: (i, 0)),
                pl.BlockSpec((K, tv), lambda j, i: (0, j)),   # constant over inner axis -> reused
                pl.BlockSpec((1, tv), lambda j, i: (0, j)),
            ],
            out_specs=pl.BlockSpec((tn, tv), lambda j, i: (i, j)),
        ),
        compiler_params=pltpu.CompilerParams(
            dimension_semantics=("parallel", "arbitrary"),
            vmem_limit_bytes=_vmem_limit_bytes(block_bytes),
        ),
    )(x2d, w_t, b_row)


# -------------- Fused multi-layer LSTM (all layers, chunked over T) --------------

def _sigmoid(x):
    # sigmoid(x) = 0.5*tanh(0.5*x) + 0.5 : one EUP transcendental per gate.
    return 0.5 * jnp.tanh(0.5 * x) + 0.5


def _fused_lstm_kernel(pre0_ref, whh0_ref, wcat_ref, brest_ref, h_out_ref,
                       h_scr, c_scr):
    """One time-chunk of the full LSTM stack for one batch block.

    pre0_ref : (Tc, tb, 4*Hp)  hoisted layer-0 pre-gates (x @ W_ih0 + b0), gate-padded
    whh0_ref : (Hp, 4*Hp)      layer-0 recurrent weight (gate-padded)
    wcat_ref : (L-1|1, 2*Hp, 4*Hp)  stacked [W_ih; W_hh] for layers >= 1 (dummy if L==1)
    brest_ref: (L-1|1, 1, 4*Hp)     folded biases for layers >= 1
    h_out_ref: (Tc, tb, Hp)    last-layer hidden per step (lane-dense)
    h_scr/c_scr: (tb, L*Hp)    per-layer state; layer l lives in columns [l*Hp,(l+1)*Hp)
    """
    Tc, tb, gate_w = pre0_ref.shape
    Hp = whh0_ref.shape[0]
    L = h_scr.shape[1] // Hp

    # New batch block -> zero-init the recurrent state (scratch persists across
    # the "arbitrary" time-chunk axis).
    @pl.when(pl.program_id(1) == 0)
    def _():
        h_scr[...] = jnp.zeros_like(h_scr)
        c_scr[...] = jnp.zeros_like(c_scr)

    # Hoist loop-invariant weight loads / bias broadcasts out of the time loop
    # (JAX does not CSE broadcast_in_dim inside the unrolled loop).
    whh0 = whh0_ref[...]
    wcats = [wcat_ref[l] for l in range(L - 1)]
    biases = [jnp.broadcast_to(brest_ref[l], (tb, gate_w)) for l in range(L - 1)]

    def cell(gates, l):
        # Gate slices are lane-aligned full-vreg slices (Hp % 128 == 0).
        i_g = _sigmoid(gates[:, 0 * Hp:1 * Hp])
        f_g = _sigmoid(gates[:, 1 * Hp:2 * Hp])
        g_g = jnp.tanh(gates[:, 2 * Hp:3 * Hp])
        o_g = _sigmoid(gates[:, 3 * Hp:4 * Hp])
        c_new = f_g * c_scr[:, l * Hp:(l + 1) * Hp] + i_g * g_g
        h_new = o_g * jnp.tanh(c_new)
        c_scr[:, l * Hp:(l + 1) * Hp] = c_new
        h_scr[:, l * Hp:(l + 1) * Hp] = h_new
        return h_new

    def step(t, carry):
        # Layer 0: input projection precomputed (pre0); one recurrent matmul.
        g0 = pre0_ref[t] + jnp.dot(h_scr[:, 0:Hp], whh0,
                                   preferred_element_type=jnp.float32)
        h_new = cell(g0, 0)
        for l in range(1, L):  # static layer unroll
            # Layer l-1 was updated this step, layer l still holds step t-1, and they
            # are adjacent in h_scr: [h_{l-1}(t), h_l(t-1)] is one contiguous slice,
            # so a single fused matmul replaces the separate ih/hh dots.
            xh = h_scr[:, (l - 1) * Hp:(l + 1) * Hp]
            g = jnp.dot(xh, wcats[l - 1],
                        preferred_element_type=jnp.float32) + biases[l - 1]
            h_new = cell(g, l)
        h_out_ref[t] = h_new
        return carry

    # Fully unroll short chunks; partial unroll for longer ones (LLO visibility
    # without exploding code size / vreg pressure).
    lax.fori_loop(0, Tc, step, 0, unroll=(Tc if Tc <= 16 else 4))


def fused_lstm(pre0, whh0, wcat, brest, *, num_layers):
    """pre0: (T1, B, 4*Hp) -> last-layer hiddens (T1, B, Hp)."""
    T1, B, Gp = pre0.shape
    Hp = whh0.shape[0]
    L = num_layers

    # Split the batch across TensorCores only when the chip actually has >1 TC and the
    # per-core block keeps a sublane-aligned (multiple-of-8) batch dim; otherwise the
    # extra grid step is pure serial overhead on single-TC v5e/v6e.
    ncores = _num_tensorcores()
    nb = 2 if (ncores >= 2 and B % 2 == 0 and (B // 2) % 8 == 0) else 1
    tb = B // nb

    # Chunk the time axis so only (Tc, tb, *) slabs are VMEM-resident (v7x: 64 MiB);
    # h/c carry across chunks in scratch.  Trailing (out-of-bounds) steps of the last
    # chunk read undefined pre0 padding but only pollute state that is re-initialized
    # at the next batch block, and their output rows are discarded.
    Tc = T1 if T1 <= 32 else 32
    ntc = pl.cdiv(T1, Tc)

    block_bytes = 4 * (Tc * tb * Gp + whh0.size + wcat.size + brest.size
                       + Tc * tb * Hp)
    scratch_bytes = 4 * (2 * tb * L * Hp + (L - 1) * tb * Gp
                         + whh0.size + wcat.size)

    return pl.pallas_call(
        _fused_lstm_kernel,
        out_shape=jax.ShapeDtypeStruct((T1, B, Hp), jnp.float32),
        grid_spec=pltpu.PrefetchScalarGridSpec(
            num_scalar_prefetch=0,
            grid=(nb, ntc),
            in_specs=[
                pl.BlockSpec((Tc, tb, Gp), lambda bb, tc: (tc, bb, 0)),
                pl.BlockSpec(whh0.shape, lambda bb, tc: (0, 0)),
                pl.BlockSpec(wcat.shape, lambda bb, tc: (0, 0, 0)),
                pl.BlockSpec(brest.shape, lambda bb, tc: (0, 0, 0)),
            ],
            out_specs=pl.BlockSpec((Tc, tb, Hp), lambda bb, tc: (tc, bb, 0)),
            scratch_shapes=[
                pltpu.VMEM((tb, L * Hp), jnp.float32),
                pltpu.VMEM((tb, L * Hp), jnp.float32),
            ],
        ),
        compiler_params=pltpu.CompilerParams(
            dimension_semantics=("parallel", "arbitrary"),
            vmem_limit_bytes=_vmem_limit_bytes(block_bytes, scratch_bytes),
        ),
    )(pre0, whh0, wcat, brest)


# ------------------------------- Parameters -----------------------------------

def init_decoder_params(key, embed_size, vocabulary_size, hidden_size, num_layers):
    """Raw (PyTorch-layout) parameters; also used by the pure-JAX reference."""
    H = hidden_size
    keys = jax.random.split(key, 3 + 4 * num_layers)
    bound = float(1.0 / (hidden_size ** 0.5))

    embed = jax.random.normal(keys[0], (vocabulary_size, embed_size), jnp.float32)

    w_ih, w_hh, b_ih, b_hh = [], [], [], []
    for l in range(num_layers):
        in_sz = embed_size if l == 0 else hidden_size
        k0, k1, k2, k3 = keys[1 + 4 * l: 5 + 4 * l]
        w_ih.append(jax.random.uniform(k0, (4 * H, in_sz), jnp.float32, -bound, bound))
        w_hh.append(jax.random.uniform(k1, (4 * H, H), jnp.float32, -bound, bound))
        b_ih.append(jax.random.uniform(k2, (4 * H,), jnp.float32, -bound, bound))
        b_hh.append(jax.random.uniform(k3, (4 * H,), jnp.float32, -bound, bound))

    kw, kb = keys[1 + 4 * num_layers], keys[2 + 4 * num_layers]
    linear_w = jax.random.uniform(kw, (vocabulary_size, H), jnp.float32, -bound, bound)
    linear_b = jax.random.uniform(kb, (vocabulary_size,), jnp.float32, -bound, bound)

    return {"embed": embed, "w_ih": w_ih, "w_hh": w_hh, "b_ih": b_ih, "b_hh": b_hh,
            "linear_w": linear_w, "linear_b": linear_b}


def pack_decoder_params(raw):
    """One-time packing/padding of raw params into kernel-friendly layouts.

    Padded gate columns carry zero weight/bias, so the padded hidden/cell state stays
    exactly 0 and the valid outputs match the unpadded reference bit-for-bit (modulo
    f32 rounding).
    """
    H = raw["w_hh"][0].shape[1]
    L = len(raw["w_hh"])
    V, _E = raw["embed"].shape
    Hp = _round_up(H, 128)
    Gp = 4 * Hp
    Vp = _round_up(V, 128)

    def pad_gate_cols(w_t):   # (in, 4H) -> (in, Gp), per-gate 128-lane padding
        return jnp.concatenate(
            [jnp.pad(w_t[:, g * H:(g + 1) * H], ((0, 0), (0, Hp - H)))
             for g in range(4)], axis=1)

    def pad_gate_vec(v):      # (4H,) -> (Gp,)
        return jnp.concatenate(
            [jnp.pad(v[g * H:(g + 1) * H], (0, Hp - H)) for g in range(4)])

    def pad_rows(w, rows):    # (r, cols) -> (rows, cols)
        return jnp.pad(w, ((0, rows - w.shape[0]), (0, 0)))

    # Layer 0
    w_ih0_t = pad_gate_cols(raw["w_ih"][0].T)                            # (E, Gp)
    b0 = pad_gate_vec(raw["b_ih"][0] + raw["b_hh"][0]).reshape(1, Gp)
    whh0 = pad_rows(pad_gate_cols(raw["w_hh"][0].T), Hp)                 # (Hp, Gp)

    # Layers >= 1: stacked [W_ih ; W_hh]
    if L > 1:
        wcat, brest = [], []
        for l in range(1, L):
            wi = pad_rows(pad_gate_cols(raw["w_ih"][l].T), Hp)           # (Hp, Gp)
            wh = pad_rows(pad_gate_cols(raw["w_hh"][l].T), Hp)           # (Hp, Gp)
            wcat.append(jnp.concatenate([wi, wh], axis=0))               # (2Hp, Gp)
            brest.append(pad_gate_vec(raw["b_ih"][l] + raw["b_hh"][l]).reshape(1, Gp))
        wcat = jnp.stack(wcat, axis=0)                                   # (L-1, 2Hp, Gp)
        brest = jnp.stack(brest, axis=0)                                 # (L-1, 1, Gp)
    else:
        wcat = jnp.zeros((1, 2 * Hp, Gp), jnp.float32)                   # unused dummy
        brest = jnp.zeros((1, 1, Gp), jnp.float32)

    # Vocab projection: rows padded H->Hp (zeros), cols padded V->Vp (once, at init).
    lin_w_t = jnp.pad(raw["linear_w"].T, ((0, Hp - H), (0, Vp - V)))     # (Hp, Vp)
    lin_b = jnp.pad(raw["linear_b"], (0, Vp - V)).reshape(1, Vp)

    return {"embed": raw["embed"], "w_ih0_t": w_ih0_t, "b0": b0, "whh0": whh0,
            "wcat": wcat, "brest": brest, "linear_w_t": lin_w_t, "linear_b": lin_b}


# ------------------------------- Decoder forward -------------------------------

@functools.partial(jax.jit, static_argnames=("num_layers", "vocab_size"))
def decoder_forward(params, out, caption, *, num_layers, vocab_size):
    """out: (B, E) float32 image feature, caption: (T, B) int32 -> (T+1, B, V)."""
    # Embedding gather (glue) + eval-mode dropout (identity).
    embedding = params["embed"][caption]                             # (T, B, E)
    res = jnp.concatenate([out[None, :, :], embedding], axis=0)      # (T+1, B, E)
    T1, B, E = res.shape
    Hp = params["whh0"].shape[0]
    Gp = 4 * Hp

    # Hoisted layer-0 input projection (+ folded bias) over all T+1 steps.
    pre0 = linear(res.reshape(T1 * B, E), params["w_ih0_t"], params["b0"])
    pre0 = pre0.reshape(T1, B, Gp)

    hiddens = fused_lstm(pre0, params["whh0"], params["wcat"], params["brest"],
                         num_layers=num_layers)                      # (T1, B, Hp)

    logits = linear(hiddens.reshape(T1 * B, Hp), params["linear_w_t"],
                    params["linear_b"], out_cols=vocab_size)         # (T1*B, V)
    return logits.reshape(T1, B, vocab_size)


# ----------------------------- Pure-JAX reference -----------------------------

def reference_forward(raw, out, caption):
    embedding = raw["embed"][caption]
    res = jnp.concatenate([out[None, :, :], embedding], axis=0)
    B = res.shape[1]
    H = raw["w_hh"][0].shape[1]
    x = res
    for l in range(len(raw["w_hh"])):
        w_ih_t = raw["w_ih"][l].T
        w_hh_t = raw["w_hh"][l].T
        b = raw["b_ih"][l] + raw["b_hh"][l]

        def step(carry, x_t, w_ih_t=w_ih_t, w_hh_t=w_hh_t, b=b):
            h, c = carry
            gates = x_t @ w_ih_t + h @ w_hh_t + b
            i = jax.nn.sigmoid(gates[:, 0 * H:1 * H])
            f = jax.nn.sigmoid(gates[:, 1 * H:2 * H])
            g = jnp.tanh(gates[:, 2 * H:3 * H])
            o = jax.nn.sigmoid(gates[:, 3 * H:4 * H])
            c = f * c + i * g
            h = o * jnp.tanh(c)
            return (h, c), h

        init = (jnp.zeros((B, H), jnp.float32), jnp.zeros((B, H), jnp.float32))
        _, x = lax.scan(step, init, x)
    return x @ raw["linear_w"].T + raw["linear_b"]


if __name__ == "__main__":
    embed_size = 32
    vocabulary_size = 50
    hidden_size = 32
    num_layers = 2
    batch = 2
    seq = 8

    key = jax.random.PRNGKey(0)
    k_params, k_out, k_cap = jax.random.split(key, 3)

    raw = init_decoder_params(
        k_params, embed_size, vocabulary_size, hidden_size, num_layers)
    params = pack_decoder_params(raw)

    out = jax.random.normal(k_out, (batch, embed_size), jnp.float32)          # image feature
    caption = jax.random.randint(k_cap, (seq, batch), 0, vocabulary_size, jnp.int32)

    logits = decoder_forward(params, out, caption,
                             num_layers=num_layers, vocab_size=vocabulary_size)
    logits = jax.block_until_ready(logits)

    assert logits.shape == (seq + 1, batch, vocabulary_size), logits.shape
    assert logits.dtype == jnp.float32
    assert bool(jnp.all(jnp.isfinite(logits)))

    ref = reference_forward(raw, out, caption)
    err = float(jnp.max(jnp.abs(logits - ref)))
    assert err < 1e-3, f"max abs error vs reference: {err}"

    print("KERNEL_OK")
</pallas_src>

<mosaic_0001>
module attributes {stable_mosaic.version = 11 : i64} {
  func.func @_linear_kernel(%arg0: i32, %arg1: i32, %arg2: memref<18x32xf32, #tpu.memory_space<vmem>>, %arg3: memref<32x512xf32, #tpu.memory_space<vmem>>, %arg4: memref<1x512xf32, #tpu.memory_space<vmem>>, %arg5: memref<18x512xf32, #tpu.memory_space<vmem>>) attributes {dimension_semantics = [#tpu.dimension_semantics<parallel>, #tpu.dimension_semantics<arbitrary>], iteration_bounds = array<i64: 1, 1>, scalar_prefetch = 0 : i64, scratch_operands = 0 : i64, tpu.core_type = #tpu.core_type<tc>, window_params = [{transform_indices = @transform_0, window_bounds = array<i64: 18, 32>}, {transform_indices = @transform_1, window_bounds = array<i64: 32, 512>}, {transform_indices = @transform_2, window_bounds = array<i64: 1, 512>}, {transform_indices = @transform_3, window_bounds = array<i64: 18, 512>}]} {
    %c0 = arith.constant 0 : index
    %c0_0 = arith.constant 0 : index
    %0 = vector.load %arg2[%c0, %c0_0] : memref<18x32xf32, #tpu.memory_space<vmem>>, vector<18x32xf32>
    %c0_1 = arith.constant 0 : index
    %c0_2 = arith.constant 0 : index
    %1 = vector.load %arg3[%c0_1, %c0_2] : memref<32x512xf32, #tpu.memory_space<vmem>>, vector<32x512xf32>
    %cst = arith.constant dense<0.000000e+00> : vector<18x512xf32>
    %2 = tpu.matmul %0, %1, %cst {dimension_numbers = #tpu.dot_dimension_numbers<[1], [0], [0], [1], [0, 0, 1, 1], [], []>} : vector<18x32xf32>, vector<32x512xf32>, vector<18x512xf32> -> vector<18x512xf32>
    %c0_3 = arith.constant 0 : index
    %c0_4 = arith.constant 0 : index
    %3 = vector.load %arg4[%c0_3, %c0_4] : memref<1x512xf32, #tpu.memory_space<vmem>>, vector<1x512xf32>
    %4 = vector.broadcast %3 : vector<1x512xf32> to vector<18x512xf32>
    %5 = arith.addf %2, %4 : vector<18x512xf32>
    %c0_5 = arith.constant 0 : index
    %c0_6 = arith.constant 0 : index
    %6 = vector.load %arg5[%c0_5, %c0_6] : memref<18x512xf32, #tpu.memory_space<vmem>>, vector<18x512xf32>
    tpu.vector_store %arg5[%c0_5, %c0_6], %5 {strides = array<i32>} : memref<18x512xf32, #tpu.memory_space<vmem>>, vector<18x512xf32>,
    return
  }
  func.func @transform_0(%arg0: i32, %arg1: i32) -> (i32, i32) {
    %c0_i32 = arith.constant 0 : i32
    %c0_i32_0 = arith.constant 0 : i32
    return %arg1, %c0_i32 : i32, i32
  }
  func.func @transform_1(%arg0: i32, %arg1: i32) -> (i32, i32) {
    %c0_i32 = arith.constant 0 : i32
    %c0_i32_0 = arith.constant 0 : i32
    return %c0_i32, %arg0 : i32, i32
  }
  func.func @transform_2(%arg0: i32, %arg1: i32) -> (i32, i32) {
    %c0_i32 = arith.constant 0 : i32
    %c0_i32_0 = arith.constant 0 : i32
    return %c0_i32, %arg0 : i32, i32
  }
  func.func @transform_3(%arg0: i32, %arg1: i32) -> (i32, i32) {
    %c0_i32 = arith.constant 0 : i32
    return %arg1, %arg0 : i32, i32
  }
}

module attributes {stable_mosaic.version = 11 : i64} {
  func.func @_linear_kernel(%arg0: i32, %arg1: i32, %arg2: memref<18x128xf32, #tpu.memory_space<vmem>>, %arg3: memref<128x128xf32, #tpu.memory_space<vmem>>, %arg4: memref<1x128xf32, #tpu.memory_space<vmem>>, %arg5: memref<18x128xf32, #tpu.memory_space<vmem>>) attributes {dimension_semantics = [#tpu.dimension_semantics<parallel>, #tpu.dimension_semantics<arbitrary>], iteration_bounds = array<i64: 1, 1>, scalar_prefetch = 0 : i64, scratch_operands = 0 : i64, tpu.core_type = #tpu.core_type<tc>, window_params = [{transform_indices = @transform_0, window_bounds = array<i64: 18, 128>}, {transform_indices = @transform_1, window_bounds = array<i64: 128, 128>}, {transform_indices = @transform_2, window_bounds = array<i64: 1, 128>}, {transform_indices = @transform_3, window_bounds = array<i64: 18, 128>}]} {
    %c0 = arith.constant 0 : index
    %c0_0 = arith.constant 0 : index
    %0 = vector.load %arg2[%c0, %c0_0] : memref<18x128xf32, #tpu.memory_space<vmem>>, vector<18x128xf32>
    %c0_1 = arith.constant 0 : index
    %c0_2 = arith.constant 0 : index
    %1 = vector.load %arg3[%c0_1, %c0_2] : memref<128x128xf32, #tpu.memory_space<vmem>>, vector<128x128xf32>
    %cst = arith.constant dense<0.000000e+00> : vector<18x128xf32>
    %2 = tpu.matmul %0, %1, %cst {dimension_numbers = #tpu.dot_dimension_numbers<[1], [0], [0], [1], [0, 0, 1, 1], [], []>} : vector<18x128xf32>, vector<128x128xf32>, vector<18x128xf32> -> vector<18x128xf32>
    %c0_3 = arith.constant 0 : index
    %c0_4 = arith.constant 0 : index
    %3 = vector.load %arg4[%c0_3, %c0_4] : memref<1x128xf32, #tpu.memory_space<vmem>>, vector<1x128xf32>
    %4 = vector.broadcast %3 : vector<1x128xf32> to vector<18x128xf32>
    %5 = arith.addf %2, %4 : vector<18x128xf32>
    %c0_5 = arith.constant 0 : index
    %c0_6 = arith.constant 0 : index
    %6 = vector.load %arg5[%c0_5, %c0_6] : memref<18x128xf32, #tpu.memory_space<vmem>>, vector<18x128xf32>
    tpu.vector_store %arg5[%c0_5, %c0_6], %5 {strides = array<i32>} : memref<18x128xf32, #tpu.memory_space<vmem>>, vector<18x128xf32>,
    return
  }
  func.func @transform_0(%arg0: i32, %arg1: i32) -> (i32, i32) {
    %c0_i32 = arith.constant 0 : i32
    %c0_i32_0 = arith.constant 0 : i32
    return %arg1, %c0_i32 : i32, i32
  }
  func.func @transform_1(%arg0: i32, %arg1: i32) -> (i32, i32) {
    %c0_i32 = arith.constant 0 : i32
    %c0_i32_0 = arith.constant 0 : i32
    return %c0_i32, %arg0 : i32, i32
  }
  func.func @transform_2(%arg0: i32, %arg1: i32) -> (i32, i32) {
    %c0_i32 = arith.constant 0 : i32
    %c0_i32_0 = arith.constant 0 : i32
    return %c0_i32, %arg0 : i32, i32
  }
  func.func @transform_3(%arg0: i32, %arg1: i32) -> (i32, i32) {
    %c0_i32 = arith.constant 0 : i32
    return %arg1, %arg0 : i32, i32
  }
}

module attributes {stable_mosaic.version = 11 : i64} {
  func.func @_fused_lstm_kernel(%arg0: i32, %arg1: i32, %arg2: memref<9x2x512xf32, #tpu.memory_space<vmem>>, %arg3: memref<128x512xf32, #tpu.memory_space<vmem>>, %arg4: memref<1x256x512xf32, #tpu.memory_space<vmem>>, %arg5: memref<1x1x512xf32, #tpu.memory_space<vmem>>, %arg6: memref<9x2x128xf32, #tpu.memory_space<vmem>>, %arg7: memref<2x256xf32, #tpu.memory_space<vmem>>, %arg8: memref<2x256xf32, #tpu.memory_space<vmem>>) attributes {dimension_semantics = [#tpu.dimension_semantics<parallel>, #tpu.dimension_semantics<arbitrary>], iteration_bounds = array<i64: 1, 1>, scalar_prefetch = 0 : i64, scratch_operands = 2 : i64, tpu.core_type = #tpu.core_type<tc>, window_params = [{transform_indices = @transform_0, window_bounds = array<i64: 9, 2, 512>}, {pipeline_mode = #tpu.pipeline_mode<synchronous>, transform_indices = @transform_1, window_bounds = array<i64: 128, 512>}, {pipeline_mode = #tpu.pipeline_mode<synchronous>, transform_indices = @transform_2, window_bounds = array<i64: 1, 256, 512>}, {pipeline_mode = #tpu.pipeline_mode<synchronous>, transform_indices = @transform_3, window_bounds = array<i64: 1, 1, 512>}, {transform_indices = @transform_4, window_bounds = array<i64: 9, 2, 128>}]} {
    %c0_i32 = arith.constant 0 : i32
    %0 = arith.cmpi eq, %arg1, %c0_i32 : i32
    %1 = arith.extui %0 : i1 to i32
    %c0_i32_0 = arith.constant 0 : i32
    %2 = arith.cmpi ne, %1, %c0_i32_0 : i32
    scf.if %2 {
      %cst_367 = arith.constant 0.000000e+00 : f32
      %739 = vector.broadcast %cst_367 : f32 to vector<2x256xf32>
      %c0_368 = arith.constant 0 : index
      %c0_369 = arith.constant 0 : index
      %740 = vector.load %arg7[%c0_368, %c0_369] : memref<2x256xf32, #tpu.memory_space<vmem>>, vector<2x256xf32>
      tpu.vector_store %arg7[%c0_368, %c0_369], %739 {strides = array<i32>} : memref<2x256xf32, #tpu.memory_space<vmem>>, vector<2x256xf32>,
      %cst_370 = arith.constant 0.000000e+00 : f32
      %741 = vector.broadcast %cst_370 : f32 to vector<2x256xf32>
      %c0_371 = arith.constant 0 : index
      %c0_372 = arith.constant 0 : index
      %742 = vector.load %arg8[%c0_371, %c0_372] : memref<2x256xf32, #tpu.memory_space<vmem>>, vector<2x256xf32>
      tpu.vector_store %arg8[%c0_371, %c0_372], %741 {strides = array<i32>} : memref<2x256xf32, #tpu.memory_space<vmem>>, vector<2x256xf32>,
    } else {
    }
    %c0 = arith.constant 0 : index
    %c0_1 = arith.constant 0 : index
    %3 = vector.load %arg3[%c0, %c0_1] : memref<128x512xf32, #tpu.memory_space<vmem>>, vector<128x512xf32>
    %c0_2 = arith.constant 0 : index
    %c0_3 = arith.constant 0 : index
    %c0_4 = arith.constant 0 : index
    %4 = vector.load %arg4[%c0_2, %c0_3, %c0_4] : memref<1x256x512xf32, #tpu.memory_space<vmem>>, vector<1x256x512xf32>
    %5 = vector.shape_cast %4 : vector<1x256x512xf32> to vector<256x512xf32>
    %c0_5 = arith.constant 0 : index
    %c0_6 = arith.constant 0 : index
    %c0_7 = arith.constant 0 : index
    %6 = vector.load %arg5[%c0_5, %c0_6, %c0_7] : memref<1x1x512xf32, #tpu.memory_space<vmem>>, vector<1x1x512xf32>
    %7 = vector.shape_cast %6 : vector<1x1x512xf32> to vector<1x512xf32>
    %8 = vector.shape_cast %7 : vector<1x512xf32> to vector<1x512xf32>
    %9 = vector.broadcast %8 : vector<1x512xf32> to vector<2x512xf32>
    %c0_i32_8 = arith.constant 0 : i32
    %10 = arith.index_cast %c0_i32_8 : i32 to index
    %c0_9 = arith.constant 0 : index
    %c0_10 = arith.constant 0 : index
    %11 = vector.load %arg2[%10, %c0_9, %c0_10] : memref<9x2x512xf32, #tpu.memory_space<vmem>>, vector<1x2x512xf32>
    %12 = vector.shape_cast %11 : vector<1x2x512xf32> to vector<2x512xf32>
    %c0_11 = arith.constant 0 : index
    %c0_12 = arith.constant 0 : index
    %13 = vector.load %arg7[%c0_11, %c0_12] : memref<2x256xf32, #tpu.memory_space<vmem>>, vector<2x128xf32>
    %cst = arith.constant dense<0.000000e+00> : vector<2x512xf32>
    %14 = tpu.matmul %13, %3, %cst {dimension_numbers = #tpu.dot_dimension_numbers<[1], [0], [0], [1], [0, 0, 1, 1], [], []>} : vector<2x128xf32>, vector<128x512xf32>, vector<2x512xf32> -> vector<2x512xf32>
    %15 = arith.addf %12, %14 : vector<2x512xf32>
    %16 = vector.extract_strided_slice %15 {offsets = [0, 0], sizes = [2, 128], strides = [1, 1]} : vector<2x512xf32> to vector<2x128xf32>
    %cst_13 = arith.constant 5.000000e-01 : f32
    %17 = vector.broadcast %cst_13 : f32 to vector<2x128xf32>
    %18 = arith.mulf %17, %16 : vector<2x128xf32>
    %19 = math.tanh %18 : vector<2x128xf32>
    %cst_14 = arith.constant 5.000000e-01 : f32
    %20 = vector.broadcast %cst_14 : f32 to vector<2x128xf32>
    %21 = arith.mulf %20, %19 : vector<2x128xf32>
    %cst_15 = arith.constant 5.000000e-01 : f32
    %22 = vector.broadcast %cst_15 : f32 to vector<2x128xf32>
    %23 = arith.addf %21, %22 : vector<2x128xf32>
    %24 = vector.extract_strided_slice %15 {offsets = [0, 128], sizes = [2, 128], strides = [1, 1]} : vector<2x512xf32> to vector<2x128xf32>
    %cst_16 = arith.constant 5.000000e-01 : f32
    %25 = vector.broadcast %cst_16 : f32 to vector<2x128xf32>
    %26 = arith.mulf %25, %24 : vector<2x128xf32>
    %27 = math.tanh %26 : vector<2x128xf32>
    %cst_17 = arith.constant 5.000000e-01 : f32
    %28 = vector.broadcast %cst_17 : f32 to vector<2x128xf32>
    %29 = arith.mulf %28, %27 : vector<2x128xf32>
    %cst_18 = arith.constant 5.000000e-01 : f32
    %30 = vector.broadcast %cst_18 : f32 to vector<2x128xf32>
    %31 = arith.addf %29, %30 : vector<2x128xf32>
    %32 = vector.extract_strided_slice %15 {offsets = [0, 256], sizes = [2, 128], strides = [1, 1]} : vector<2x512xf32> to vector<2x128xf32>
    %33 = math.tanh %32 : vector<2x128xf32>
    %34 = vector.extract_strided_slice %15 {offsets = [0, 384], sizes = [2, 128], strides = [1, 1]} : vector<2x512xf32> to vector<2x128xf32>
    %cst_19 = arith.constant 5.000000e-01 : f32
    %35 = vector.broadcast %cst_19 : f32 to vector<2x128xf32>
    %36 = arith.mulf %35, %34 : vector<2x128xf32>
    %37 = math.tanh %36 : vector<2x128xf32>
    %cst_20 = arith.constant 5.000000e-01 : f32
    %38 = vector.broadcast %cst_20 : f32 to vector<2x128xf32>
    %39 = arith.mulf %38, %37 : vector<2x128xf32>
    %cst_21 = arith.constant 5.000000e-01 : f32
    %40 = vector.broadcast %cst_21 : f32 to vector<2x128xf32>
    %41 = arith.addf %39, %40 : vector<2x128xf32>
    %c0_22 = arith.constant 0 : index
    %c0_23 = arith.constant 0 : index
    %42 = vector.load %arg8[%c0_22, %c0_23] : memref<2x256xf32, #tpu.memory_space<vmem>>, vector<2x128xf32>
    %43 = arith.mulf %31, %42 : vector<2x128xf32>
    %44 = arith.mulf %23, %33 : vector<2x128xf32>
    %45 = arith.addf %43, %44 : vector<2x128xf32>
    %46 = math.tanh %45 : vector<2x128xf32>
    %47 = arith.mulf %41, %46 : vector<2x128xf32>
    %c0_24 = arith.constant 0 : index
    %c0_25 = arith.constant 0 : index
    %48 = vector.load %arg8[%c0_24, %c0_25] : memref<2x256xf32, #tpu.memory_space<vmem>>, vector<2x128xf32>
    tpu.vector_store %arg8[%c0_24, %c0_25], %45 {strides = array<i32>} : memref<2x256xf32, #tpu.memory_space<vmem>>, vector<2x128xf32>,
    %c0_26 = arith.constant 0 : index
    %c0_27 = arith.constant 0 : index
    %49 = vector.load %arg7[%c0_26, %c0_27] : memref<2x256xf32, #tpu.memory_space<vmem>>, vector<2x128xf32>
    tpu.vector_store %arg7[%c0_26, %c0_27], %47 {strides = array<i32>} : memref<2x256xf32, #tpu.memory_space<vmem>>, vector<2x128xf32>,
    %c0_28 = arith.constant 0 : index
    %c0_29 = arith.constant 0 : index
    %50 = vector.load %arg7[%c0_28, %c0_29] : memref<2x256xf32, #tpu.memory_space<vmem>>, vector<2x256xf32>
    %cst_30 = arith.constant dense<0.000000e+00> : vector<2x512xf32>
    %51 = tpu.matmul %50, %5, %cst_30 {dimension_numbers = #tpu.dot_dimension_numbers<[1], [0], [0], [1], [0, 0, 1, 1], [], []>} : vector<2x256xf32>, vector<256x512xf32>, vector<2x512xf32> -> vector<2x512xf32>
    %52 = arith.addf %51, %9 : vector<2x512xf32>
    %53 = vector.extract_strided_slice %52 {offsets = [0, 0], sizes = [2, 128], strides = [1, 1]} : vector<2x512xf32> to vector<2x128xf32>
    %cst_31 = arith.constant 5.000000e-01 : f32
    %54 = vector.broadcast %cst_31 : f32 to vector<2x128xf32>
    %55 = arith.mulf %54, %53 : vector<2x128xf32>
    %56 = math.tanh %55 : vector<2x128xf32>
    %cst_32 = arith.constant 5.000000e-01 : f32
    %57 = vector.broadcast %cst_32 : f32 to vector<2x128xf32>
    %58 = arith.mulf %57, %56 : vector<2x128xf32>
    %cst_33 = arith.constant 5.000000e-01 : f32
    %59 = vector.broadcast %cst_33 : f32 to vector<2x128xf32>
    %60 = arith.addf %58, %59 : vector<2x128xf32>
    %61 = vector.extract_strided_slice %52 {offsets = [0, 128], sizes = [2, 128], strides = [1, 1]} : vector<2x512xf32> to vector<2x128xf32>
    %cst_34 = arith.constant 5.000000e-01 : f32
    %62 = vector.broadcast %cst_34 : f32 to vector<2x128xf32>
    %63 = arith.mulf %62, %61 : vector<2x128xf32>
    %64 = math.tanh %63 : vector<2x128xf32>
    %cst_35 = arith.constant 5.000000e-01 : f32
    %65 = vector.broadcast %cst_35 : f32 to vector<2x128xf32>
    %66 = arith.mulf %65, %64 : vector<2x128xf32>
    %cst_36 = arith.constant 5.000000e-01 : f32
    %67 = vector.broadcast %cst_36 : f32 to vector<2x128xf32>
    %68 = arith.addf %66, %67 : vector<2x128xf32>
    %69 = vector.extract_strided_slice %52 {offsets = [0, 256], sizes = [2, 128], strides = [1, 1]} : vector<2x512xf32> to vector<2x128xf32>
    %70 = math.tanh %69 : vector<2x128xf32>
    %71 = vector.extract_strided_slice %52 {offsets = [0, 384], sizes = [2, 128], strides = [1, 1]} : vector<2x512xf32> to vector<2x128xf32>
    %cst_37 = arith.constant 5.000000e-01 : f32
    %72 = vector.broadcast %cst_37 : f32 to vector<2x128xf32>
    %73 = arith.mulf %72, %71 : vector<2x128xf32>
    %74 = math.tanh %73 : vector<2x128xf32>
    %cst_38 = arith.constant 5.000000e-01 : f32
    %75 = vector.broadcast %cst_38 : f32 to vector<2x128xf32>
    %76 = arith.mulf %75, %74 : vector<2x128xf32>
    %cst_39 = arith.constant 5.000000e-01 : f32
    %77 = vector.broadcast %cst_39 : f32 to vector<2x128xf32>
    %78 = arith.addf %76, %77 : vector<2x128xf32>
    %c0_40 = arith.constant 0 : index
    %c128 = arith.constant 128 : index
    %79 = vector.load %arg8[%c0_40, %c128] : memref<2x256xf32, #tpu.memory_space<vmem>>, vector<2x128xf32>
    %80 = arith.mulf %68, %79 : vector<2x128xf32>
    %81 = arith.mulf %60, %70 : vector<2x128xf32>
    %82 = arith.addf %80, %81 : vector<2x128xf32>
    %83 = math.tanh %82 : vector<2x128xf32>
    %84 = arith.mulf %78, %83 : vector<2x128xf32>
    %c0_41 = arith.constant 0 : index
    %c128_42 = arith.constant 128 : index
    %85 = vector.load %arg8[%c0_41, %c128_42] : memref<2x256xf32, #tpu.memory_space<vmem>>, vector<2x128xf32>
    tpu.vector_store %arg8[%c0_41, %c128_42], %82 {strides = array<i32>} : memref<2x256xf32, #tpu.memory_space<vmem>>, vector<2x128xf32>,
    %c0_43 = arith.constant 0 : index
    %c128_44 = arith.constant 128 : index
    %86 = vector.load %arg7[%c0_43, %c128_44] : memref<2x256xf32, #tpu.memory_space<vmem>>, vector<2x128xf32>
    tpu.vector_store %arg7[%c0_43, %c128_44], %84 {strides = array<i32>} : memref<2x256xf32, #tpu.memory_space<vmem>>, vector<2x128xf32>,
    %87 = arith.index_cast %c0_i32_8 : i32 to index
    %c0_45 = arith.constant 0 : index
    %c0_46 = arith.constant 0 : index
    %88 = vector.load %arg6[%87, %c0_45, %c0_46] : memref<9x2x128xf32, #tpu.memory_space<vmem>>, vector<1x2x128xf32>
    %89 = vector.shape_cast %88 : vector<1x2x128xf32> to vector<2x128xf32>
    %90 = vector.shape_cast %84 : vector<2x128xf32> to vector<1x2x128xf32>
    tpu.vector_store %arg6[%87, %c0_45, %c0_46], %90 {strides = array<i32>} : memref<9x2x128xf32, #tpu.memory_space<vmem>>, vector<1x2x128xf32>,
    %c1_i32 = arith.constant 1 : i32
    %91 = arith.index_cast %c1_i32 : i32 to index
    %c0_47 = arith.constant 0 : index
    %c0_48 = arith.constant 0 : index
    %92 = vector.load %arg2[%91, %c0_47, %c0_48] : memref<9x2x512xf32, #tpu.memory_space<vmem>>, vector<1x2x512xf32>
    %93 = vector.shape_cast %92 : vector<1x2x512xf32> to vector<2x512xf32>
    %c0_49 = arith.constant 0 : index
    %c0_50 = arith.constant 0 : index
    %94 = vector.load %arg7[%c0_49, %c0_50] : memref<2x256xf32, #tpu.memory_space<vmem>>, vector<2x128xf32>
    %cst_51 = arith.constant dense<0.000000e+00> : vector<2x512xf32>
    %95 = tpu.matmul %94, %3, %cst_51 {dimension_numbers = #tpu.dot_dimension_numbers<[1], [0], [0], [1], [0, 0, 1, 1], [], []>} : vector<2x128xf32>, vector<128x512xf32>, vector<2x512xf32> -> vector<2x512xf32>
    %96 = arith.addf %93, %95 : vector<2x512xf32>
    %97 = vector.extract_strided_slice %96 {offsets = [0, 0], sizes = [2, 128], strides = [1, 1]} : vector<2x512xf32> to vector<2x128xf32>
    %cst_52 = arith.constant 5.000000e-01 : f32
    %98 = vector.broadcast %cst_52 : f32 to vector<2x128xf32>
    %99 = arith.mulf %98, %97 : vector<2x128xf32>
    %100 = math.tanh %99 : vector<2x128xf32>
    %cst_53 = arith.constant 5.000000e-01 : f32
    %101 = vector.broadcast %cst_53 : f32 to vector<2x128xf32>
    %102 = arith.mulf %101, %100 : vector<2x128xf32>
    %cst_54 = arith.constant 5.000000e-01 : f32
    %103 = vector.broadcast %cst_54 : f32 to vector<2x128xf32>
    %104 = arith.addf %102, %103 : vector<2x128xf32>
    %105 = vector.extract_strided_slice %96 {offsets = [0, 128], sizes = [2, 128], strides = [1, 1]} : vector<2x512xf32> to vector<2x128xf32>
    %cst_55 = arith.constant 5.000000e-01 : f32
    %106 = vector.broadcast %cst_55 : f32 to vector<2x128xf32>
    %107 = arith.mulf %106, %105 : vector<2x128xf32>
    %108 = math.tanh %107 : vector<2x128xf32>
    %cst_56 = arith.constant 5.000000e-01 : f32
    %109 = vector.broadcast %cst_56 : f32 to vector<2x128xf32>
    %110 = arith.mulf %109, %108 : vector<2x128xf32>
    %cst_57 = arith.constant 5.000000e-01 : f32
    %111 = vector.broadcast %cst_57 : f32 to vector<2x128xf32>
    %112 = arith.addf %110, %111 : vector<2x128xf32>
    %113 = vector.extract_strided_slice %96 {offsets = [0, 256], sizes = [2, 128], strides = [1, 1]} : vector<2x512xf32> to vector<2x128xf32>
    %114 = math.tanh %113 : vector<2x128xf32>
    %115 = vector.extract_strided_slice %96 {offsets = [0, 384], sizes = [2, 128], strides = [1, 1]} : vector<2x512xf32> to vector<2x128xf32>
    %cst_58 = arith.constant 5.000000e-01 : f32
    %116 = vector.broadcast %cst_58 : f32 to vector<2x128xf32>
    %117 = arith.mulf %116, %115 : vector<2x128xf32>
    %118 = math.tanh %117 : vector<2x128xf32>
    %cst_59 = arith.constant 5.000000e-01 : f32
    %119 = vector.broadcast %cst_59 : f32 to vector<2x128xf32>
    %120 = arith.mulf %119, %118 : vector<2x128xf32>
    %cst_60 = arith.constant 5.000000e-01 : f32
    %121 = vector.broadcast %cst_60 : f32 to vector<2x128xf32>
    %122 = arith.addf %120, %121 : vector<2x128xf32>
    %c0_61 = arith.constant 0 : index
    %c0_62 = arith.constant 0 : index
    %123 = vector.load %arg8[%c0_61, %c0_62] : memref<2x256xf32, #tpu.memory_space<vmem>>, vector<2x128xf32>
    %124 = arith.mulf %112, %123 : vector<2x128xf32>
    %125 = arith.mulf %104, %114 : vector<2x128xf32>
    %126 = arith.addf %124, %125 : vector<2x128xf32>
    %127 = math.tanh %126 : vector<2x128xf32>
    %128 = arith.mulf %122, %127 : vector<2x128xf32>
    %c0_63 = arith.constant 0 : index
    %c0_64 = arith.constant 0 : index
    %129 = vector.load %arg8[%c0_63, %c0_64] : memref<2x256xf32, #tpu.memory_space<vmem>>, vector<2x128xf32>
    tpu.vector_store %arg8[%c0_63, %c0_64], %126 {strides = array<i32>} : memref<2x256xf32, #tpu.memory_space<vmem>>, vector<2x128xf32>,
    %c0_65 = arith.constant 0 : index
    %c0_66 = arith.constant 0 : index
    %130 = vector.load %arg7[%c0_65, %c0_66] : memref<2x256xf32, #tpu.memory_space<vmem>>, vector<2x128xf32>
    tpu.vector_store %arg7[%c0_65, %c0_66], %128 {strides = array<i32>} : memref<2x256xf32, #tpu.memory_space<vmem>>, vector<2x128xf32>,
    %c0_67 = arith.constant 0 : index
    %c0_68 = arith.constant 0 : index
    %131 = vector.load %arg7[%c0_67, %c0_68] : memref<2x256xf32, #tpu.memory_space<vmem>>, vector<2x256xf32>
    %cst_69 = arith.constant dense<0.000000e+00> : vector<2x512xf32>
    %132 = tpu.matmul %131, %5, %cst_69 {dimension_numbers = #tpu.dot_dimension_numbers<[1], [0], [0], [1], [0, 0, 1, 1], [], []>} : vector<2x256xf32>, vector<256x512xf32>, vector<2x512xf32> -> vector<2x512xf32>
    %133 = arith.addf %132, %9 : vector<2x512xf32>
    %134 = vector.extract_strided_slice %133 {offsets = [0, 0], sizes = [2, 128], strides = [1, 1]} : vector<2x512xf32> to vector<2x128xf32>
    %cst_70 = arith.constant 5.000000e-01 : f32
    %135 = vector.broadcast %cst_70 : f32 to vector<2x128xf32>
    %136 = arith.mulf %135, %134 : vector<2x128xf32>
    %137 = math.tanh %136 : vector<2x128xf32>
    %cst_71 = arith.constant 5.000000e-01 : f32
    %138 = vector.broadcast %cst_71 : f32 to vector<2x128xf32>
    %139 = arith.mulf %138, %137 : vector<2x128xf32>
    %cst_72 = arith.constant 5.000000e-01 : f32
    %140 = vector.broadcast %cst_72 : f32 to vector<2x128xf32>
    %141 = arith.addf %139, %140 : vector<2x128xf32>
    %142 = vector.extract_strided_slice %133 {offsets = [0, 128], sizes = [2, 128], strides = [1, 1]} : vector<2x512xf32> to vector<2x128xf32>
    %cst_73 = arith.constant 5.000000e-01 : f32
    %143 = vector.broadcast %cst_73 : f32 to vector<2x128xf32>
    %144 = arith.mulf %143, %142 : vector<2x128xf32>
    %145 = math.tanh %144 : vector<2x128xf32>
    %cst_74 = arith.constant 5.000000e-01 : f32
    %146 = vector.broadcast %cst_74 : f32 to vector<2x128xf32>
    %147 = arith.mulf %146, %145 : vector<2x128xf32>
    %cst_75 = arith.constant 5.000000e-01 : f32
    %148 = vector.broadcast %cst_75 : f32 to vector<2x128xf32>
    %149 = arith.addf %147, %148 : vector<2x128xf32>
    %150 = vector.extract_strided_slice %133 {offsets = [0, 256], sizes = [2, 128], strides = [1, 1]} : vector<2x512xf32> to vector<2x128xf32>
    %151 = math.tanh %150 : vector<2x128xf32>
    %152 = vector.extract_strided_slice %133 {offsets = [0, 384], sizes = [2, 128], strides = [1, 1]} : vector<2x512xf32> to vector<2x128xf32>
    %cst_76 = arith.constant 5.000000e-01 : f32
    %153 = vector.broadcast %cst_76 : f32 to vector<2x128xf32>
    %154 = arith.mulf %153, %152 : vector<2x128xf32>
    %155 = math.tanh %154 : vector<2x128xf32>
    %cst_77 = arith.constant 5.000000e-01 : f32
    %156 = vector.broadcast %cst_77 : f32 to vector<2x128xf32>
    %157 = arith.mulf %156, %155 : vector<2x128xf32>
    %cst_78 = arith.constant 5.000000e-01 : f32
    %158 = vector.broadcast %cst_78 : f32 to vector<2x128xf32>
    %159 = arith.addf %157, %158 : vector<2x128xf32>
    %c0_79 = arith.constant 0 : index
    %c128_80 = arith.constant 128 : index
    %160 = vector.load %arg8[%c0_79, %c128_80] : memref<2x256xf32, #tpu.memory_space<vmem>>, vector<2x128xf32>
    %161 = arith.mulf %149, %160 : vector<2x128xf32>
    %162 = arith.mulf %141, %151 : vector<2x128xf32>
    %163 = arith.addf %161, %162 : vector<2x128xf32>
    %164 = math.tanh %163 : vector<2x128xf32>
    %165 = arith.mulf %159, %164 : vector<2x128xf32>
    %c0_81 = arith.constant 0 : index
    %c128_82 = arith.constant 128 : index
    %166 = vector.load %arg8[%c0_81, %c128_82] : memref<2x256xf32, #tpu.memory_space<vmem>>, vector<2x128xf32>
    tpu.vector_store %arg8[%c0_81, %c128_82], %163 {strides = array<i32>} : memref<2x256xf32, #tpu.memory_space<vmem>>, vector<2x128xf32>,
    %c0_83 = arith.constant 0 : index
    %c128_84 = arith.constant 128 : index
    %167 = vector.load %arg7[%c0_83, %c128_84] : memref<2x256xf32, #tpu.memory_space<vmem>>, vector<2x128xf32>
    tpu.vector_store %arg7[%c0_83, %c128_84], %165 {strides = array<i32>} : memref<2x256xf32, #tpu.memory_space<vmem>>, vector<2x128xf32>,
    %168 = arith.index_cast %c1_i32 : i32 to index
    %c0_85 = arith.constant 0 : index
    %c0_86 = arith.constant 0 : index
    %169 = vector.load %arg6[%168, %c0_85, %c0_86] : memref<9x2x128xf32, #tpu.memory_space<vmem>>, vector<1x2x128xf32>
    %170 = vector.shape_cast %169 : vector<1x2x128xf32> to vector<2x128xf32>
    %171 = vector.shape_cast %165 : vector<2x128xf32> to vector<1x2x128xf32>
    tpu.vector_store %arg6[%168, %c0_85, %c0_86], %171 {strides = array<i32>} : memref<9x2x128xf32, #tpu.memory_space<vmem>>, vector<1x2x128xf32>,
    %c2_i32 = arith.constant 2 : i32
    %172 = arith.index_cast %c2_i32 : i32 to index
    %c0_87 = arith.constant 0 : index
    %c0_88 = arith.constant 0 : index
    %173 = vector.load %arg2[%172, %c0_87, %c0_88] : memref<9x2x512xf32, #tpu.memory_space<vmem>>, vector<1x2x512xf32>
    %174 = vector.shape_cast %173 : vector<1x2x512xf32> to vector<2x512xf32>
    %c0_89 = arith.constant 0 : index
    %c0_90 = arith.constant 0 : index
    %175 = vector.load %arg7[%c0_89, %c0_90] : memref<2x256xf32, #tpu.memory_space<vmem>>, vector<2x128xf32>
    %cst_91 = arith.constant dense<0.000000e+00> : vector<2x512xf32>
    %176 = tpu.matmul %175, %3, %cst_91 {dimension_numbers = #tpu.dot_dimension_numbers<[1], [0], [0], [1], [0, 0, 1, 1], [], []>} : vector<2x128xf32>, vector<128x512xf32>, vector<2x512xf32> -> vector<2x512xf32>
    %177 = arith.addf %174, %176 : vector<2x512xf32>
    %178 = vector.extract_strided_slice %177 {offsets = [0, 0], sizes = [2, 128], strides = [1, 1]} : vector<2x512xf32> to vector<2x128xf32>
    %cst_92 = arith.constant 5.000000e-01 : f32
    %179 = vector.broadcast %cst_92 : f32 to vector<2x128xf32>
    %180 = arith.mulf %179, %178 : vector<2x128xf32>
    %181 = math.tanh %180 : vector<2x128xf32>
    %cst_93 = arith.constant 5.000000e-01 : f32
    %182 = vector.broadcast %cst_93 : f32 to vector<2x128xf32>
    %183 = arith.mulf %182, %181 : vector<2x128xf32>
    %cst_94 = arith.constant 5.000000e-01 : f32
    %184 = vector.broadcast %cst_94 : f32 to vector<2x128xf32>
    %185 = arith.addf %183, %184 : vector<2x128xf32>
    %186 = vector.extract_strided_slice %177 {offsets = [0, 128], sizes = [2, 128], strides = [1, 1]} : vector<2x512xf32> to vector<2x128xf32>
    %cst_95 = arith.constant 5.000000e-01 : f32
    %187 = vector.broadcast %cst_95 : f32 to vector<2x128xf32>
    %188 = arith.mulf %187, %186 : vector<2x128xf32>
    %189 = math.tanh %188 : vector<2x128xf32>
    %cst_96 = arith.constant 5.000000e-01 : f32
    %190 = vector.broadcast %cst_96 : f32 to vector<2x128xf32>
    %191 = arith.mulf %190, %189 : vector<2x128xf32>
    %cst_97 = arith.constant 5.000000e-01 : f32
    %192 = vector.broadcast %cst_97 : f32 to vector<2x128xf32>
    %193 = arith.addf %191, %192 : vector<2x128xf32>
    %194 = vector.extract_strided_slice %177 {offsets = [0, 256], sizes = [2, 128], strides = [1, 1]} : vector<2x512xf32> to vector<2x128xf32>
    %195 = math.tanh %194 : vector<2x128xf32>
    %196 = vector.extract_strided_slice %177 {offsets = [0, 384], sizes = [2, 128], strides = [1, 1]} : vector<2x512xf32> to vector<2x128xf32>
    %cst_98 = arith.constant 5.000000e-01 : f32
    %197 = vector.broadcast %cst_98 : f32 to vector<2x128xf32>
    %198 = arith.mulf %197, %196 : vector<2x128xf32>
    %199 = math.tanh %198 : vector<2x128xf32>
    %cst_99 = arith.constant 5.000000e-01 : f32
    %200 = vector.broadcast %cst_99 : f32 to vector<2x128xf32>
    %201 = arith.mulf %200, %199 : vector<2x128xf32>
    %cst_100 = arith.constant 5.000000e-01 : f32
    %202 = vector.broadcast %cst_100 : f32 to vector<2x128xf32>
    %203 = arith.addf %201, %202 : vector<2x128xf32>
    %c0_101 = arith.constant 0 : index
    %c0_102 = arith.constant 0 : index
    %204 = vector.load %arg8[%c0_101, %c0_102] : memref<2x256xf32, #tpu.memory_space<vmem>>, vector<2x128xf32>
    %205 = arith.mulf %193, %204 : vector<2x128xf32>
    %206 = arith.mulf %185, %195 : vector<2x128xf32>
    %207 = arith.addf %205, %206 : vector<2x128xf32>
    %208 = math.tanh %207 : vector<2x128xf32>
    %209 = arith.mulf %203, %208 : vector<2x128xf32>
    %c0_103 = arith.constant 0 : index
    %c0_104 = arith.constant 0 : index
    %210 = vector.load %arg8[%c0_103, %c0_104] : memref<2x256xf32, #tpu.memory_space<vmem>>, vector<2x128xf32>
    tpu.vector_store %arg8[%c0_103, %c0_104], %207 {strides = array<i32>} : memref<2x256xf32, #tpu.memory_space<vmem>>, vector<2x128xf32>,
    %c0_105 = arith.constant 0 : index
    %c0_106 = arith.constant 0 : index
    %211 = vector.load %arg7[%c0_105, %c0_106] : memref<2x256xf32, #tpu.memory_space<vmem>>, vector<2x128xf32>
    tpu.vector_store %arg7[%c0_105, %c0_106], %209 {strides = array<i32>} : memref<2x256xf32, #tpu.memory_space<vmem>>, vector<2x128xf32>,
    %c0_107 = arith.constant 0 : index
    %c0_108 = arith.constant 0 : index
    %212 = vector.load %arg7[%c0_107, %c0_108] : memref<2x256xf32, #tpu.memory_space<vmem>>, vector<2x256xf32>
    %cst_109 = arith.constant dense<0.000000e+00> : vector<2x512xf32>
    %213 = tpu.matmul %212, %5, %cst_109 {dimension_numbers = #tpu.dot_dimension_numbers<[1], [0], [0], [1], [0, 0, 1, 1], [], []>} : vector<2x256xf32>, vector<256x512xf32>, vector<2x512xf32> -> vector<2x512xf32>
    %214 = arith.addf %213, %9 : vector<2x512xf32>
    %215 = vector.extract_strided_slice %214 {offsets = [0, 0], sizes = [2, 128], strides = [1, 1]} : vector<2x512xf32> to vector<2x128xf32>
    %cst_110 = arith.constant 5.000000e-01 : f32
    %216 = vector.broadcast %cst_110 : f32 to vector<2x128xf32>
    %217 = arith.mulf %216, %215 : vector<2x128xf32>
    %218 = math.tanh %217 : vector<2x128xf32>
    %cst_111 = arith.constant 5.000000e-01 : f32
    %219 = vector.broadcast %cst_111 : f32 to vector<2x128xf32>
    %220 = arith.mulf %219, %218 : vector<2x128xf32>
    %cst_112 = arith.constant 5.000000e-01 : f32
    %221 = vector.broadcast %cst_112 : f32 to vector<2x128xf32>
    %222 = arith.addf %220, %221 : vector<2x128xf32>
    %223 = vector.extract_strided_slice %214 {offsets = [0, 128], sizes = [2, 128], strides = [1, 1]} : vector<2x512xf32> to vector<2x128xf32>
    %cst_113 = arith.constant 5.000000e-01 : f32
    %224 = vector.broadcast %cst_113 : f32 to vector<2x128xf32>
    %225 = arith.mulf %224, %223 : vector<2x128xf32>
    %226 = math.tanh %225 : vector<2x128xf32>
    %cst_114 = arith.constant 5.000000e-01 : f32
    %227 = vector.broadcast %cst_114 : f32 to vector<2x128xf32>
    %228 = arith.mulf %227, %226 : vector<2x128xf32>
    %cst_115 = arith.constant 5.000000e-01 : f32
    %229 = vector.broadcast %cst_115 : f32 to vector<2x128xf32>
    %230 = arith.addf %228, %229 : vector<2x128xf32>
    %231 = vector.extract_strided_slice %214 {offsets = [0, 256], sizes = [2, 128], strides = [1, 1]} : vector<2x512xf32> to vector<2x128xf32>
    %232 = math.tanh %231 : vector<2x128xf32>
    %233 = vector.extract_strided_slice %214 {offsets = [0, 384], sizes = [2, 128], strides = [1, 1]} : vector<2x512xf32> to vector<2x128xf32>
    %cst_116 = arith.constant 5.000000e-01 : f32
    %234 = vector.broadcast %cst_116 : f32 to vector<2x128xf32>
    %235 = arith.mulf %234, %233 : vector<2x128xf32>
    %236 = math.tanh %235 : vector<2x128xf32>
    %cst_117 = arith.constant 5.000000e-01 : f32
    %237 = vector.broadcast %cst_117 : f32 to vector<2x128xf32>
    %238 = arith.mulf %237, %236 : vector<2x128xf32>
    %cst_118 = arith.constant 5.000000e-01 : f32
    %239 = vector.broadcast %cst_118 : f32 to vector<2x128xf32>
    %240 = arith.addf %238, %239 : vector<2x128xf32>
    %c0_119 = arith.constant 0 : index
    %c128_120 = arith.constant 128 : index
    %241 = vector.load %arg8[%c0_119, %c128_120] : memref<2x256xf32, #tpu.memory_space<vmem>>, vector<2x128xf32>
    %242 = arith.mulf %230, %241 : vector<2x128xf32>
    %243 = arith.mulf %222, %232 : vector<2x128xf32>
    %244 = arith.addf %242, %243 : vector<2x128xf32>
    %245 = math.tanh %244 : vector<2x128xf32>
    %246 = arith.mulf %240, %245 : vector<2x128xf32>
    %c0_121 = arith.constant 0 : index
    %c128_122 = arith.constant 128 : index
    %247 = vector.load %arg8[%c0_121, %c128_122] : memref<2x256xf32, #tpu.memory_space<vmem>>, vector<2x128xf32>
    tpu.vector_store %arg8[%c0_121, %c128_122], %244 {strides = array<i32>} : memref<2x256xf32, #tpu.memory_space<vmem>>, vector<2x128xf32>,
    %c0_123 = arith.constant 0 : index
    %c128_124 = arith.constant 128 : index
    %248 = vector.load %arg7[%c0_123, %c128_124] : memref<2x256xf32, #tpu.memory_space<vmem>>, vector<2x128xf32>
    tpu.vector_store %arg7[%c0_123, %c128_124], %246 {strides = array<i32>} : memref<2x256xf32, #tpu.memory_space<vmem>>, vector<2x128xf32>,
    %249 = arith.index_cast %c2_i32 : i32 to index
    %c0_125 = arith.constant 0 : index
    %c0_126 = arith.constant 0 : index
    %250 = vector.load %arg6[%249, %c0_125, %c0_126] : memref<9x2x128xf32, #tpu.memory_space<vmem>>, vector<1x2x128xf32>
    %251 = vector.shape_cast %250 : vector<1x2x128xf32> to vector<2x128xf32>
    %252 = vector.shape_cast %246 : vector<2x128xf32> to vector<1x2x128xf32>
    tpu.vector_store %arg6[%249, %c0_125, %c0_126], %252 {strides = array<i32>} : memref<9x2x128xf32, #tpu.memory_space<vmem>>, vector<1x2x128xf32>,
    %c3_i32 = arith.constant 3 : i32
    %253 = arith.index_cast %c3_i32 : i32 to index
    %c0_127 = arith.constant 0 : index
    %c0_128 = arith.constant 0 : index
    %254 = vector.load %arg2[%253, %c0_127, %c0_128] : memref<9x2x512xf32, #tpu.memory_space<vmem>>, vector<1x2x512xf32>
    %255 = vector.shape_cast %254 : vector<1x2x512xf32> to vector<2x512xf32>
    %c0_129 = arith.constant 0 : index
    %c0_130 = arith.constant 0 : index
    %256 = vector.load %arg7[%c0_129, %c0_130] : memref<2x256xf32, #tpu.memory_space<vmem>>, vector<2x128xf32>
    %cst_131 = arith.constant dense<0.000000e+00> : vector<2x512xf32>
    %257 = tpu.matmul %256, %3, %cst_131 {dimension_numbers = #tpu.dot_dimension_numbers<[1], [0], [0], [1], [0, 0, 1, 1], [], []>} : vector<2x128xf32>, vector<128x512xf32>, vector<2x512xf32> -> vector<2x512xf32>
    %258 = arith.addf %255, %257 : vector<2x512xf32>
    %259 = vector.extract_strided_slice %258 {offsets = [0, 0], sizes = [2, 128], strides = [1, 1]} : vector<2x512xf32> to vector<2x128xf32>
    %cst_132 = arith.constant 5.000000e-01 : f32
    %260 = vector.broadcast %cst_132 : f32 to vector<2x128xf32>
    %261 = arith.mulf %260, %259 : vector<2x128xf32>
    %262 = math.tanh %261 : vector<2x128xf32>
    %cst_133 = arith.constant 5.000000e-01 : f32
    %263 = vector.broadcast %cst_133 : f32 to vector<2x128xf32>
    %264 = arith.mulf %263, %262 : vector<2x128xf32>
    %cst_134 = arith.constant 5.000000e-01 : f32
    %265 = vector.broadcast %cst_134 : f32 to vector<2x128xf32>
    %266 = arith.addf %264, %265 : vector<2x128xf32>
    %267 = vector.extract_strided_slice %258 {offsets = [0, 128], sizes = [2, 128], strides = [1, 1]} : vector<2x512xf32> to vector<2x128xf32>
    %cst_135 = arith.constant 5.000000e-01 : f32
    %268 = vector.broadcast %cst_135 : f32 to vector<2x128xf32>
    %269 = arith.mulf %268, %267 : vector<2x128xf32>
    %270 = math.tanh %269 : vector<2x128xf32>
    %cst_136 = arith.constant 5.000000e-01 : f32
    %271 = vector.broadcast %cst_136 : f32 to vector<2x128xf32>
    %272 = arith.mulf %271, %270 : vector<2x128xf32>
    %cst_137 = arith.constant 5.000000e-01 : f32
    %273 = vector.broadcast %cst_137 : f32 to vector<2x128xf32>
    %274 = arith.addf %272, %273 : vector<2x128xf32>
    %275 = vector.extract_strided_slice %258 {offsets = [0, 256], sizes = [2, 128], strides = [1, 1]} : vector<2x512xf32> to vector<2x128xf32>
    %276 = math.tanh %275 : vector<2x128xf32>
    %277 = vector.extract_strided_slice %258 {offsets = [0, 384], sizes = [2, 128], strides = [1, 1]} : vector<2x512xf32> to vector<2x128xf32>
    %cst_138 = arith.constant 5.000000e-01 : f32
    %278 = vector.broadcast %cst_138 : f32 to vector<2x128xf32>
    %279 = arith.mulf %278, %277 : vector<2x128xf32>
    %280 = math.tanh %279 : vector<2x128xf32>
    %cst_139 = arith.constant 5.000000e-01 : f32
    %281 = vector.broadcast %cst_139 : f32 to vector<2x128xf32>
    %282 = arith.mulf %281, %280 : vector<2x128xf32>
    %cst_140 = arith.constant 5.000000e-01 : f32
    %283 = vector.broadcast %cst_140 : f32 to vector<2x128xf32>
    %284 = arith.addf %282, %283 : vector<2x128xf32>
    %c0_141 = arith.constant 0 : index
    %c0_142 = arith.constant 0 : index
    %285 = vector.load %arg8[%c0_141, %c0_142] : memref<2x256xf32, #tpu.memory_space<vmem>>, vector<2x128xf32>
    %286 = arith.mulf %274, %285 : vector<2x128xf32>
    %287 = arith.mulf %266, %276 : vector<2x128xf32>
    %288 = arith.addf %286, %287 : vector<2x128xf32>
    %289 = math.tanh %288 : vector<2x128xf32>
    %290 = arith.mulf %284, %289 : vector<2x128xf32>
    %c0_143 = arith.constant 0 : index
    %c0_144 = arith.constant 0 : index
    %291 = vector.load %arg8[%c0_143, %c0_144] : memref<2x256xf32, #tpu.memory_space<vmem>>, vector<2x128xf32>
    tpu.vector_store %arg8[%c0_143, %c0_144], %288 {strides = array<i32>} : memref<2x256xf32, #tpu.memory_space<vmem>>, vector<2x128xf32>,
    %c0_145 = arith.constant 0 : index
    %c0_146 = arith.constant 0 : index
    %292 = vector.load %arg7[%c0_145, %c0_146] : memref<2x256xf32, #tpu.memory_space<vmem>>, vector<2x128xf32>
    tpu.vector_store %arg7[%c0_145, %c0_146], %290 {strides = array<i32>} : memref<2x256xf32, #tpu.memory_space<vmem>>, vector<2x128xf32>,
    %c0_147 = arith.constant 0 : index
    %c0_148 = arith.constant 0 : index
    %293 = vector.load %arg7[%c0_147, %c0_148] : memref<2x256xf32, #tpu.memory_space<vmem>>, vector<2x256xf32>
    %cst_149 = arith.constant dense<0.000000e+00> : vector<2x512xf32>
    %294 = tpu.matmul %293, %5, %cst_149 {dimension_numbers = #tpu.dot_dimension_numbers<[1], [0], [0], [1], [0, 0, 1, 1], [], []>} : vector<2x256xf32>, vector<256x512xf32>, vector<2x512xf32> -> vector<2x512xf32>
    %295 = arith.addf %294, %9 : vector<2x512xf32>
    %296 = vector.extract_strided_slice %295 {offsets = [0, 0], sizes = [2, 128], strides = [1, 1]} : vector<2x512xf32> to vector<2x128xf32>
    %cst_150 = arith.constant 5.000000e-01 : f32
    %297 = vector.broadcast %cst_150 : f32 to vector<2x128xf32>
    %298 = arith.mulf %297, %296 : vector<2x128xf32>
    %299 = math.tanh %298 : vector<2x128xf32>
    %cst_151 = arith.constant 5.000000e-01 : f32
    %300 = vector.broadcast %cst_151 : f32 to vector<2x128xf32>
    %301 = arith.mulf %300, %299 : vector<2x128xf32>
    %cst_152 = arith.constant 5.000000e-01 : f32
    %302 = vector.broadcast %cst_152 : f32 to vector<2x128xf32>
    %303 = arith.addf %301, %302 : vector<2x128xf32>
    %304 = vector.extract_strided_slice %295 {offsets = [0, 128], sizes = [2, 128], strides = [1, 1]} : vector<2x512xf32> to vector<2x128xf32>
    %cst_153 = arith.constant 5.000000e-01 : f32
    %305 = vector.broadcast %cst_153 : f32 to vector<2x128xf32>
    %306 = arith.mulf %305, %304 : vector<2x128xf32>
    %307 = math.tanh %306 : vector<2x128xf32>
    %cst_154 = arith.constant 5.000000e-01 : f32
    %308 = vector.broadcast %cst_154 : f32 to vector<2x128xf32>
    %309 = arith.mulf %308, %307 : vector<2x128xf32>
    %cst_155 = arith.constant 5.000000e-01 : f32
    %310 = vector.broadcast %cst_155 : f32 to vector<2x128xf32>
    %311 = arith.addf %309, %310 : vector<2x128xf32>
    %312 = vector.extract_strided_slice %295 {offsets = [0, 256], sizes = [2, 128], strides = [1, 1]} : vector<2x512xf32> to vector<2x128xf32>
    %313 = math.tanh %312 : vector<2x128xf32>
    %314 = vector.extract_strided_slice %295 {offsets = [0, 384], sizes = [2, 128], strides = [1, 1]} : vector<2x512xf32> to vector<2x128xf32>
    %cst_156 = arith.constant 5.000000e-01 : f32
    %315 = vector.broadcast %cst_156 : f32 to vector<2x128xf32>
    %316 = arith.mulf %315, %314 : vector<2x128xf32>
    %317 = math.tanh %316 : vector<2x128xf32>
    %cst_157 = arith.constant 5.000000e-01 : f32
    %318 = vector.broadcast %cst_157 : f32 to vector<2x128xf32>
    %319 = arith.mulf %318, %317 : vector<2x128xf32>
    %cst_158 = arith.constant 5.000000e-01 : f32
    %320 = vector.broadcast %cst_158 : f32 to vector<2x128xf32>
    %321 = arith.addf %319, %320 : vector<2x128xf32>
    %c0_159 = arith.constant 0 : index
    %c128_160 = arith.constant 128 : index
    %322 = vector.load %arg8[%c0_159, %c128_160] : memref<2x256xf32, #tpu.memory_space<vmem>>, vector<2x128xf32>
    %323 = arith.mulf %311, %322 : vector<2x128xf32>
    %324 = arith.mulf %303, %313 : vector<2x128xf32>
    %325 = arith.addf %323, %324 : vector<2x128xf32>
    %326 = math.tanh %325 : vector<2x128xf32>
    %327 = arith.mulf %321, %326 : vector<2x128xf32>
    %c0_161 = arith.constant 0 : index
    %c128_162 = arith.constant 128 : index
    %328 = vector.load %arg8[%c0_161, %c128_162] : memref<2x256xf32, #tpu.memory_space<vmem>>, vector<2x128xf32>
    tpu.vector_store %arg8[%c0_161, %c128_162], %325 {strides = array<i32>} : memref<2x256xf32, #tpu.memory_space<vmem>>, vector<2x128xf32>,
    %c0_163 = arith.constant 0 : index
    %c128_164 = arith.constant 128 : index
    %329 = vector.load %arg7[%c0_163, %c128_164] : memref<2x256xf32, #tpu.memory_space<vmem>>, vector<2x128xf32>
    tpu.vector_store %arg7[%c0_163, %c128_164], %327 {strides = array<i32>} : memref<2x256xf32, #tpu.memory_space<vmem>>, vector<2x128xf32>,
    %330 = arith.index_cast %c3_i32 : i32 to index
    %c0_165 = arith.constant 0 : index
    %c0_166 = arith.constant 0 : index
    %331 = vector.load %arg6[%330, %c0_165, %c0_166] : memref<9x2x128xf32, #tpu.memory_space<vmem>>, vector<1x2x128xf32>
    %332 = vector.shape_cast %331 : vector<1x2x128xf32> to vector<2x128xf32>
    %333 = vector.shape_cast %327 : vector<2x128xf32> to vector<1x2x128xf32>
    tpu.vector_store %arg6[%330, %c0_165, %c0_166], %333 {strides = array<i32>} : memref<9x2x128xf32, #tpu.memory_space<vmem>>, vector<1x2x128xf32>,
    %c4_i32 = arith.constant 4 : i32
    %334 = arith.index_cast %c4_i32 : i32 to index
    %c0_167 = arith.constant 0 : index
    %c0_168 = arith.constant 0 : index
    %335 = vector.load %arg2[%334, %c0_167, %c0_168] : memref<9x2x512xf32, #tpu.memory_space<vmem>>, vector<1x2x512xf32>
    %336 = vector.shape_cast %335 : vector<1x2x512xf32> to vector<2x512xf32>
    %c0_169 = arith.constant 0 : index
    %c0_170 = arith.constant 0 : index
    %337 = vector.load %arg7[%c0_169, %c0_170] : memref<2x256xf32, #tpu.memory_space<vmem>>, vector<2x128xf32>
    %cst_171 = arith.constant dense<0.000000e+00> : vector<2x512xf32>
    %338 = tpu.matmul %337, %3, %cst_171 {dimension_numbers = #tpu.dot_dimension_numbers<[1], [0], [0], [1], [0, 0, 1, 1], [], []>} : vector<2x128xf32>, vector<128x512xf32>, vector<2x512xf32> -> vector<2x512xf32>
    %339 = arith.addf %336, %338 : vector<2x512xf32>
    %340 = vector.extract_strided_slice %339 {offsets = [0, 0], sizes = [2, 128], strides = [1, 1]} : vector<2x512xf32> to vector<2x128xf32>
    %cst_172 = arith.constant 5.000000e-01 : f32
    %341 = vector.broadcast %cst_172 : f32 to vector<2x128xf32>
    %342 = arith.mulf %341, %340 : vector<2x128xf32>
    %343 = math.tanh %342 : vector<2x128xf32>
    %cst_173 = arith.constant 5.000000e-01 : f32
    %344 = vector.broadcast %cst_173 : f32 to vector<2x128xf32>
    %345 = arith.mulf %344, %343 : vector<2x128xf32>
    %cst_174 = arith.constant 5.000000e-01 : f32
    %346 = vector.broadcast %cst_174 : f32 to vector<2x128xf32>
    %347 = arith.addf %345, %346 : vector<2x128xf32>
    %348 = vector.extract_strided_slice %339 {offsets = [0, 128], sizes = [2, 128], strides = [1, 1]} : vector<2x512xf32> to vector<2x128xf32>
    %cst_175 = arith.constant 5.000000e-01 : f32
    %349 = vector.broadcast %cst_175 : f32 to vector<2x128xf32>
    %350 = arith.mulf %349, %348 : vector<2x128xf32>
    %351 = math.tanh %350 : vector<2x128xf32>
    %cst_176 = arith.constant 5.000000e-01 : f32
    %352 = vector.broadcast %cst_176 : f32 to vector<2x128xf32>
    %353 = arith.mulf %352, %351 : vector<2x128xf32>
    %cst_177 = arith.constant 5.000000e-01 : f32
    %354 = vector.broadcast %cst_177 : f32 to vector<2x128xf32>
    %355 = arith.addf %353, %354 : vector<2x128xf32>
    %356 = vector.extract_strided_slice %339 {offsets = [0, 256], sizes = [2, 128], strides = [1, 1]} : vector<2x512xf32> to vector<2x128xf32>
    %357 = math.tanh %356 : vector<2x128xf32>
    %358 = vector.extract_strided_slice %339 {offsets = [0, 384], sizes = [2, 128], strides = [1, 1]} : vector<2x512xf32> to vector<2x128xf32>
    %cst_178 = arith.constant 5.000000e-01 : f32
    %359 = vector.broadcast %cst_178 : f32 to vector<2x128xf32>
    %360 = arith.mulf %359, %358 : vector<2x128xf32>
    %361 = math.tanh %360 : vector<2x128xf32>
    %cst_179 = arith.constant 5.000000e-01 : f32
    %362 = vector.broadcast %cst_179 : f32 to vector<2x128xf32>
    %363 = arith.mulf %362, %361 : vector<2x128xf32>
    %cst_180 = arith.constant 5.000000e-01 : f32
    %364 = vector.broadcast %cst_180 : f32 to vector<2x128xf32>
    %365 = arith.addf %363, %364 : vector<2x128xf32>
    %c0_181 = arith.constant 0 : index
    %c0_182 = arith.constant 0 : index
    %366 = vector.load %arg8[%c0_181, %c0_182] : memref<2x256xf32, #tpu.memory_space<vmem>>, vector<2x128xf32>
    %367 = arith.mulf %355, %366 : vector<2x128xf32>
    %368 = arith.mulf %347, %357 : vector<2x128xf32>
    %369 = arith.addf %367, %368 : vector<2x128xf32>
    %370 = math.tanh %369 : vector<2x128xf32>
    %371 = arith.mulf %365, %370 : vector<2x128xf32>
    %c0_183 = arith.constant 0 : index
    %c0_184 = arith.constant 0 : index
    %372 = vector.load %arg8[%c0_183, %c0_184] : memref<2x256xf32, #tpu.memory_space<vmem>>, vector<2x128xf32>
    tpu.vector_store %arg8[%c0_183, %c0_184], %369 {strides = array<i32>} : memref<2x256xf32, #tpu.memory_space<vmem>>, vector<2x128xf32>,
    %c0_185 = arith.constant 0 : index
    %c0_186 = arith.constant 0 : index
    %373 = vector.load %arg7[%c0_185, %c0_186] : memref<2x256xf32, #tpu.memory_space<vmem>>, vector<2x128xf32>
    tpu.vector_store %arg7[%c0_185, %c0_186], %371 {strides = array<i32>} : memref<2x256xf32, #tpu.memory_space<vmem>>, vector<2x128xf32>,
    %c0_187 = arith.constant 0 : index
    %c0_188 = arith.constant 0 : index
    %374 = vector.load %arg7[%c0_187, %c0_188] : memref<2x256xf32, #tpu.memory_space<vmem>>, vector<2x256xf32>
    %cst_189 = arith.constant dense<0.000000e+00> : vector<2x512xf32>
    %375 = tpu.matmul %374, %5, %cst_189 {dimension_numbers = #tpu.dot_dimension_numbers<[1], [0], [0], [1], [0, 0, 1, 1], [], []>} : vector<2x256xf32>, vector<256x512xf32>, vector<2x512xf32> -> vector<2x512xf32>
    %376 = arith.addf %375, %9 : vector<2x512xf32>
    %377 = vector.extract_strided_slice %376 {offsets = [0, 0], sizes = [2, 128], strides = [1, 1]} : vector<2x512xf32> to vector<2x128xf32>
    %cst_190 = arith.constant 5.000000e-01 : f32
    %378 = vector.broadcast %cst_190 : f32 to vector<2x128xf32>
    %379 = arith.mulf %378, %377 : vector<2x128xf32>
    %380 = math.tanh %379 : vector<2x128xf32>
    %cst_191 = arith.constant 5.000000e-01 : f32
    %381 = vector.broadcast %cst_191 : f32 to vector<2x128xf32>
    %382 = arith.mulf %381, %380 : vector<2x128xf32>
    %cst_192 = arith.constant 5.000000e-01 : f32
    %383 = vector.broadcast %cst_192 : f32 to vector<2x128xf32>
    %384 = arith.addf %382, %383 : vector<2x128xf32>
    %385 = vector.extract_strided_slice %376 {offsets = [0, 128], sizes = [2, 128], strides = [1, 1]} : vector<2x512xf32> to vector<2x128xf32>
    %cst_193 = arith.constant 5.000000e-01 : f32
    %386 = vector.broadcast %cst_193 : f32 to vector<2x128xf32>
    %387 = arith.mulf %386, %385 : vector<2x128xf32>
    %388 = math.tanh %387 : vector<2x128xf32>
    %cst_194 = arith.constant 5.000000e-01 : f32
    %389 = vector.broadcast %cst_194 : f32 to vector<2x128xf32>
    %390 = arith.mulf %389, %388 : vector<2x128xf32>
    %cst_195 = arith.constant 5.000000e-01 : f32
    %391 = vector.broadcast %cst_195 : f32 to vector<2x128xf32>
    %392 = arith.addf %390, %391 : vector<2x128xf32>
    %393 = vector.extract_strided_slice %376 {offsets = [0, 256], sizes = [2, 128], strides = [1, 1]} : vector<2x512xf32> to vector<2x128xf32>
    %394 = math.tanh %393 : vector<2x128xf32>
    %395 = vector.extract_strided_slice %376 {offsets = [0, 384], sizes = [2, 128], strides = [1, 1]} : vector<2x512xf32> to vector<2x128xf32>
    %cst_196 = arith.constant 5.000000e-01 : f32
    %396 = vector.broadcast %cst_196 : f32 to vector<2x128xf32>
    %397 = arith.mulf %396, %395 : vector<2x128xf32>
    %398 = math.tanh %397 : vector<2x128xf32>
    %cst_197 = arith.constant 5.000000e-01 : f32
    %399 = vector.broadcast %cst_197 : f32 to vector<2x128xf32>
    %400 = arith.mulf %399, %398 : vector<2x128xf32>
    %cst_198 = arith.constant 5.000000e-01 : f32
    %401 = vector.broadcast %cst_198 : f32 to vector<2x128xf32>
    %402 = arith.addf %400, %401 : vector<2x128xf32>
    %c0_199 = arith.constant 0 : index
    %c128_200 = arith.constant 128 : index
    %403 = vector.load %arg8[%c0_199, %c128_200] : memref<2x256xf32, #tpu.memory_space<vmem>>, vector<2x128xf32>
    %404 = arith.mulf %392, %403 : vector<2x128xf32>
    %405 = arith.mulf %384, %394 : vector<2x128xf32>
    %406 = arith.addf %404, %405 : vector<2x128xf32>
    %407 = math.tanh %406 : vector<2x128xf32>
    %408 = arith.mulf %402, %407 : vector<2x128xf32>
    %c0_201 = arith.constant 0 : index
    %c128_202 = arith.constant 128 : index
    %409 = vector.load %arg8[%c0_201, %c128_202] : memref<2x256xf32, #tpu.memory_space<vmem>>, vector<2x128xf32>
    tpu.vector_store %arg8[%c0_201, %c128_202], %406 {strides = array<i32>} : memref<2x256xf32, #tpu.memory_space<vmem>>, vector<2x128xf32>,
    %c0_203 = arith.constant 0 : index
    %c128_204 = arith.constant 128 : index
    %410 = vector.load %arg7[%c0_203, %c128_204] : memref<2x256xf32, #tpu.memory_space<vmem>>, vector<2x128xf32>
    tpu.vector_store %arg7[%c0_203, %c128_204], %408 {strides = array<i32>} : memref<2x256xf32, #tpu.memory_space<vmem>>, vector<2x128xf32>,
    %411 = arith.index_cast %c4_i32 : i32 to index
    %c0_205 = arith.constant 0 : index
    %c0_206 = arith.constant 0 : index
    %412 = vector.load %arg6[%411, %c0_205, %c0_206] : memref<9x2x128xf32, #tpu.memory_space<vmem>>, vector<1x2x128xf32>
    %413 = vector.shape_cast %412 : vector<1x2x128xf32> to vector<2x128xf32>
    %414 = vector.shape_cast %408 : vector<2x128xf32> to vector<1x2x128xf32>
    tpu.vector_store %arg6[%411, %c0_205, %c0_206], %414 {strides = array<i32>} : memref<9x2x128xf32, #tpu.memory_space<vmem>>, vector<1x2x128xf32>,
    %c5_i32 = arith.constant 5 : i32
    %415 = arith.index_cast %c5_i32 : i32 to index
    %c0_207 = arith.constant 0 : index
    %c0_208 = arith.constant 0 : index
    %416 = vector.load %arg2[%415, %c0_207, %c0_208] : memref<9x2x512xf32, #tpu.memory_space<vmem>>, vector<1x2x512xf32>
    %417 = vector.shape_cast %416 : vector<1x2x512xf32> to vector<2x512xf32>
    %c0_209 = arith.constant 0 : index
    %c0_210 = arith.constant 0 : index
    %418 = vector.load %arg7[%c0_209, %c0_210] : memref<2x256xf32, #tpu.memory_space<vmem>>, vector<2x128xf32>
    %cst_211 = arith.constant dense<0.000000e+00> : vector<2x512xf32>
    %419 = tpu.matmul %418, %3, %cst_211 {dimension_numbers = #tpu.dot_dimension_numbers<[1], [0], [0], [1], [0, 0, 1, 1], [], []>} : vector<2x128xf32>, vector<128x512xf32>, vector<2x512xf32> -> vector<2x512xf32>
    %420 = arith.addf %417, %419 : vector<2x512xf32>
    %421 = vector.extract_strided_slice %420 {offsets = [0, 0], sizes = [2, 128], strides = [1, 1]} : vector<2x512xf32> to vector<2x128xf32>
    %cst_212 = arith.constant 5.000000e-01 : f32
    %422 = vector.broadcast %cst_212 : f32 to vector<2x128xf32>
    %423 = arith.mulf %422, %421 : vector<2x128xf32>
    %424 = math.tanh %423 : vector<2x128xf32>
    %cst_213 = arith.constant 5.000000e-01 : f32
    %425 = vector.broadcast %cst_213 : f32 to vector<2x128xf32>
    %426 = arith.mulf %425, %424 : vector<2x128xf32>
    %cst_214 = arith.constant 5.000000e-01 : f32
    %427 = vector.broadcast %cst_214 : f32 to vector<2x128xf32>
    %428 = arith.addf %426, %427 : vector<2x128xf32>
    %429 = vector.extract_strided_slice %420 {offsets = [0, 128], sizes = [2, 128], strides = [1, 1]} : vector<2x512xf32> to vector<2x128xf32>
    %cst_215 = arith.constant 5.000000e-01 : f32
    %430 = vector.broadcast %cst_215 : f32 to vector<2x128xf32>
    %431 = arith.mulf %430, %429 : vector<2x128xf32>
    %432 = math.tanh %431 : vector<2x128xf32>
    %cst_216 = arith.constant 5.000000e-01 : f32
    %433 = vector.broadcast %cst_216 : f32 to vector<2x128xf32>
    %434 = arith.mulf %433, %432 : vector<2x128xf32>
    %cst_217 = arith.constant 5.000000e-01 : f32
    %435 = vector.broadcast %cst_217 : f32 to vector<2x128xf32>
    %436 = arith.addf %434, %435 : vector<2x128xf32>
    %437 = vector.extract_strided_slice %420 {offsets = [0, 256], sizes = [2, 128], strides = [1, 1]} : vector<2x512xf32> to vector<2x128xf32>
    %438 = math.tanh %437 : vector<2x128xf32>
    %439 = vector.extract_strided_slice %420 {offsets = [0, 384], sizes = [2, 128], strides = [1, 1]} : vector<2x512xf32> to vector<2x128xf32>
    %cst_218 = arith.constant 5.000000e-01 : f32
    %440 = vector.broadcast %cst_218 : f32 to vector<2x128xf32>
    %441 = arith.mulf %440, %439 : vector<2x128xf32>
    %442 = math.tanh %441 : vector<2x128xf32>
    %cst_219 = arith.constant 5.000000e-01 : f32
    %443 = vector.broadcast %cst_219 : f32 to vector<2x128xf32>
    %444 = arith.mulf %443, %442 : vector<2x128xf32>
    %cst_220 = arith.constant 5.000000e-01 : f32
    %445 = vector.broadcast %cst_220 : f32 to vector<2x128xf32>
    %446 = arith.addf %444, %445 : vector<2x128xf32>
    %c0_221 = arith.constant 0 : index
    %c0_222 = arith.constant 0 : index
    %447 = vector.load %arg8[%c0_221, %c0_222] : memref<2x256xf32, #tpu.memory_space<vmem>>, vector<2x128xf32>
    %448 = arith.mulf %436, %447 : vector<2x128xf32>
    %449 = arith.mulf %428, %438 : vector<2x128xf32>
    %450 = arith.addf %448, %449 : vector<2x128xf32>
    %451 = math.tanh %450 : vector<2x128xf32>
    %452 = arith.mulf %446, %451 : vector<2x128xf32>
    %c0_223 = arith.constant 0 : index
    %c0_224 = arith.constant 0 : index
    %453 = vector.load %arg8[%c0_223, %c0_224] : memref<2x256xf32, #tpu.memory_space<vmem>>, vector<2x128xf32>
    tpu.vector_store %arg8[%c0_223, %c0_224], %450 {strides = array<i32>} : memref<2x256xf32, #tpu.memory_space<vmem>>, vector<2x128xf32>,
    %c0_225 = arith.constant 0 : index
    %c0_226 = arith.constant 0 : index
    %454 = vector.load %arg7[%c0_225, %c0_226] : memref<2x256xf32, #tpu.memory_space<vmem>>, vector<2x128xf32>
    tpu.vector_store %arg7[%c0_225, %c0_226], %452 {strides = array<i32>} : memref<2x256xf32, #tpu.memory_space<vmem>>, vector<2x128xf32>,
    %c0_227 = arith.constant 0 : index
    %c0_228 = arith.constant 0 : index
    %455 = vector.load %arg7[%c0_227, %c0_228] : memref<2x256xf32, #tpu.memory_space<vmem>>, vector<2x256xf32>
    %cst_229 = arith.constant dense<0.000000e+00> : vector<2x512xf32>
    %456 = tpu.matmul %455, %5, %cst_229 {dimension_numbers = #tpu.dot_dimension_numbers<[1], [0], [0], [1], [0, 0, 1, 1], [], []>} : vector<2x256xf32>, vector<256x512xf32>, vector<2x512xf32> -> vector<2x512xf32>
    %457 = arith.addf %456, %9 : vector<2x512xf32>
    %458 = vector.extract_strided_slice %457 {offsets = [0, 0], sizes = [2, 128], strides = [1, 1]} : vector<2x512xf32> to vector<2x128xf32>
    %cst_230 = arith.constant 5.000000e-01 : f32
    %459 = vector.broadcast %cst_230 : f32 to vector<2x128xf32>
    %460 = arith.mulf %459, %458 : vector<2x128xf32>
    %461 = math.tanh %460 : vector<2x128xf32>
    %cst_231 = arith.constant 5.000000e-01 : f32
    %462 = vector.broadcast %cst_231 : f32 to vector<2x128xf32>
    %463 = arith.mulf %462, %461 : vector<2x128xf32>
    %cst_232 = arith.constant 5.000000e-01 : f32
    %464 = vector.broadcast %cst_232 : f32 to vector<2x128xf32>
    %465 = arith.addf %463, %464 : vector<2x128xf32>
    %466 = vector.extract_strided_slice %457 {offsets = [0, 128], sizes = [2, 128], strides = [1, 1]} : vector<2x512xf32> to vector<2x128xf32>
    %cst_233 = arith.constant 5.000000e-01 : f32
    %467 = vector.broadcast %cst_233 : f32 to vector<2x128xf32>
    %468 = arith.mulf %467, %466 : vector<2x128xf32>
    %469 = math.tanh %468 : vector<2x128xf32>
    %cst_234 = arith.constant 5.000000e-01 : f32
    %470 = vector.broadcast %cst_234 : f32 to vector<2x128xf32>
    %471 = arith.mulf %470, %469 : vector<2x128xf32>
    %cst_235 = arith.constant 5.000000e-01 : f32
    %472 = vector.broadcast %cst_235 : f32 to vector<2x128xf32>
    %473 = arith.addf %471, %472 : vector<2x128xf32>
    %474 = vector.extract_strided_slice %457 {offsets = [0, 256], sizes = [2, 128], strides = [1, 1]} : vector<2x512xf32> to vector<2x128xf32>
    %475 = math.tanh %474 : vector<2x128xf32>
    %476 = vector.extract_strided_slice %457 {offsets = [0, 384], sizes = [2, 128], strides = [1, 1]} : vector<2x512xf32> to vector<2x128xf32>
    %cst_236 = arith.constant 5.000000e-01 : f32
    %477 = vector.broadcast %cst_236 : f32 to vector<2x128xf32>
    %478 = arith.mulf %477, %476 : vector<2x128xf32>
    %479 = math.tanh %478 : vector<2x128xf32>
    %cst_237 = arith.constant 5.000000e-01 : f32
    %480 = vector.broadcast %cst_237 : f32 to vector<2x128xf32>
    %481 = arith.mulf %480, %479 : vector<2x128xf32>
    %cst_238 = arith.constant 5.000000e-01 : f32
    %482 = vector.broadcast %cst_238 : f32 to vector<2x128xf32>
    %483 = arith.addf %481, %482 : vector<2x128xf32>
    %c0_239 = arith.constant 0 : index
    %c128_240 = arith.constant 128 : index
    %484 = vector.load %arg8[%c0_239, %c128_240] : memref<2x256xf32, #tpu.memory_space<vmem>>, vector<2x128xf32>
    %485 = arith.mulf %473, %484 : vector<2x128xf32>
    %486 = arith.mulf %465, %475 : vector<2x128xf32>
    %487 = arith.addf %485, %486 : vector<2x128xf32>
    %488 = math.tanh %487 : vector<2x128xf32>
    %489 = arith.mulf %483, %488 : vector<2x128xf32>
    %c0_241 = arith.constant 0 : index
    %c128_242 = arith.constant 128 : index
    %490 = vector.load %arg8[%c0_241, %c128_242] : memref<2x256xf32, #tpu.memory_space<vmem>>, vector<2x128xf32>
    tpu.vector_store %arg8[%c0_241, %c128_242], %487 {strides = array<i32>} : memref<2x256xf32, #tpu.memory_space<vmem>>, vector<2x128xf32>,
    %c0_243 = arith.constant 0 : index
    %c128_244 = arith.constant 128 : index
    %491 = vector.load %arg7[%c0_243, %c128_244] : memref<2x256xf32, #tpu.memory_space<vmem>>, vector<2x128xf32>
    tpu.vector_store %arg7[%c0_243, %c128_244], %489 {strides = array<i32>} : memref<2x256xf32, #tpu.memory_space<vmem>>, vector<2x128xf32>,
    %492 = arith.index_cast %c5_i32 : i32 to index
    %c0_245 = arith.constant 0 : index
    %c0_246 = arith.constant 0 : index
    %493 = vector.load %arg6[%492, %c0_245, %c0_246] : memref<9x2x128xf32, #tpu.memory_space<vmem>>, vector<1x2x128xf32>
    %494 = vector.shape_cast %493 : vector<1x2x128xf32> to vector<2x128xf32>
    %495 = vector.shape_cast %489 : vector<2x128xf32> to vector<1x2x128xf32>
    tpu.vector_store %arg6[%492, %c0_245, %c0_246], %495 {strides = array<i32>} : memref<9x2x128xf32, #tpu.memory_space<vmem>>, vector<1x2x128xf32>,
    %c6_i32 = arith.constant 6 : i32
    %496 = arith.index_cast %c6_i32 : i32 to index
    %c0_247 = arith.constant 0 : index
    %c0_248 = arith.constant 0 : index
    %497 = vector.load %arg2[%496, %c0_247, %c0_248] : memref<9x2x512xf32, #tpu.memory_space<vmem>>, vector<1x2x512xf32>
    %498 = vector.shape_cast %497 : vector<1x2x512xf32> to vector<2x512xf32>
    %c0_249 = arith.constant 0 : index
    %c0_250 = arith.constant 0 : index
    %499 = vector.load %arg7[%c0_249, %c0_250] : memref<2x256xf32, #tpu.memory_space<vmem>>, vector<2x128xf32>
    %cst_251 = arith.constant dense<0.000000e+00> : vector<2x512xf32>
    %500 = tpu.matmul %499, %3, %cst_251 {dimension_numbers = #tpu.dot_dimension_numbers<[1], [0], [0], [1], [0, 0, 1, 1], [], []>} : vector<2x128xf32>, vector<128x512xf32>, vector<2x512xf32> -> vector<2x512xf32>
    %501 = arith.addf %498, %500 : vector<2x512xf32>
    %502 = vector.extract_strided_slice %501 {offsets = [0, 0], sizes = [2, 128], strides = [1, 1]} : vector<2x512xf32> to vector<2x128xf32>
    %cst_252 = arith.constant 5.000000e-01 : f32
    %503 = vector.broadcast %cst_252 : f32 to vector<2x128xf32>
    %504 = arith.mulf %503, %502 : vector<2x128xf32>
    %505 = math.tanh %504 : vector<2x128xf32>
    %cst_253 = arith.constant 5.000000e-01 : f32
    %506 = vector.broadcast %cst_253 : f32 to vector<2x128xf32>
    %507 = arith.mulf %506, %505 : vector<2x128xf32>
    %cst_254 = arith.constant 5.000000e-01 : f32
    %508 = vector.broadcast %cst_254 : f32 to vector<2x128xf32>
    %509 = arith.addf %507, %508 : vector<2x128xf32>
    %510 = vector.extract_strided_slice %501 {offsets = [0, 128], sizes = [2, 128], strides = [1, 1]} : vector<2x512xf32> to vector<2x128xf32>
    %cst_255 = arith.constant 5.000000e-01 : f32
    %511 = vector.broadcast %cst_255 : f32 to vector<2x128xf32>
    %512 = arith.mulf %511, %510 : vector<2x128xf32>
    %513 = math.tanh %512 : vector<2x128xf32>
    %cst_256 = arith.constant 5.000000e-01 : f32
    %514 = vector.broadcast %cst_256 : f32 to vector<2x128xf32>
    %515 = arith.mulf %514, %513 : vector<2x128xf32>
    %cst_257 = arith.constant 5.000000e-01 : f32
    %516 = vector.broadcast %cst_257 : f32 to vector<2x128xf32>
    %517 = arith.addf %515, %516 : vector<2x128xf32>
    %518 = vector.extract_strided_slice %501 {offsets = [0, 256], sizes = [2, 128], strides = [1, 1]} : vector<2x512xf32> to vector<2x128xf32>
    %519 = math.tanh %518 : vector<2x128xf32>
    %520 = vector.extract_strided_slice %501 {offsets = [0, 384], sizes = [2, 128], strides = [1, 1]} : vector<2x512xf32> to vector<2x128xf32>
    %cst_258 = arith.constant 5.000000e-01 : f32
    %521 = vector.broadcast %cst_258 : f32 to vector<2x128xf32>
    %522 = arith.mulf %521, %520 : vector<2x128xf32>
    %523 = math.tanh %522 : vector<2x128xf32>
    %cst_259 = arith.constant 5.000000e-01 : f32
    %524 = vector.broadcast %cst_259 : f32 to vector<2x128xf32>
    %525 = arith.mulf %524, %523 : vector<2x128xf32>
    %cst_260 = arith.constant 5.000000e-01 : f32
    %526 = vector.broadcast %cst_260 : f32 to vector<2x128xf32>
    %527 = arith.addf %525, %526 : vector<2x128xf32>
    %c0_261 = arith.constant 0 : index
    %c0_262 = arith.constant 0 : index
    %528 = vector.load %arg8[%c0_261, %c0_262] : memref<2x256xf32, #tpu.memory_space<vmem>>, vector<2x128xf32>
    %529 = arith.mulf %517, %528 : vector<2x128xf32>
    %530 = arith.mulf %509, %519 : vector<2x128xf32>
    %531 = arith.addf %529, %530 : vector<2x128xf32>
    %532 = math.tanh %531 : vector<2x128xf32>
    %533 = arith.mulf %527, %532 : vector<2x128xf32>
    %c0_263 = arith.constant 0 : index
    %c0_264 = arith.constant 0 : index
    %534 = vector.load %arg8[%c0_263, %c0_264] : memref<2x256xf32, #tpu.memory_space<vmem>>, vector<2x128xf32>
    tpu.vector_store %arg8[%c0_263, %c0_264], %531 {strides = array<i32>} : memref<2x256xf32, #tpu.memory_space<vmem>>, vector<2x128xf32>,
    %c0_265 = arith.constant 0 : index
    %c0_266 = arith.constant 0 : index
    %535 = vector.load %arg7[%c0_265, %c0_266] : memref<2x256xf32, #tpu.memory_space<vmem>>, vector<2x128xf32>
    tpu.vector_store %arg7[%c0_265, %c0_266], %533 {strides = array<i32>} : memref<2x256xf32, #tpu.memory_space<vmem>>, vector<2x128xf32>,
    %c0_267 = arith.constant 0 : index
    %c0_268 = arith.constant 0 : index
    %536 = vector.load %arg7[%c0_267, %c0_268] : memref<2x256xf32, #tpu.memory_space<vmem>>, vector<2x256xf32>
    %cst_269 = arith.constant dense<0.000000e+00> : vector<2x512xf32>
    %537 = tpu.matmul %536, %5, %cst_269 {dimension_numbers = #tpu.dot_dimension_numbers<[1], [0], [0], [1], [0, 0, 1, 1], [], []>} : vector<2x256xf32>, vector<256x512xf32>, vector<2x512xf32> -> vector<2x512xf32>
    %538 = arith.addf %537, %9 : vector<2x512xf32>
    %539 = vector.extract_strided_slice %538 {offsets = [0, 0], sizes = [2, 128], strides = [1, 1]} : vector<2x512xf32> to vector<2x128xf32>
    %cst_270 = arith.constant 5.000000e-01 : f32
    %540 = vector.broadcast %cst_270 : f32 to vector<2x128xf32>
    %541 = arith.mulf %540, %539 : vector<2x128xf32>
    %542 = math.tanh %541 : vector<2x128xf32>
    %cst_271 = arith.constant 5.000000e-01 : f32
    %543 = vector.broadcast %cst_271 : f32 to vector<2x128xf32>
    %544 = arith.mulf %543, %542 : vector<2x128xf32>
    %cst_272 = arith.constant 5.000000e-01 : f32
    %545 = vector.broadcast %cst_272 : f32 to vector<2x128xf32>
    %546 = arith.addf %544, %545 : vector<2x128xf32>
    %547 = vector.extract_strided_slice %538 {offsets = [0, 128], sizes = [2, 128], strides = [1, 1]} : vector<2x512xf32> to vector<2x128xf32>
    %cst_273 = arith.constant 5.000000e-01 : f32
    %548 = vector.broadcast %cst_273 : f32 to vector<2x128xf32>
    %549 = arith.mulf %548, %547 : vector<2x128xf32>
    %550 = math.tanh %549 : vector<2x128xf32>
    %cst_274 = arith.constant 5.000000e-01 : f32
    %551 = vector.broadcast %cst_274 : f32 to vector<2x128xf32>
    %552 = arith.mulf %551, %550 : vector<2x128xf32>
    %cst_275 = arith.constant 5.000000e-01 : f32
    %553 = vector.broadcast %cst_275 : f32 to vector<2x128xf32>
    %554 = arith.addf %552, %553 : vector<2x128xf32>
    %555 = vector.extract_strided_slice %538 {offsets = [0, 256], sizes = [2, 128], strides = [1, 1]} : vector<2x512xf32> to vector<2x128xf32>
    %556 = math.tanh %555 : vector<2x128xf32>
    %557 = vector.extract_strided_slice %538 {offsets = [0, 384], sizes = [2, 128], strides = [1, 1]} : vector<2x512xf32> to vector<2x128xf32>
    %cst_276 = arith.constant 5.000000e-01 : f32
    %558 = vector.broadcast %cst_276 : f32 to vector<2x128xf32>
    %559 = arith.mulf %558, %557 : vector<2x128xf32>
    %560 = math.tanh %559 : vector<2x128xf32>
    %cst_277 = arith.constant 5.000000e-01 : f32
    %561 = vector.broadcast %cst_277 : f32 to vector<2x128xf32>
    %562 = arith.mulf %561, %560 : vector<2x128xf32>
    %cst_278 = arith.constant 5.000000e-01 : f32
    %563 = vector.broadcast %cst_278 : f32 to vector<2x128xf32>
    %564 = arith.addf %562, %563 : vector<2x128xf32>
    %c0_279 = arith.constant 0 : index
    %c128_280 = arith.constant 128 : index
    %565 = vector.load %arg8[%c0_279, %c128_280] : memref<2x256xf32, #tpu.memory_space<vmem>>, vector<2x128xf32>
    %566 = arith.mulf %554, %565 : vector<2x128xf32>
    %567 = arith.mulf %546, %556 : vector<2x128xf32>
    %568 = arith.addf %566, %567 : vector<2x128xf32>
    %569 = math.tanh %568 : vector<2x128xf32>
    %570 = arith.mulf %564, %569 : vector<2x128xf32>
    %c0_281 = arith.constant 0 : index
    %c128_282 = arith.constant 128 : index
    %571 = vector.load %arg8[%c0_281, %c128_282] : memref<2x256xf32, #tpu.memory_space<vmem>>, vector<2x128xf32>
    tpu.vector_store %arg8[%c0_281, %c128_282], %568 {strides = array<i32>} : memref<2x256xf32, #tpu.memory_space<vmem>>, vector<2x128xf32>,
    %c0_283 = arith.constant 0 : index
    %c128_284 = arith.constant 128 : index
    %572 = vector.load %arg7[%c0_283, %c128_284] : memref<2x256xf32, #tpu.memory_space<vmem>>, vector<2x128xf32>
    tpu.vector_store %arg7[%c0_283, %c128_284], %570 {strides = array<i32>} : memref<2x256xf32, #tpu.memory_space<vmem>>, vector<2x128xf32>,
    %573 = arith.index_cast %c6_i32 : i32 to index
    %c0_285 = arith.constant 0 : index
    %c0_286 = arith.constant 0 : index
    %574 = vector.load %arg6[%573, %c0_285, %c0_286] : memref<9x2x128xf32, #tpu.memory_space<vmem>>, vector<1x2x128xf32>
    %575 = vector.shape_cast %574 : vector<1x2x128xf32> to vector<2x128xf32>
    %576 = vector.shape_cast %570 : vector<2x128xf32> to vector<1x2x128xf32>
    tpu.vector_store %arg6[%573, %c0_285, %c0_286], %576 {strides = array<i32>} : memref<9x2x128xf32, #tpu.memory_space<vmem>>, vector<1x2x128xf32>,
    %c7_i32 = arith.constant 7 : i32
    %577 = arith.index_cast %c7_i32 : i32 to index
    %c0_287 = arith.constant 0 : index
    %c0_288 = arith.constant 0 : index
    %578 = vector.load %arg2[%577, %c0_287, %c0_288] : memref<9x2x512xf32, #tpu.memory_space<vmem>>, vector<1x2x512xf32>
    %579 = vector.shape_cast %578 : vector<1x2x512xf32> to vector<2x512xf32>
    %c0_289 = arith.constant 0 : index
    %c0_290 = arith.constant 0 : index
    %580 = vector.load %arg7[%c0_289, %c0_290] : memref<2x256xf32, #tpu.memory_space<vmem>>, vector<2x128xf32>
    %cst_291 = arith.constant dense<0.000000e+00> : vector<2x512xf32>
    %581 = tpu.matmul %580, %3, %cst_291 {dimension_numbers = #tpu.dot_dimension_numbers<[1], [0], [0], [1], [0, 0, 1, 1], [], []>} : vector<2x128xf32>, vector<128x512xf32>, vector<2x512xf32> -> vector<2x512xf32>
    %582 = arith.addf %579, %581 : vector<2x512xf32>
    %583 = vector.extract_strided_slice %582 {offsets = [0, 0], sizes = [2, 128], strides = [1, 1]} : vector<2x512xf32> to vector<2x128xf32>
    %cst_292 = arith.constant 5.000000e-01 : f32
    %584 = vector.broadcast %cst_292 : f32 to vector<2x128xf32>
    %585 = arith.mulf %584, %583 : vector<2x128xf32>
    %586 = math.tanh %585 : vector<2x128xf32>
    %cst_293 = arith.constant 5.000000e-01 : f32
    %587 = vector.broadcast %cst_293 : f32 to vector<2x128xf32>
    %588 = arith.mulf %587, %586 : vector<2x128xf32>
    %cst_294 = arith.constant 5.000000e-01 : f32
    %589 = vector.broadcast %cst_294 : f32 to vector<2x128xf32>
    %590 = arith.addf %588, %589 : vector<2x128xf32>
    %591 = vector.extract_strided_slice %582 {offsets = [0, 128], sizes = [2, 128], strides = [1, 1]} : vector<2x512xf32> to vector<2x128xf32>
    %cst_295 = arith.constant 5.000000e-01 : f32
    %592 = vector.broadcast %cst_295 : f32 to vector<2x128xf32>
    %593 = arith.mulf %592, %591 : vector<2x128xf32>
    %594 = math.tanh %593 : vector<2x128xf32>
    %cst_296 = arith.constant 5.000000e-01 : f32
    %595 = vector.broadcast %cst_296 : f32 to vector<2x128xf32>
    %596 = arith.mulf %595, %594 : vector<2x128xf32>
    %cst_297 = arith.constant 5.000000e-01 : f32
    %597 = vector.broadcast %cst_297 : f32 to vector<2x128xf32>
    %598 = arith.addf %596, %597 : vector<2x128xf32>
    %599 = vector.extract_strided_slice %582 {offsets = [0, 256], sizes = [2, 128], strides = [1, 1]} : vector<2x512xf32> to vector<2x128xf32>
    %600 = math.tanh %599 : vector<2x128xf32>
    %601 = vector.extract_strided_slice %582 {offsets = [0, 384], sizes = [2, 128], strides = [1, 1]} : vector<2x512xf32> to vector<2x128xf32>
    %cst_298 = arith.constant 5.000000e-01 : f32
    %602 = vector.broadcast %cst_298 : f32 to vector<2x128xf32>
    %603 = arith.mulf %602, %601 : vector<2x128xf32>
    %604 = math.tanh %603 : vector<2x128xf32>
    %cst_299 = arith.constant 5.000000e-01 : f32
    %605 = vector.broadcast %cst_299 : f32 to vector<2x128xf32>
    %606 = arith.mulf %605, %604 : vector<2x128xf32>
    %cst_300 = arith.constant 5.000000e-01 : f32
    %607 = vector.broadcast %cst_300 : f32 to vector<2x128xf32>
    %608 = arith.addf %606, %607 : vector<2x128xf32>
    %c0_301 = arith.constant 0 : index
    %c0_302 = arith.constant 0 : index
    %609 = vector.load %arg8[%c0_301, %c0_302] : memref<2x256xf32, #tpu.memory_space<vmem>>, vector<2x128xf32>
    %610 = arith.mulf %598, %609 : vector<2x128xf32>
    %611 = arith.mulf %590, %600 : vector<2x128xf32>
    %612 = arith.addf %610, %611 : vector<2x128xf32>
    %613 = math.tanh %612 : vector<2x128xf32>
    %614 = arith.mulf %608, %613 : vector<2x128xf32>
    %c0_303 = arith.constant 0 : index
    %c0_304 = arith.constant 0 : index
    %615 = vector.load %arg8[%c0_303, %c0_304] : memref<2x256xf32, #tpu.memory_space<vmem>>, vector<2x128xf32>
    tpu.vector_store %arg8[%c0_303, %c0_304], %612 {strides = array<i32>} : memref<2x256xf32, #tpu.memory_space<vmem>>, vector<2x128xf32>,
    %c0_305 = arith.constant 0 : index
    %c0_306 = arith.constant 0 : index
    %616 = vector.load %arg7[%c0_305, %c0_306] : memref<2x256xf32, #tpu.memory_space<vmem>>, vector<2x128xf32>
    tpu.vector_store %arg7[%c0_305, %c0_306], %614 {strides = array<i32>} : memref<2x256xf32, #tpu.memory_space<vmem>>, vector<2x128xf32>,
    %c0_307 = arith.constant 0 : index
    %c0_308 = arith.constant 0 : index
    %617 = vector.load %arg7[%c0_307, %c0_308] : memref<2x256xf32, #tpu.memory_space<vmem>>, vector<2x256xf32>
    %cst_309 = arith.constant dense<0.000000e+00> : vector<2x512xf32>
    %618 = tpu.matmul %617, %5, %cst_309 {dimension_numbers = #tpu.dot_dimension_numbers<[1], [0], [0], [1], [0, 0, 1, 1], [], []>} : vector<2x256xf32>, vector<256x512xf32>, vector<2x512xf32> -> vector<2x512xf32>
    %619 = arith.addf %618, %9 : vector<2x512xf32>
    %620 = vector.extract_strided_slice %619 {offsets = [0, 0], sizes = [2, 128], strides = [1, 1]} : vector<2x512xf32> to vector<2x128xf32>
    %cst_310 = arith.constant 5.000000e-01 : f32
    %621 = vector.broadcast %cst_310 : f32 to vector<2x128xf32>
    %622 = arith.mulf %621, %620 : vector<2x128xf32>
    %623 = math.tanh %622 : vector<2x128xf32>
    %cst_311 = arith.constant 5.000000e-01 : f32
    %624 = vector.broadcast %cst_311 : f32 to vector<2x128xf32>
    %625 = arith.mulf %624, %623 : vector<2x128xf32>
    %cst_312 = arith.constant 5.000000e-01 : f32
    %626 = vector.broadcast %cst_312 : f32 to vector<2x128xf32>
    %627 = arith.addf %625, %626 : vector<2x128xf32>
    %628 = vector.extract_strided_slice %619 {offsets = [0, 128], sizes = [2, 128], strides = [1, 1]} : vector<2x512xf32> to vector<2x128xf32>
    %cst_313 = arith.constant 5.000000e-01 : f32
    %629 = vector.broadcast %cst_313 : f32 to vector<2x128xf32>
    %630 = arith.mulf %629, %628 : vector<2x128xf32>
    %631 = math.tanh %630 : vector<2x128xf32>
    %cst_314 = arith.constant 5.000000e-01 : f32
    %632 = vector.broadcast %cst_314 : f32 to vector<2x128xf32>
    %633 = arith.mulf %632, %631 : vector<2x128xf32>
    %cst_315 = arith.constant 5.000000e-01 : f32
    %634 = vector.broadcast %cst_315 : f32 to vector<2x128xf32>
    %635 = arith.addf %633, %634 : vector<2x128xf32>
    %636 = vector.extract_strided_slice %619 {offsets = [0, 256], sizes = [2, 128], strides = [1, 1]} : vector<2x512xf32> to vector<2x128xf32>
    %637 = math.tanh %636 : vector<2x128xf32>
    %638 = vector.extract_strided_slice %619 {offsets = [0, 384], sizes = [2, 128], strides = [1, 1]} : vector<2x512xf32> to vector<2x128xf32>
    %cst_316 = arith.constant 5.000000e-01 : f32
    %639 = vector.broadcast %cst_316 : f32 to vector<2x128xf32>
    %640 = arith.mulf %639, %638 : vector<2x128xf32>
    %641 = math.tanh %640 : vector<2x128xf32>
    %cst_317 = arith.constant 5.000000e-01 : f32
    %642 = vector.broadcast %cst_317 : f32 to vector<2x128xf32>
    %643 = arith.mulf %642, %641 : vector<2x128xf32>
    %cst_318 = arith.constant 5.000000e-01 : f32
    %644 = vector.broadcast %cst_318 : f32 to vector<2x128xf32>
    %645 = arith.addf %643, %644 : vector<2x128xf32>
    %c0_319 = arith.constant 0 : index
    %c128_320 = arith.constant 128 : index
    %646 = vector.load %arg8[%c0_319, %c128_320] : memref<2x256xf32, #tpu.memory_space<vmem>>, vector<2x128xf32>
    %647 = arith.mulf %635, %646 : vector<2x128xf32>
    %648 = arith.mulf %627, %637 : vector<2x128xf32>
    %649 = arith.addf %647, %648 : vector<2x128xf32>
    %650 = math.tanh %649 : vector<2x128xf32>
    %651 = arith.mulf %645, %650 : vector<2x128xf32>
    %c0_321 = arith.constant 0 : index
    %c128_322 = arith.constant 128 : index
    %652 = vector.load %arg8[%c0_321, %c128_322] : memref<2x256xf32, #tpu.memory_space<vmem>>, vector<2x128xf32>
    tpu.vector_store %arg8[%c0_321, %c128_322], %649 {strides = array<i32>} : memref<2x256xf32, #tpu.memory_space<vmem>>, vector<2x128xf32>,
    %c0_323 = arith.constant 0 : index
    %c128_324 = arith.constant 128 : index
    %653 = vector.load %arg7[%c0_323, %c128_324] : memref<2x256xf32, #tpu.memory_space<vmem>>, vector<2x128xf32>
    tpu.vector_store %arg7[%c0_323, %c128_324], %651 {strides = array<i32>} : memref<2x256xf32, #tpu.memory_space<vmem>>, vector<2x128xf32>,
    %654 = arith.index_cast %c7_i32 : i32 to index
    %c0_325 = arith.constant 0 : index
    %c0_326 = arith.constant 0 : index
    %655 = vector.load %arg6[%654, %c0_325, %c0_326] : memref<9x2x128xf32, #tpu.memory_space<vmem>>, vector<1x2x128xf32>
    %656 = vector.shape_cast %655 : vector<1x2x128xf32> to vector<2x128xf32>
    %657 = vector.shape_cast %651 : vector<2x128xf32> to vector<1x2x128xf32>
    tpu.vector_store %arg6[%654, %c0_325, %c0_326], %657 {strides = array<i32>} : memref<9x2x128xf32, #tpu.memory_space<vmem>>, vector<1x2x128xf32>,
    %c8_i32 = arith.constant 8 : i32
    %658 = arith.index_cast %c8_i32 : i32 to index
    %c0_327 = arith.constant 0 : index
    %c0_328 = arith.constant 0 : index
    %659 = vector.load %arg2[%658, %c0_327, %c0_328] : memref<9x2x512xf32, #tpu.memory_space<vmem>>, vector<1x2x512xf32>
    %660 = vector.shape_cast %659 : vector<1x2x512xf32> to vector<2x512xf32>
    %c0_329 = arith.constant 0 : index
    %c0_330 = arith.constant 0 : index
    %661 = vector.load %arg7[%c0_329, %c0_330] : memref<2x256xf32, #tpu.memory_space<vmem>>, vector<2x128xf32>
    %cst_331 = arith.constant dense<0.000000e+00> : vector<2x512xf32>
    %662 = tpu.matmul %661, %3, %cst_331 {dimension_numbers = #tpu.dot_dimension_numbers<[1], [0], [0], [1], [0, 0, 1, 1], [], []>} : vector<2x128xf32>, vector<128x512xf32>, vector<2x512xf32> -> vector<2x512xf32>
    %663 = arith.addf %660, %662 : vector<2x512xf32>
    %664 = vector.extract_strided_slice %663 {offsets = [0, 0], sizes = [2, 128], strides = [1, 1]} : vector<2x512xf32> to vector<2x128xf32>
    %cst_332 = arith.constant 5.000000e-01 : f32
    %665 = vector.broadcast %cst_332 : f32 to vector<2x128xf32>
    %666 = arith.mulf %665, %664 : vector<2x128xf32>
    %667 = math.tanh %666 : vector<2x128xf32>
    %cst_333 = arith.constant 5.000000e-01 : f32
    %668 = vector.broadcast %cst_333 : f32 to vector<2x128xf32>
    %669 = arith.mulf %668, %667 : vector<2x128xf32>
    %cst_334 = arith.constant 5.000000e-01 : f32
    %670 = vector.broadcast %cst_334 : f32 to vector<2x128xf32>
    %671 = arith.addf %669, %670 : vector<2x128xf32>
    %672 = vector.extract_strided_slice %663 {offsets = [0, 128], sizes = [2, 128], strides = [1, 1]} : vector<2x512xf32> to vector<2x128xf32>
    %cst_335 = arith.constant 5.000000e-01 : f32
    %673 = vector.broadcast %cst_335 : f32 to vector<2x128xf32>
    %674 = arith.mulf %673, %672 : vector<2x128xf32>
    %675 = math.tanh %674 : vector<2x128xf32>
    %cst_336 = arith.constant 5.000000e-01 : f32
    %676 = vector.broadcast %cst_336 : f32 to vector<2x128xf32>
    %677 = arith.mulf %676, %675 : vector<2x128xf32>
    %cst_337 = arith.constant 5.000000e-01 : f32
    %678 = vector.broadcast %cst_337 : f32 to vector<2x128xf32>
    %679 = arith.addf %677, %678 : vector<2x128xf32>
    %680 = vector.extract_strided_slice %663 {offsets = [0, 256], sizes = [2, 128], strides = [1, 1]} : vector<2x512xf32> to vector<2x128xf32>
    %681 = math.tanh %680 : vector<2x128xf32>
    %682 = vector.extract_strided_slice %663 {offsets = [0, 384], sizes = [2, 128], strides = [1, 1]} : vector<2x512xf32> to vector<2x128xf32>
    %cst_338 = arith.constant 5.000000e-01 : f32
    %683 = vector.broadcast %cst_338 : f32 to vector<2x128xf32>
    %684 = arith.mulf %683, %682 : vector<2x128xf32>
    %685 = math.tanh %684 : vector<2x128xf32>
    %cst_339 = arith.constant 5.000000e-01 : f32
    %686 = vector.broadcast %cst_339 : f32 to vector<2x128xf32>
    %687 = arith.mulf %686, %685 : vector<2x128xf32>
    %cst_340 = arith.constant 5.000000e-01 : f32
    %688 = vector.broadcast %cst_340 : f32 to vector<2x128xf32>
    %689 = arith.addf %687, %688 : vector<2x128xf32>
    %c0_341 = arith.constant 0 : index
    %c0_342 = arith.constant 0 : index
    %690 = vector.load %arg8[%c0_341, %c0_342] : memref<2x256xf32, #tpu.memory_space<vmem>>, vector<2x128xf32>
    %691 = arith.mulf %679, %690 : vector<2x128xf32>
    %692 = arith.mulf %671, %681 : vector<2x128xf32>
    %693 = arith.addf %691, %692 : vector<2x128xf32>
    %694 = math.tanh %693 : vector<2x128xf32>
    %695 = arith.mulf %689, %694 : vector<2x128xf32>
    %c0_343 = arith.constant 0 : index
    %c0_344 = arith.constant 0 : index
    %696 = vector.load %arg8[%c0_343, %c0_344] : memref<2x256xf32, #tpu.memory_space<vmem>>, vector<2x128xf32>
    tpu.vector_store %arg8[%c0_343, %c0_344], %693 {strides = array<i32>} : memref<2x256xf32, #tpu.memory_space<vmem>>, vector<2x128xf32>,
    %c0_345 = arith.constant 0 : index
    %c0_346 = arith.constant 0 : index
    %697 = vector.load %arg7[%c0_345, %c0_346] : memref<2x256xf32, #tpu.memory_space<vmem>>, vector<2x128xf32>
    tpu.vector_store %arg7[%c0_345, %c0_346], %695 {strides = array<i32>} : memref<2x256xf32, #tpu.memory_space<vmem>>, vector<2x128xf32>,
    %c0_347 = arith.constant 0 : index
    %c0_348 = arith.constant 0 : index
    %698 = vector.load %arg7[%c0_347, %c0_348] : memref<2x256xf32, #tpu.memory_space<vmem>>, vector<2x256xf32>
    %cst_349 = arith.constant dense<0.000000e+00> : vector<2x512xf32>
    %699 = tpu.matmul %698, %5, %cst_349 {dimension_numbers = #tpu.dot_dimension_numbers<[1], [0], [0], [1], [0, 0, 1, 1], [], []>} : vector<2x256xf32>, vector<256x512xf32>, vector<2x512xf32> -> vector<2x512xf32>
    %700 = arith.addf %699, %9 : vector<2x512xf32>
    %701 = vector.extract_strided_slice %700 {offsets = [0, 0], sizes = [2, 128], strides = [1, 1]} : vector<2x512xf32> to vector<2x128xf32>
    %cst_350 = arith.constant 5.000000e-01 : f32
    %702 = vector.broadcast %cst_350 : f32 to vector<2x128xf32>
    %703 = arith.mulf %702, %701 : vector<2x128xf32>
    %704 = math.tanh %703 : vector<2x128xf32>
    %cst_351 = arith.constant 5.000000e-01 : f32
    %705 = vector.broadcast %cst_351 : f32 to vector<2x128xf32>
    %706 = arith.mulf %705, %704 : vector<2x128xf32>
    %cst_352 = arith.constant 5.000000e-01 : f32
    %707 = vector.broadcast %cst_352 : f32 to vector<2x128xf32>
    %708 = arith.addf %706, %707 : vector<2x128xf32>
    %709 = vector.extract_strided_slice %700 {offsets = [0, 128], sizes = [2, 128], strides = [1, 1]} : vector<2x512xf32> to vector<2x128xf32>
    %cst_353 = arith.constant 5.000000e-01 : f32
    %710 = vector.broadcast %cst_353 : f32 to vector<2x128xf32>
    %711 = arith.mulf %710, %709 : vector<2x128xf32>
    %712 = math.tanh %711 : vector<2x128xf32>
    %cst_354 = arith.constant 5.000000e-01 : f32
    %713 = vector.broadcast %cst_354 : f32 to vector<2x128xf32>
    %714 = arith.mulf %713, %712 : vector<2x128xf32>
    %cst_355 = arith.constant 5.000000e-01 : f32
    %715 = vector.broadcast %cst_355 : f32 to vector<2x128xf32>
    %716 = arith.addf %714, %715 : vector<2x128xf32>
    %717 = vector.extract_strided_slice %700 {offsets = [0, 256], sizes = [2, 128], strides = [1, 1]} : vector<2x512xf32> to vector<2x128xf32>
    %718 = math.tanh %717 : vector<2x128xf32>
    %719 = vector.extract_strided_slice %700 {offsets = [0, 384], sizes = [2, 128], strides = [1, 1]} : vector<2x512xf32> to vector<2x128xf32>
    %cst_356 = arith.constant 5.000000e-01 : f32
    %720 = vector.broadcast %cst_356 : f32 to vector<2x128xf32>
    %721 = arith.mulf %720, %719 : vector<2x128xf32>
    %722 = math.tanh %721 : vector<2x128xf32>
    %cst_357 = arith.constant 5.000000e-01 : f32
    %723 = vector.broadcast %cst_357 : f32 to vector<2x128xf32>
    %724 = arith.mulf %723, %722 : vector<2x128xf32>
    %cst_358 = arith.constant 5.000000e-01 : f32
    %725 = vector.broadcast %cst_358 : f32 to vector<2x128xf32>
    %726 = arith.addf %724, %725 : vector<2x128xf32>
    %c0_359 = arith.constant 0 : index
    %c128_360 = arith.constant 128 : index
    %727 = vector.load %arg8[%c0_359, %c128_360] : memref<2x256xf32, #tpu.memory_space<vmem>>, vector<2x128xf32>
    %728 = arith.mulf %716, %727 : vector<2x128xf32>
    %729 = arith.mulf %708, %718 : vector<2x128xf32>
    %730 = arith.addf %728, %729 : vector<2x128xf32>
    %731 = math.tanh %730 : vector<2x128xf32>
    %732 = arith.mulf %726, %731 : vector<2x128xf32>
    %c0_361 = arith.constant 0 : index
    %c128_362 = arith.constant 128 : index
    %733 = vector.load %arg8[%c0_361, %c128_362] : memref<2x256xf32, #tpu.memory_space<vmem>>, vector<2x128xf32>
    tpu.vector_store %arg8[%c0_361, %c128_362], %730 {strides = array<i32>} : memref<2x256xf32, #tpu.memory_space<vmem>>, vector<2x128xf32>,
    %c0_363 = arith.constant 0 : index
    %c128_364 = arith.constant 128 : index
    %734 = vector.load %arg7[%c0_363, %c128_364] : memref<2x256xf32, #tpu.memory_space<vmem>>, vector<2x128xf32>
    tpu.vector_store %arg7[%c0_363, %c128_364], %732 {strides = array<i32>} : memref<2x256xf32, #tpu.memory_space<vmem>>, vector<2x128xf32>,
    %735 = arith.index_cast %c8_i32 : i32 to index
    %c0_365 = arith.constant 0 : index
    %c0_366 = arith.constant 0 : index
    %736 = vector.load %arg6[%735, %c0_365, %c0_366] : memref<9x2x128xf32, #tpu.memory_space<vmem>>, vector<1x2x128xf32>
    %737 = vector.shape_cast %736 : vector<1x2x128xf32> to vector<2x128xf32>
    %738 = vector.shape_cast %732 : vector<2x128xf32> to vector<1x2x128xf32>
    tpu.vector_store %arg6[%735, %c0_365, %c0_366], %738 {strides = array<i32>} : memref<9x2x128xf32, #tpu.memory_space<vmem>>, vector<1x2x128xf32>,
    %c9_i32 = arith.constant 9 : i32
    return
  }
  func.func @transform_0(%arg0: i32, %arg1: i32) -> (i32, i32, i32) {
    %c0_i32 = arith.constant 0 : i32
    %c0_i32_0 = arith.constant 0 : i32
    return %arg1, %arg0, %c0_i32 : i32, i32, i32
  }
  func.func @transform_1(%arg0: i32, %arg1: i32) -> (i32, i32) {
    %c0_i32 = arith.constant 0 : i32
    %c0_i32_0 = arith.constant 0 : i32
    %c0_i32_1 = arith.constant 0 : i32
    return %c0_i32, %c0_i32_0 : i32, i32
  }
  func.func @transform_2(%arg0: i32, %arg1: i32) -> (i32, i32, i32) {
    %c0_i32 = arith.constant 0 : i32
    %c0_i32_0 = arith.constant 0 : i32
    %c0_i32_1 = arith.constant 0 : i32
    %c0_i32_2 = arith.constant 0 : i32
    return %c0_i32, %c0_i32_0, %c0_i32_1 : i32, i32, i32
  }
  func.func @transform_3(%arg0: i32, %arg1: i32) -> (i32, i32, i32) {
    %c0_i32 = arith.constant 0 : i32
    %c0_i32_0 = arith.constant 0 : i32
    %c0_i32_1 = arith.constant 0 : i32
    %c0_i32_2 = arith.constant 0 : i32
    return %c0_i32, %c0_i32_0, %c0_i32_1 : i32, i32, i32
  }
  func.func @transform_4(%arg0: i32, %arg1: i32) -> (i32, i32, i32) {
    %c0_i32 = arith.constant 0 : i32
    %c0_i32_0 = arith.constant 0 : i32
    return %arg1, %arg0, %c0_i32 : i32, i32, i32
  }
}

</mosaic_0001>

<bundles_post_ra>
// kernel: decoder_forward.5
= control target key start
LH: loop header
LB: loop body
LE: loop exit
PB: predicated region body
PF: predicated region fallthrough
CT: control target
= control target key end

     0   :  { %v222_v0 = vmov 0.0   ;;  %vm223_vm0 = vmmov 0   ;;  %s348_s1 = inlined_call_operand.vmem [shape: f32[128,128], index: 1, kind: input, shape index: {}]   ;;  %s349_s0 = inlined_call_operand.vmem [shape: f32[18,128], index: 0, kind: input, shape index: {}]   ;;  %s350_s2 = inlined_call_operand.vmem [shape: f32[1,128], index: 2, kind: input, shape index: {}]   ;;  %s351_s3 = inlined_call_operand.vmem [shape: f32[18,50], index: 3, kind: output, shape index: {}]  }
   0x1   :  { %188 = vmatprep.subr.mxu1 %v222_v0  ;;  %v32_v1 = vld [vmem:[%s348_s1 + $0x78] sm:$0xff]  ;;  %147 = vmatprep.subr.mxu0 %v222_v0  ;;  %v31_v2 = vld [vmem:[%s348_s1 + $0x70] sm:$0xff]  ;;  %v30_v3 = vld [vmem:[%s348_s1 + $0x68] sm:$0xff] }
   0x2   :  { %204 = vmatpush3.msra.mxu1 %v32_v1  ;;  %148 = vmatpush3.msra.mxu0 %v32_v1  ;;  %v29_v4 = vld [vmem:[%s348_s1 + $0x60] sm:$0xff]  ;;  %v28_v5 = vld [vmem:[%s348_s1 + $0x58] sm:$0xff]  ;;  %v27_v6 = vld [vmem:[%s348_s1 + $0x50] sm:$0xff] }
   0x3   :  { %189 = vmatprep.subr.mxu1 %v222_v0  ;;  %149 = vmatprep.subr.mxu0 %v222_v0  ;;  %v26_v7 = vld [vmem:[%s348_s1 + $0x48] sm:$0xff]  ;;  %v25_v8 = vld [vmem:[%s348_s1 + $0x40] sm:$0xff]  ;;  %v24_v9 = vld [vmem:[%s348_s1 + $0x38] sm:$0xff] }
   0x4   :  { %205 = vmatpush3.msra.mxu1 %v31_v2  ;;  %150 = vmatpush3.msra.mxu0 %v31_v2  ;;  %v23_v10 = vld [vmem:[%s348_s1 + $0x30] sm:$0xff]  ;;  %v22_v11 = vld [vmem:[%s348_s1 + $0x28] sm:$0xff]  ;;  %v21_v12 = vld [vmem:[%s348_s1 + $0x20] sm:$0xff] }
   0x5   :  { %190 = vmatprep.subr.mxu1 %v222_v0  ;;  %151 = vmatprep.subr.mxu0 %v222_v0  ;;  %v20_v13 = vld [vmem:[%s348_s1 + $0x18] sm:$0xff]  ;;  %v19_v14 = vld [vmem:[%s348_s1 + $0x10] sm:$0xff]  ;;  %v18_v15 = vld [vmem:[%s348_s1 + $0x8] sm:$0xff] }
   0x6   :  { %206 = vmatpush3.msra.mxu1 %v30_v3  ;;  %152 = vmatpush3.msra.mxu0 %v30_v3  ;;  %v17_v16 = vld [vmem:[%s348_s1] sm:$0xff]  ;;  %v15_v17 = vld [vmem:[%s349_s0 + $0x8] sm:$0xff]  ;;  %v16_v19 = vld [vmem:[%s349_s0 + $0x10] sm:$0x3] }
   0x7   :  { %191 = vmatprep.subr.mxu1 %v222_v0  ;;  %153 = vmatprep.subr.mxu0 %v222_v0  ;;  %v14_v18 = vld [vmem:[%s349_s0] sm:$0xff] }
   0x8   :  { %207 = vmatpush3.msra.mxu1 %v29_v4  ;;  %154 = vmatpush3.msra.mxu0 %v29_v4  ;;  %v127_v20 = vld [vmem:[%s350_s2] ss:$0 sm:$0xff] }
   0x9   :  { %192 = vmatprep.subr.mxu1 %v222_v0  ;;  %155 = vmatprep.subr.mxu0 %v222_v0 }
   0xa   :  { %208 = vmatpush3.msra.mxu1 %v28_v5  ;;  %156 = vmatpush3.msra.mxu0 %v28_v5 }
   0xb   :  { %193 = vmatprep.subr.mxu1 %v222_v0  ;;  %157 = vmatprep.subr.mxu0 %v222_v0 }
   0xc   :  { %209 = vmatpush3.msra.mxu1 %v27_v6  ;;  %158 = vmatpush3.msra.mxu0 %v27_v6 }
   0xd   :  { %194 = vmatprep.subr.mxu1 %v222_v0  ;;  %159 = vmatprep.subr.mxu0 %v222_v0 }
   0xe   :  { %210 = vmatpush3.msra.mxu1 %v26_v7  ;;  %160 = vmatpush3.msra.mxu0 %v26_v7 }
   0xf   :  { %195 = vmatprep.subr.mxu1 %v222_v0  ;;  %161 = vmatprep.subr.mxu0 %v222_v0 }
  0x10   :  { %211 = vmatpush3.msra.mxu1 %v25_v8  ;;  %162 = vmatpush3.msra.mxu0 %v25_v8 }
  0x11   :  { %196 = vmatprep.subr.mxu1 %v222_v0  ;;  %163 = vmatprep.subr.mxu0 %v222_v0 }
  0x12   :  { %212 = vmatpush3.msra.mxu1 %v24_v9  ;;  %164 = vmatpush3.msra.mxu0 %v24_v9 }
  0x13   :  { %197 = vmatprep.subr.mxu1 %v222_v0  ;;  %165 = vmatprep.subr.mxu0 %v222_v0 }
  0x14   :  { %213 = vmatpush3.msra.mxu1 %v23_v10  ;;  %166 = vmatpush3.msra.mxu0 %v23_v10 }
  0x15   :  { %198 = vmatprep.subr.mxu1 %v222_v0  ;;  %167 = vmatprep.subr.mxu0 %v222_v0 }
  0x16   :  { %214 = vmatpush3.msra.mxu1 %v22_v11  ;;  %168 = vmatpush3.msra.mxu0 %v22_v11 }
  0x17   :  { %199 = vmatprep.subr.mxu1 %v222_v0  ;;  %169 = vmatprep.subr.mxu0 %v222_v0 }
  0x18   :  { %215 = vmatpush3.msra.mxu1 %v21_v12  ;;  %170 = vmatpush3.msra.mxu0 %v21_v12 }
  0x19   :  { %200 = vmatprep.subr.mxu1 %v222_v0  ;;  %171 = vmatprep.subr.mxu0 %v222_v0 }
  0x1a   :  { %216 = vmatpush3.msra.mxu1 %v20_v13  ;;  %172 = vmatpush3.msra.mxu0 %v20_v13 }
  0x1b   :  { %201 = vmatprep.subr.mxu1 %v222_v0  ;;  %173 = vmatprep.subr.mxu0 %v222_v0 }
  0x1c   :  { %217 = vmatpush3.msra.mxu1 %v19_v14  ;;  %174 = vmatpush3.msra.mxu0 %v19_v14 }
  0x1d   :  { %202 = vmatprep.subr.mxu1 %v222_v0  ;;  %175 = vmatprep.subr.mxu0 %v222_v0 }
  0x1e   :  { %218 = vmatpush3.msra.mxu1 %v18_v15  ;;  %176 = vmatpush3.msra.mxu0 %v18_v15 }
  0x1f   :  { %203 = vmatprep.subr.mxu1 %v222_v0  ;;  %182 = vmatprep.mubr.msk.f32.mxu1 %vm223_vm0, %v222_v0 }
  0x20   :  { %219 = vmatpush3.msra.mxu1 %v17_v16  ;;  %177 = vmatprep.subr.mxu0 %v222_v0 }
  0x21   :  { %183 = vmatmul.mubr.f32.vlgmr.msra.gmra.mxu1 %v15_v17  ;;  %178 = vmatpush3.msra.mxu0 %v17_v16 }
  0x22   :  { %179 = vmatprep.mubr.msk.f32.mxu0 %vm223_vm0, %v222_v0  ;;  %185 = vmatprep.mubr.msk.f32.mxu1 %vm223_vm0, %v222_v0 }
  0x23   :  { %180 = vmatmul.mubr.f32.vlgmr.msra.gmra.mxu0 %v14_v18 }
  0x25   :  { %186 = vmatmul.mubr.f32.gmra.mxu1 %v16_v19 }
  0xe1   :  { %v111_v21 = vpop.f32.mrf.mxu1 }
  0xe2   :  { %v112_v22 = vadd.f32 %v127_v20, %v111_v21 }
  0xe3   :  { %v106_v23 = vpop.f32.mrf.mxu0  ;;  %v184_v24 = vpop.f32.mrf.mxu1 }
  0xe4   :  { %121 = vst [vmem:[%s351_s3 + $0x8] sm:$0xff] %v112_v22  ;;  %v107_v25 = vadd.f32 %v127_v20, %v106_v23 }
  0xe5   :  { %v181_v26 = vpop.f32.mrf.mxu0  ;;  %v116_v27 = vpop.f32.mrf.mxu1 }
  0xe6   :  { %120 = vst [vmem:[%s351_s3] sm:$0xff] %v107_v25  ;;  %v117_v28 = vadd.f32 %v127_v20, %v116_v27 }
  0xe7   :  { %v187_v29 = vpop.f32.mrf.mxu1 }
  0xe8   :  { %122 = vst [vmem:[%s351_s3 + $0x10] sm:$0x3] %v117_v28 }

// kernel: decoder_forward.3
= control target key start
LH: loop header
LB: loop body
LE: loop exit
PB: predicated region body
PF: predicated region fallthrough
CT: control target
= control target key end

     0   :  { %8 = vsyncpa [#allocation3], 0  ;;  %s412_s0 = inlined_call_operand.vmem [shape: f32[18,32], index: 0, kind: input, shape index: {}]   ;;  %s413_s1 = inlined_call_operand.hbm [shape: f32[32,512], index: 1, kind: input, shape index: {}]   ;;  %s414_s2 = inlined_call_operand.hbm [shape: f32[1,512], index: 2, kind: input, shape index: {}]   ;;  %s415_s3 = inlined_call_operand.vmem [shape: f32[18,512], index: 3, kind: output, shape index: {}]  }
   0x1   :  { %9 = vsyncpa [#allocation5], 0  ;;  %s330_s12 = smov [#allocation2]  }
   0x2   :  { %s17_s13 = sshll.u32 %s330_s12, 4  ;;  %s18_s13 = int_to_ptr.vmem [resolvable:$true] %s17_s13 }
   0x3   :  { %s294_s14 = scalar_lea.vmem %s18_s13, 2048  ;;  %p299_p1 = scmp.lt.s32.totalorder %s18_s13, %s18_s13 }
   0x4   :  { %p295_p0 = scmp.ne.s32.totalorder %s18_s13, %s294_s14  ;;  %p300_p2 = scmp.lt.s32.totalorder %s294_s14, %s294_s14 }
   0x6   :  { %p301_p3 = por %p300_p2, %p299_p1 }
   0x8   :  { %p302_p4 = pnand %p301_p3, %p295_p0 }
   0xa   :  { %305 = shalt.err (!%p302_p4)
}
   0xb   :  { %s331_s15 = smov 512   ;;  %s332_s16 = smov 32  }
   0xc   :  { %23 = dma.hbm_to_vmem [thread:$0]  %s413_s1, 2048, %s18_s13, [#allocation3], %s331_s15, %s331_s15, %s332_s16  }
   0xd   :  { %s333_s19 = smov [#allocation4]  }
   0xe   :  { %s30_s20 = sshll.u32 %s333_s19, 4  ;;  %s31_s20 = int_to_ptr.vmem [resolvable:$true] %s30_s20 }
   0xf   :  { %s314_s21 = scalar_lea.vmem %s31_s20, 64  ;;  %p319_p6 = scmp.lt.s32.totalorder %s31_s20, %s31_s20 }
  0x10   :  { %p315_p5 = scmp.ne.s32.totalorder %s31_s20, %s314_s21  ;;  %p320_p7 = scmp.lt.s32.totalorder %s314_s21, %s314_s21 }
  0x12   :  { %p321_p8 = por %p320_p7, %p319_p6 }
  0x14   :  { %p322_p9 = pnand %p321_p8, %p315_p5 }
  0x16   :  { %325 = shalt.err (!%p322_p9)
}
  0x17   :  { %33 = dma.hbm_to_vmem [thread:$0]  %s414_s2, 64, %s31_s20, [#allocation5]  }
  0x18   :  { %326 = dma.done.wait [#allocation3], 2048  }
  0x19   :  { %327 = vsyncadd [#allocation3], 4294965248 }
  0x1a   :  { %328 = dma.done.wait [#allocation5], 64  }
  0x1b   :  { %329 = vsyncadd [#allocation5], 4294967232  ;;  %v334_v0 = vmov 0.0   ;;  %v56_v1 = vld [vmem:[#allocation2 + $0x68] sm:$0xff]  ;;  %v58_v2 = vld [vmem:[#allocation2 + $0x78] sm:$0xff]  ;;  %vm81_vm0 = vcmask 261120   ;;  %v61_v20 = vlaneseq }
  0x1c   :  { %155 = vmatprep.mubr.f32.mxu0 %v334_v0  ;;  %238 = vmatprep.mubr.f32.mxu1 %v334_v0  ;;  %v55_v3 = vld [vmem:[#allocation2 + $0x60] sm:$0xff]  ;;  %v57_v4 = vld [vmem:[#allocation2 + $0x70] sm:$0xff]  ;;  %v52_v5 = vld [vmem:[#allocation2 + $0x48] sm:$0xff] }
  0x1d   :  { %115 = vmatprep.subr.mxu0 %v56_v1  ;;  %198 = vmatprep.subr.mxu1 %v58_v2  ;;  %v54_v6 = vld [vmem:[#allocation2 + $0x58] sm:$0xff]  ;;  %v51_v7 = vld [vmem:[#allocation2 + $0x40] sm:$0xff]  ;;  %v53_v8 = vld [vmem:[#allocation2 + $0x50] sm:$0xff]  ;;  %v62_v21 = vshrl.u32 %v61_v20, 7 }
  0x1e   :  { %116 = vmatpush1.msra.mxu0 %v55_v3  ;;  %199 = vmatpush1.msra.mxu1 %v57_v4  ;;  %v48_v9 = vld [vmem:[#allocation2 + $0x28] sm:$0xff]  ;;  %v50_v10 = vld [vmem:[#allocation2 + $0x38] sm:$0xff]  ;;  %v47_v11 = vld [vmem:[#allocation2 + $0x20] sm:$0xff] }
  0x1f   :  { %117 = vmatprep.subr.mxu0 %v52_v5  ;;  %200 = vmatprep.subr.mxu1 %v54_v6  ;;  %v49_v12 = vld [vmem:[#allocation2 + $0x30] sm:$0xff]  ;;  %v44_v13 = vld [vmem:[#allocation2 + $0x8] sm:$0xff]  ;;  %v46_v14 = vld [vmem:[#allocation2 + $0x18] sm:$0xff]  ;;  %v63_v22 = vsub.s32 0, %v62_v21  ;;  %v71_v23 = vsub.s32 2, %v62_v21  ;;  %v67_v25 = vsub.s32 1, %v62_v21 }
  0x20   :  { %118 = vmatpush1.msra.mxu0 %v51_v7  ;;  %201 = vmatpush1.msra.mxu1 %v53_v8  ;;  %v43_v15 = vld [vmem:[#allocation2] sm:$0xff]  ;;  %v45_v16 = vld [vmem:[#allocation2 + $0x10] sm:$0xff]  ;;  %v41_v18 = vld [vmem:[%s412_s0 + $0x8] sm:$0xff]  ;;  %v75_v26 = vsub.s32 3, %v62_v21 }
  0x21   :  { %119 = vmatprep.subr.mxu0 %v48_v9  ;;  %202 = vmatprep.subr.mxu1 %v50_v10  ;;  %v40_v17 = vld [vmem:[%s412_s0] sm:$0xff]  ;;  %v42_v19 = vld [vmem:[%s412_s0 + $0x10] sm:$0x3] }
  0x22   :  { %120 = vmatpush1.msra.mxu0 %v47_v11  ;;  %203 = vmatpush1.msra.mxu1 %v49_v12  ;;  %v59_v24 = vld [vmem:[#allocation4] sm:$0xf] }
  0x23   :  { %121 = vmatprep.subr.mxu0 %v44_v13  ;;  %204 = vmatprep.subr.mxu1 %v46_v14  ;;  %v64_v27 = vrot.slane %v59_v24, %v63_v22  ;;  %v72_v28 = vrot.slane %v59_v24, %v71_v23  ;;  %v68_v29 = vrot.slane %v59_v24, %v67_v25 }
  0x24   :  { %122 = vmatpush1.msra.mxu0 %v43_v15  ;;  %205 = vmatpush1.msra.mxu1 %v45_v16  ;;  %v76_v30 = vrot.slane %v59_v24, %v75_v26 }
  0x25   :  { %275 = vmatmul.mubr.msk.f32.vlgmr.msra.gmra.mxu0 %vm81_vm0, %v40_v17  ;;  %278 = vmatmul.mubr.msk.f32.vlgmr.msra.gmra.mxu1 %vm81_vm0, %v40_v17 }
  0x26   :  { %161 = vmatprep.mubr.f32.mxu0 %v334_v0  ;;  %244 = vmatprep.mubr.f32.mxu1 %v334_v0 }
  0x29   :  { %276 = vmatmul.mubr.msk.f32.gmra.mxu0 %vm81_vm0, %v41_v18  ;;  %279 = vmatmul.mubr.msk.f32.gmra.mxu1 %vm81_vm0, %v41_v18 }
  0x2a   :  { %167 = vmatprep.mubr.f32.mxu0 %v334_v0  ;;  %250 = vmatprep.mubr.f32.mxu1 %v334_v0 }
  0x2d   :  { %277 = vmatmul.mubr.msk.f32.gmra.mxu0 %vm81_vm0, %v42_v19  ;;  %280 = vmatmul.mubr.msk.f32.gmra.mxu1 %vm81_vm0, %v42_v19 }
  0xe5   :  { %v157_v31 = vpop.f32.mrf.mxu0  ;;  %v240_v32 = vpop.f32.mrf.mxu1 }
  0xe6   :  { %v158_v33 = vadd.f32 %v157_v31, %v64_v27  ;;  %v241_v34 = vadd.f32 %v240_v32, %v72_v28 }
  0xe7   :  { %v159_v35 = vpop.f32.mrf.mxu0  ;;  %v242_v36 = vpop.f32.mrf.mxu1 }
  0xe8   :  { %257 = vst [vmem:[%s415_s3] sm:$0xff] %v158_v33  ;;  %259 = vst [vmem:[%s415_s3 + $0x10] sm:$0xff] %v241_v34  ;;  %v160_v37 = vadd.f32 %v159_v35, %v68_v29  ;;  %v243_v38 = vadd.f32 %v242_v36, %v76_v30 }
  0xe9   :  { %v163_v39 = vpop.f32.mrf.mxu0  ;;  %v246_v40 = vpop.f32.mrf.mxu1 }
  0xea   :  { %258 = vst [vmem:[%s415_s3 + $0x8] sm:$0xff] %v160_v37  ;;  %260 = vst [vmem:[%s415_s3 + $0x18] sm:$0xff] %v243_v38  ;;  %v164_v41 = vadd.f32 %v163_v39, %v64_v27  ;;  %v247_v42 = vadd.f32 %v246_v40, %v72_v28 }
  0xeb   :  { %v165_v43 = vpop.f32.mrf.mxu0  ;;  %v248_v44 = vpop.f32.mrf.mxu1 }
  0xec   :  { %261 = vst [vmem:[%s415_s3 + $0x20] sm:$0xff] %v164_v41  ;;  %263 = vst [vmem:[%s415_s3 + $0x30] sm:$0xff] %v247_v42  ;;  %v166_v45 = vadd.f32 %v165_v43, %v68_v29  ;;  %v249_v46 = vadd.f32 %v248_v44, %v76_v30 }
  0xed   :  { %v169_v47 = vpop.f32.mrf.mxu0  ;;  %v252_v48 = vpop.f32.mrf.mxu1 }
  0xee   :  { %262 = vst [vmem:[%s415_s3 + $0x28] sm:$0xff] %v166_v45  ;;  %264 = vst [vmem:[%s415_s3 + $0x38] sm:$0xff] %v249_v46  ;;  %v170_v49 = vadd.f32 %v169_v47, %v64_v27  ;;  %v253_v50 = vadd.f32 %v252_v48, %v72_v28 }
  0xef   :  { %v171_v51 = vpop.f32.mrf.mxu0  ;;  %v254_v52 = vpop.f32.mrf.mxu1 }
  0xf0   :  { %265 = vst [vmem:[%s415_s3 + $0x40] sm:$0x3] %v170_v49  ;;  %267 = vst [vmem:[%s415_s3 + $0x50] sm:$0x3] %v253_v50  ;;  %v172_v53 = vadd.f32 %v171_v51, %v68_v29  ;;  %v255_v54 = vadd.f32 %v254_v52, %v76_v30 }
  0xf2   :  { %266 = vst [vmem:[%s415_s3 + $0x48] sm:$0x3] %v172_v53  ;;  %268 = vst [vmem:[%s415_s3 + $0x58] sm:$0x3] %v255_v54 }
  0xf3   :  { %273 = vsyncpa [#allocation3], 1 }
  0xf4   :  { %274 = vsyncpa [#allocation5], 1 }

// kernel: decoder_forward.4
= control target key start
LH: loop header
LB: loop body
LE: loop exit
PB: predicated region body
PF: predicated region fallthrough
CT: control target
= control target key end

     0   :  { %9 = vsyncpa [#allocation5], 0  ;;  %s4611_s15 = smov [#allocation4]   ;;  %s8824_s0 = inlined_call_operand.vmem [shape: f32[9,2,512], index: 0, kind: input, shape index: {}]   ;;  %s8825_s1 = inlined_call_operand.vmem [shape: f32[128,512], index: 1, kind: input, shape index: {}]   ;;  %s8826_s2 = inlined_call_operand.hbm [shape: f32[1,256,512], index: 2, kind: input, shape index: {}]   ;;  %s8827_s3 = inlined_call_operand.vmem [shape: f32[1,1,512], index: 3, kind: input, shape index: {}]   ;;  %s8828_s4 = inlined_call_operand.vmem [shape: f32[9,2,128], index: 4, kind: output, shape index: {}]  }
   0x1   :  { %s19_s16 = sshll.u32 %s4611_s15, 4  ;;  %s20_s16 = int_to_ptr.vmem [resolvable:$true] %s19_s16 }
   0x2   :  { %s4597_s17 = scalar_lea.vmem %s20_s16, 16384  ;;  %p4602_p1 = scmp.lt.s32.totalorder %s20_s16, %s20_s16 }
   0x3   :  { %p4598_p0 = scmp.ne.s32.totalorder %s20_s16, %s4597_s17  ;;  %p4603_p2 = scmp.lt.s32.totalorder %s4597_s17, %s4597_s17 }
   0x5   :  { %p4604_p3 = por %p4603_p2, %p4602_p1 }
   0x7   :  { %p4605_p4 = pnand %p4604_p3, %p4598_p0 }
   0x9   :  { %4608 = shalt.err (!%p4605_p4)
}
   0xa   :  { %s4612_s18 = smov 512   ;;  %s4613_s19 = smov 32  }
   0xb   :  { %25 = dma.hbm_to_vmem [thread:$0]  %s8826_s2, 16384, %s20_s16, [#allocation5], %s4612_s18, %s4612_s18, %s4613_s19  }
   0xc   :  { %4609 = dma.done.wait [#allocation5], 16384  }
   0xd   :  { %4610 = vsyncadd [#allocation5], 4294950912  ;;  %v8829_v0 = vmov 0.0   ;;  %v4651_v1 = vld [vmem:[%s8825_s1 + $0x1e8] sm:$0xff]  ;;  %v4656_v2 = vld [vmem:[%s8825_s1 + $0x1f8] sm:$0xff] }
   0xe   :  { %317 = vmatprep.mubr.f32.mxu0 %v8829_v0  ;;  %35 = vst [vmem:[#allocation2] sm:$0xf] %v8829_v0  ;;  %36 = vst [vmem:[#allocation3] sm:$0xf] %v8829_v0  ;;  %388 = vmatprep.mubr.f32.mxu1 %v8829_v0  ;;  %v4661_v3 = vld [vmem:[%s8825_s1 + $0x1e0] sm:$0xff]  ;;  %v4668_v4 = vld [vmem:[%s8825_s1 + $0x1f0] sm:$0xff] }
   0xf   :  { %253 = vmatprep.subr.mxu0 %v4651_v1  ;;  %324 = vmatprep.subr.mxu1 %v4656_v2  ;;  %v4673_v5 = vld [vmem:[%s8825_s1 + $0x1c8] sm:$0xff]  ;;  %v4678_v6 = vld [vmem:[%s8825_s1 + $0x1d8] sm:$0xff]  ;;  %v4685_v7 = vld [vmem:[%s8825_s1 + $0x1c0] sm:$0xff] }
  0x10   :  { %254 = vmatpush1.msra.mxu0 %v4661_v3  ;;  %325 = vmatpush1.msra.mxu1 %v4668_v4  ;;  %v4690_v8 = vld [vmem:[%s8825_s1 + $0x1d0] sm:$0xff]  ;;  %v4695_v9 = vld [vmem:[%s8825_s1 + $0x1a8] sm:$0xff]  ;;  %v4702_v10 = vld [vmem:[%s8825_s1 + $0x1b8] sm:$0xff] }
  0x11   :  { %255 = vmatprep.subr.mxu0 %v4673_v5  ;;  %326 = vmatprep.subr.mxu1 %v4678_v6  ;;  %v4707_v11 = vld [vmem:[%s8825_s1 + $0x1a0] sm:$0xff]  ;;  %v4712_v12 = vld [vmem:[%s8825_s1 + $0x1b0] sm:$0xff]  ;;  %v4719_v13 = vld [vmem:[%s8825_s1 + $0x188] sm:$0xff] }
  0x12   :  { %256 = vmatpush1.msra.mxu0 %v4685_v7  ;;  %327 = vmatpush1.msra.mxu1 %v4690_v8  ;;  %v4724_v14 = vld [vmem:[%s8825_s1 + $0x198] sm:$0xff]  ;;  %v4731_v15 = vld [vmem:[%s8825_s1 + $0x180] sm:$0xff]  ;;  %v4736_v16 = vld [vmem:[%s8825_s1 + $0x190] sm:$0xff] }
  0x13   :  { %257 = vmatprep.subr.mxu0 %v4695_v9  ;;  %328 = vmatprep.subr.mxu1 %v4702_v10  ;;  %v4743_v17 = vld [vmem:[%s8825_s1 + $0x168] sm:$0xff]  ;;  %v4748_v18 = vld [vmem:[%s8825_s1 + $0x178] sm:$0xff]  ;;  %v4755_v19 = vld [vmem:[%s8825_s1 + $0x160] sm:$0xff] }
  0x14   :  { %258 = vmatpush1.msra.mxu0 %v4707_v11  ;;  %329 = vmatpush1.msra.mxu1 %v4712_v12  ;;  %v4760_v20 = vld [vmem:[%s8825_s1 + $0x170] sm:$0xff]  ;;  %v4767_v21 = vld [vmem:[%s8825_s1 + $0x148] sm:$0xff]  ;;  %v4772_v22 = vld [vmem:[%s8825_s1 + $0x158] sm:$0xff] }
  0x15   :  { %259 = vmatprep.subr.mxu0 %v4719_v13  ;;  %330 = vmatprep.subr.mxu1 %v4724_v14  ;;  %v4779_v23 = vld [vmem:[%s8825_s1 + $0x140] sm:$0xff]  ;;  %v4784_v24 = vld [vmem:[%s8825_s1 + $0x150] sm:$0xff]  ;;  %v4791_v25 = vld [vmem:[%s8825_s1 + $0x128] sm:$0xff] }
  0x16   :  { %260 = vmatpush1.msra.mxu0 %v4731_v15  ;;  %331 = vmatpush1.msra.mxu1 %v4736_v16  ;;  %v4796_v26 = vld [vmem:[%s8825_s1 + $0x138] sm:$0xff]  ;;  %v4803_v27 = vld [vmem:[%s8825_s1 + $0x120] sm:$0xff]  ;;  %v4808_v28 = vld [vmem:[%s8825_s1 + $0x130] sm:$0xff] }
  0x17   :  { %261 = vmatprep.subr.mxu0 %v4743_v17  ;;  %332 = vmatprep.subr.mxu1 %v4748_v18  ;;  %v4815_v29 = vld [vmem:[%s8825_s1 + $0x108] sm:$0xff]  ;;  %v4820_v30 = vld [vmem:[%s8825_s1 + $0x118] sm:$0xff]  ;;  %v4827_v31 = vld [vmem:[%s8825_s1 + $0x100] sm:$0xff] }
  0x18   :  { %262 = vmatpush1.msra.mxu0 %v4755_v19  ;;  %333 = vmatpush1.msra.mxu1 %v4760_v20  ;;  %v4832_v32 = vld [vmem:[%s8825_s1 + $0x110] sm:$0xff]  ;;  %v4839_v33 = vld [vmem:[%s8825_s1 + $0xe8] sm:$0xff]  ;;  %v4844_v34 = vld [vmem:[%s8825_s1 + $0xf8] sm:$0xff] }
  0x19   :  { %263 = vmatprep.subr.mxu0 %v4767_v21  ;;  %334 = vmatprep.subr.mxu1 %v4772_v22  ;;  %v4851_v35 = vld [vmem:[%s8825_s1 + $0xe0] sm:$0xff]  ;;  %v4856_v36 = vld [vmem:[%s8825_s1 + $0xf0] sm:$0xff]  ;;  %v4863_v37 = vld [vmem:[%s8825_s1 + $0xc8] sm:$0xff] }
  0x1a   :  { %264 = vmatpush1.msra.mxu0 %v4779_v23  ;;  %335 = vmatpush1.msra.mxu1 %v4784_v24  ;;  %v4868_v38 = vld [vmem:[%s8825_s1 + $0xd8] sm:$0xff]  ;;  %v4875_v39 = vld [vmem:[%s8825_s1 + $0xc0] sm:$0xff]  ;;  %v4880_v40 = vld [vmem:[%s8825_s1 + $0xd0] sm:$0xff] }
  0x1b   :  { %265 = vmatprep.subr.mxu0 %v4791_v25  ;;  %336 = vmatprep.subr.mxu1 %v4796_v26  ;;  %v4887_v41 = vld [vmem:[%s8825_s1 + $0xa8] sm:$0xff]  ;;  %v4892_v42 = vld [vmem:[%s8825_s1 + $0xb8] sm:$0xff]  ;;  %v4899_v43 = vld [vmem:[%s8825_s1 + $0xa0] sm:$0xff] }
  0x1c   :  { %266 = vmatpush1.msra.mxu0 %v4803_v27  ;;  %337 = vmatpush1.msra.mxu1 %v4808_v28  ;;  %v4904_v44 = vld [vmem:[%s8825_s1 + $0xb0] sm:$0xff]  ;;  %v4911_v45 = vld [vmem:[%s8825_s1 + $0x88] sm:$0xff]  ;;  %v4916_v46 = vld [vmem:[%s8825_s1 + $0x98] sm:$0xff] }
  0x1d   :  { %267 = vmatprep.subr.mxu0 %v4815_v29  ;;  %338 = vmatprep.subr.mxu1 %v4820_v30  ;;  %v4923_v47 = vld [vmem:[%s8825_s1 + $0x80] sm:$0xff]  ;;  %v4928_v48 = vld [vmem:[%s8825_s1 + $0x90] sm:$0xff]  ;;  %v4935_v49 = vld [vmem:[%s8825_s1 + $0x68] sm:$0xff] }
  0x1e   :  { %268 = vmatpush1.msra.mxu0 %v4827_v31  ;;  %339 = vmatpush1.msra.mxu1 %v4832_v32  ;;  %9437 = vst [vmem:[#allocation7_spill] sm:$0xff] %v4928_v48  ;;  %9438 = vst [vmem:[#allocation8_spill] sm:$0xff] %v4935_v49  ;;  %v4940_v50 = vld [vmem:[%s8825_s1 + $0x78] sm:$0xff]  ;;  %v4947_v51 = vld [vmem:[%s8825_s1 + $0x60] sm:$0xff] }
  0x1f   :  { %269 = vmatprep.subr.mxu0 %v4839_v33  ;;  %340 = vmatprep.subr.mxu1 %v4844_v34  ;;  %9439 = vst [vmem:[#allocation9_spill] sm:$0xff] %v4940_v50  ;;  %9440 = vst [vmem:[#allocation10_spill] sm:$0xff] %v4947_v51  ;;  %v4952_v52 = vld [vmem:[%s8825_s1 + $0x70] sm:$0xff]  ;;  %v4959_v53 = vld [vmem:[%s8825_s1 + $0x48] sm:$0xff] }
  0x20   :  { %270 = vmatpush1.msra.mxu0 %v4851_v35  ;;  %341 = vmatpush1.msra.mxu1 %v4856_v36  ;;  %9441 = vst [vmem:[#allocation11_spill] sm:$0xff] %v4952_v52  ;;  %9442 = vst [vmem:[#allocation12_spill] sm:$0xff] %v4959_v53  ;;  %v4964_v54 = vld [vmem:[%s8825_s1 + $0x58] sm:$0xff]  ;;  %v4971_v55 = vld [vmem:[%s8825_s1 + $0x40] sm:$0xff] }
  0x21   :  { %271 = vmatprep.subr.mxu0 %v4863_v37  ;;  %342 = vmatprep.subr.mxu1 %v4868_v38  ;;  %9443 = vst [vmem:[#allocation13_spill] sm:$0xff] %v4964_v54  ;;  %9444 = vst [vmem:[#allocation14_spill] sm:$0xff] %v4971_v55  ;;  %v4976_v56 = vld [vmem:[%s8825_s1 + $0x50] sm:$0xff]  ;;  %v4983_v57 = vld [vmem:[%s8825_s1 + $0x28] sm:$0xff] }
  0x22   :  { %272 = vmatpush1.msra.mxu0 %v4875_v39  ;;  %343 = vmatpush1.msra.mxu1 %v4880_v40  ;;  %9445 = vst [vmem:[#allocation15_spill] sm:$0xff] %v4976_v56  ;;  %9446 = vst [vmem:[#allocation16_spill] sm:$0xff] %v4983_v57  ;;  %v4988_v58 = vld [vmem:[%s8825_s1 + $0x38] sm:$0xff]  ;;  %v4995_v59 = vld [vmem:[%s8825_s1 + $0x20] sm:$0xff] }
  0x23   :  { %273 = vmatprep.subr.mxu0 %v4887_v41  ;;  %344 = vmatprep.subr.mxu1 %v4892_v42  ;;  %9447 = vst [vmem:[#allocation17_spill] sm:$0xff] %v4988_v58  ;;  %9448 = vst [vmem:[#allocation18_spill] sm:$0xff] %v4995_v59  ;;  %v5000_v60 = vld [vmem:[%s8825_s1 + $0x30] sm:$0xff]  ;;  %v5007_v61 = vld [vmem:[%s8825_s1 + $0x8] sm:$0xff] }
  0x24   :  { %274 = vmatpush1.msra.mxu0 %v4899_v43  ;;  %345 = vmatpush1.msra.mxu1 %v4904_v44  ;;  %9449 = vst [vmem:[#allocation19_spill] sm:$0xff] %v5000_v60  ;;  %9450 = vst [vmem:[#allocation20_spill] sm:$0xff] %v5007_v61  ;;  %v5012_v62 = vld [vmem:[%s8825_s1 + $0x18] sm:$0xff]  ;;  %v5019_v63 = vld [vmem:[%s8825_s1] sm:$0xff] }
  0x25   :  { %275 = vmatprep.subr.mxu0 %v4911_v45  ;;  %346 = vmatprep.subr.mxu1 %v4916_v46  ;;  %9451 = vst [vmem:[#allocation21_spill] sm:$0xff] %v5012_v62  ;;  %9452 = vst [vmem:[#allocation22_spill] sm:$0xff] %v5019_v63  ;;  %v5024_v0 = vld [vmem:[%s8825_s1 + $0x10] sm:$0xff] }
  0x26   :  { %276 = vmatpush1.msra.mxu0 %v4923_v47  ;;  %347 = vmatpush1.msra.mxu1 %v4928_v48  ;;  %9453 = vst [vmem:[#allocation23_spill] sm:$0xff] %v5024_v0 }
  0x27   :  { %277 = vmatprep.subr.mxu0 %v4935_v49  ;;  %348 = vmatprep.subr.mxu1 %v4940_v50 }
  0x28   :  { %278 = vmatpush1.msra.mxu0 %v4947_v51  ;;  %349 = vmatpush1.msra.mxu1 %v4952_v52 }
  0x29   :  { %279 = vmatprep.subr.mxu0 %v4959_v53  ;;  %350 = vmatprep.subr.mxu1 %v4964_v54 }
  0x2a   :  { %280 = vmatpush1.msra.mxu0 %v4971_v55  ;;  %351 = vmatpush1.msra.mxu1 %v4976_v56  ;;  %v252_v56 = vld [vmem:[#allocation2] sm:$0x3] }
  0x2b   :  { %281 = vmatprep.subr.mxu0 %v4983_v57  ;;  %352 = vmatprep.subr.mxu1 %v4988_v58  ;;  %v5030_v58 = vld [vmem:[#allocation4 + $0x1e8] sm:$0xff]  ;;  %v5032_v57 = vld [vmem:[#allocation4 + $0x1f8] sm:$0xff] }
  0x2c   :  { %282 = vmatpush1.msra.mxu0 %v4995_v59  ;;  %353 = vmatpush1.msra.mxu1 %v5000_v60  ;;  %9454 = vst [vmem:[#allocation24_spill] sm:$0xff] %v5030_v58  ;;  %9455 = vst [vmem:[#allocation25_spill] sm:$0xff] %v5032_v57  ;;  %v5038_v60 = vld [vmem:[#allocation4 + $0x1e0] sm:$0xff]  ;;  %v5040_v59 = vld [vmem:[#allocation4 + $0x1f0] sm:$0xff] }
  0x2d   :  { %283 = vmatprep.subr.mxu0 %v5007_v61  ;;  %354 = vmatprep.subr.mxu1 %v5012_v62  ;;  %9456 = vst [vmem:[#allocation26_spill] sm:$0xff] %v5038_v60  ;;  %9457 = vst [vmem:[#allocation27_spill] sm:$0xff] %v5040_v59  ;;  %v5044_v62 = vld [vmem:[#allocation4 + $0x1c8] sm:$0xff]  ;;  %v5046_v61 = vld [vmem:[#allocation4 + $0x1d8] sm:$0xff] }
  0x2e   :  { %284 = vmatpush1.msra.mxu0 %v5019_v63  ;;  %355 = vmatpush1.msra.mxu1 %v5024_v0  ;;  %9458 = vst [vmem:[#allocation28_spill] sm:$0xff] %v5044_v62  ;;  %9459 = vst [vmem:[#allocation29_spill] sm:$0xff] %v5046_v61  ;;  %v5410_v0 = vld [vmem:[#allocation4 + $0x210] sm:$0xff] }
  0x2f   :  { %318 = vmatmul.mubr.f32.vlgmr.msra.gmra.mxu0 %v252_v56  ;;  %389 = vmatmul.mubr.f32.vlgmr.msra.gmra.mxu1 %v252_v56  ;;  %v5050_v56 = vld [vmem:[#allocation4 + $0x1c0] sm:$0xff]  ;;  %9581 = vst [vmem:[#allocation151_spill] sm:$0xff] %v5410_v0 }
  0x30   :  { %458 = vmatprep.subr.mxu0 %v5030_v58  ;;  %529 = vmatprep.subr.mxu1 %v5032_v57  ;;  %9460 = vst [vmem:[#allocation30_spill] sm:$0xff] %v5050_v56  ;;  %v5052_v58 = vld [vmem:[#allocation4 + $0x1d0] sm:$0xff]  ;;  %v5056_v57 = vld [vmem:[#allocation4 + $0x1a8] sm:$0xff] }
  0x31   :  { %459 = vmatpush1.msra.mxu0 %v5038_v60  ;;  %530 = vmatpush1.msra.mxu1 %v5040_v59  ;;  %9461 = vst [vmem:[#allocation31_spill] sm:$0xff] %v5052_v58  ;;  %9462 = vst [vmem:[#allocation32_spill] sm:$0xff] %v5056_v57  ;;  %v5058_v60 = vld [vmem:[#allocation4 + $0x1b8] sm:$0xff]  ;;  %v5062_v59 = vld [vmem:[#allocation4 + $0x1a0] sm:$0xff] }
  0x32   :  { %460 = vmatprep.subr.mxu0 %v5044_v62  ;;  %531 = vmatprep.subr.mxu1 %v5046_v61  ;;  %9463 = vst [vmem:[#allocation33_spill] sm:$0xff] %v5058_v60  ;;  %9464 = vst [vmem:[#allocation34_spill] sm:$0xff] %v5062_v59  ;;  %v5064_v62 = vld [vmem:[#allocation4 + $0x1b0] sm:$0xff]  ;;  %v5068_v61 = vld [vmem:[#allocation4 + $0x188] sm:$0xff] }
  0x33   :  { %461 = vmatpush1.msra.mxu0 %v5050_v56  ;;  %532 = vmatpush1.msra.mxu1 %v5052_v58  ;;  %9465 = vst [vmem:[#allocation35_spill] sm:$0xff] %v5064_v62  ;;  %9466 = vst [vmem:[#allocation36_spill] sm:$0xff] %v5068_v61  ;;  %v5070_v56 = vld [vmem:[#allocation4 + $0x198] sm:$0xff]  ;;  %v5074_v58 = vld [vmem:[#allocation4 + $0x180] sm:$0xff] }
  0x34   :  { %462 = vmatprep.subr.mxu0 %v5056_v57  ;;  %533 = vmatprep.subr.mxu1 %v5058_v60  ;;  %9467 = vst [vmem:[#allocation37_spill] sm:$0xff] %v5070_v56  ;;  %9468 = vst [vmem:[#allocation38_spill] sm:$0xff] %v5074_v58  ;;  %v5076_v57 = vld [vmem:[#allocation4 + $0x190] sm:$0xff]  ;;  %v5080_v60 = vld [vmem:[#allocation4 + $0x168] sm:$0xff] }
  0x35   :  { %463 = vmatpush1.msra.mxu0 %v5062_v59  ;;  %534 = vmatpush1.msra.mxu1 %v5064_v62  ;;  %9469 = vst [vmem:[#allocation39_spill] sm:$0xff] %v5076_v57  ;;  %9470 = vst [vmem:[#allocation40_spill] sm:$0xff] %v5080_v60  ;;  %v5082_v59 = vld [vmem:[#allocation4 + $0x178] sm:$0xff]  ;;  %v5086_v62 = vld [vmem:[#allocation4 + $0x160] sm:$0xff] }
  0x36   :  { %464 = vmatprep.subr.mxu0 %v5068_v61  ;;  %535 = vmatprep.subr.mxu1 %v5070_v56  ;;  %9471 = vst [vmem:[#allocation41_spill] sm:$0xff] %v5082_v59  ;;  %9472 = vst [vmem:[#allocation42_spill] sm:$0xff] %v5086_v62  ;;  %v5088_v61 = vld [vmem:[#allocation4 + $0x170] sm:$0xff]  ;;  %v5092_v56 = vld [vmem:[#allocation4 + $0x148] sm:$0xff] }
  0x37   :  { %465 = vmatpush1.msra.mxu0 %v5074_v58  ;;  %536 = vmatpush1.msra.mxu1 %v5076_v57  ;;  %9473 = vst [vmem:[#allocation43_spill] sm:$0xff] %v5088_v61  ;;  %9474 = vst [vmem:[#allocation44_spill] sm:$0xff] %v5092_v56  ;;  %v5094_v58 = vld [vmem:[#allocation4 + $0x158] sm:$0xff]  ;;  %v5098_v57 = vld [vmem:[#allocation4 + $0x140] sm:$0xff] }
  0x38   :  { %466 = vmatprep.subr.mxu0 %v5080_v60  ;;  %537 = vmatprep.subr.mxu1 %v5082_v59  ;;  %9475 = vst [vmem:[#allocation45_spill] sm:$0xff] %v5094_v58  ;;  %9476 = vst [vmem:[#allocation46_spill] sm:$0xff] %v5098_v57  ;;  %v5100_v60 = vld [vmem:[#allocation4 + $0x150] sm:$0xff]  ;;  %v5104_v59 = vld [vmem:[#allocation4 + $0x128] sm:$0xff] }
  0x39   :  { %467 = vmatpush1.msra.mxu0 %v5086_v62  ;;  %538 = vmatpush1.msra.mxu1 %v5088_v61  ;;  %9477 = vst [vmem:[#allocation47_spill] sm:$0xff] %v5100_v60  ;;  %9478 = vst [vmem:[#allocation48_spill] sm:$0xff] %v5104_v59  ;;  %v5106_v62 = vld [vmem:[#allocation4 + $0x138] sm:$0xff]  ;;  %v5110_v61 = vld [vmem:[#allocation4 + $0x120] sm:$0xff] }
  0x3a   :  { %468 = vmatprep.subr.mxu0 %v5092_v56  ;;  %539 = vmatprep.subr.mxu1 %v5094_v58  ;;  %9479 = vst [vmem:[#allocation49_spill] sm:$0xff] %v5106_v62  ;;  %9480 = vst [vmem:[#allocation50_spill] sm:$0xff] %v5110_v61  ;;  %v5112_v56 = vld [vmem:[#allocation4 + $0x130] sm:$0xff]  ;;  %v5116_v58 = vld [vmem:[#allocation4 + $0x108] sm:$0xff] }
  0x3b   :  { %469 = vmatpush1.msra.mxu0 %v5098_v57  ;;  %540 = vmatpush1.msra.mxu1 %v5100_v60  ;;  %9481 = vst [vmem:[#allocation51_spill] sm:$0xff] %v5112_v56  ;;  %9482 = vst [vmem:[#allocation52_spill] sm:$0xff] %v5116_v58  ;;  %v5118_v57 = vld [vmem:[#allocation4 + $0x118] sm:$0xff]  ;;  %v5122_v60 = vld [vmem:[#allocation4 + $0x100] sm:$0xff] }
  0x3c   :  { %470 = vmatprep.subr.mxu0 %v5104_v59  ;;  %541 = vmatprep.subr.mxu1 %v5106_v62  ;;  %9483 = vst [vmem:[#allocation53_spill] sm:$0xff] %v5118_v57  ;;  %9484 = vst [vmem:[#allocation54_spill] sm:$0xff] %v5122_v60  ;;  %v5124_v59 = vld [vmem:[#allocation4 + $0x110] sm:$0xff]  ;;  %v5128_v62 = vld [vmem:[#allocation4 + $0xe8] sm:$0xff] }
  0x3d   :  { %471 = vmatpush1.msra.mxu0 %v5110_v61  ;;  %542 = vmatpush1.msra.mxu1 %v5112_v56  ;;  %9485 = vst [vmem:[#allocation55_spill] sm:$0xff] %v5124_v59  ;;  %9486 = vst [vmem:[#allocation56_spill] sm:$0xff] %v5128_v62  ;;  %v5130_v61 = vld [vmem:[#allocation4 + $0xf8] sm:$0xff]  ;;  %v5134_v56 = vld [vmem:[#allocation4 + $0xe0] sm:$0xff] }
  0x3e   :  { %472 = vmatprep.subr.mxu0 %v5116_v58  ;;  %543 = vmatprep.subr.mxu1 %v5118_v57  ;;  %9487 = vst [vmem:[#allocation57_spill] sm:$0xff] %v5130_v61  ;;  %9488 = vst [vmem:[#allocation58_spill] sm:$0xff] %v5134_v56  ;;  %v5136_v58 = vld [vmem:[#allocation4 + $0xf0] sm:$0xff]  ;;  %v5140_v57 = vld [vmem:[#allocation4 + $0xc8] sm:$0xff] }
  0x3f   :  { %473 = vmatpush1.msra.mxu0 %v5122_v60  ;;  %544 = vmatpush1.msra.mxu1 %v5124_v59  ;;  %9489 = vst [vmem:[#allocation59_spill] sm:$0xff] %v5136_v58  ;;  %9490 = vst [vmem:[#allocation60_spill] sm:$0xff] %v5140_v57  ;;  %v5142_v60 = vld [vmem:[#allocation4 + $0xd8] sm:$0xff]  ;;  %v5146_v59 = vld [vmem:[#allocation4 + $0xc0] sm:$0xff] }
  0x40   :  { %474 = vmatprep.subr.mxu0 %v5128_v62  ;;  %545 = vmatprep.subr.mxu1 %v5130_v61  ;;  %9491 = vst [vmem:[#allocation61_spill] sm:$0xff] %v5142_v60  ;;  %9492 = vst [vmem:[#allocation62_spill] sm:$0xff] %v5146_v59  ;;  %v5148_v62 = vld [vmem:[#allocation4 + $0xd0] sm:$0xff]  ;;  %v5152_v61 = vld [vmem:[#allocation4 + $0xa8] sm:$0xff] }
  0x41   :  { %475 = vmatpush1.msra.mxu0 %v5134_v56  ;;  %546 = vmatpush1.msra.mxu1 %v5136_v58  ;;  %9493 = vst [vmem:[#allocation63_spill] sm:$0xff] %v5148_v62  ;;  %9494 = vst [vmem:[#allocation64_spill] sm:$0xff] %v5152_v61  ;;  %v5154_v56 = vld [vmem:[#allocation4 + $0xb8] sm:$0xff]  ;;  %v5158_v58 = vld [vmem:[#allocation4 + $0xa0] sm:$0xff] }
  0x42   :  { %476 = vmatprep.subr.mxu0 %v5140_v57  ;;  %547 = vmatprep.subr.mxu1 %v5142_v60  ;;  %9495 = vst [vmem:[#allocation65_spill] sm:$0xff] %v5154_v56  ;;  %9496 = vst [vmem:[#allocation66_spill] sm:$0xff] %v5158_v58  ;;  %v5160_v57 = vld [vmem:[#allocation4 + $0xb0] sm:$0xff]  ;;  %v5164_v60 = vld [vmem:[#allocation4 + $0x88] sm:$0xff] }
  0x43   :  { %477 = vmatpush1.msra.mxu0 %v5146_v59  ;;  %548 = vmatpush1.msra.mxu1 %v5148_v62  ;;  %9497 = vst [vmem:[#allocation67_spill] sm:$0xff] %v5160_v57  ;;  %9498 = vst [vmem:[#allocation68_spill] sm:$0xff] %v5164_v60  ;;  %v5166_v59 = vld [vmem:[#allocation4 + $0x98] sm:$0xff]  ;;  %v5170_v62 = vld [vmem:[#allocation4 + $0x80] sm:$0xff] }
  0x44   :  { %478 = vmatprep.subr.mxu0 %v5152_v61  ;;  %549 = vmatprep.subr.mxu1 %v5154_v56  ;;  %9499 = vst [vmem:[#allocation69_spill] sm:$0xff] %v5166_v59  ;;  %9500 = vst [vmem:[#allocation70_spill] sm:$0xff] %v5170_v62  ;;  %v5172_v61 = vld [vmem:[#allocation4 + $0x90] sm:$0xff]  ;;  %v5176_v56 = vld [vmem:[#allocation4 + $0x68] sm:$0xff] }
  0x45   :  { %479 = vmatpush1.msra.mxu0 %v5158_v58  ;;  %550 = vmatpush1.msra.mxu1 %v5160_v57  ;;  %9501 = vst [vmem:[#allocation71_spill] sm:$0xff] %v5172_v61  ;;  %9502 = vst [vmem:[#allocation72_spill] sm:$0xff] %v5176_v56  ;;  %v5178_v58 = vld [vmem:[#allocation4 + $0x78] sm:$0xff]  ;;  %v5182_v57 = vld [vmem:[#allocation4 + $0x60] sm:$0xff] }
  0x46   :  { %480 = vmatprep.subr.mxu0 %v5164_v60  ;;  %551 = vmatprep.subr.mxu1 %v5166_v59  ;;  %9503 = vst [vmem:[#allocation73_spill] sm:$0xff] %v5178_v58  ;;  %9504 = vst [vmem:[#allocation74_spill] sm:$0xff] %v5182_v57  ;;  %v5184_v60 = vld [vmem:[#allocation4 + $0x70] sm:$0xff]  ;;  %v5188_v59 = vld [vmem:[#allocation4 + $0x48] sm:$0xff] }
  0x47   :  { %481 = vmatpush1.msra.mxu0 %v5170_v62  ;;  %552 = vmatpush1.msra.mxu1 %v5172_v61  ;;  %9505 = vst [vmem:[#allocation75_spill] sm:$0xff] %v5184_v60  ;;  %9506 = vst [vmem:[#allocation76_spill] sm:$0xff] %v5188_v59  ;;  %v5190_v62 = vld [vmem:[#allocation4 + $0x58] sm:$0xff]  ;;  %v5194_v61 = vld [vmem:[#allocation4 + $0x40] sm:$0xff] }
  0x48   :  { %482 = vmatprep.subr.mxu0 %v5176_v56  ;;  %553 = vmatprep.subr.mxu1 %v5178_v58  ;;  %9507 = vst [vmem:[#allocation77_spill] sm:$0xff] %v5190_v62  ;;  %9508 = vst [vmem:[#allocation78_spill] sm:$0xff] %v5194_v61  ;;  %v5196_v56 = vld [vmem:[#allocation4 + $0x50] sm:$0xff]  ;;  %v5200_v58 = vld [vmem:[#allocation4 + $0x28] sm:$0xff] }
  0x49   :  { %483 = vmatpush1.msra.mxu0 %v5182_v57  ;;  %554 = vmatpush1.msra.mxu1 %v5184_v60  ;;  %9509 = vst [vmem:[#allocation79_spill] sm:$0xff] %v5196_v56  ;;  %9510 = vst [vmem:[#allocation80_spill] sm:$0xff] %v5200_v58  ;;  %v5202_v57 = vld [vmem:[#allocation4 + $0x38] sm:$0xff]  ;;  %v5206_v60 = vld [vmem:[#allocation4 + $0x20] sm:$0xff] }
  0x4a   :  { %484 = vmatprep.subr.mxu0 %v5188_v59  ;;  %555 = vmatprep.subr.mxu1 %v5190_v62  ;;  %9511 = vst [vmem:[#allocation81_spill] sm:$0xff] %v5202_v57  ;;  %9512 = vst [vmem:[#allocation82_spill] sm:$0xff] %v5206_v60  ;;  %v5208_v59 = vld [vmem:[#allocation4 + $0x30] sm:$0xff]  ;;  %v5212_v62 = vld [vmem:[#allocation4 + $0x8] sm:$0xff] }
  0x4b   :  { %485 = vmatpush1.msra.mxu0 %v5194_v61  ;;  %556 = vmatpush1.msra.mxu1 %v5196_v56  ;;  %9513 = vst [vmem:[#allocation83_spill] sm:$0xff] %v5208_v59  ;;  %9514 = vst [vmem:[#allocation84_spill] sm:$0xff] %v5212_v62  ;;  %v5214_v61 = vld [vmem:[#allocation4 + $0x18] sm:$0xff]  ;;  %v5218_v56 = vld [vmem:[#allocation4] sm:$0xff] }
  0x4c   :  { %486 = vmatprep.subr.mxu0 %v5200_v58  ;;  %557 = vmatprep.subr.mxu1 %v5202_v57  ;;  %9515 = vst [vmem:[#allocation85_spill] sm:$0xff] %v5214_v61  ;;  %9516 = vst [vmem:[#allocation86_spill] sm:$0xff] %v5218_v56  ;;  %v5220_v58 = vld [vmem:[#allocation4 + $0x10] sm:$0xff]  ;;  %v5224_v57 = vld [vmem:[#allocation4 + $0x3e8] sm:$0xff] }
  0x4d   :  { %487 = vmatpush1.msra.mxu0 %v5206_v60  ;;  %558 = vmatpush1.msra.mxu1 %v5208_v59  ;;  %9517 = vst [vmem:[#allocation87_spill] sm:$0xff] %v5220_v58  ;;  %9518 = vst [vmem:[#allocation88_spill] sm:$0xff] %v5224_v57  ;;  %v5226_v60 = vld [vmem:[#allocation4 + $0x3f8] sm:$0xff]  ;;  %v5230_v59 = vld [vmem:[#allocation4 + $0x3e0] sm:$0xff] }
  0x4e   :  { %488 = vmatprep.subr.mxu0 %v5212_v62  ;;  %559 = vmatprep.subr.mxu1 %v5214_v61  ;;  %9519 = vst [vmem:[#allocation89_spill] sm:$0xff] %v5226_v60  ;;  %9520 = vst [vmem:[#allocation90_spill] sm:$0xff] %v5230_v59  ;;  %v5232_v62 = vld [vmem:[#allocation4 + $0x3f0] sm:$0xff]  ;;  %v5236_v61 = vld [vmem:[#allocation4 + $0x3c8] sm:$0xff] }
  0x4f   :  { %489 = vmatpush1.msra.mxu0 %v5218_v56  ;;  %560 = vmatpush1.msra.mxu1 %v5220_v58  ;;  %9521 = vst [vmem:[#allocation91_spill] sm:$0xff] %v5232_v62  ;;  %9522 = vst [vmem:[#allocation92_spill] sm:$0xff] %v5236_v61  ;;  %v5238_v56 = vld [vmem:[#allocation4 + $0x3d8] sm:$0xff]  ;;  %v5242_v58 = vld [vmem:[#allocation4 + $0x3c0] sm:$0xff] }
  0x50   :  { %490 = vmatprep.subr.mxu0 %v5224_v57  ;;  %561 = vmatprep.subr.mxu1 %v5226_v60  ;;  %9523 = vst [vmem:[#allocation93_spill] sm:$0xff] %v5238_v56  ;;  %9524 = vst [vmem:[#allocation94_spill] sm:$0xff] %v5242_v58  ;;  %v5244_v57 = vld [vmem:[#allocation4 + $0x3d0] sm:$0xff]  ;;  %v5248_v60 = vld [vmem:[#allocation4 + $0x3a8] sm:$0xff] }
  0x51   :  { %491 = vmatpush2.msra.mxu0 %v5230_v59  ;;  %562 = vmatpush2.msra.mxu1 %v5232_v62  ;;  %9525 = vst [vmem:[#allocation95_spill] sm:$0xff] %v5244_v57  ;;  %9526 = vst [vmem:[#allocation96_spill] sm:$0xff] %v5248_v60  ;;  %v5250_v59 = vld [vmem:[#allocation4 + $0x3b8] sm:$0xff]  ;;  %v5254_v62 = vld [vmem:[#allocation4 + $0x3a0] sm:$0xff] }
  0x52   :  { %492 = vmatprep.subr.mxu0 %v5236_v61  ;;  %563 = vmatprep.subr.mxu1 %v5238_v56  ;;  %9527 = vst [vmem:[#allocation97_spill] sm:$0xff] %v5250_v59  ;;  %9528 = vst [vmem:[#allocation98_spill] sm:$0xff] %v5254_v62  ;;  %v5256_v61 = vld [vmem:[#allocation4 + $0x3b0] sm:$0xff]  ;;  %v5260_v56 = vld [vmem:[#allocation4 + $0x388] sm:$0xff] }
  0x53   :  { %493 = vmatpush2.msra.mxu0 %v5242_v58  ;;  %564 = vmatpush2.msra.mxu1 %v5244_v57  ;;  %9529 = vst [vmem:[#allocation99_spill] sm:$0xff] %v5256_v61  ;;  %9530 = vst [vmem:[#allocation100_spill] sm:$0xff] %v5260_v56  ;;  %v5262_v58 = vld [vmem:[#allocation4 + $0x398] sm:$0xff]  ;;  %v5266_v57 = vld [vmem:[#allocation4 + $0x380] sm:$0xff] }
  0x54   :  { %494 = vmatprep.subr.mxu0 %v5248_v60  ;;  %565 = vmatprep.subr.mxu1 %v5250_v59  ;;  %9531 = vst [vmem:[#allocation101_spill] sm:$0xff] %v5262_v58  ;;  %9532 = vst [vmem:[#allocation102_spill] sm:$0xff] %v5266_v57  ;;  %v5268_v60 = vld [vmem:[#allocation4 + $0x390] sm:$0xff]  ;;  %v5272_v59 = vld [vmem:[#allocation4 + $0x368] sm:$0xff] }
  0x55   :  { %495 = vmatpush2.msra.mxu0 %v5254_v62  ;;  %566 = vmatpush2.msra.mxu1 %v5256_v61  ;;  %9533 = vst [vmem:[#allocation103_spill] sm:$0xff] %v5268_v60  ;;  %9534 = vst [vmem:[#allocation104_spill] sm:$0xff] %v5272_v59  ;;  %v5274_v62 = vld [vmem:[#allocation4 + $0x378] sm:$0xff]  ;;  %v5278_v61 = vld [vmem:[#allocation4 + $0x360] sm:$0xff] }
  0x56   :  { %496 = vmatprep.subr.mxu0 %v5260_v56  ;;  %567 = vmatprep.subr.mxu1 %v5262_v58  ;;  %9535 = vst [vmem:[#allocation105_spill] sm:$0xff] %v5274_v62  ;;  %9536 = vst [vmem:[#allocation106_spill] sm:$0xff] %v5278_v61  ;;  %v5280_v56 = vld [vmem:[#allocation4 + $0x370] sm:$0xff]  ;;  %v5284_v58 = vld [vmem:[#allocation4 + $0x348] sm:$0xff] }
  0x57   :  { %497 = vmatpush2.msra.mxu0 %v5266_v57  ;;  %568 = vmatpush2.msra.mxu1 %v5268_v60  ;;  %9537 = vst [vmem:[#allocation107_spill] sm:$0xff] %v5280_v56  ;;  %9538 = vst [vmem:[#allocation108_spill] sm:$0xff] %v5284_v58  ;;  %v5286_v57 = vld [vmem:[#allocation4 + $0x358] sm:$0xff]  ;;  %v5290_v60 = vld [vmem:[#allocation4 + $0x340] sm:$0xff] }
  0x58   :  { %498 = vmatprep.subr.mxu0 %v5272_v59  ;;  %569 = vmatprep.subr.mxu1 %v5274_v62  ;;  %9539 = vst [vmem:[#allocation109_spill] sm:$0xff] %v5286_v57  ;;  %9540 = vst [vmem:[#allocation110_spill] sm:$0xff] %v5290_v60  ;;  %v5292_v59 = vld [vmem:[#allocation4 + $0x350] sm:$0xff]  ;;  %v5296_v62 = vld [vmem:[#allocation4 + $0x328] sm:$0xff] }
  0x59   :  { %499 = vmatpush2.msra.mxu0 %v5278_v61  ;;  %570 = vmatpush2.msra.mxu1 %v5280_v56  ;;  %9541 = vst [vmem:[#allocation111_spill] sm:$0xff] %v5292_v59  ;;  %9542 = vst [vmem:[#allocation112_spill] sm:$0xff] %v5296_v62  ;;  %v5298_v61 = vld [vmem:[#allocation4 + $0x338] sm:$0xff]  ;;  %v5302_v56 = vld [vmem:[#allocation4 + $0x320] sm:$0xff] }
  0x5a   :  { %500 = vmatprep.subr.mxu0 %v5284_v58  ;;  %571 = vmatprep.subr.mxu1 %v5286_v57  ;;  %9543 = vst [vmem:[#allocation113_spill] sm:$0xff] %v5298_v61  ;;  %9544 = vst [vmem:[#allocation114_spill] sm:$0xff] %v5302_v56  ;;  %v5304_v58 = vld [vmem:[#allocation4 + $0x330] sm:$0xff]  ;;  %v5308_v57 = vld [vmem:[#allocation4 + $0x308] sm:$0xff] }
  0x5b   :  { %501 = vmatpush2.msra.mxu0 %v5290_v60  ;;  %572 = vmatpush2.msra.mxu1 %v5292_v59  ;;  %9545 = vst [vmem:[#allocation115_spill] sm:$0xff] %v5304_v58  ;;  %9546 = vst [vmem:[#allocation116_spill] sm:$0xff] %v5308_v57  ;;  %v5310_v60 = vld [vmem:[#allocation4 + $0x318] sm:$0xff]  ;;  %v5314_v59 = vld [vmem:[#allocation4 + $0x300] sm:$0xff] }
  0x5c   :  { %502 = vmatprep.subr.mxu0 %v5296_v62  ;;  %573 = vmatprep.subr.mxu1 %v5298_v61  ;;  %9547 = vst [vmem:[#allocation117_spill] sm:$0xff] %v5310_v60  ;;  %9548 = vst [vmem:[#allocation118_spill] sm:$0xff] %v5314_v59  ;;  %v5316_v62 = vld [vmem:[#allocation4 + $0x310] sm:$0xff]  ;;  %v5320_v61 = vld [vmem:[#allocation4 + $0x2e8] sm:$0xff] }
  0x5d   :  { %503 = vmatpush2.msra.mxu0 %v5302_v56  ;;  %574 = vmatpush2.msra.mxu1 %v5304_v58  ;;  %9549 = vst [vmem:[#allocation119_spill] sm:$0xff] %v5316_v62  ;;  %9550 = vst [vmem:[#allocation120_spill] sm:$0xff] %v5320_v61  ;;  %v5322_v56 = vld [vmem:[#allocation4 + $0x2f8] sm:$0xff]  ;;  %v5326_v58 = vld [vmem:[#allocation4 + $0x2e0] sm:$0xff] }
  0x5e   :  { %504 = vmatprep.subr.mxu0 %v5308_v57  ;;  %575 = vmatprep.subr.mxu1 %v5310_v60  ;;  %9551 = vst [vmem:[#allocation121_spill] sm:$0xff] %v5322_v56  ;;  %9552 = vst [vmem:[#allocation122_spill] sm:$0xff] %v5326_v58  ;;  %v5328_v57 = vld [vmem:[#allocation4 + $0x2f0] sm:$0xff]  ;;  %v5332_v60 = vld [vmem:[#allocation4 + $0x2c8] sm:$0xff] }
  0x5f   :  { %505 = vmatpush2.msra.mxu0 %v5314_v59  ;;  %576 = vmatpush2.msra.mxu1 %v5316_v62  ;;  %9553 = vst [vmem:[#allocation123_spill] sm:$0xff] %v5328_v57  ;;  %9554 = vst [vmem:[#allocation124_spill] sm:$0xff] %v5332_v60  ;;  %v5334_v59 = vld [vmem:[#allocation4 + $0x2d8] sm:$0xff]  ;;  %v5338_v62 = vld [vmem:[#allocation4 + $0x2c0] sm:$0xff] }
  0x60   :  { %506 = vmatprep.subr.mxu0 %v5320_v61  ;;  %577 = vmatprep.subr.mxu1 %v5322_v56  ;;  %9555 = vst [vmem:[#allocation125_spill] sm:$0xff] %v5334_v59  ;;  %9556 = vst [vmem:[#allocation126_spill] sm:$0xff] %v5338_v62  ;;  %v5340_v61 = vld [vmem:[#allocation4 + $0x2d0] sm:$0xff]  ;;  %v5344_v56 = vld [vmem:[#allocation4 + $0x2a8] sm:$0xff] }
  0x61   :  { %507 = vmatpush2.msra.mxu0 %v5326_v58  ;;  %578 = vmatpush2.msra.mxu1 %v5328_v57  ;;  %9557 = vst [vmem:[#allocation127_spill] sm:$0xff] %v5340_v61  ;;  %9558 = vst [vmem:[#allocation128_spill] sm:$0xff] %v5344_v56  ;;  %v5346_v58 = vld [vmem:[#allocation4 + $0x2b8] sm:$0xff]  ;;  %v5350_v57 = vld [vmem:[#allocation4 + $0x2a0] sm:$0xff] }
  0x62   :  { %508 = vmatprep.subr.mxu0 %v5332_v60  ;;  %579 = vmatprep.subr.mxu1 %v5334_v59  ;;  %9559 = vst [vmem:[#allocation129_spill] sm:$0xff] %v5346_v58  ;;  %9560 = vst [vmem:[#allocation130_spill] sm:$0xff] %v5350_v57  ;;  %v5352_v60 = vld [vmem:[#allocation4 + $0x2b0] sm:$0xff]  ;;  %v5356_v59 = vld [vmem:[#allocation4 + $0x288] sm:$0xff] }
  0x63   :  { %509 = vmatpush2.msra.mxu0 %v5338_v62  ;;  %580 = vmatpush2.msra.mxu1 %v5340_v61  ;;  %9561 = vst [vmem:[#allocation131_spill] sm:$0xff] %v5352_v60  ;;  %9562 = vst [vmem:[#allocation132_spill] sm:$0xff] %v5356_v59  ;;  %v5358_v62 = vld [vmem:[#allocation4 + $0x298] sm:$0xff]  ;;  %v5362_v61 = vld [vmem:[#allocation4 + $0x280] sm:$0xff] }
  0x64   :  { %510 = vmatprep.subr.mxu0 %v5344_v56  ;;  %581 = vmatprep.subr.mxu1 %v5346_v58  ;;  %9563 = vst [vmem:[#allocation133_spill] sm:$0xff] %v5358_v62  ;;  %9564 = vst [vmem:[#allocation134_spill] sm:$0xff] %v5362_v61  ;;  %v5364_v56 = vld [vmem:[#allocation4 + $0x290] sm:$0xff]  ;;  %v5368_v58 = vld [vmem:[#allocation4 + $0x268] sm:$0xff] }
  0x65   :  { %511 = vmatpush2.msra.mxu0 %v5350_v57  ;;  %582 = vmatpush2.msra.mxu1 %v5352_v60  ;;  %9565 = vst [vmem:[#allocation135_spill] sm:$0xff] %v5364_v56  ;;  %9566 = vst [vmem:[#allocation136_spill] sm:$0xff] %v5368_v58  ;;  %v5370_v57 = vld [vmem:[#allocation4 + $0x278] sm:$0xff]  ;;  %v5374_v60 = vld [vmem:[#allocation4 + $0x260] sm:$0xff] }
  0x66   :  { %512 = vmatprep.subr.mxu0 %v5356_v59  ;;  %583 = vmatprep.subr.mxu1 %v5358_v62  ;;  %9567 = vst [vmem:[#allocation137_spill] sm:$0xff] %v5370_v57  ;;  %9568 = vst [vmem:[#allocation138_spill] sm:$0xff] %v5374_v60  ;;  %v5376_v59 = vld [vmem:[#allocation4 + $0x270] sm:$0xff]  ;;  %v5380_v62 = vld [vmem:[#allocation4 + $0x248] sm:$0xff] }
  0x67   :  { %513 = vmatpush2.msra.mxu0 %v5362_v61  ;;  %584 = vmatpush2.msra.mxu1 %v5364_v56  ;;  %9569 = vst [vmem:[#allocation139_spill] sm:$0xff] %v5376_v59  ;;  %9570 = vst [vmem:[#allocation140_spill] sm:$0xff] %v5380_v62  ;;  %v5382_v61 = vld [vmem:[#allocation4 + $0x258] sm:$0xff]  ;;  %v5386_v56 = vld [vmem:[#allocation4 + $0x240] sm:$0xff] }
  0x68   :  { %514 = vmatprep.subr.mxu0 %v5368_v58  ;;  %585 = vmatprep.subr.mxu1 %v5370_v57  ;;  %9571 = vst [vmem:[#allocation141_spill] sm:$0xff] %v5382_v61  ;;  %9572 = vst [vmem:[#allocation142_spill] sm:$0xff] %v5386_v56  ;;  %v5388_v58 = vld [vmem:[#allocation4 + $0x250] sm:$0xff]  ;;  %v5392_v57 = vld [vmem:[#allocation4 + $0x228] sm:$0xff] }
  0x69   :  { %515 = vmatpush2.msra.mxu0 %v5374_v60  ;;  %586 = vmatpush2.msra.mxu1 %v5376_v59  ;;  %9573 = vst [vmem:[#allocation143_spill] sm:$0xff] %v5388_v58  ;;  %9574 = vst [vmem:[#allocation144_spill] sm:$0xff] %v5392_v57  ;;  %v5394_v60 = vld [vmem:[#allocation4 + $0x238] sm:$0xff]  ;;  %v5398_v59 = vld [vmem:[#allocation4 + $0x220] sm:$0xff] }
  0x6a   :  { %516 = vmatprep.subr.mxu0 %v5380_v62  ;;  %587 = vmatprep.subr.mxu1 %v5382_v61  ;;  %9575 = vst [vmem:[#allocation145_spill] sm:$0xff] %v5394_v60  ;;  %9576 = vst [vmem:[#allocation146_spill] sm:$0xff] %v5398_v59  ;;  %v5400_v62 = vld [vmem:[#allocation4 + $0x230] sm:$0xff]  ;;  %v5402_v61 = vld [vmem:[#allocation4 + $0x208] sm:$0xff] }
  0x6b   :  { %517 = vmatpush2.msra.mxu0 %v5386_v56  ;;  %588 = vmatpush2.msra.mxu1 %v5388_v58  ;;  %9577 = vst [vmem:[#allocation147_spill] sm:$0xff] %v5400_v62  ;;  %9578 = vst [vmem:[#allocation148_spill] sm:$0xff] %v5402_v61  ;;  %v5406_v56 = vld [vmem:[#allocation4 + $0x218] sm:$0xff]  ;;  %v5408_v58 = vld [vmem:[#allocation4 + $0x200] sm:$0xff] }
  0x6c   :  { %518 = vmatprep.subr.mxu0 %v5392_v57  ;;  %589 = vmatprep.subr.mxu1 %v5394_v60  ;;  %9579 = vst [vmem:[#allocation149_spill] sm:$0xff] %v5406_v56  ;;  %9580 = vst [vmem:[#allocation150_spill] sm:$0xff] %v5408_v58 }
  0x6d   :  { %519 = vmatpush2.msra.mxu0 %v5398_v59  ;;  %590 = vmatpush2.msra.mxu1 %v5400_v62  ;;  %v231_v59 = vlaneseq  ;;  %v4615_v62 = vmov 1983009808  }
  0x6e   :  { %520 = vmatprep.subr.mxu0 %v5402_v61  ;;  %591 = vmatprep.subr.mxu1 %v5406_v56  ;;  %v402_v60 = vunpack.c.l.s4 %v4615_v62 }
  0x6f   :  { %521 = vmatpush2.msra.mxu0 %v5408_v58  ;;  %592 = vmatpush2.msra.mxu1 %v5410_v0  ;;  %v5418_v57 = vshrl.u32 %v231_v59, 7 }
  0x70   :  { %625 = vmatprep.subr.mxu0 %v4651_v1  ;;  %696 = vmatprep.subr.mxu1 %v4656_v2  ;;  %v403_v63 = vunpack.c.0.s8 %v402_v60  ;;  %v251_v2 = vld [vmem:[%s8824_s0] sm:$0xff] }
  0x71   :  { %9582 = vst [vmem:[#allocation152_spill] sm:$0xff] %v5418_v57 }
  0x72   :  { %v5421_v61 = vsub.s32 %v403_v63, %v5418_v57 }
  0x74   :  { %9583 = vst [vmem:[#allocation153_spill] sm:$0xff] %v5421_v61 }
  0xef   :  { %v319_v55 = vpop.f32.mrf.mxu0  ;;  %v390_v54 = vpop.f32.mrf.mxu1 }
  0xf1   :  { %v321_v56 = vpop.f32.mrf.mxu0  ;;  %v392_v53 = vpop.f32.mrf.mxu1 }
  0xf2   :  { %v399_v58 = vcombine.low %v319_v55, %v321_v56  ;;  %v400_v52 = vcombine.low %v390_v54, %v392_v53 }
  0xf4   :  { %v407_v0 = vrot.slane %v399_v58, %v5421_v61  ;;  %v414_v1 = vrot.slane %v400_v52, %v5421_v61  ;;  %v438_v61 = vld [vmem:[#allocation3] sm:$0x3] }
  0xf6   :  { %v415_v59 = vcombine.low %v407_v0, %v414_v1 }
  0xf8   :  { %v417_v62 = vadd.f32 %v415_v59, %v251_v2 }
  0xfa   :  { %v418_v60 = vmul.f32 0.5, %v417_v62  ;;  %v423_v51 = vrot.slane %v417_v62, 2  ;;  %v429_v63 = vrot.slane %v417_v62, 4  ;;  %v432_v57 = vrot.slane %v417_v62, 6 }
  0xfc   :  { %3641 = vtanh.f32 %v418_v60  ;;  %v425_v50 = vmul.f32 0.5, %v423_v51  ;;  %v434_v55 = vmul.f32 0.5, %v432_v57 }
  0xfe   :  { %3643 = vtanh.f32 %v425_v50 }
  0xff   :  { %3645 = vtanh.f32 %v429_v63 }
 0x100   :  { %3647 = vtanh.f32 %v434_v55  ;;  %v9631_v55 = vld [vmem:[#allocation53_spill] sm:$0xff] }
 0x109   :  { %v3642_v53 = vpop.eup %3641 }
 0x10a   :  { %v420_v54 = vmul.f32 0.5, %v3642_v53  ;;  %v9632_v53 = vld [vmem:[#allocation54_spill] sm:$0xff] }
 0x10b   :  { %v3644_v58 = vpop.eup %3643 }
 0x10c   :  { %v421_v56 = vadd.f32 0.5, %v420_v54  ;;  %v427_v52 = vmul.f32 0.5, %v3644_v58  ;;  %v3646_v48 = vpop.eup %3645  ;;  %v9633_v54 = vld [vmem:[#allocation55_spill] sm:$0xff]  ;;  %v9634_v58 = vld [vmem:[#allocation56_spill] sm:$0xff] }
 0x10d   :  { %v3648_v51 = vpop.eup %3647 }
 0x10e   :  { %v428_v49 = vadd.f32 0.5, %v427_v52  ;;  %v440_v1 = vmul.f32 %v3646_v48, %v421_v56  ;;  %v436_v50 = vmul.f32 0.5, %v3648_v51  ;;  %v9628_v48 = vld [vmem:[#allocation50_spill] sm:$0xff]  ;;  %v9635_v56 = vld [vmem:[#allocation57_spill] sm:$0xff] }
 0x10f   :  { %v9636_v52 = vld [vmem:[#allocation58_spill] sm:$0xff] }
 0x110   :  { %v439_v0 = vmul.f32 %v438_v61, %v428_v49  ;;  %v437_v59 = vadd.f32 0.5, %v436_v50  ;;  %v9629_v49 = vld [vmem:[#allocation51_spill] sm:$0xff]  ;;  %v9630_v61 = vld [vmem:[#allocation52_spill] sm:$0xff]  ;;  %v9640_v51 = vld [vmem:[#allocation62_spill] sm:$0xff] }
 0x111   :  { %v9641_v50 = vld [vmem:[#allocation63_spill] sm:$0xff] }
 0x112   :  { %v441_v2 = vadd.f32 %v440_v1, %v439_v0  ;;  %v9637_v0 = vld [vmem:[#allocation59_spill] sm:$0xff]  ;;  %v9638_v1 = vld [vmem:[#allocation60_spill] sm:$0xff] }
 0x114   :  { %3649 = vtanh.f32 %v441_v2  ;;  %444 = vst [vmem:[#allocation3] sm:$0x3] %v441_v2  ;;  %v9639_v2 = vld [vmem:[#allocation61_spill] sm:$0xff] }
 0x121   :  { %v3650_v60 = vpop.eup %3649 }
 0x122   :  { %v443_v62 = vmul.f32 %v3650_v60, %v437_v59  ;;  %v9642_v59 = vld [vmem:[#allocation64_spill] sm:$0xff]  ;;  %v9643_v60 = vld [vmem:[#allocation65_spill] sm:$0xff] }
 0x124   :  { %445 = vst [vmem:[#allocation2] sm:$0x3] %v443_v62  ;;  %v9644_v62 = vld [vmem:[#allocation66_spill] sm:$0xff] }
 0x12b   :  { %v3611_v57 = vld.sshfl [vmem:[#allocation2] sm:$0x33 pattern:$0x76325410] }
 0x12c   :  { %v455_v63 = vcombine.high %v3611_v57, %v3611_v57 }
 0x12e   :  { %522 = vmatprep.mubr.f32.mxu0 %v455_v63  ;;  %593 = vmatprep.mubr.f32.mxu1 %v455_v63  ;;  %v9646_v63 = vld [vmem:[#allocation68_spill] sm:$0xff] }
 0x12f   :  { %523 = vmatmul.mubr.f32.vlgmr.msra.gmra.mxu0 %v3611_v57  ;;  %594 = vmatmul.mubr.f32.vlgmr.msra.gmra.mxu1 %v3611_v57  ;;  %v9645_v57 = vld [vmem:[#allocation67_spill] sm:$0xff] }
 0x130   :  { %626 = vmatpush1.msra.mxu0 %v4661_v3  ;;  %697 = vmatpush1.msra.mxu1 %v4668_v4  ;;  %v9584_v3 = vld [vmem:[#allocation7_spill] sm:$0xff]  ;;  %v9585_v4 = vld [vmem:[#allocation8_spill] sm:$0xff] }
 0x131   :  { %627 = vmatprep.subr.mxu0 %v4673_v5  ;;  %698 = vmatprep.subr.mxu1 %v4678_v6  ;;  %v9586_v5 = vld [vmem:[#allocation9_spill] sm:$0xff]  ;;  %v9587_v6 = vld [vmem:[#allocation10_spill] sm:$0xff] }
 0x132   :  { %628 = vmatpush1.msra.mxu0 %v4685_v7  ;;  %699 = vmatpush1.msra.mxu1 %v4690_v8  ;;  %v9588_v7 = vld [vmem:[#allocation11_spill] sm:$0xff]  ;;  %v9589_v8 = vld [vmem:[#allocation12_spill] sm:$0xff] }
 0x133   :  { %629 = vmatprep.subr.mxu0 %v4695_v9  ;;  %700 = vmatprep.subr.mxu1 %v4702_v10  ;;  %v9590_v9 = vld [vmem:[#allocation13_spill] sm:$0xff]  ;;  %v9591_v10 = vld [vmem:[#allocation14_spill] sm:$0xff] }
 0x134   :  { %630 = vmatpush1.msra.mxu0 %v4707_v11  ;;  %701 = vmatpush1.msra.mxu1 %v4712_v12  ;;  %v9592_v11 = vld [vmem:[#allocation15_spill] sm:$0xff]  ;;  %v9593_v12 = vld [vmem:[#allocation16_spill] sm:$0xff] }
 0x135   :  { %631 = vmatprep.subr.mxu0 %v4719_v13  ;;  %702 = vmatprep.subr.mxu1 %v4724_v14  ;;  %v9594_v13 = vld [vmem:[#allocation17_spill] sm:$0xff]  ;;  %v9595_v14 = vld [vmem:[#allocation18_spill] sm:$0xff] }
 0x136   :  { %632 = vmatpush1.msra.mxu0 %v4731_v15  ;;  %703 = vmatpush1.msra.mxu1 %v4736_v16  ;;  %v9596_v15 = vld [vmem:[#allocation19_spill] sm:$0xff]  ;;  %v9597_v16 = vld [vmem:[#allocation20_spill] sm:$0xff] }
 0x137   :  { %633 = vmatprep.subr.mxu0 %v4743_v17  ;;  %704 = vmatprep.subr.mxu1 %v4748_v18  ;;  %v9598_v17 = vld [vmem:[#allocation21_spill] sm:$0xff]  ;;  %v9599_v18 = vld [vmem:[#allocation22_spill] sm:$0xff] }
 0x138   :  { %634 = vmatpush1.msra.mxu0 %v4755_v19  ;;  %705 = vmatpush1.msra.mxu1 %v4760_v20  ;;  %v9600_v19 = vmov 0.0   ;;  %v9601_v20 = vld [vmem:[#allocation23_spill] sm:$0xff] }
 0x139   :  { %635 = vmatprep.subr.mxu0 %v4767_v21  ;;  %706 = vmatprep.subr.mxu1 %v4772_v22  ;;  %v624_v21 = vld [vmem:[#allocation2] sm:$0x3]  ;;  %v9602_v22 = vld [vmem:[#allocation24_spill] sm:$0xff] }
 0x13a   :  { %636 = vmatpush1.msra.mxu0 %v4779_v23  ;;  %707 = vmatpush1.msra.mxu1 %v4784_v24  ;;  %v9603_v23 = vld [vmem:[#allocation25_spill] sm:$0xff]  ;;  %v9604_v24 = vld [vmem:[#allocation26_spill] sm:$0xff] }
 0x13b   :  { %637 = vmatprep.subr.mxu0 %v4791_v25  ;;  %708 = vmatprep.subr.mxu1 %v4796_v26  ;;  %v9605_v25 = vld [vmem:[#allocation27_spill] sm:$0xff]  ;;  %v9606_v26 = vld [vmem:[#allocation28_spill] sm:$0xff] }
 0x13c   :  { %638 = vmatpush1.msra.mxu0 %v4803_v27  ;;  %709 = vmatpush1.msra.mxu1 %v4808_v28  ;;  %v9607_v27 = vld [vmem:[#allocation29_spill] sm:$0xff]  ;;  %v9608_v28 = vld [vmem:[#allocation30_spill] sm:$0xff] }
 0x13d   :  { %639 = vmatprep.subr.mxu0 %v4815_v29  ;;  %710 = vmatprep.subr.mxu1 %v4820_v30  ;;  %v9609_v29 = vld [vmem:[#allocation31_spill] sm:$0xff]  ;;  %v9610_v30 = vld [vmem:[#allocation32_spill] sm:$0xff] }
 0x13e   :  { %640 = vmatpush1.msra.mxu0 %v4827_v31  ;;  %711 = vmatpush1.msra.mxu1 %v4832_v32  ;;  %v9611_v31 = vld [vmem:[#allocation33_spill] sm:$0xff]  ;;  %v9612_v32 = vld [vmem:[#allocation34_spill] sm:$0xff] }
 0x13f   :  { %641 = vmatprep.subr.mxu0 %v4839_v33  ;;  %712 = vmatprep.subr.mxu1 %v4844_v34  ;;  %v9613_v33 = vld [vmem:[#allocation35_spill] sm:$0xff]  ;;  %v9614_v34 = vld [vmem:[#allocation36_spill] sm:$0xff] }
 0x140   :  { %642 = vmatpush1.msra.mxu0 %v4851_v35  ;;  %713 = vmatpush1.msra.mxu1 %v4856_v36  ;;  %v9615_v35 = vld [vmem:[#allocation37_spill] sm:$0xff]  ;;  %v9616_v36 = vld [vmem:[#allocation38_spill] sm:$0xff] }
 0x141   :  { %643 = vmatprep.subr.mxu0 %v4863_v37  ;;  %714 = vmatprep.subr.mxu1 %v4868_v38  ;;  %v9617_v37 = vld [vmem:[#allocation39_spill] sm:$0xff]  ;;  %v9618_v38 = vld [vmem:[#allocation40_spill] sm:$0xff] }
 0x142   :  { %644 = vmatpush1.msra.mxu0 %v4875_v39  ;;  %715 = vmatpush1.msra.mxu1 %v4880_v40  ;;  %v9619_v39 = vld [vmem:[#allocation41_spill] sm:$0xff]  ;;  %v9620_v40 = vld [vmem:[#allocation42_spill] sm:$0xff] }
 0x143   :  { %645 = vmatprep.subr.mxu0 %v4887_v41  ;;  %716 = vmatprep.subr.mxu1 %v4892_v42  ;;  %v9621_v41 = vld [vmem:[#allocation43_spill] sm:$0xff]  ;;  %v9622_v42 = vld [vmem:[#allocation44_spill] sm:$0xff] }
 0x144   :  { %646 = vmatpush1.msra.mxu0 %v4899_v43  ;;  %717 = vmatpush1.msra.mxu1 %v4904_v44  ;;  %v9623_v43 = vld [vmem:[#allocation45_spill] sm:$0xff]  ;;  %v9624_v44 = vld [vmem:[#allocation46_spill] sm:$0xff] }
 0x145   :  { %647 = vmatprep.subr.mxu0 %v4911_v45  ;;  %718 = vmatprep.subr.mxu1 %v4916_v46  ;;  %v9625_v45 = vld [vmem:[#allocation47_spill] sm:$0xff]  ;;  %v9626_v46 = vld [vmem:[#allocation48_spill] sm:$0xff] }
 0x146   :  { %648 = vmatpush1.msra.mxu0 %v4923_v47  ;;  %719 = vmatpush1.msra.mxu1 %v9584_v3  ;;  %v9627_v47 = vld [vmem:[#allocation49_spill] sm:$0xff] }
 0x147   :  { %649 = vmatprep.subr.mxu0 %v9585_v4  ;;  %720 = vmatprep.subr.mxu1 %v9586_v5  ;;  %v9647_v3 = vld [vmem:[#allocation69_spill] sm:$0xff]  ;;  %v9648_v4 = vld [vmem:[#allocation70_spill] sm:$0xff]  ;;  %v9649_v5 = vld [vmem:[#allocation71_spill] sm:$0xff] }
 0x148   :  { %650 = vmatpush1.msra.mxu0 %v9587_v6  ;;  %721 = vmatpush1.msra.mxu1 %v9588_v7  ;;  %v9650_v6 = vld [vmem:[#allocation72_spill] sm:$0xff]  ;;  %v9651_v7 = vld [vmem:[#allocation73_spill] sm:$0xff] }
 0x149   :  { %651 = vmatprep.subr.mxu0 %v9589_v8  ;;  %722 = vmatprep.subr.mxu1 %v9590_v9  ;;  %v9652_v8 = vld [vmem:[#allocation74_spill] sm:$0xff]  ;;  %v9653_v9 = vld [vmem:[#allocation75_spill] sm:$0xff] }
 0x14a   :  { %652 = vmatpush1.msra.mxu0 %v9591_v10  ;;  %723 = vmatpush1.msra.mxu1 %v9592_v11  ;;  %v9654_v10 = vld [vmem:[#allocation76_spill] sm:$0xff]  ;;  %v9655_v11 = vld [vmem:[#allocation77_spill] sm:$0xff] }
 0x14b   :  { %653 = vmatprep.subr.mxu0 %v9593_v12  ;;  %724 = vmatprep.subr.mxu1 %v9594_v13  ;;  %v9656_v12 = vld [vmem:[#allocation78_spill] sm:$0xff]  ;;  %v9657_v13 = vld [vmem:[#allocation79_spill] sm:$0xff] }
 0x14c   :  { %654 = vmatpush1.msra.mxu0 %v9595_v14  ;;  %725 = vmatpush1.msra.mxu1 %v9596_v15  ;;  %v9658_v14 = vld [vmem:[#allocation80_spill] sm:$0xff]  ;;  %v9659_v15 = vld [vmem:[#allocation81_spill] sm:$0xff] }
 0x14d   :  { %655 = vmatprep.subr.mxu0 %v9597_v16  ;;  %726 = vmatprep.subr.mxu1 %v9598_v17  ;;  %v9660_v16 = vld [vmem:[#allocation82_spill] sm:$0xff]  ;;  %v9661_v17 = vld [vmem:[#allocation83_spill] sm:$0xff] }
 0x14e   :  { %656 = vmatpush1.msra.mxu0 %v9599_v18  ;;  %689 = vmatprep.mubr.f32.mxu0 %v9600_v19  ;;  %v9662_v18 = vld [vmem:[#allocation84_spill] sm:$0xff] }
 0x14f   :  { %727 = vmatpush1.msra.mxu1 %v9601_v20  ;;  %760 = vmatprep.mubr.f32.mxu1 %v9600_v19  ;;  %v9663_v20 = vld [vmem:[#allocation85_spill] sm:$0xff] }
 0x150   :  { %690 = vmatmul.mubr.f32.vlgmr.msra.gmra.mxu0 %v624_v21  ;;  %761 = vmatmul.mubr.f32.vlgmr.msra.gmra.mxu1 %v624_v21  ;;  %v9664_v21 = vld [vmem:[#allocation86_spill] sm:$0xff] }
 0x151   :  { %830 = vmatprep.subr.mxu0 %v9602_v22  ;;  %901 = vmatprep.subr.mxu1 %v9603_v23  ;;  %v9665_v22 = vld [vmem:[#allocation87_spill] sm:$0xff]  ;;  %v9666_v23 = vld [vmem:[#allocation88_spill] sm:$0xff] }
 0x152   :  { %831 = vmatpush1.msra.mxu0 %v9604_v24  ;;  %902 = vmatpush1.msra.mxu1 %v9605_v25  ;;  %v9667_v24 = vld [vmem:[#allocation89_spill] sm:$0xff]  ;;  %v9668_v25 = vld [vmem:[#allocation90_spill] sm:$0xff] }
 0x153   :  { %832 = vmatprep.subr.mxu0 %v9606_v26  ;;  %903 = vmatprep.subr.mxu1 %v9607_v27  ;;  %v9669_v26 = vld [vmem:[#allocation91_spill] sm:$0xff]  ;;  %v9670_v27 = vld [vmem:[#allocation92_spill] sm:$0xff] }
 0x154   :  { %833 = vmatpush1.msra.mxu0 %v9608_v28  ;;  %904 = vmatpush1.msra.mxu1 %v9609_v29  ;;  %v9671_v28 = vld [vmem:[#allocation93_spill] sm:$0xff]  ;;  %v9672_v29 = vld [vmem:[#allocation94_spill] sm:$0xff] }
 0x155   :  { %834 = vmatprep.subr.mxu0 %v9610_v30  ;;  %905 = vmatprep.subr.mxu1 %v9611_v31  ;;  %v9673_v30 = vld [vmem:[#allocation95_spill] sm:$0xff]  ;;  %v9674_v31 = vld [vmem:[#allocation96_spill] sm:$0xff] }
 0x156   :  { %835 = vmatpush1.msra.mxu0 %v9612_v32  ;;  %906 = vmatpush1.msra.mxu1 %v9613_v33  ;;  %v9675_v32 = vld [vmem:[#allocation97_spill] sm:$0xff]  ;;  %v9676_v33 = vld [vmem:[#allocation98_spill] sm:$0xff] }
 0x157   :  { %836 = vmatprep.subr.mxu0 %v9614_v34  ;;  %907 = vmatprep.subr.mxu1 %v9615_v35  ;;  %v9677_v34 = vld [vmem:[#allocation99_spill] sm:$0xff]  ;;  %v9678_v35 = vld [vmem:[#allocation100_spill] sm:$0xff] }
 0x158   :  { %837 = vmatpush1.msra.mxu0 %v9616_v36  ;;  %908 = vmatpush1.msra.mxu1 %v9617_v37  ;;  %v9679_v36 = vld [vmem:[#allocation101_spill] sm:$0xff]  ;;  %v9680_v37 = vld [vmem:[#allocation102_spill] sm:$0xff] }
 0x159   :  { %838 = vmatprep.subr.mxu0 %v9618_v38  ;;  %909 = vmatprep.subr.mxu1 %v9619_v39  ;;  %v9681_v38 = vld [vmem:[#allocation103_spill] sm:$0xff]  ;;  %v9682_v39 = vld [vmem:[#allocation104_spill] sm:$0xff] }
 0x15a   :  { %839 = vmatpush1.msra.mxu0 %v9620_v40  ;;  %910 = vmatpush1.msra.mxu1 %v9621_v41  ;;  %v9683_v40 = vld [vmem:[#allocation105_spill] sm:$0xff]  ;;  %v9684_v41 = vld [vmem:[#allocation106_spill] sm:$0xff] }
 0x15b   :  { %840 = vmatprep.subr.mxu0 %v9622_v42  ;;  %911 = vmatprep.subr.mxu1 %v9623_v43  ;;  %v9685_v42 = vld [vmem:[#allocation107_spill] sm:$0xff]  ;;  %v9686_v43 = vld [vmem:[#allocation108_spill] sm:$0xff] }
 0x15c   :  { %841 = vmatpush1.msra.mxu0 %v9624_v44  ;;  %912 = vmatpush1.msra.mxu1 %v9625_v45  ;;  %v9687_v44 = vld [vmem:[#allocation109_spill] sm:$0xff]  ;;  %v9688_v45 = vld [vmem:[#allocation110_spill] sm:$0xff] }
 0x15d   :  { %842 = vmatprep.subr.mxu0 %v9626_v46  ;;  %913 = vmatprep.subr.mxu1 %v9627_v47  ;;  %v9689_v46 = vld [vmem:[#allocation111_spill] sm:$0xff]  ;;  %v9690_v47 = vld [vmem:[#allocation112_spill] sm:$0xff] }
 0x15e   :  { %843 = vmatpush1.msra.mxu0 %v9628_v48  ;;  %914 = vmatpush1.msra.mxu1 %v9629_v49  ;;  %v9691_v48 = vld [vmem:[#allocation113_spill] sm:$0xff]  ;;  %v9692_v49 = vld [vmem:[#allocation114_spill] sm:$0xff] }
 0x15f   :  { %844 = vmatprep.subr.mxu0 %v9630_v61  ;;  %915 = vmatprep.subr.mxu1 %v9631_v55  ;;  %v9693_v61 = vld [vmem:[#allocation115_spill] sm:$0xff]  ;;  %v9694_v55 = vld [vmem:[#allocation116_spill] sm:$0xff] }
 0x160   :  { %845 = vmatpush1.msra.mxu0 %v9632_v53  ;;  %916 = vmatpush1.msra.mxu1 %v9633_v54  ;;  %v9695_v53 = vld [vmem:[#allocation117_spill] sm:$0xff]  ;;  %v9696_v54 = vld [vmem:[#allocation118_spill] sm:$0xff] }
 0x161   :  { %846 = vmatprep.subr.mxu0 %v9634_v58  ;;  %917 = vmatprep.subr.mxu1 %v9635_v56  ;;  %v9697_v58 = vld [vmem:[#allocation119_spill] sm:$0xff]  ;;  %v9698_v56 = vld [vmem:[#allocation120_spill] sm:$0xff] }
 0x162   :  { %847 = vmatpush1.msra.mxu0 %v9636_v52  ;;  %918 = vmatpush1.msra.mxu1 %v9637_v0  ;;  %v9699_v52 = vld [vmem:[#allocation121_spill] sm:$0xff]  ;;  %v9700_v0 = vld [vmem:[#allocation122_spill] sm:$0xff] }
 0x163   :  { %848 = vmatprep.subr.mxu0 %v9638_v1  ;;  %919 = vmatprep.subr.mxu1 %v9639_v2  ;;  %v9701_v1 = vld [vmem:[#allocation123_spill] sm:$0xff]  ;;  %v9702_v2 = vld [vmem:[#allocation124_spill] sm:$0xff] }
 0x164   :  { %849 = vmatpush1.msra.mxu0 %v9640_v51  ;;  %920 = vmatpush1.msra.mxu1 %v9641_v50  ;;  %v9703_v51 = vld [vmem:[#allocation125_spill] sm:$0xff]  ;;  %v9704_v50 = vld [vmem:[#allocation126_spill] sm:$0xff] }
 0x165   :  { %850 = vmatprep.subr.mxu0 %v9642_v59  ;;  %921 = vmatprep.subr.mxu1 %v9643_v60  ;;  %v9705_v59 = vld [vmem:[#allocation127_spill] sm:$0xff]  ;;  %v9706_v60 = vld [vmem:[#allocation128_spill] sm:$0xff] }
 0x166   :  { %851 = vmatpush1.msra.mxu0 %v9644_v62  ;;  %922 = vmatpush1.msra.mxu1 %v9645_v57  ;;  %v9707_v62 = vld [vmem:[#allocation129_spill] sm:$0xff]  ;;  %v9708_v57 = vld [vmem:[#allocation130_spill] sm:$0xff] }
 0x167   :  { %852 = vmatprep.subr.mxu0 %v9646_v63  ;;  %923 = vmatprep.subr.mxu1 %v9647_v3  ;;  %v9709_v63 = vld [vmem:[#allocation131_spill] sm:$0xff]  ;;  %v9710_v3 = vld [vmem:[#allocation132_spill] sm:$0xff] }
 0x168   :  { %853 = vmatpush1.msra.mxu0 %v9648_v4  ;;  %924 = vmatpush1.msra.mxu1 %v9649_v5  ;;  %v9711_v4 = vld [vmem:[#allocation133_spill] sm:$0xff]  ;;  %v9712_v5 = vld [vmem:[#allocation134_spill] sm:$0xff] }
 0x169   :  { %854 = vmatprep.subr.mxu0 %v9650_v6  ;;  %925 = vmatprep.subr.mxu1 %v9651_v7  ;;  %v9713_v6 = vld [vmem:[#allocation135_spill] sm:$0xff]  ;;  %v9714_v7 = vld [vmem:[#allocation136_spill] sm:$0xff] }
 0x16a   :  { %855 = vmatpush1.msra.mxu0 %v9652_v8  ;;  %926 = vmatpush1.msra.mxu1 %v9653_v9  ;;  %v9715_v8 = vld [vmem:[#allocation137_spill] sm:$0xff]  ;;  %v9716_v9 = vld [vmem:[#allocation138_spill] sm:$0xff] }
 0x16b   :  { %856 = vmatprep.subr.mxu0 %v9654_v10  ;;  %927 = vmatprep.subr.mxu1 %v9655_v11  ;;  %v9717_v10 = vld [vmem:[#allocation139_spill] sm:$0xff]  ;;  %v9718_v11 = vld [vmem:[#allocation140_spill] sm:$0xff] }
 0x16c   :  { %857 = vmatpush1.msra.mxu0 %v9656_v12  ;;  %928 = vmatpush1.msra.mxu1 %v9657_v13  ;;  %v9719_v12 = vld [vmem:[#allocation141_spill] sm:$0xff]  ;;  %v9720_v13 = vld [vmem:[#allocation142_spill] sm:$0xff] }
 0x16d   :  { %858 = vmatprep.subr.mxu0 %v9658_v14  ;;  %929 = vmatprep.subr.mxu1 %v9659_v15  ;;  %v9721_v14 = vld [vmem:[#allocation143_spill] sm:$0xff]  ;;  %v9722_v15 = vld [vmem:[#allocation144_spill] sm:$0xff] }
 0x16e   :  { %859 = vmatpush1.msra.mxu0 %v9660_v16  ;;  %930 = vmatpush1.msra.mxu1 %v9661_v17  ;;  %v9723_v16 = vld [vmem:[#allocation145_spill] sm:$0xff]  ;;  %v9724_v17 = vld [vmem:[#allocation146_spill] sm:$0xff] }
 0x16f   :  { %860 = vmatprep.subr.mxu0 %v9662_v18  ;;  %931 = vmatprep.subr.mxu1 %v9663_v20  ;;  %v9725_v18 = vld [vmem:[#allocation147_spill] sm:$0xff]  ;;  %v9726_v20 = vld [vmem:[#allocation148_spill] sm:$0xff] }
 0x170   :  { %861 = vmatpush1.msra.mxu0 %v9664_v21  ;;  %932 = vmatpush1.msra.mxu1 %v9665_v22  ;;  %v9727_v21 = vld [vmem:[#allocation149_spill] sm:$0xff]  ;;  %v9728_v22 = vld [vmem:[#allocation150_spill] sm:$0xff] }
 0x171   :  { %862 = vmatprep.subr.mxu0 %v9666_v23  ;;  %933 = vmatprep.subr.mxu1 %v9667_v24  ;;  %v9729_v23 = vld [vmem:[#allocation151_spill] sm:$0xff] }
 0x172   :  { %863 = vmatpush2.msra.mxu0 %v9668_v25  ;;  %934 = vmatpush2.msra.mxu1 %v9669_v26  ;;  %v5623_v24 = vld [vmem:[%s8825_s1 + $0x1e8] sm:$0xff]  ;;  %v5629_v25 = vld [vmem:[%s8825_s1 + $0x1f8] sm:$0xff]  ;;  %v9730_v26 = vld [vmem:[#allocation152_spill] sm:$0xff] }
 0x173   :  { %864 = vmatprep.subr.mxu0 %v9670_v27  ;;  %935 = vmatprep.subr.mxu1 %v9671_v28  ;;  %v233_v27 = vsub.s32 0, %v9730_v26  ;;  %v229_v28 = vld [vmem:[%s8827_s3] sm:$0xf] }
 0x174   :  { %865 = vmatpush2.msra.mxu0 %v9672_v29  ;;  %936 = vmatpush2.msra.mxu1 %v9673_v30  ;;  %v237_v29 = vsub.s32 1, %v9730_v26 }
 0x175   :  { %866 = vmatprep.subr.mxu0 %v9674_v31  ;;  %937 = vmatprep.subr.mxu1 %v9675_v32  ;;  %v5637_v30 = vrot.slane %v229_v28, %v233_v27  ;;  %v241_v31 = vsub.s32 2, %v9730_v26  ;;  %v810_v27 = vld [vmem:[#allocation3] sm:$0x3] }
 0x176   :  { %867 = vmatpush2.msra.mxu0 %v9676_v33  ;;  %938 = vmatpush2.msra.mxu1 %v9677_v34  ;;  %v5640_v32 = vrot.slane %v229_v28, %v237_v29 }
 0x177   :  { %868 = vmatprep.subr.mxu0 %v9678_v35  ;;  %939 = vmatprep.subr.mxu1 %v9679_v36  ;;  %9731 = vst [vmem:[#allocation7_spill] sm:$0xff] %v5637_v30 }
 0x178   :  { %869 = vmatpush2.msra.mxu0 %v9680_v37  ;;  %940 = vmatpush2.msra.mxu1 %v9681_v38  ;;  %9732 = vst [vmem:[#allocation8_spill] sm:$0xff] %v5640_v32  ;;  %v5643_v37 = vrot.slane %v229_v28, %v241_v31 }
 0x179   :  { %870 = vmatprep.subr.mxu0 %v9682_v39  ;;  %941 = vmatprep.subr.mxu1 %v9683_v40 }
 0x17a   :  { %871 = vmatpush2.msra.mxu0 %v9684_v41  ;;  %942 = vmatpush2.msra.mxu1 %v9685_v42  ;;  %9733 = vst [vmem:[#allocation9_spill] sm:$0xff] %v5643_v37  ;;  %v245_v41 = vsub.s32 3, %v9730_v26 }
 0x17b   :  { %872 = vmatprep.subr.mxu0 %v9686_v43  ;;  %943 = vmatprep.subr.mxu1 %v9687_v44 }
 0x17c   :  { %873 = vmatpush2.msra.mxu0 %v9688_v45  ;;  %944 = vmatpush2.msra.mxu1 %v9689_v46  ;;  %v5648_v43 = vrot.slane %v229_v28, %v245_v41  ;;  %v5662_v41 = vld [vmem:[%s8825_s1 + $0x1e0] sm:$0xff] }
 0x17d   :  { %874 = vmatprep.subr.mxu0 %v9690_v47  ;;  %945 = vmatprep.subr.mxu1 %v9691_v48 }
 0x17e   :  { %875 = vmatpush2.msra.mxu0 %v9692_v49  ;;  %946 = vmatpush2.msra.mxu1 %v9693_v61  ;;  %9734 = vst [vmem:[#allocation10_spill] sm:$0xff] %v5648_v43 }
 0x17f   :  { %876 = vmatprep.subr.mxu0 %v9694_v55  ;;  %947 = vmatprep.subr.mxu1 %v9695_v53  ;;  %v613_v53 = vld [vmem:[#allocation3 + $0x2] sm:$0x3] }
 0x180   :  { %877 = vmatpush2.msra.mxu0 %v9696_v54  ;;  %948 = vmatpush2.msra.mxu1 %v9697_v58 }
 0x181   :  { %878 = vmatprep.subr.mxu0 %v9698_v56  ;;  %949 = vmatprep.subr.mxu1 %v9699_v52 }
 0x182   :  { %879 = vmatpush2.msra.mxu0 %v9700_v0  ;;  %950 = vmatpush2.msra.mxu1 %v9701_v1 }
 0x183   :  { %880 = vmatprep.subr.mxu0 %v9702_v2  ;;  %951 = vmatprep.subr.mxu1 %v9703_v51 }
 0x184   :  { %881 = vmatpush2.msra.mxu0 %v9704_v50  ;;  %952 = vmatpush2.msra.mxu1 %v9705_v59 }
 0x185   :  { %882 = vmatprep.subr.mxu0 %v9706_v60  ;;  %953 = vmatprep.subr.mxu1 %v9707_v62 }
 0x186   :  { %883 = vmatpush2.msra.mxu0 %v9708_v57  ;;  %954 = vmatpush2.msra.mxu1 %v9709_v63  ;;  %v9735_v63 = vld [vmem:[#allocation153_spill] sm:$0xff] }
 0x187   :  { %884 = vmatprep.subr.mxu0 %v9710_v3  ;;  %955 = vmatprep.subr.mxu1 %v9711_v4 }
 0x188   :  { %885 = vmatpush2.msra.mxu0 %v9712_v5  ;;  %956 = vmatpush2.msra.mxu1 %v9713_v6  ;;  %v3612_v5 = vld [vmem:[%s8824_s0 + $0x8] sm:$0xff] }
 0x189   :  { %886 = vmatprep.subr.mxu0 %v9714_v7  ;;  %957 = vmatprep.subr.mxu1 %v9715_v8 }
 0x18a   :  { %887 = vmatpush2.msra.mxu0 %v9716_v9  ;;  %958 = vmatpush2.msra.mxu1 %v9717_v10 }
 0x18b   :  { %888 = vmatprep.subr.mxu0 %v9718_v11  ;;  %959 = vmatprep.subr.mxu1 %v9719_v12 }
 0x18c   :  { %889 = vmatpush2.msra.mxu0 %v9720_v13  ;;  %960 = vmatpush2.msra.mxu1 %v9721_v14 }
 0x18d   :  { %890 = vmatprep.subr.mxu0 %v9722_v15  ;;  %961 = vmatprep.subr.mxu1 %v9723_v16 }
 0x18e   :  { %891 = vmatpush2.msra.mxu0 %v9724_v17  ;;  %962 = vmatpush2.msra.mxu1 %v9725_v18 }
 0x18f   :  { %892 = vmatprep.subr.mxu0 %v9726_v20  ;;  %963 = vmatprep.subr.mxu1 %v9727_v21 }
 0x190   :  { %893 = vmatpush2.msra.mxu0 %v9728_v22  ;;  %964 = vmatpush2.msra.mxu1 %v9729_v23 }
 0x191   :  { %998 = vmatprep.subr.mxu0 %v5623_v24  ;;  %1069 = vmatprep.subr.mxu1 %v5629_v25 }
 0x1ef   :  { %v524_v33 = vpop.f32.mrf.mxu0  ;;  %v595_v39 = vpop.f32.mrf.mxu1 }
 0x1f0   :  { %v525_v34 = vadd.f32 %v524_v33, %v5637_v30  ;;  %v596_v42 = vadd.f32 %v595_v39, %v5643_v37 }
 0x1f1   :  { %v526_v35 = vpop.f32.mrf.mxu0  ;;  %v597_v44 = vpop.f32.mrf.mxu1 }
 0x1f2   :  { %v600_v36 = vmul.f32 0.5, %v525_v34  ;;  %v527_v38 = vadd.f32 %v526_v35, %v5640_v32  ;;  %v598_v45 = vadd.f32 %v597_v44, %v5648_v43  ;;  %v5674_v44 = vld [vmem:[%s8825_s1 + $0x1c8] sm:$0xff] }
 0x1f4   :  { %3651 = vtanh.f32 %v600_v36  ;;  %v604_v40 = vmul.f32 0.5, %v527_v38  ;;  %v609_v46 = vmul.f32 0.5, %v598_v45  ;;  %v5680_v45 = vld [vmem:[%s8825_s1 + $0x1d8] sm:$0xff] }
 0x1f6   :  { %3653 = vtanh.f32 %v604_v40 }
 0x1f7   :  { %3655 = vtanh.f32 %v596_v42  ;;  %v5668_v42 = vld [vmem:[%s8825_s1 + $0x1f0] sm:$0xff] }
 0x1f8   :  { %3657 = vtanh.f32 %v609_v46  ;;  %v5686_v46 = vld [vmem:[%s8825_s1 + $0x1c0] sm:$0xff] }
 0x201   :  { %v3652_v47 = vpop.eup %3651 }
 0x202   :  { %v602_v48 = vmul.f32 0.5, %v3652_v47  ;;  %v5692_v47 = vld [vmem:[%s8825_s1 + $0x1d0] sm:$0xff] }
 0x203   :  { %v3654_v49 = vpop.eup %3653 }
 0x204   :  { %v603_v61 = vadd.f32 0.5, %v602_v48  ;;  %v606_v55 = vmul.f32 0.5, %v3654_v49  ;;  %v3656_v58 = vpop.eup %3655  ;;  %v5698_v48 = vld [vmem:[%s8825_s1 + $0x1a8] sm:$0xff]  ;;  %v5704_v49 = vld [vmem:[%s8825_s1 + $0x1b8] sm:$0xff] }
 0x205   :  { %v3658_v51 = vpop.eup %3657 }
 0x206   :  { %v607_v54 = vadd.f32 0.5, %v606_v55  ;;  %v615_v52 = vmul.f32 %v3656_v58, %v603_v61  ;;  %v611_v57 = vmul.f32 0.5, %v3658_v51  ;;  %v5710_v61 = vld [vmem:[%s8825_s1 + $0x1a0] sm:$0xff]  ;;  %v5716_v55 = vld [vmem:[%s8825_s1 + $0x1b0] sm:$0xff]  ;;  %v5770_v51 = vld [vmem:[%s8825_s1 + $0x148] sm:$0xff] }
 0x207   :  { %v5734_v58 = vld [vmem:[%s8825_s1 + $0x180] sm:$0xff] }
 0x208   :  { %v614_v56 = vmul.f32 %v613_v53, %v607_v54  ;;  %v612_v7 = vadd.f32 0.5, %v611_v57  ;;  %v5722_v53 = vld [vmem:[%s8825_s1 + $0x188] sm:$0xff]  ;;  %v5728_v54 = vld [vmem:[%s8825_s1 + $0x198] sm:$0xff] }
 0x209   :  { %v5800_v57 = vld [vmem:[%s8825_s1 + $0x138] sm:$0xff] }
 0x20a   :  { %v616_v0 = vadd.f32 %v615_v52, %v614_v56  ;;  %v5740_v56 = vld [vmem:[%s8825_s1 + $0x190] sm:$0xff]  ;;  %v5746_v52 = vld [vmem:[%s8825_s1 + $0x168] sm:$0xff] }
 0x20c   :  { %3659 = vtanh.f32 %v616_v0  ;;  %619 = vst [vmem:[#allocation3 + $0x2] sm:$0x3] %v616_v0  ;;  %v5752_v0 = vld [vmem:[%s8825_s1 + $0x178] sm:$0xff] }
 0x210   :  { %v691_v1 = vpop.f32.mrf.mxu0  ;;  %v762_v2 = vpop.f32.mrf.mxu1 }
 0x212   :  { %v693_v50 = vpop.f32.mrf.mxu0  ;;  %v764_v59 = vpop.f32.mrf.mxu1 }
 0x213   :  { %v771_v60 = vcombine.low %v691_v1, %v693_v50  ;;  %v772_v62 = vcombine.low %v762_v2, %v764_v59  ;;  %v5758_v1 = vld [vmem:[%s8825_s1 + $0x160] sm:$0xff]  ;;  %v5764_v2 = vld [vmem:[%s8825_s1 + $0x170] sm:$0xff]  ;;  %v5776_v50 = vld [vmem:[%s8825_s1 + $0x158] sm:$0xff] }
 0x214   :  { %v5782_v59 = vld [vmem:[%s8825_s1 + $0x140] sm:$0xff] }
 0x215   :  { %v779_v3 = vrot.slane %v771_v60, %v9735_v63  ;;  %v786_v4 = vrot.slane %v772_v62, %v9735_v63  ;;  %v5788_v60 = vld [vmem:[%s8825_s1 + $0x150] sm:$0xff]  ;;  %v5794_v62 = vld [vmem:[%s8825_s1 + $0x128] sm:$0xff] }
 0x217   :  { %v787_v6 = vcombine.low %v779_v3, %v786_v4  ;;  %v5806_v3 = vld [vmem:[%s8825_s1 + $0x120] sm:$0xff]  ;;  %v5812_v4 = vld [vmem:[%s8825_s1 + $0x130] sm:$0xff] }
 0x219   :  { %v3660_v8 = vpop.eup %3659  ;;  %v789_v9 = vadd.f32 %v3612_v5, %v787_v6  ;;  %v5818_v5 = vld [vmem:[%s8825_s1 + $0x108] sm:$0xff]  ;;  %v5824_v6 = vld [vmem:[%s8825_s1 + $0x118] sm:$0xff] }
 0x21a   :  { %v618_v10 = vmul.f32 %v3660_v8, %v612_v7  ;;  %v5830_v7 = vld [vmem:[%s8825_s1 + $0x100] sm:$0xff]  ;;  %v5836_v8 = vld [vmem:[%s8825_s1 + $0x110] sm:$0xff] }
 0x21b   :  { %v790_v11 = vmul.f32 0.5, %v789_v9  ;;  %v795_v12 = vrot.slane %v789_v9, 2  ;;  %v801_v14 = vrot.slane %v789_v9, 4  ;;  %v804_v15 = vrot.slane %v789_v9, 6  ;;  %v5842_v9 = vld [vmem:[%s8825_s1 + $0xe8] sm:$0xff] }
 0x21c   :  { %620 = vst [vmem:[#allocation2 + $0x2] sm:$0x3] %v618_v10  ;;  %621 = vst [vmem:[%s8828_s4] sm:$0x3] %v618_v10  ;;  %v5848_v10 = vld [vmem:[%s8825_s1 + $0xf8] sm:$0xff] }
 0x21d   :  { %3661 = vtanh.f32 %v790_v11  ;;  %v797_v13 = vmul.f32 0.5, %v795_v12  ;;  %v806_v16 = vmul.f32 0.5, %v804_v15  ;;  %v5854_v11 = vld [vmem:[%s8825_s1 + $0xe0] sm:$0xff]  ;;  %v5860_v12 = vld [vmem:[%s8825_s1 + $0xf0] sm:$0xff] }
 0x21e   :  { %v5878_v15 = vld [vmem:[%s8825_s1 + $0xc0] sm:$0xff] }
 0x21f   :  { %3663 = vtanh.f32 %v797_v13  ;;  %v5866_v13 = vld [vmem:[%s8825_s1 + $0xc8] sm:$0xff] }
 0x220   :  { %3665 = vtanh.f32 %v801_v14  ;;  %v5872_v14 = vld [vmem:[%s8825_s1 + $0xd8] sm:$0xff] }
 0x221   :  { %3667 = vtanh.f32 %v806_v16  ;;  %v5884_v16 = vld [vmem:[%s8825_s1 + $0xd0] sm:$0xff] }
 0x22a   :  { %v3662_v17 = vpop.eup %3661 }
 0x22b   :  { %v792_v18 = vmul.f32 0.5, %v3662_v17  ;;  %v5890_v17 = vld [vmem:[%s8825_s1 + $0xa8] sm:$0xff] }
 0x22c   :  { %v3664_v20 = vpop.eup %3663 }
 0x22d   :  { %v793_v21 = vadd.f32 0.5, %v792_v18  ;;  %v799_v22 = vmul.f32 0.5, %v3664_v20  ;;  %v3666_v26 = vpop.eup %3665  ;;  %v5896_v18 = vld [vmem:[%s8825_s1 + $0xb8] sm:$0xff]  ;;  %v5902_v20 = vld [vmem:[%s8825_s1 + $0xa0] sm:$0xff] }
 0x22e   :  { %v3668_v33 = vpop.eup %3667 }
 0x22f   :  { %v800_v23 = vadd.f32 0.5, %v799_v22  ;;  %v812_v29 = vmul.f32 %v3666_v26, %v793_v21  ;;  %v808_v34 = vmul.f32 0.5, %v3668_v33  ;;  %v5908_v21 = vld [vmem:[%s8825_s1 + $0xb0] sm:$0xff]  ;;  %v5914_v22 = vld [vmem:[%s8825_s1 + $0x88] sm:$0xff]  ;;  %v5926_v26 = vld [vmem:[%s8825_s1 + $0x80] sm:$0xff] }
 0x230   :  { %9736 = vst [vmem:[#allocation11_spill] sm:$0xff] %v5926_v26  ;;  %v5956_v33 = vld [vmem:[%s8825_s1 + $0x70] sm:$0xff] }
 0x231   :  { %v811_v28 = vmul.f32 %v810_v27, %v800_v23  ;;  %v809_v35 = vadd.f32 0.5, %v808_v34  ;;  %v5920_v23 = vld [vmem:[%s8825_s1 + $0x98] sm:$0xff]  ;;  %v5932_v27 = vld [vmem:[%s8825_s1 + $0x90] sm:$0xff]  ;;  %9741 = vst [vmem:[#allocation16_spill] sm:$0xff] %v5956_v33  ;;  %v5962_v34 = vld [vmem:[%s8825_s1 + $0x48] sm:$0xff] }
 0x232   :  { %9737 = vst [vmem:[#allocation12_spill] sm:$0xff] %v5932_v27  ;;  %9742 = vst [vmem:[#allocation17_spill] sm:$0xff] %v5962_v34 }
 0x233   :  { %v813_v31 = vadd.f32 %v812_v29, %v811_v28  ;;  %v5938_v28 = vld [vmem:[%s8825_s1 + $0x68] sm:$0xff]  ;;  %v5944_v29 = vld [vmem:[%s8825_s1 + $0x78] sm:$0xff] }
 0x234   :  { %9738 = vst [vmem:[#allocation13_spill] sm:$0xff] %v5938_v28  ;;  %9739 = vst [vmem:[#allocation14_spill] sm:$0xff] %v5944_v29 }
 0x235   :  { %3669 = vtanh.f32 %v813_v31  ;;  %816 = vst [vmem:[#allocation3] sm:$0x3] %v813_v31  ;;  %v5950_v31 = vld [vmem:[%s8825_s1 + $0x60] sm:$0xff] }
 0x236   :  { %9740 = vst [vmem:[#allocation15_spill] sm:$0xff] %v5950_v31 }
 0x242   :  { %v3670_v36 = vpop.eup %3669 }
 0x243   :  { %v815_v38 = vmul.f32 %v3670_v36, %v809_v35  ;;  %v5968_v35 = vld [vmem:[%s8825_s1 + $0x58] sm:$0xff]  ;;  %v5974_v36 = vld [vmem:[%s8825_s1 + $0x40] sm:$0xff] }
 0x244   :  { %9743 = vst [vmem:[#allocation18_spill] sm:$0xff] %v5968_v35  ;;  %9744 = vst [vmem:[#allocation19_spill] sm:$0xff] %v5974_v36 }
 0x245   :  { %817 = vst [vmem:[#allocation2] sm:$0x3] %v815_v38  ;;  %v5980_v38 = vld [vmem:[%s8825_s1 + $0x50] sm:$0xff] }
 0x246   :  { %9745 = vst [vmem:[#allocation20_spill] sm:$0xff] %v5980_v38 }
 0x24c   :  { %v3613_v39 = vld.sshfl [vmem:[#allocation2] sm:$0x33 pattern:$0x76325410] }
 0x24d   :  { %v827_v40 = vcombine.high %v3613_v39, %v3613_v39 }
 0x24f   :  { %894 = vmatprep.mubr.f32.mxu0 %v827_v40  ;;  %965 = vmatprep.mubr.f32.mxu1 %v827_v40  ;;  %v5992_v40 = vld [vmem:[%s8825_s1 + $0x38] sm:$0xff] }
 0x250   :  { %895 = vmatmul.mubr.f32.vlgmr.msra.gmra.mxu0 %v3613_v39  ;;  %966 = vmatmul.mubr.f32.vlgmr.msra.gmra.mxu1 %v3613_v39  ;;  %v5986_v39 = vld [vmem:[%s8825_s1 + $0x28] sm:$0xff]  ;;  %9747 = vst [vmem:[#allocation22_spill] sm:$0xff] %v5992_v40 }
 0x251   :  { %999 = vmatpush1.msra.mxu0 %v5662_v41  ;;  %1070 = vmatpush1.msra.mxu1 %v5668_v42  ;;  %9746 = vst [vmem:[#allocation21_spill] sm:$0xff] %v5986_v39 }
 0x252   :  { %1000 = vmatprep.subr.mxu0 %v5674_v44  ;;  %1071 = vmatprep.subr.mxu1 %v5680_v45 }
 0x253   :  { %1001 = vmatpush1.msra.mxu0 %v5686_v46  ;;  %1072 = vmatpush1.msra.mxu1 %v5692_v47 }
 0x254   :  { %1002 = vmatprep.subr.mxu0 %v5698_v48  ;;  %1073 = vmatprep.subr.mxu1 %v5704_v49 }
 0x255   :  { %1003 = vmatpush1.msra.mxu0 %v5710_v61  ;;  %1074 = vmatpush1.msra.mxu1 %v5716_v55 }
 0x256   :  { %1004 = vmatprep.subr.mxu0 %v5722_v53  ;;  %1075 = vmatprep.subr.mxu1 %v5728_v54 }
 0x257   :  { %1005 = vmatpush1.msra.mxu0 %v5734_v58  ;;  %1076 = vmatpush1.msra.mxu1 %v5740_v56 }
 0x258   :  { %1006 = vmatprep.subr.mxu0 %v5746_v52  ;;  %1077 = vmatprep.subr.mxu1 %v5752_v0 }
 0x259   :  { %1007 = vmatpush1.msra.mxu0 %v5758_v1  ;;  %1078 = vmatpush1.msra.mxu1 %v5764_v2 }
 0x25a   :  { %1008 = vmatprep.subr.mxu0 %v5770_v51  ;;  %1079 = vmatprep.subr.mxu1 %v5776_v50 }
 0x25b   :  { %1009 = vmatpush1.msra.mxu0 %v5782_v59  ;;  %1080 = vmatpush1.msra.mxu1 %v5788_v60 }
 0x25c   :  { %1010 = vmatprep.subr.mxu0 %v5794_v62  ;;  %1081 = vmatprep.subr.mxu1 %v5800_v57 }
 0x25d   :  { %1011 = vmatpush1.msra.mxu0 %v5806_v3  ;;  %1082 = vmatpush1.msra.mxu1 %v5812_v4 }
 0x25e   :  { %1012 = vmatprep.subr.mxu0 %v5818_v5  ;;  %1083 = vmatprep.subr.mxu1 %v5824_v6 }
 0x25f   :  { %1013 = vmatpush1.msra.mxu0 %v5830_v7  ;;  %1084 = vmatpush1.msra.mxu1 %v5836_v8 }
 0x260   :  { %1014 = vmatprep.subr.mxu0 %v5842_v9  ;;  %1085 = vmatprep.subr.mxu1 %v5848_v10 }
 0x261   :  { %1015 = vmatpush1.msra.mxu0 %v5854_v11  ;;  %1086 = vmatpush1.msra.mxu1 %v5860_v12 }
 0x262   :  { %1016 = vmatprep.subr.mxu0 %v5866_v13  ;;  %1087 = vmatprep.subr.mxu1 %v5872_v14 }
 0x263   :  { %1017 = vmatpush1.msra.mxu0 %v5878_v15  ;;  %1088 = vmatpush1.msra.mxu1 %v5884_v16 }
 0x264   :  { %1018 = vmatprep.subr.mxu0 %v5890_v17  ;;  %1089 = vmatprep.subr.mxu1 %v5896_v18 }
 0x265   :  { %1019 = vmatpush1.msra.mxu0 %v5902_v20  ;;  %1090 = vmatpush1.msra.mxu1 %v5908_v21 }
 0x266   :  { %1020 = vmatprep.subr.mxu0 %v5914_v22  ;;  %1091 = vmatprep.subr.mxu1 %v5920_v23 }
 0x267   :  { %1021 = vmatpush1.msra.mxu0 %v5926_v26  ;;  %1092 = vmatpush1.msra.mxu1 %v5932_v27 }
 0x268   :  { %1022 = vmatprep.subr.mxu0 %v5938_v28  ;;  %1093 = vmatprep.subr.mxu1 %v5944_v29 }
 0x269   :  { %1023 = vmatpush1.msra.mxu0 %v5950_v31  ;;  %1094 = vmatpush1.msra.mxu1 %v5956_v33 }
 0x26a   :  { %1024 = vmatprep.subr.mxu0 %v5962_v34  ;;  %1095 = vmatprep.subr.mxu1 %v5968_v35  ;;  %v6036_v35 = vld [vmem:[#allocation4 + $0x1f8] sm:$0xff]  ;;  %v6042_v34 = vld [vmem:[#allocation4 + $0x1f0] sm:$0xff] }
 0x26b   :  { %1025 = vmatpush1.msra.mxu0 %v5974_v36  ;;  %1096 = vmatpush1.msra.mxu1 %v5980_v38  ;;  %v5998_v36 = vld [vmem:[%s8825_s1 + $0x20] sm:$0xff]  ;;  %v6004_v38 = vld [vmem:[%s8825_s1 + $0x30] sm:$0xff]  ;;  %9755 = vst [vmem:[#allocation30_spill] sm:$0xff] %v6036_v35  ;;  %9757 = vst [vmem:[#allocation32_spill] sm:$0xff] %v6042_v34 }
 0x26c   :  { %1026 = vmatprep.subr.mxu0 %v5986_v39  ;;  %1097 = vmatprep.subr.mxu1 %v5992_v40  ;;  %9748 = vst [vmem:[#allocation23_spill] sm:$0xff] %v5998_v36  ;;  %9749 = vst [vmem:[#allocation24_spill] sm:$0xff] %v6004_v38  ;;  %v6010_v39 = vld [vmem:[%s8825_s1 + $0x8] sm:$0xff]  ;;  %v6016_v40 = vld [vmem:[%s8825_s1 + $0x18] sm:$0xff] }
 0x26d   :  { %1027 = vmatpush1.msra.mxu0 %v5998_v36  ;;  %1098 = vmatpush1.msra.mxu1 %v6004_v38  ;;  %9750 = vst [vmem:[#allocation25_spill] sm:$0xff] %v6010_v39  ;;  %9751 = vst [vmem:[#allocation26_spill] sm:$0xff] %v6016_v40  ;;  %v6022_v36 = vld [vmem:[%s8825_s1] sm:$0xff] }
 0x26e   :  { %1028 = vmatprep.subr.mxu0 %v6010_v39  ;;  %1099 = vmatprep.subr.mxu1 %v6016_v40  ;;  %9752 = vst [vmem:[#allocation27_spill] sm:$0xff] %v6022_v36  ;;  %v6029_v39 = vld [vmem:[%s8825_s1 + $0x10] sm:$0xff]  ;;  %v997_v38 = vld [vmem:[#allocation2] sm:$0x3] }
 0x26f   :  { %1029 = vmatpush1.msra.mxu0 %v6022_v36  ;;  %1062 = vmatprep.mubr.f32.mxu0 %v9600_v19  ;;  %9753 = vst [vmem:[#allocation28_spill] sm:$0xff] %v6029_v39  ;;  %v6033_v40 = vld [vmem:[#allocation4 + $0x1e8] sm:$0xff]  ;;  %v6039_v36 = vld [vmem:[#allocation4 + $0x1e0] sm:$0xff] }
 0x270   :  { %1100 = vmatpush1.msra.mxu1 %v6029_v39  ;;  %1133 = vmatprep.mubr.f32.mxu1 %v9600_v19  ;;  %9754 = vst [vmem:[#allocation29_spill] sm:$0xff] %v6033_v40  ;;  %9756 = vst [vmem:[#allocation31_spill] sm:$0xff] %v6039_v36  ;;  %v6045_v39 = vld [vmem:[#allocation4 + $0x1c8] sm:$0xff] }
 0x271   :  { %1063 = vmatmul.mubr.f32.vlgmr.msra.gmra.mxu0 %v997_v38  ;;  %1134 = vmatmul.mubr.f32.vlgmr.msra.gmra.mxu1 %v997_v38  ;;  %9758 = vst [vmem:[#allocation33_spill] sm:$0xff] %v6045_v39  ;;  %v6048_v38 = vld [vmem:[#allocation4 + $0x1d8] sm:$0xff] }
 0x272   :  { %1203 = vmatprep.subr.mxu0 %v6033_v40  ;;  %1274 = vmatprep.subr.mxu1 %v6036_v35  ;;  %9759 = vst [vmem:[#allocation34_spill] sm:$0xff] %v6048_v38  ;;  %v6051_v40 = vld [vmem:[#allocation4 + $0x1c0] sm:$0xff]  ;;  %v6054_v35 = vld [vmem:[#allocation4 + $0x1d0] sm:$0xff] }
 0x273   :  { %1204 = vmatpush1.msra.mxu0 %v6039_v36  ;;  %1275 = vmatpush1.msra.mxu1 %v6042_v34  ;;  %9760 = vst [vmem:[#allocation35_spill] sm:$0xff] %v6051_v40  ;;  %9761 = vst [vmem:[#allocation36_spill] sm:$0xff] %v6054_v35  ;;  %v6057_v36 = vld [vmem:[#allocation4 + $0x1a8] sm:$0xff]  ;;  %v6060_v34 = vld [vmem:[#allocation4 + $0x1b8] sm:$0xff] }
 0x274   :  { %1205 = vmatprep.subr.mxu0 %v6045_v39  ;;  %1276 = vmatprep.subr.mxu1 %v6048_v38  ;;  %9762 = vst [vmem:[#allocation37_spill] sm:$0xff] %v6057_v36  ;;  %9763 = vst [vmem:[#allocation38_spill] sm:$0xff] %v6060_v34  ;;  %v6063_v39 = vld [vmem:[#allocation4 + $0x1a0] sm:$0xff]  ;;  %v6066_v38 = vld [vmem:[#allocation4 + $0x1b0] sm:$0xff] }
 0x275   :  { %1206 = vmatpush1.msra.mxu0 %v6051_v40  ;;  %1277 = vmatpush1.msra.mxu1 %v6054_v35  ;;  %9764 = vst [vmem:[#allocation39_spill] sm:$0xff] %v6063_v39  ;;  %9765 = vst [vmem:[#allocation40_spill] sm:$0xff] %v6066_v38  ;;  %v6069_v40 = vld [vmem:[#allocation4 + $0x188] sm:$0xff]  ;;  %v6072_v35 = vld [vmem:[#allocation4 + $0x198] sm:$0xff] }
 0x276   :  { %1207 = vmatprep.subr.mxu0 %v6057_v36  ;;  %1278 = vmatprep.subr.mxu1 %v6060_v34  ;;  %9766 = vst [vmem:[#allocation41_spill] sm:$0xff] %v6069_v40  ;;  %9767 = vst [vmem:[#allocation42_spill] sm:$0xff] %v6072_v35  ;;  %v6075_v36 = vld [vmem:[#allocation4 + $0x180] sm:$0xff]  ;;  %v6078_v34 = vld [vmem:[#allocation4 + $0x190] sm:$0xff] }
 0x277   :  { %1208 = vmatpush1.msra.mxu0 %v6063_v39  ;;  %1279 = vmatpush1.msra.mxu1 %v6066_v38  ;;  %9768 = vst [vmem:[#allocation43_spill] sm:$0xff] %v6075_v36  ;;  %9769 = vst [vmem:[#allocation44_spill] sm:$0xff] %v6078_v34  ;;  %v6081_v39 = vld [vmem:[#allocation4 + $0x168] sm:$0xff]  ;;  %v6084_v38 = vld [vmem:[#allocation4 + $0x178] sm:$0xff] }
 0x278   :  { %1209 = vmatprep.subr.mxu0 %v6069_v40  ;;  %1280 = vmatprep.subr.mxu1 %v6072_v35  ;;  %9770 = vst [vmem:[#allocation45_spill] sm:$0xff] %v6081_v39  ;;  %9771 = vst [vmem:[#allocation46_spill] sm:$0xff] %v6084_v38  ;;  %v6087_v40 = vld [vmem:[#allocation4 + $0x160] sm:$0xff]  ;;  %v6090_v35 = vld [vmem:[#allocation4 + $0x170] sm:$0xff] }
 0x279   :  { %1210 = vmatpush1.msra.mxu0 %v6075_v36  ;;  %1281 = vmatpush1.msra.mxu1 %v6078_v34  ;;  %9772 = vst [vmem:[#allocation47_spill] sm:$0xff] %v6087_v40  ;;  %9773 = vst [vmem:[#allocation48_spill] sm:$0xff] %v6090_v35  ;;  %v6093_v36 = vld [vmem:[#allocation4 + $0x148] sm:$0xff]  ;;  %v6096_v34 = vld [vmem:[#allocation4 + $0x158] sm:$0xff] }
 0x27a   :  { %1211 = vmatprep.subr.mxu0 %v6081_v39  ;;  %1282 = vmatprep.subr.mxu1 %v6084_v38  ;;  %9774 = vst [vmem:[#allocation49_spill] sm:$0xff] %v6093_v36  ;;  %9775 = vst [vmem:[#allocation50_spill] sm:$0xff] %v6096_v34  ;;  %v6099_v39 = vld [vmem:[#allocation4 + $0x140] sm:$0xff]  ;;  %v6102_v38 = vld [vmem:[#allocation4 + $0x150] sm:$0xff] }
 0x27b   :  { %1212 = vmatpush1.msra.mxu0 %v6087_v40  ;;  %1283 = vmatpush1.msra.mxu1 %v6090_v35  ;;  %9776 = vst [vmem:[#allocation51_spill] sm:$0xff] %v6099_v39  ;;  %9777 = vst [vmem:[#allocation52_spill] sm:$0xff] %v6102_v38  ;;  %v6105_v40 = vld [vmem:[#allocation4 + $0x128] sm:$0xff]  ;;  %v6108_v35 = vld [vmem:[#allocation4 + $0x138] sm:$0xff] }
 0x27c   :  { %1213 = vmatprep.subr.mxu0 %v6093_v36  ;;  %1284 = vmatprep.subr.mxu1 %v6096_v34  ;;  %9778 = vst [vmem:[#allocation53_spill] sm:$0xff] %v6105_v40  ;;  %9779 = vst [vmem:[#allocation54_spill] sm:$0xff] %v6108_v35  ;;  %v6111_v36 = vld [vmem:[#allocation4 + $0x120] sm:$0xff]  ;;  %v6114_v34 = vld [vmem:[#allocation4 + $0x130] sm:$0xff] }
 0x27d   :  { %1214 = vmatpush1.msra.mxu0 %v6099_v39  ;;  %1285 = vmatpush1.msra.mxu1 %v6102_v38  ;;  %9780 = vst [vmem:[#allocation55_spill] sm:$0xff] %v6111_v36  ;;  %9781 = vst [vmem:[#allocation56_spill] sm:$0xff] %v6114_v34  ;;  %v6117_v39 = vld [vmem:[#allocation4 + $0x108] sm:$0xff]  ;;  %v6120_v38 = vld [vmem:[#allocation4 + $0x118] sm:$0xff] }
 0x27e   :  { %1215 = vmatprep.subr.mxu0 %v6105_v40  ;;  %1286 = vmatprep.subr.mxu1 %v6108_v35  ;;  %9782 = vst [vmem:[#allocation57_spill] sm:$0xff] %v6117_v39  ;;  %9783 = vst [vmem:[#allocation58_spill] sm:$0xff] %v6120_v38  ;;  %v6123_v40 = vld [vmem:[#allocation4 + $0x100] sm:$0xff]  ;;  %v6126_v35 = vld [vmem:[#allocation4 + $0x110] sm:$0xff] }
 0x27f   :  { %1216 = vmatpush1.msra.mxu0 %v6111_v36  ;;  %1287 = vmatpush1.msra.mxu1 %v6114_v34  ;;  %9784 = vst [vmem:[#allocation59_spill] sm:$0xff] %v6123_v40  ;;  %9785 = vst [vmem:[#allocation60_spill] sm:$0xff] %v6126_v35  ;;  %v6129_v36 = vld [vmem:[#allocation4 + $0xe8] sm:$0xff]  ;;  %v6132_v34 = vld [vmem:[#allocation4 + $0xf8] sm:$0xff] }
 0x280   :  { %1217 = vmatprep.subr.mxu0 %v6117_v39  ;;  %1288 = vmatprep.subr.mxu1 %v6120_v38  ;;  %9786 = vst [vmem:[#allocation61_spill] sm:$0xff] %v6129_v36  ;;  %9787 = vst [vmem:[#allocation62_spill] sm:$0xff] %v6132_v34  ;;  %v6135_v39 = vld [vmem:[#allocation4 + $0xe0] sm:$0xff]  ;;  %v6138_v38 = vld [vmem:[#allocation4 + $0xf0] sm:$0xff] }
 0x281   :  { %1218 = vmatpush1.msra.mxu0 %v6123_v40  ;;  %1289 = vmatpush1.msra.mxu1 %v6126_v35  ;;  %9788 = vst [vmem:[#allocation63_spill] sm:$0xff] %v6135_v39  ;;  %9789 = vst [vmem:[#allocation64_spill] sm:$0xff] %v6138_v38  ;;  %v6141_v40 = vld [vmem:[#allocation4 + $0xc8] sm:$0xff]  ;;  %v6144_v35 = vld [vmem:[#allocation4 + $0xd8] sm:$0xff] }
 0x282   :  { %1219 = vmatprep.subr.mxu0 %v6129_v36  ;;  %1290 = vmatprep.subr.mxu1 %v6132_v34  ;;  %9790 = vst [vmem:[#allocation65_spill] sm:$0xff] %v6141_v40  ;;  %9791 = vst [vmem:[#allocation66_spill] sm:$0xff] %v6144_v35  ;;  %v6147_v36 = vld [vmem:[#allocation4 + $0xc0] sm:$0xff]  ;;  %v6150_v34 = vld [vmem:[#allocation4 + $0xd0] sm:$0xff] }
 0x283   :  { %1220 = vmatpush1.msra.mxu0 %v6135_v39  ;;  %1291 = vmatpush1.msra.mxu1 %v6138_v38  ;;  %9792 = vst [vmem:[#allocation67_spill] sm:$0xff] %v6147_v36  ;;  %9793 = vst [vmem:[#allocation68_spill] sm:$0xff] %v6150_v34  ;;  %v6153_v39 = vld [vmem:[#allocation4 + $0xa8] sm:$0xff]  ;;  %v6156_v38 = vld [vmem:[#allocation4 + $0xb8] sm:$0xff] }
 0x284   :  { %1221 = vmatprep.subr.mxu0 %v6141_v40  ;;  %1292 = vmatprep.subr.mxu1 %v6144_v35  ;;  %9794 = vst [vmem:[#allocation69_spill] sm:$0xff] %v6153_v39  ;;  %9795 = vst [vmem:[#allocation70_spill] sm:$0xff] %v6156_v38  ;;  %v6159_v40 = vld [vmem:[#allocation4 + $0xa0] sm:$0xff]  ;;  %v6162_v35 = vld [vmem:[#allocation4 + $0xb0] sm:$0xff] }
 0x285   :  { %1222 = vmatpush1.msra.mxu0 %v6147_v36  ;;  %1293 = vmatpush1.msra.mxu1 %v6150_v34  ;;  %9796 = vst [vmem:[#allocation71_spill] sm:$0xff] %v6159_v40  ;;  %9797 = vst [vmem:[#allocation72_spill] sm:$0xff] %v6162_v35  ;;  %v6165_v36 = vld [vmem:[#allocation4 + $0x88] sm:$0xff]  ;;  %v6168_v34 = vld [vmem:[#allocation4 + $0x98] sm:$0xff] }
 0x286   :  { %1223 = vmatprep.subr.mxu0 %v6153_v39  ;;  %1294 = vmatprep.subr.mxu1 %v6156_v38  ;;  %9798 = vst [vmem:[#allocation73_spill] sm:$0xff] %v6165_v36  ;;  %9799 = vst [vmem:[#allocation74_spill] sm:$0xff] %v6168_v34  ;;  %v6171_v39 = vld [vmem:[#allocation4 + $0x80] sm:$0xff]  ;;  %v6174_v38 = vld [vmem:[#allocation4 + $0x90] sm:$0xff] }
 0x287   :  { %1224 = vmatpush1.msra.mxu0 %v6159_v40  ;;  %1295 = vmatpush1.msra.mxu1 %v6162_v35  ;;  %9800 = vst [vmem:[#allocation75_spill] sm:$0xff] %v6171_v39  ;;  %9801 = vst [vmem:[#allocation76_spill] sm:$0xff] %v6174_v38  ;;  %v6177_v40 = vld [vmem:[#allocation4 + $0x68] sm:$0xff]  ;;  %v6180_v35 = vld [vmem:[#allocation4 + $0x78] sm:$0xff] }
 0x288   :  { %1225 = vmatprep.subr.mxu0 %v6165_v36  ;;  %1296 = vmatprep.subr.mxu1 %v6168_v34  ;;  %9802 = vst [vmem:[#allocation77_spill] sm:$0xff] %v6177_v40  ;;  %9803 = vst [vmem:[#allocation78_spill] sm:$0xff] %v6180_v35  ;;  %v6183_v36 = vld [vmem:[#allocation4 + $0x60] sm:$0xff]  ;;  %v6186_v34 = vld [vmem:[#allocation4 + $0x70] sm:$0xff] }
 0x289   :  { %1226 = vmatpush1.msra.mxu0 %v6171_v39  ;;  %1297 = vmatpush1.msra.mxu1 %v6174_v38  ;;  %9804 = vst [vmem:[#allocation79_spill] sm:$0xff] %v6183_v36  ;;  %9805 = vst [vmem:[#allocation80_spill] sm:$0xff] %v6186_v34  ;;  %v6189_v39 = vld [vmem:[#allocation4 + $0x48] sm:$0xff]  ;;  %v6192_v38 = vld [vmem:[#allocation4 + $0x58] sm:$0xff] }
 0x28a   :  { %1227 = vmatprep.subr.mxu0 %v6177_v40  ;;  %1298 = vmatprep.subr.mxu1 %v6180_v35  ;;  %9806 = vst [vmem:[#allocation81_spill] sm:$0xff] %v6189_v39  ;;  %9807 = vst [vmem:[#allocation82_spill] sm:$0xff] %v6192_v38  ;;  %v6195_v40 = vld [vmem:[#allocation4 + $0x40] sm:$0xff]  ;;  %v6198_v35 = vld [vmem:[#allocation4 + $0x50] sm:$0xff] }
 0x28b   :  { %1228 = vmatpush1.msra.mxu0 %v6183_v36  ;;  %1299 = vmatpush1.msra.mxu1 %v6186_v34  ;;  %9808 = vst [vmem:[#allocation83_spill] sm:$0xff] %v6195_v40  ;;  %9809 = vst [vmem:[#allocation84_spill] sm:$0xff] %v6198_v35  ;;  %v6201_v36 = vld [vmem:[#allocation4 + $0x28] sm:$0xff]  ;;  %v6204_v34 = vld [vmem:[#allocation4 + $0x38] sm:$0xff] }
 0x28c   :  { %1229 = vmatprep.subr.mxu0 %v6189_v39  ;;  %1300 = vmatprep.subr.mxu1 %v6192_v38  ;;  %9810 = vst [vmem:[#allocation85_spill] sm:$0xff] %v6201_v36  ;;  %9811 = vst [vmem:[#allocation86_spill] sm:$0xff] %v6204_v34  ;;  %v6207_v39 = vld [vmem:[#allocation4 + $0x20] sm:$0xff]  ;;  %v6210_v38 = vld [vmem:[#allocation4 + $0x30] sm:$0xff] }
 0x28d   :  { %1230 = vmatpush1.msra.mxu0 %v6195_v40  ;;  %1301 = vmatpush1.msra.mxu1 %v6198_v35  ;;  %9812 = vst [vmem:[#allocation87_spill] sm:$0xff] %v6207_v39  ;;  %9813 = vst [vmem:[#allocation88_spill] sm:$0xff] %v6210_v38  ;;  %v6213_v40 = vld [vmem:[#allocation4 + $0x8] sm:$0xff]  ;;  %v6216_v35 = vld [vmem:[#allocation4 + $0x18] sm:$0xff] }
 0x28e   :  { %1231 = vmatprep.subr.mxu0 %v6201_v36  ;;  %1302 = vmatprep.subr.mxu1 %v6204_v34  ;;  %9814 = vst [vmem:[#allocation89_spill] sm:$0xff] %v6213_v40  ;;  %9815 = vst [vmem:[#allocation90_spill] sm:$0xff] %v6216_v35  ;;  %v6219_v36 = vld [vmem:[#allocation4] sm:$0xff]  ;;  %v6222_v34 = vld [vmem:[#allocation4 + $0x10] sm:$0xff] }
 0x28f   :  { %1232 = vmatpush1.msra.mxu0 %v6207_v39  ;;  %1303 = vmatpush1.msra.mxu1 %v6210_v38  ;;  %9816 = vst [vmem:[#allocation91_spill] sm:$0xff] %v6219_v36  ;;  %9817 = vst [vmem:[#allocation92_spill] sm:$0xff] %v6222_v34  ;;  %v6225_v39 = vld [vmem:[#allocation4 + $0x3e8] sm:$0xff]  ;;  %v6228_v38 = vld [vmem:[#allocation4 + $0x3f8] sm:$0xff] }
 0x290   :  { %1233 = vmatprep.subr.mxu0 %v6213_v40  ;;  %1304 = vmatprep.subr.mxu1 %v6216_v35  ;;  %9818 = vst [vmem:[#allocation93_spill] sm:$0xff] %v6225_v39  ;;  %9819 = vst [vmem:[#allocation94_spill] sm:$0xff] %v6228_v38  ;;  %v6231_v40 = vld [vmem:[#allocation4 + $0x3e0] sm:$0xff]  ;;  %v6234_v35 = vld [vmem:[#allocation4 + $0x3f0] sm:$0xff] }
 0x291   :  { %1234 = vmatpush1.msra.mxu0 %v6219_v36  ;;  %1305 = vmatpush1.msra.mxu1 %v6222_v34  ;;  %9820 = vst [vmem:[#allocation95_spill] sm:$0xff] %v6231_v40  ;;  %9821 = vst [vmem:[#allocation96_spill] sm:$0xff] %v6234_v35  ;;  %v6237_v36 = vld [vmem:[#allocation4 + $0x3c8] sm:$0xff]  ;;  %v6240_v34 = vld [vmem:[#allocation4 + $0x3d8] sm:$0xff] }
 0x292   :  { %1235 = vmatprep.subr.mxu0 %v6225_v39  ;;  %1306 = vmatprep.subr.mxu1 %v6228_v38  ;;  %9822 = vst [vmem:[#allocation97_spill] sm:$0xff] %v6237_v36  ;;  %9823 = vst [vmem:[#allocation98_spill] sm:$0xff] %v6240_v34  ;;  %v6243_v39 = vld [vmem:[#allocation4 + $0x3c0] sm:$0xff]  ;;  %v6246_v38 = vld [vmem:[#allocation4 + $0x3d0] sm:$0xff] }
 0x293   :  { %1236 = vmatpush2.msra.mxu0 %v6231_v40  ;;  %1307 = vmatpush2.msra.mxu1 %v6234_v35  ;;  %9824 = vst [vmem:[#allocation99_spill] sm:$0xff] %v6243_v39  ;;  %9825 = vst [vmem:[#allocation100_spill] sm:$0xff] %v6246_v38  ;;  %v6249_v40 = vld [vmem:[#allocation4 + $0x3a8] sm:$0xff]  ;;  %v6252_v35 = vld [vmem:[#allocation4 + $0x3b8] sm:$0xff] }
 0x294   :  { %1237 = vmatprep.subr.mxu0 %v6237_v36  ;;  %1308 = vmatprep.subr.mxu1 %v6240_v34  ;;  %9826 = vst [vmem:[#allocation101_spill] sm:$0xff] %v6249_v40  ;;  %9827 = vst [vmem:[#allocation102_spill] sm:$0xff] %v6252_v35  ;;  %v6255_v36 = vld [vmem:[#allocation4 + $0x3a0] sm:$0xff]  ;;  %v6258_v34 = vld [vmem:[#allocation4 + $0x3b0] sm:$0xff] }
 0x295   :  { %1238 = vmatpush2.msra.mxu0 %v6243_v39  ;;  %1309 = vmatpush2.msra.mxu1 %v6246_v38  ;;  %9828 = vst [vmem:[#allocation103_spill] sm:$0xff] %v6255_v36  ;;  %9829 = vst [vmem:[#allocation104_spill] sm:$0xff] %v6258_v34  ;;  %v6261_v39 = vld [vmem:[#allocation4 + $0x388] sm:$0xff]  ;;  %v6264_v38 = vld [vmem:[#allocation4 + $0x398] sm:$0xff] }
 0x296   :  { %1239 = vmatprep.subr.mxu0 %v6249_v40  ;;  %1310 = vmatprep.subr.mxu1 %v6252_v35  ;;  %9830 = vst [vmem:[#allocation105_spill] sm:$0xff] %v6261_v39  ;;  %9831 = vst [vmem:[#allocation106_spill] sm:$0xff] %v6264_v38  ;;  %v6267_v40 = vld [vmem:[#allocation4 + $0x380] sm:$0xff]  ;;  %v6270_v35 = vld [vmem:[#allocation4 + $0x390] sm:$0xff] }
 0x297   :  { %1240 = vmatpush2.msra.mxu0 %v6255_v36  ;;  %1311 = vmatpush2.msra.mxu1 %v6258_v34  ;;  %9832 = vst [vmem:[#allocation107_spill] sm:$0xff] %v6267_v40  ;;  %9833 = vst [vmem:[#allocation108_spill] sm:$0xff] %v6270_v35  ;;  %v6273_v36 = vld [vmem:[#allocation4 + $0x368] sm:$0xff]  ;;  %v6276_v34 = vld [vmem:[#allocation4 + $0x378] sm:$0xff] }
 0x298   :  { %1241 = vmatprep.subr.mxu0 %v6261_v39  ;;  %1312 = vmatprep.subr.mxu1 %v6264_v38  ;;  %9834 = vst [vmem:[#allocation109_spill] sm:$0xff] %v6273_v36  ;;  %9835 = vst [vmem:[#allocation110_spill] sm:$0xff] %v6276_v34  ;;  %v6279_v39 = vld [vmem:[#allocation4 + $0x360] sm:$0xff]  ;;  %v6282_v38 = vld [vmem:[#allocation4 + $0x370] sm:$0xff] }
 0x299   :  { %1242 = vmatpush2.msra.mxu0 %v6267_v40  ;;  %1313 = vmatpush2.msra.mxu1 %v6270_v35  ;;  %9836 = vst [vmem:[#allocation111_spill] sm:$0xff] %v6279_v39  ;;  %9837 = vst [vmem:[#allocation112_spill] sm:$0xff] %v6282_v38  ;;  %v6285_v40 = vld [vmem:[#allocation4 + $0x348] sm:$0xff]  ;;  %v6288_v35 = vld [vmem:[#allocation4 + $0x358] sm:$0xff] }
 0x29a   :  { %1243 = vmatprep.subr.mxu0 %v6273_v36  ;;  %1314 = vmatprep.subr.mxu1 %v6276_v34  ;;  %9838 = vst [vmem:[#allocation113_spill] sm:$0xff] %v6285_v40  ;;  %9839 = vst [vmem:[#allocation114_spill] sm:$0xff] %v6288_v35  ;;  %v6291_v36 = vld [vmem:[#allocation4 + $0x340] sm:$0xff]  ;;  %v6294_v34 = vld [vmem:[#allocation4 + $0x350] sm:$0xff] }
 0x29b   :  { %1244 = vmatpush2.msra.mxu0 %v6279_v39  ;;  %1315 = vmatpush2.msra.mxu1 %v6282_v38  ;;  %9840 = vst [vmem:[#allocation115_spill] sm:$0xff] %v6291_v36  ;;  %9841 = vst [vmem:[#allocation116_spill] sm:$0xff] %v6294_v34  ;;  %v6297_v39 = vld [vmem:[#allocation4 + $0x328] sm:$0xff]  ;;  %v6300_v38 = vld [vmem:[#allocation4 + $0x338] sm:$0xff] }
 0x29c   :  { %1245 = vmatprep.subr.mxu0 %v6285_v40  ;;  %1316 = vmatprep.subr.mxu1 %v6288_v35  ;;  %9842 = vst [vmem:[#allocation117_spill] sm:$0xff] %v6297_v39  ;;  %9843 = vst [vmem:[#allocation118_spill] sm:$0xff] %v6300_v38  ;;  %v6303_v40 = vld [vmem:[#allocation4 + $0x320] sm:$0xff]  ;;  %v6306_v35 = vld [vmem:[#allocation4 + $0x330] sm:$0xff] }
 0x29d   :  { %1246 = vmatpush2.msra.mxu0 %v6291_v36  ;;  %1317 = vmatpush2.msra.mxu1 %v6294_v34  ;;  %9844 = vst [vmem:[#allocation119_spill] sm:$0xff] %v6303_v40  ;;  %9845 = vst [vmem:[#allocation120_spill] sm:$0xff] %v6306_v35  ;;  %v6309_v36 = vld [vmem:[#allocation4 + $0x308] sm:$0xff]  ;;  %v6312_v34 = vld [vmem:[#allocation4 + $0x318] sm:$0xff] }
 0x29e   :  { %1247 = vmatprep.subr.mxu0 %v6297_v39  ;;  %1318 = vmatprep.subr.mxu1 %v6300_v38  ;;  %9846 = vst [vmem:[#allocation121_spill] sm:$0xff] %v6309_v36  ;;  %9847 = vst [vmem:[#allocation122_spill] sm:$0xff] %v6312_v34  ;;  %v6315_v39 = vld [vmem:[#allocation4 + $0x300] sm:$0xff]  ;;  %v6318_v38 = vld [vmem:[#allocation4 + $0x310] sm:$0xff] }
 0x29f   :  { %1248 = vmatpush2.msra.mxu0 %v6303_v40  ;;  %1319 = vmatpush2.msra.mxu1 %v6306_v35  ;;  %9848 = vst [vmem:[#allocation123_spill] sm:$0xff] %v6315_v39  ;;  %9849 = vst [vmem:[#allocation124_spill] sm:$0xff] %v6318_v38  ;;  %v6321_v40 = vld [vmem:[#allocation4 + $0x2e8] sm:$0xff]  ;;  %v6324_v35 = vld [vmem:[#allocation4 + $0x2f8] sm:$0xff] }
 0x2a0   :  { %1249 = vmatprep.subr.mxu0 %v6309_v36  ;;  %1320 = vmatprep.subr.mxu1 %v6312_v34  ;;  %9850 = vst [vmem:[#allocation125_spill] sm:$0xff] %v6321_v40  ;;  %9851 = vst [vmem:[#allocation126_spill] sm:$0xff] %v6324_v35  ;;  %v6327_v36 = vld [vmem:[#allocation4 + $0x2e0] sm:$0xff]  ;;  %v6330_v34 = vld [vmem:[#allocation4 + $0x2f0] sm:$0xff] }
 0x2a1   :  { %1250 = vmatpush2.msra.mxu0 %v6315_v39  ;;  %1321 = vmatpush2.msra.mxu1 %v6318_v38  ;;  %9852 = vst [vmem:[#allocation127_spill] sm:$0xff] %v6327_v36  ;;  %9853 = vst [vmem:[#allocation128_spill] sm:$0xff] %v6330_v34  ;;  %v6333_v39 = vld [vmem:[#allocation4 + $0x2c8] sm:$0xff]  ;;  %v6336_v38 = vld [vmem:[#allocation4 + $0x2d8] sm:$0xff] }
 0x2a2   :  { %1251 = vmatprep.subr.mxu0 %v6321_v40  ;;  %1322 = vmatprep.subr.mxu1 %v6324_v35  ;;  %9854 = vst [vmem:[#allocation129_spill] sm:$0xff] %v6333_v39  ;;  %9855 = vst [vmem:[#allocation130_spill] sm:$0xff] %v6336_v38  ;;  %v6339_v40 = vld [vmem:[#allocation4 + $0x2c0] sm:$0xff]  ;;  %v6342_v35 = vld [vmem:[#allocation4 + $0x2d0] sm:$0xff] }
 0x2a3   :  { %1252 = vmatpush2.msra.mxu0 %v6327_v36  ;;  %1323 = vmatpush2.msra.mxu1 %v6330_v34  ;;  %9856 = vst [vmem:[#allocation131_spill] sm:$0xff] %v6339_v40  ;;  %9857 = vst [vmem:[#allocation132_spill] sm:$0xff] %v6342_v35  ;;  %v6345_v36 = vld [vmem:[#allocation4 + $0x2a8] sm:$0xff]  ;;  %v6348_v34 = vld [vmem:[#allocation4 + $0x2b8] sm:$0xff] }
 0x2a4   :  { %1253 = vmatprep.subr.mxu0 %v6333_v39  ;;  %1324 = vmatprep.subr.mxu1 %v6336_v38  ;;  %9858 = vst [vmem:[#allocation133_spill] sm:$0xff] %v6345_v36  ;;  %9859 = vst [vmem:[#allocation134_spill] sm:$0xff] %v6348_v34  ;;  %v6351_v39 = vld [vmem:[#allocation4 + $0x2a0] sm:$0xff]  ;;  %v6354_v38 = vld [vmem:[#allocation4 + $0x2b0] sm:$0xff] }
 0x2a5   :  { %1254 = vmatpush2.msra.mxu0 %v6339_v40  ;;  %1325 = vmatpush2.msra.mxu1 %v6342_v35  ;;  %9860 = vst [vmem:[#allocation135_spill] sm:$0xff] %v6351_v39  ;;  %9861 = vst [vmem:[#allocation136_spill] sm:$0xff] %v6354_v38  ;;  %v6357_v40 = vld [vmem:[#allocation4 + $0x288] sm:$0xff]  ;;  %v6360_v35 = vld [vmem:[#allocation4 + $0x298] sm:$0xff] }
 0x2a6   :  { %1255 = vmatprep.subr.mxu0 %v6345_v36  ;;  %1326 = vmatprep.subr.mxu1 %v6348_v34  ;;  %9862 = vst [vmem:[#allocation137_spill] sm:$0xff] %v6357_v40  ;;  %9863 = vst [vmem:[#allocation138_spill] sm:$0xff] %v6360_v35  ;;  %v6363_v36 = vld [vmem:[#allocation4 + $0x280] sm:$0xff]  ;;  %v6366_v34 = vld [vmem:[#allocation4 + $0x290] sm:$0xff] }
 0x2a7   :  { %1256 = vmatpush2.msra.mxu0 %v6351_v39  ;;  %1327 = vmatpush2.msra.mxu1 %v6354_v38  ;;  %9864 = vst [vmem:[#allocation139_spill] sm:$0xff] %v6363_v36  ;;  %9865 = vst [vmem:[#allocation140_spill] sm:$0xff] %v6366_v34  ;;  %v6369_v39 = vld [vmem:[#allocation4 + $0x268] sm:$0xff]  ;;  %v6372_v38 = vld [vmem:[#allocation4 + $0x278] sm:$0xff] }
 0x2a8   :  { %1257 = vmatprep.subr.mxu0 %v6357_v40  ;;  %1328 = vmatprep.subr.mxu1 %v6360_v35  ;;  %9866 = vst [vmem:[#allocation141_spill] sm:$0xff] %v6369_v39  ;;  %9867 = vst [vmem:[#allocation142_spill] sm:$0xff] %v6372_v38  ;;  %v6375_v40 = vld [vmem:[#allocation4 + $0x260] sm:$0xff]  ;;  %v6378_v35 = vld [vmem:[#allocation4 + $0x270] sm:$0xff] }
 0x2a9   :  { %1258 = vmatpush2.msra.mxu0 %v6363_v36  ;;  %1329 = vmatpush2.msra.mxu1 %v6366_v34  ;;  %9868 = vst [vmem:[#allocation143_spill] sm:$0xff] %v6375_v40  ;;  %9869 = vst [vmem:[#allocation144_spill] sm:$0xff] %v6378_v35  ;;  %v6381_v36 = vld [vmem:[#allocation4 + $0x248] sm:$0xff]  ;;  %v6384_v34 = vld [vmem:[#allocation4 + $0x258] sm:$0xff] }
 0x2aa   :  { %1259 = vmatprep.subr.mxu0 %v6369_v39  ;;  %1330 = vmatprep.subr.mxu1 %v6372_v38  ;;  %9870 = vst [vmem:[#allocation145_spill] sm:$0xff] %v6381_v36  ;;  %9871 = vst [vmem:[#allocation146_spill] sm:$0xff] %v6384_v34  ;;  %v6387_v39 = vld [vmem:[#allocation4 + $0x240] sm:$0xff]  ;;  %v6390_v38 = vld [vmem:[#allocation4 + $0x250] sm:$0xff] }
 0x2ab   :  { %1260 = vmatpush2.msra.mxu0 %v6375_v40  ;;  %1331 = vmatpush2.msra.mxu1 %v6378_v35  ;;  %9872 = vst [vmem:[#allocation147_spill] sm:$0xff] %v6387_v39  ;;  %9873 = vst [vmem:[#allocation148_spill] sm:$0xff] %v6390_v38  ;;  %v6393_v40 = vld [vmem:[#allocation4 + $0x228] sm:$0xff]  ;;  %v6396_v35 = vld [vmem:[#allocation4 + $0x238] sm:$0xff] }
 0x2ac   :  { %1261 = vmatprep.subr.mxu0 %v6381_v36  ;;  %1332 = vmatprep.subr.mxu1 %v6384_v34  ;;  %9874 = vst [vmem:[#allocation149_spill] sm:$0xff] %v6393_v40  ;;  %9875 = vst [vmem:[#allocation150_spill] sm:$0xff] %v6396_v35  ;;  %v6399_v36 = vld [vmem:[#allocation4 + $0x220] sm:$0xff]  ;;  %v6402_v34 = vld [vmem:[#allocation4 + $0x230] sm:$0xff] }
 0x2ad   :  { %1262 = vmatpush2.msra.mxu0 %v6387_v39  ;;  %1333 = vmatpush2.msra.mxu1 %v6390_v38  ;;  %9876 = vst [vmem:[#allocation151_spill] sm:$0xff] %v6399_v36  ;;  %9877 = vst [vmem:[#allocation152_spill] sm:$0xff] %v6402_v34  ;;  %v6405_v39 = vld [vmem:[#allocation4 + $0x208] sm:$0xff]  ;;  %v6408_v38 = vld [vmem:[#allocation4 + $0x218] sm:$0xff] }
 0x2ae   :  { %1263 = vmatprep.subr.mxu0 %v6393_v40  ;;  %1334 = vmatprep.subr.mxu1 %v6396_v35  ;;  %9878 = vst [vmem:[#allocation153_spill] sm:$0xff] %v6405_v39  ;;  %9879 = vst [vmem:[#allocation154_spill] sm:$0xff] %v6408_v38  ;;  %v6411_v40 = vld [vmem:[#allocation4 + $0x200] sm:$0xff]  ;;  %v6414_v35 = vld [vmem:[#allocation4 + $0x210] sm:$0xff] }
 0x2af   :  { %1264 = vmatpush2.msra.mxu0 %v6399_v36  ;;  %1335 = vmatpush2.msra.mxu1 %v6402_v34  ;;  %9880 = vst [vmem:[#allocation155_spill] sm:$0xff] %v6411_v40  ;;  %9881 = vst [vmem:[#allocation156_spill] sm:$0xff] %v6414_v35 }
 0x2b0   :  { %1265 = vmatprep.subr.mxu0 %v6405_v39  ;;  %1336 = vmatprep.subr.mxu1 %v6408_v38 }
 0x2b1   :  { %1266 = vmatpush2.msra.mxu0 %v6411_v40  ;;  %1337 = vmatpush2.msra.mxu1 %v6414_v35 }
 0x2b2   :  { %1371 = vmatprep.subr.mxu0 %v5623_v24  ;;  %1442 = vmatprep.subr.mxu1 %v5629_v25 }
 0x310   :  { %v896_v34 = vpop.f32.mrf.mxu0  ;;  %v967_v38 = vpop.f32.mrf.mxu1 }
 0x311   :  { %v897_v36 = vadd.f32 %v896_v34, %v5637_v30  ;;  %v968_v40 = vadd.f32 %v967_v38, %v5643_v37 }
 0x312   :  { %v898_v39 = vpop.f32.mrf.mxu0  ;;  %v969_v29 = vpop.f32.mrf.mxu1 }
 0x313   :  { %v972_v19 = vmul.f32 0.5, %v897_v36  ;;  %v899_v33 = vadd.f32 %v898_v39, %v5640_v32  ;;  %v970_v35 = vadd.f32 %v969_v29, %v5648_v43  ;;  %v985_v39 = vld [vmem:[#allocation3 + $0x2] sm:$0x3] }
 0x315   :  { %3671 = vtanh.f32 %v972_v19  ;;  %v976_v31 = vmul.f32 0.5, %v899_v33  ;;  %v981_v24 = vmul.f32 0.5, %v970_v35 }
 0x317   :  { %3673 = vtanh.f32 %v976_v31 }
 0x318   :  { %3675 = vtanh.f32 %v968_v40 }
 0x319   :  { %3677 = vtanh.f32 %v981_v24  ;;  %v3615_v24 = vld [vmem:[%s8824_s0 + $0x10] sm:$0xff] }
 0x322   :  { %v3672_v28 = vpop.eup %3671 }
 0x323   :  { %v974_v25 = vmul.f32 0.5, %v3672_v28 }
 0x324   :  { %v3674_v27 = vpop.eup %3673 }
 0x325   :  { %v975_v26 = vadd.f32 0.5, %v974_v25  ;;  %v978_v34 = vmul.f32 0.5, %v3674_v27  ;;  %v3676_v30 = vpop.eup %3675 }
 0x326   :  { %v3678_v40 = vpop.eup %3677 }
 0x327   :  { %v979_v36 = vadd.f32 0.5, %v978_v34  ;;  %v987_v19 = vmul.f32 %v3676_v30, %v975_v26  ;;  %v983_v28 = vmul.f32 0.5, %v3678_v40 }
 0x329   :  { %v986_v32 = vmul.f32 %v985_v39, %v979_v36 }
 0x32b   :  { %v988_v33 = vadd.f32 %v987_v19, %v986_v32  ;;  %v984_v32 = vadd.f32 0.5, %v983_v28 }
 0x32d   :  { %3679 = vtanh.f32 %v988_v33  ;;  %991 = vst [vmem:[#allocation3 + $0x2] sm:$0x3] %v988_v33 }
 0x331   :  { %v1064_v31 = vpop.f32.mrf.mxu0  ;;  %v1135_v38 = vpop.f32.mrf.mxu1 }
 0x333   :  { %v1066_v37 = vpop.f32.mrf.mxu0  ;;  %v1137_v29 = vpop.f32.mrf.mxu1 }
 0x334   :  { %v1144_v35 = vcombine.low %v1064_v31, %v1066_v37  ;;  %v1145_v43 = vcombine.low %v1135_v38, %v1137_v29 }
 0x336   :  { %v1152_v25 = vrot.slane %v1144_v35, %v9735_v63  ;;  %v1159_v27 = vrot.slane %v1145_v43, %v9735_v63 }
 0x338   :  { %v1160_v30 = vcombine.low %v1152_v25, %v1159_v27 }
 0x33a   :  { %v3680_v26 = vpop.eup %3679  ;;  %v1162_v34 = vadd.f32 %v3615_v24, %v1160_v30  ;;  %v1183_v24 = vld [vmem:[#allocation3] sm:$0x3] }
 0x33b   :  { %v990_v36 = vmul.f32 %v3680_v26, %v984_v32 }
 0x33c   :  { %v1163_v39 = vmul.f32 0.5, %v1162_v34  ;;  %v1168_v19 = vrot.slane %v1162_v34, 2  ;;  %v1174_v43 = vrot.slane %v1162_v34, 4  ;;  %v1177_v33 = vrot.slane %v1162_v34, 6 }
 0x33d   :  { %992 = vst [vmem:[#allocation2 + $0x2] sm:$0x3] %v990_v36  ;;  %3614 = vst [vmem:[%s8828_s4 + $0x2] sm:$0x3] %v990_v36 }
 0x33e   :  { %3681 = vtanh.f32 %v1163_v39  ;;  %v1170_v37 = vmul.f32 0.5, %v1168_v19  ;;  %v1179_v31 = vmul.f32 0.5, %v1177_v33 }
 0x340   :  { %3683 = vtanh.f32 %v1170_v37 }
 0x341   :  { %3685 = vtanh.f32 %v1174_v43 }
 0x342   :  { %3687 = vtanh.f32 %v1179_v31  ;;  %v9925_v31 = vld [vmem:[#allocation53_spill] sm:$0xff] }
 0x34b   :  { %v3682_v38 = vpop.eup %3681 }
 0x34c   :  { %v1165_v40 = vmul.f32 0.5, %v3682_v38  ;;  %v9926_v38 = vld [vmem:[#allocation54_spill] sm:$0xff] }
 0x34d   :  { %v3684_v29 = vpop.eup %3683 }
 0x34e   :  { %v1166_v35 = vadd.f32 0.5, %v1165_v40  ;;  %v1172_v28 = vmul.f32 0.5, %v3684_v29  ;;  %v3686_v27 = vpop.eup %3685  ;;  %v9927_v40 = vld [vmem:[#allocation55_spill] sm:$0xff]  ;;  %v9928_v29 = vld [vmem:[#allocation56_spill] sm:$0xff] }
 0x34f   :  { %v3688_v36 = vpop.eup %3687 }
 0x350   :  { %v1173_v25 = vadd.f32 0.5, %v1172_v28  ;;  %v1185_v32 = vmul.f32 %v3686_v27, %v1166_v35  ;;  %v1181_v39 = vmul.f32 0.5, %v3688_v36  ;;  %v9929_v35 = vld [vmem:[#allocation57_spill] sm:$0xff]  ;;  %v9930_v28 = vld [vmem:[#allocation58_spill] sm:$0xff]  ;;  %v9932_v27 = vld [vmem:[#allocation60_spill] sm:$0xff] }
 0x351   :  { %v9937_v36 = vld [vmem:[#allocation65_spill] sm:$0xff] }
 0x352   :  { %v1184_v30 = vmul.f32 %v1183_v24, %v1173_v25  ;;  %v1182_v19 = vadd.f32 0.5, %v1181_v39  ;;  %v9931_v25 = vld [vmem:[#allocation59_spill] sm:$0xff]  ;;  %v9933_v24 = vld [vmem:[#allocation61_spill] sm:$0xff]  ;;  %v9938_v39 = vld [vmem:[#allocation66_spill] sm:$0xff] }
 0x354   :  { %v1186_v26 = vadd.f32 %v1185_v32, %v1184_v30  ;;  %v9934_v30 = vld [vmem:[#allocation62_spill] sm:$0xff]  ;;  %v9935_v32 = vld [vmem:[#allocation63_spill] sm:$0xff] }
 0x356   :  { %3689 = vtanh.f32 %v1186_v26  ;;  %1189 = vst [vmem:[#allocation3] sm:$0x3] %v1186_v26  ;;  %v9936_v26 = vld [vmem:[#allocation64_spill] sm:$0xff] }
 0x363   :  { %v3690_v37 = vpop.eup %3689 }
 0x364   :  { %v1188_v34 = vmul.f32 %v3690_v37, %v1182_v19  ;;  %v9939_v19 = vld [vmem:[#allocation67_spill] sm:$0xff]  ;;  %v9940_v37 = vld [vmem:[#allocation68_spill] sm:$0xff] }
 0x366   :  { %1190 = vst [vmem:[#allocation2] sm:$0x3] %v1188_v34  ;;  %v9941_v34 = vld [vmem:[#allocation69_spill] sm:$0xff] }
 0x36d   :  { %v3616_v43 = vld.sshfl [vmem:[#allocation2] sm:$0x33 pattern:$0x76325410] }
 0x36e   :  { %v1200_v33 = vcombine.high %v3616_v43, %v3616_v43 }
 0x370   :  { %1267 = vmatprep.mubr.f32.mxu0 %v1200_v33  ;;  %1338 = vmatprep.mubr.f32.mxu1 %v1200_v33  ;;  %v9943_v33 = vld [vmem:[#allocation71_spill] sm:$0xff] }
 0x371   :  { %1268 = vmatmul.mubr.f32.vlgmr.msra.gmra.mxu0 %v3616_v43  ;;  %1339 = vmatmul.mubr.f32.vlgmr.msra.gmra.mxu1 %v3616_v43  ;;  %v9942_v43 = vld [vmem:[#allocation70_spill] sm:$0xff] }
 0x372   :  { %1372 = vmatpush1.msra.mxu0 %v5662_v41  ;;  %1443 = vmatpush1.msra.mxu1 %v5668_v42  ;;  %v9882_v41 = vld [vmem:[#allocation11_spill] sm:$0xff]  ;;  %v9883_v42 = vld [vmem:[#allocation12_spill] sm:$0xff] }
 0x373   :  { %1373 = vmatprep.subr.mxu0 %v5674_v44  ;;  %1444 = vmatprep.subr.mxu1 %v5680_v45  ;;  %v9884_v44 = vld [vmem:[#allocation13_spill] sm:$0xff]  ;;  %v9885_v45 = vld [vmem:[#allocation14_spill] sm:$0xff] }
 0x374   :  { %1374 = vmatpush1.msra.mxu0 %v5686_v46  ;;  %1445 = vmatpush1.msra.mxu1 %v5692_v47  ;;  %v9886_v46 = vld [vmem:[#allocation15_spill] sm:$0xff]  ;;  %v9887_v47 = vld [vmem:[#allocation16_spill] sm:$0xff] }
 0x375   :  { %1375 = vmatprep.subr.mxu0 %v5698_v48  ;;  %1446 = vmatprep.subr.mxu1 %v5704_v49  ;;  %v9888_v48 = vld [vmem:[#allocation17_spill] sm:$0xff]  ;;  %v9889_v49 = vld [vmem:[#allocation18_spill] sm:$0xff] }
 0x376   :  { %1376 = vmatpush1.msra.mxu0 %v5710_v61  ;;  %1447 = vmatpush1.msra.mxu1 %v5716_v55  ;;  %v9890_v61 = vld [vmem:[#allocation19_spill] sm:$0xff]  ;;  %v9891_v55 = vld [vmem:[#allocation20_spill] sm:$0xff] }
 0x377   :  { %1377 = vmatprep.subr.mxu0 %v5722_v53  ;;  %1448 = vmatprep.subr.mxu1 %v5728_v54  ;;  %v9892_v53 = vld [vmem:[#allocation21_spill] sm:$0xff]  ;;  %v9893_v54 = vld [vmem:[#allocation22_spill] sm:$0xff] }
 0x378   :  { %1378 = vmatpush1.msra.mxu0 %v5734_v58  ;;  %1449 = vmatpush1.msra.mxu1 %v5740_v56  ;;  %v9894_v58 = vld [vmem:[#allocation23_spill] sm:$0xff]  ;;  %v9895_v56 = vld [vmem:[#allocation24_spill] sm:$0xff] }
 0x379   :  { %1379 = vmatprep.subr.mxu0 %v5746_v52  ;;  %1450 = vmatprep.subr.mxu1 %v5752_v0  ;;  %v9896_v52 = vld [vmem:[#allocation25_spill] sm:$0xff]  ;;  %v9897_v0 = vld [vmem:[#allocation26_spill] sm:$0xff] }
 0x37a   :  { %1380 = vmatpush1.msra.mxu0 %v5758_v1  ;;  %1451 = vmatpush1.msra.mxu1 %v5764_v2  ;;  %v9898_v1 = vld [vmem:[#allocation27_spill] sm:$0xff]  ;;  %v9899_v2 = vmov 0.0  }
 0x37b   :  { %1381 = vmatprep.subr.mxu0 %v5770_v51  ;;  %1452 = vmatprep.subr.mxu1 %v5776_v50  ;;  %v9900_v51 = vld [vmem:[#allocation28_spill] sm:$0xff]  ;;  %v1370_v50 = vld [vmem:[#allocation2] sm:$0x3] }
 0x37c   :  { %1382 = vmatpush1.msra.mxu0 %v5782_v59  ;;  %1453 = vmatpush1.msra.mxu1 %v5788_v60  ;;  %v9901_v59 = vld [vmem:[#allocation29_spill] sm:$0xff]  ;;  %v9902_v60 = vld [vmem:[#allocation30_spill] sm:$0xff] }
 0x37d   :  { %1383 = vmatprep.subr.mxu0 %v5794_v62  ;;  %1454 = vmatprep.subr.mxu1 %v5800_v57  ;;  %v9903_v62 = vld [vmem:[#allocation31_spill] sm:$0xff]  ;;  %v9904_v57 = vld [vmem:[#allocation32_spill] sm:$0xff] }
 0x37e   :  { %1384 = vmatpush1.msra.mxu0 %v5806_v3  ;;  %1455 = vmatpush1.msra.mxu1 %v5812_v4  ;;  %v9905_v3 = vld [vmem:[#allocation33_spill] sm:$0xff]  ;;  %v9906_v4 = vld [vmem:[#allocation34_spill] sm:$0xff] }
 0x37f   :  { %1385 = vmatprep.subr.mxu0 %v5818_v5  ;;  %1456 = vmatprep.subr.mxu1 %v5824_v6  ;;  %v9907_v5 = vld [vmem:[#allocation35_spill] sm:$0xff]  ;;  %v9908_v6 = vld [vmem:[#allocation36_spill] sm:$0xff] }
 0x380   :  { %1386 = vmatpush1.msra.mxu0 %v5830_v7  ;;  %1457 = vmatpush1.msra.mxu1 %v5836_v8  ;;  %v9909_v7 = vld [vmem:[#allocation37_spill] sm:$0xff]  ;;  %v9910_v8 = vld [vmem:[#allocation38_spill] sm:$0xff] }
 0x381   :  { %1387 = vmatprep.subr.mxu0 %v5842_v9  ;;  %1458 = vmatprep.subr.mxu1 %v5848_v10  ;;  %v9911_v9 = vld [vmem:[#allocation39_spill] sm:$0xff]  ;;  %v9912_v10 = vld [vmem:[#allocation40_spill] sm:$0xff] }
 0x382   :  { %1388 = vmatpush1.msra.mxu0 %v5854_v11  ;;  %1459 = vmatpush1.msra.mxu1 %v5860_v12  ;;  %v9913_v11 = vld [vmem:[#allocation41_spill] sm:$0xff]  ;;  %v9914_v12 = vld [vmem:[#allocation42_spill] sm:$0xff] }
 0x383   :  { %1389 = vmatprep.subr.mxu0 %v5866_v13  ;;  %1460 = vmatprep.subr.mxu1 %v5872_v14  ;;  %v9915_v13 = vld [vmem:[#allocation43_spill] sm:$0xff]  ;;  %v9916_v14 = vld [vmem:[#allocation44_spill] sm:$0xff] }
 0x384   :  { %1390 = vmatpush1.msra.mxu0 %v5878_v15  ;;  %1461 = vmatpush1.msra.mxu1 %v5884_v16  ;;  %v9917_v15 = vld [vmem:[#allocation45_spill] sm:$0xff]  ;;  %v9918_v16 = vld [vmem:[#allocation46_spill] sm:$0xff] }
 0x385   :  { %1391 = vmatprep.subr.mxu0 %v5890_v17  ;;  %1462 = vmatprep.subr.mxu1 %v5896_v18  ;;  %v9919_v17 = vld [vmem:[#allocation47_spill] sm:$0xff]  ;;  %v9920_v18 = vld [vmem:[#allocation48_spill] sm:$0xff] }
 0x386   :  { %1392 = vmatpush1.msra.mxu0 %v5902_v20  ;;  %1463 = vmatpush1.msra.mxu1 %v5908_v21  ;;  %v9921_v20 = vld [vmem:[#allocation49_spill] sm:$0xff]  ;;  %v9922_v21 = vld [vmem:[#allocation50_spill] sm:$0xff] }
 0x387   :  { %1393 = vmatprep.subr.mxu0 %v5914_v22  ;;  %1464 = vmatprep.subr.mxu1 %v5920_v23  ;;  %v9923_v22 = vld [vmem:[#allocation51_spill] sm:$0xff]  ;;  %v9924_v23 = vld [vmem:[#allocation52_spill] sm:$0xff] }
 0x388   :  { %1394 = vmatpush1.msra.mxu0 %v9882_v41  ;;  %1465 = vmatpush1.msra.mxu1 %v9883_v42  ;;  %v9944_v41 = vld [vmem:[#allocation72_spill] sm:$0xff]  ;;  %v9945_v42 = vld [vmem:[#allocation73_spill] sm:$0xff] }
 0x389   :  { %1395 = vmatprep.subr.mxu0 %v9884_v44  ;;  %1466 = vmatprep.subr.mxu1 %v9885_v45  ;;  %v9946_v44 = vld [vmem:[#allocation74_spill] sm:$0xff]  ;;  %v9947_v45 = vld [vmem:[#allocation75_spill] sm:$0xff] }
 0x38a   :  { %1396 = vmatpush1.msra.mxu0 %v9886_v46  ;;  %1467 = vmatpush1.msra.mxu1 %v9887_v47  ;;  %v9948_v46 = vld [vmem:[#allocation76_spill] sm:$0xff]  ;;  %v9949_v47 = vld [vmem:[#allocation77_spill] sm:$0xff] }
 0x38b   :  { %1397 = vmatprep.subr.mxu0 %v9888_v48  ;;  %1468 = vmatprep.subr.mxu1 %v9889_v49  ;;  %v9950_v48 = vld [vmem:[#allocation78_spill] sm:$0xff]  ;;  %v9951_v49 = vld [vmem:[#allocation79_spill] sm:$0xff] }
 0x38c   :  { %1398 = vmatpush1.msra.mxu0 %v9890_v61  ;;  %1469 = vmatpush1.msra.mxu1 %v9891_v55  ;;  %v9952_v61 = vld [vmem:[#allocation80_spill] sm:$0xff]  ;;  %v9953_v55 = vld [vmem:[#allocation81_spill] sm:$0xff] }
 0x38d   :  { %1399 = vmatprep.subr.mxu0 %v9892_v53  ;;  %1470 = vmatprep.subr.mxu1 %v9893_v54  ;;  %v9954_v53 = vld [vmem:[#allocation82_spill] sm:$0xff]  ;;  %v9955_v54 = vld [vmem:[#allocation83_spill] sm:$0xff] }
 0x38e   :  { %1400 = vmatpush1.msra.mxu0 %v9894_v58  ;;  %1471 = vmatpush1.msra.mxu1 %v9895_v56  ;;  %v9956_v58 = vld [vmem:[#allocation84_spill] sm:$0xff]  ;;  %v9957_v56 = vld [vmem:[#allocation85_spill] sm:$0xff] }
 0x38f   :  { %1401 = vmatprep.subr.mxu0 %v9896_v52  ;;  %1472 = vmatprep.subr.mxu1 %v9897_v0  ;;  %v9958_v52 = vld [vmem:[#allocation86_spill] sm:$0xff]  ;;  %v9959_v0 = vld [vmem:[#allocation87_spill] sm:$0xff] }
 0x390   :  { %1402 = vmatpush1.msra.mxu0 %v9898_v1  ;;  %1435 = vmatprep.mubr.f32.mxu0 %v9899_v2  ;;  %v9960_v1 = vld [vmem:[#allocation88_spill] sm:$0xff] }
 0x391   :  { %1473 = vmatpush1.msra.mxu1 %v9900_v51  ;;  %1506 = vmatprep.mubr.f32.mxu1 %v9899_v2  ;;  %v9961_v51 = vld [vmem:[#allocation89_spill] sm:$0xff] }
 0x392   :  { %1436 = vmatmul.mubr.f32.vlgmr.msra.gmra.mxu0 %v1370_v50  ;;  %1507 = vmatmul.mubr.f32.vlgmr.msra.gmra.mxu1 %v1370_v50  ;;  %v9962_v50 = vld [vmem:[#allocation90_spill] sm:$0xff] }
 0x393   :  { %1576 = vmatprep.subr.mxu0 %v9901_v59  ;;  %1647 = vmatprep.subr.mxu1 %v9902_v60  ;;  %v9963_v59 = vld [vmem:[#allocation91_spill] sm:$0xff]  ;;  %v9964_v60 = vld [vmem:[#allocation92_spill] sm:$0xff] }
 0x394   :  { %1577 = vmatpush1.msra.mxu0 %v9903_v62  ;;  %1648 = vmatpush1.msra.mxu1 %v9904_v57  ;;  %v9965_v62 = vld [vmem:[#allocation93_spill] sm:$0xff]  ;;  %v9966_v57 = vld [vmem:[#allocation94_spill] sm:$0xff] }
 0x395   :  { %1578 = vmatprep.subr.mxu0 %v9905_v3  ;;  %1649 = vmatprep.subr.mxu1 %v9906_v4  ;;  %v9967_v3 = vld [vmem:[#allocation95_spill] sm:$0xff]  ;;  %v9968_v4 = vld [vmem:[#allocation96_spill] sm:$0xff] }
 0x396   :  { %1579 = vmatpush1.msra.mxu0 %v9907_v5  ;;  %1650 = vmatpush1.msra.mxu1 %v9908_v6  ;;  %v9969_v5 = vld [vmem:[#allocation97_spill] sm:$0xff]  ;;  %v9970_v6 = vld [vmem:[#allocation98_spill] sm:$0xff] }
 0x397   :  { %1580 = vmatprep.subr.mxu0 %v9909_v7  ;;  %1651 = vmatprep.subr.mxu1 %v9910_v8  ;;  %v9971_v7 = vld [vmem:[#allocation99_spill] sm:$0xff]  ;;  %v9972_v8 = vld [vmem:[#allocation100_spill] sm:$0xff] }
 0x398   :  { %1581 = vmatpush1.msra.mxu0 %v9911_v9  ;;  %1652 = vmatpush1.msra.mxu1 %v9912_v10  ;;  %v9973_v9 = vld [vmem:[#allocation101_spill] sm:$0xff]  ;;  %v9974_v10 = vld [vmem:[#allocation102_spill] sm:$0xff] }
 0x399   :  { %1582 = vmatprep.subr.mxu0 %v9913_v11  ;;  %1653 = vmatprep.subr.mxu1 %v9914_v12  ;;  %v9975_v11 = vld [vmem:[#allocation103_spill] sm:$0xff]  ;;  %v9976_v12 = vld [vmem:[#allocation104_spill] sm:$0xff] }
 0x39a   :  { %1583 = vmatpush1.msra.mxu0 %v9915_v13  ;;  %1654 = vmatpush1.msra.mxu1 %v9916_v14  ;;  %v9977_v13 = vld [vmem:[#allocation105_spill] sm:$0xff]  ;;  %v9978_v14 = vld [vmem:[#allocation106_spill] sm:$0xff] }
 0x39b   :  { %1584 = vmatprep.subr.mxu0 %v9917_v15  ;;  %1655 = vmatprep.subr.mxu1 %v9918_v16  ;;  %v9979_v15 = vld [vmem:[#allocation107_spill] sm:$0xff]  ;;  %v9980_v16 = vld [vmem:[#allocation108_spill] sm:$0xff] }
 0x39c   :  { %1585 = vmatpush1.msra.mxu0 %v9919_v17  ;;  %1656 = vmatpush1.msra.mxu1 %v9920_v18  ;;  %v9981_v17 = vld [vmem:[#allocation109_spill] sm:$0xff]  ;;  %v9982_v18 = vld [vmem:[#allocation110_spill] sm:$0xff] }
 0x39d   :  { %1586 = vmatprep.subr.mxu0 %v9921_v20  ;;  %1657 = vmatprep.subr.mxu1 %v9922_v21  ;;  %v9983_v20 = vld [vmem:[#allocation111_spill] sm:$0xff]  ;;  %v9984_v21 = vld [vmem:[#allocation112_spill] sm:$0xff] }
 0x39e   :  { %1587 = vmatpush1.msra.mxu0 %v9923_v22  ;;  %1658 = vmatpush1.msra.mxu1 %v9924_v23  ;;  %v9985_v22 = vld [vmem:[#allocation113_spill] sm:$0xff]  ;;  %v9986_v23 = vld [vmem:[#allocation114_spill] sm:$0xff] }
 0x39f   :  { %1588 = vmatprep.subr.mxu0 %v9925_v31  ;;  %1659 = vmatprep.subr.mxu1 %v9926_v38  ;;  %v9987_v31 = vld [vmem:[#allocation115_spill] sm:$0xff]  ;;  %v9988_v38 = vld [vmem:[#allocation116_spill] sm:$0xff] }
 0x3a0   :  { %1589 = vmatpush1.msra.mxu0 %v9927_v40  ;;  %1660 = vmatpush1.msra.mxu1 %v9928_v29  ;;  %v9989_v40 = vld [vmem:[#allocation117_spill] sm:$0xff]  ;;  %v9990_v29 = vld [vmem:[#allocation118_spill] sm:$0xff] }
 0x3a1   :  { %1590 = vmatprep.subr.mxu0 %v9929_v35  ;;  %1661 = vmatprep.subr.mxu1 %v9930_v28  ;;  %v9991_v35 = vld [vmem:[#allocation119_spill] sm:$0xff]  ;;  %v9992_v28 = vld [vmem:[#allocation120_spill] sm:$0xff] }
 0x3a2   :  { %1591 = vmatpush1.msra.mxu0 %v9931_v25  ;;  %1662 = vmatpush1.msra.mxu1 %v9932_v27  ;;  %v9993_v25 = vld [vmem:[#allocation121_spill] sm:$0xff]  ;;  %v9994_v27 = vld [vmem:[#allocation122_spill] sm:$0xff] }
 0x3a3   :  { %1592 = vmatprep.subr.mxu0 %v9933_v24  ;;  %1663 = vmatprep.subr.mxu1 %v9934_v30  ;;  %v9995_v24 = vld [vmem:[#allocation123_spill] sm:$0xff]  ;;  %v9996_v30 = vld [vmem:[#allocation124_spill] sm:$0xff] }
 0x3a4   :  { %1593 = vmatpush1.msra.mxu0 %v9935_v32  ;;  %1664 = vmatpush1.msra.mxu1 %v9936_v26  ;;  %v9997_v32 = vld [vmem:[#allocation125_spill] sm:$0xff]  ;;  %v9998_v26 = vld [vmem:[#allocation126_spill] sm:$0xff] }
 0x3a5   :  { %1594 = vmatprep.subr.mxu0 %v9937_v36  ;;  %1665 = vmatprep.subr.mxu1 %v9938_v39  ;;  %v9999_v36 = vld [vmem:[#allocation127_spill] sm:$0xff]  ;;  %v10000_v39 = vld [vmem:[#allocation128_spill] sm:$0xff] }
 0x3a6   :  { %1595 = vmatpush1.msra.mxu0 %v9939_v19  ;;  %1666 = vmatpush1.msra.mxu1 %v9940_v37  ;;  %v10001_v19 = vld [vmem:[#allocation129_spill] sm:$0xff]  ;;  %v10002_v37 = vld [vmem:[#allocation130_spill] sm:$0xff] }
 0x3a7   :  { %1596 = vmatprep.subr.mxu0 %v9941_v34  ;;  %1667 = vmatprep.subr.mxu1 %v9942_v43  ;;  %v10003_v34 = vld [vmem:[#allocation131_spill] sm:$0xff]  ;;  %v10004_v43 = vld [vmem:[#allocation132_spill] sm:$0xff] }
 0x3a8   :  { %1597 = vmatpush1.msra.mxu0 %v9943_v33  ;;  %1668 = vmatpush1.msra.mxu1 %v9944_v41  ;;  %v10005_v33 = vld [vmem:[#allocation133_spill] sm:$0xff]  ;;  %v10006_v41 = vld [vmem:[#allocation134_spill] sm:$0xff] }
 0x3a9   :  { %1598 = vmatprep.subr.mxu0 %v9945_v42  ;;  %1669 = vmatprep.subr.mxu1 %v9946_v44  ;;  %v10007_v42 = vld [vmem:[#allocation135_spill] sm:$0xff]  ;;  %v10008_v44 = vld [vmem:[#allocation136_spill] sm:$0xff] }
 0x3aa   :  { %1599 = vmatpush1.msra.mxu0 %v9947_v45  ;;  %1670 = vmatpush1.msra.mxu1 %v9948_v46  ;;  %v10009_v45 = vld [vmem:[#allocation137_spill] sm:$0xff]  ;;  %v10010_v46 = vld [vmem:[#allocation138_spill] sm:$0xff] }
 0x3ab   :  { %1600 = vmatprep.subr.mxu0 %v9949_v47  ;;  %1671 = vmatprep.subr.mxu1 %v9950_v48  ;;  %v10011_v47 = vld [vmem:[#allocation139_spill] sm:$0xff]  ;;  %v10012_v48 = vld [vmem:[#allocation140_spill] sm:$0xff] }
 0x3ac   :  { %1601 = vmatpush1.msra.mxu0 %v9951_v49  ;;  %1672 = vmatpush1.msra.mxu1 %v9952_v61  ;;  %v10013_v49 = vld [vmem:[#allocation141_spill] sm:$0xff]  ;;  %v10014_v61 = vld [vmem:[#allocation142_spill] sm:$0xff] }
 0x3ad   :  { %1602 = vmatprep.subr.mxu0 %v9953_v55  ;;  %1673 = vmatprep.subr.mxu1 %v9954_v53  ;;  %v10015_v55 = vld [vmem:[#allocation143_spill] sm:$0xff]  ;;  %v10016_v53 = vld [vmem:[#allocation144_spill] sm:$0xff] }
 0x3ae   :  { %1603 = vmatpush1.msra.mxu0 %v9955_v54  ;;  %1674 = vmatpush1.msra.mxu1 %v9956_v58  ;;  %v10017_v54 = vld [vmem:[#allocation145_spill] sm:$0xff]  ;;  %v10018_v58 = vld [vmem:[#allocation146_spill] sm:$0xff] }
 0x3af   :  { %1604 = vmatprep.subr.mxu0 %v9957_v56  ;;  %1675 = vmatprep.subr.mxu1 %v9958_v52  ;;  %v10019_v56 = vld [vmem:[#allocation147_spill] sm:$0xff]  ;;  %v10020_v52 = vld [vmem:[#allocation148_spill] sm:$0xff] }
 0x3b0   :  { %1605 = vmatpush1.msra.mxu0 %v9959_v0  ;;  %1676 = vmatpush1.msra.mxu1 %v9960_v1  ;;  %v10021_v0 = vld [vmem:[#allocation149_spill] sm:$0xff]  ;;  %v10022_v1 = vld [vmem:[#allocation150_spill] sm:$0xff] }
 0x3b1   :  { %1606 = vmatprep.subr.mxu0 %v9961_v51  ;;  %1677 = vmatprep.subr.mxu1 %v9962_v50  ;;  %v10023_v51 = vld [vmem:[#allocation151_spill] sm:$0xff]  ;;  %v10024_v50 = vld [vmem:[#allocation152_spill] sm:$0xff] }
 0x3b2   :  { %1607 = vmatpush1.msra.mxu0 %v9963_v59  ;;  %1678 = vmatpush1.msra.mxu1 %v9964_v60  ;;  %v10025_v59 = vld [vmem:[#allocation153_spill] sm:$0xff]  ;;  %v10026_v60 = vld [vmem:[#allocation154_spill] sm:$0xff] }
 0x3b3   :  { %1608 = vmatprep.subr.mxu0 %v9965_v62  ;;  %1679 = vmatprep.subr.mxu1 %v9966_v57  ;;  %v10027_v62 = vld [vmem:[#allocation155_spill] sm:$0xff]  ;;  %v10028_v57 = vld [vmem:[#allocation156_spill] sm:$0xff] }
 0x3b4   :  { %1609 = vmatpush2.msra.mxu0 %v9967_v3  ;;  %1680 = vmatpush2.msra.mxu1 %v9968_v4  ;;  %v6626_v3 = vld [vmem:[%s8825_s1 + $0x1e8] sm:$0xff]  ;;  %v6632_v4 = vld [vmem:[%s8825_s1 + $0x1f8] sm:$0xff] }
 0x3b5   :  { %1610 = vmatprep.subr.mxu0 %v9969_v5  ;;  %1681 = vmatprep.subr.mxu1 %v9970_v6  ;;  %v10029_v6 = vld [vmem:[#allocation7_spill] sm:$0xff] }
 0x3b6   :  { %1611 = vmatpush2.msra.mxu0 %v9971_v7  ;;  %1682 = vmatpush2.msra.mxu1 %v9972_v8 }
 0x3b7   :  { %1612 = vmatprep.subr.mxu0 %v9973_v9  ;;  %1683 = vmatprep.subr.mxu1 %v9974_v10  ;;  %v10030_v10 = vld [vmem:[#allocation8_spill] sm:$0xff] }
 0x3b8   :  { %1613 = vmatpush2.msra.mxu0 %v9975_v11  ;;  %1684 = vmatpush2.msra.mxu1 %v9976_v12 }
 0x3b9   :  { %1614 = vmatprep.subr.mxu0 %v9977_v13  ;;  %1685 = vmatprep.subr.mxu1 %v9978_v14  ;;  %v10031_v14 = vld [vmem:[#allocation9_spill] sm:$0xff] }
 0x3ba   :  { %1615 = vmatpush2.msra.mxu0 %v9979_v15  ;;  %1686 = vmatpush2.msra.mxu1 %v9980_v16 }
 0x3bb   :  { %1616 = vmatprep.subr.mxu0 %v9981_v17  ;;  %1687 = vmatprep.subr.mxu1 %v9982_v18  ;;  %v10032_v17 = vld [vmem:[#allocation10_spill] sm:$0xff] }
 0x3bc   :  { %1617 = vmatpush2.msra.mxu0 %v9983_v20  ;;  %1688 = vmatpush2.msra.mxu1 %v9984_v21 }
 0x3bd   :  { %1618 = vmatprep.subr.mxu0 %v9985_v22  ;;  %1689 = vmatprep.subr.mxu1 %v9986_v23 }
 0x3be   :  { %1619 = vmatpush2.msra.mxu0 %v9987_v31  ;;  %1690 = vmatpush2.msra.mxu1 %v9988_v38 }
 0x3bf   :  { %1620 = vmatprep.subr.mxu0 %v9989_v40  ;;  %1691 = vmatprep.subr.mxu1 %v9990_v29 }
 0x3c0   :  { %1621 = vmatpush2.msra.mxu0 %v9991_v35  ;;  %1692 = vmatpush2.msra.mxu1 %v9992_v28  ;;  %v1358_v35 = vld [vmem:[#allocation3 + $0x2] sm:$0x3] }
 0x3c1   :  { %1622 = vmatprep.subr.mxu0 %v9993_v25  ;;  %1693 = vmatprep.subr.mxu1 %v9994_v27 }
 0x3c2   :  { %1623 = vmatpush2.msra.mxu0 %v9995_v24  ;;  %1694 = vmatpush2.msra.mxu1 %v9996_v30 }
 0x3c3   :  { %1624 = vmatprep.subr.mxu0 %v9997_v32  ;;  %1695 = vmatprep.subr.mxu1 %v9998_v26 }
 0x3c4   :  { %1625 = vmatpush2.msra.mxu0 %v9999_v36  ;;  %1696 = vmatpush2.msra.mxu1 %v10000_v39 }
 0x3c5   :  { %1626 = vmatprep.subr.mxu0 %v10001_v19  ;;  %1697 = vmatprep.subr.mxu1 %v10002_v37 }
 0x3c6   :  { %1627 = vmatpush2.msra.mxu0 %v10003_v34  ;;  %1698 = vmatpush2.msra.mxu1 %v10004_v43 }
 0x3c7   :  { %1628 = vmatprep.subr.mxu0 %v10005_v33  ;;  %1699 = vmatprep.subr.mxu1 %v10006_v41  ;;  %v3618_v33 = vld [vmem:[%s8824_s0 + $0x18] sm:$0xff] }
 0x3c8   :  { %1629 = vmatpush2.msra.mxu0 %v10007_v42  ;;  %1700 = vmatpush2.msra.mxu1 %v10008_v44 }
 0x3c9   :  { %1630 = vmatprep.subr.mxu0 %v10009_v45  ;;  %1701 = vmatprep.subr.mxu1 %v10010_v46 }
 0x3ca   :  { %1631 = vmatpush2.msra.mxu0 %v10011_v47  ;;  %1702 = vmatpush2.msra.mxu1 %v10012_v48 }
 0x3cb   :  { %1632 = vmatprep.subr.mxu0 %v10013_v49  ;;  %1703 = vmatprep.subr.mxu1 %v10014_v61 }
 0x3cc   :  { %1633 = vmatpush2.msra.mxu0 %v10015_v55  ;;  %1704 = vmatpush2.msra.mxu1 %v10016_v53 }
 0x3cd   :  { %1634 = vmatprep.subr.mxu0 %v10017_v54  ;;  %1705 = vmatprep.subr.mxu1 %v10018_v58 }
 0x3ce   :  { %1635 = vmatpush2.msra.mxu0 %v10019_v56  ;;  %1706 = vmatpush2.msra.mxu1 %v10020_v52 }
 0x3cf   :  { %1636 = vmatprep.subr.mxu0 %v10021_v0  ;;  %1707 = vmatprep.subr.mxu1 %v10022_v1 }
 0x3d0   :  { %1637 = vmatpush2.msra.mxu0 %v10023_v51  ;;  %1708 = vmatpush2.msra.mxu1 %v10024_v50  ;;  %v1556_v50 = vld [vmem:[#allocation3] sm:$0x3] }
 0x3d1   :  { %1638 = vmatprep.subr.mxu0 %v10025_v59  ;;  %1709 = vmatprep.subr.mxu1 %v10026_v60 }
 0x3d2   :  { %1639 = vmatpush2.msra.mxu0 %v10027_v62  ;;  %1710 = vmatpush2.msra.mxu1 %v10028_v57 }
 0x3d3   :  { %1744 = vmatprep.subr.mxu0 %v6626_v3  ;;  %1815 = vmatprep.subr.mxu1 %v6632_v4 }
 0x431   :  { %v1269_v5 = vpop.f32.mrf.mxu0  ;;  %v1340_v12 = vpop.f32.mrf.mxu1 }
 0x432   :  { %v1270_v7 = vadd.f32 %v1269_v5, %v10029_v6  ;;  %v1341_v15 = vadd.f32 %v1340_v12, %v10031_v14 }
 0x433   :  { %v1271_v8 = vpop.f32.mrf.mxu0  ;;  %v1342_v16 = vpop.f32.mrf.mxu1 }
 0x434   :  { %v1345_v9 = vmul.f32 0.5, %v1270_v7  ;;  %v1272_v11 = vadd.f32 %v1271_v8, %v10030_v10  ;;  %v1343_v18 = vadd.f32 %v1342_v16, %v10032_v17  ;;  %v6662_v16 = vld [vmem:[%s8825_s1 + $0x1c8] sm:$0xff] }
 0x436   :  { %3691 = vtanh.f32 %v1345_v9  ;;  %v1349_v13 = vmul.f32 0.5, %v1272_v11  ;;  %v1354_v20 = vmul.f32 0.5, %v1343_v18  ;;  %v6668_v18 = vld [vmem:[%s8825_s1 + $0x1d8] sm:$0xff] }
 0x438   :  { %3693 = vtanh.f32 %v1349_v13  ;;  %v6650_v13 = vld [vmem:[%s8825_s1 + $0x1e0] sm:$0xff] }
 0x439   :  { %3695 = vtanh.f32 %v1341_v15  ;;  %v6656_v15 = vld [vmem:[%s8825_s1 + $0x1f0] sm:$0xff] }
 0x43a   :  { %3697 = vtanh.f32 %v1354_v20  ;;  %v6674_v20 = vld [vmem:[%s8825_s1 + $0x1c0] sm:$0xff] }
 0x443   :  { %v3692_v21 = vpop.eup %3691 }
 0x444   :  { %v1347_v22 = vmul.f32 0.5, %v3692_v21  ;;  %v6680_v21 = vld [vmem:[%s8825_s1 + $0x1d0] sm:$0xff] }
 0x445   :  { %v3694_v23 = vpop.eup %3693 }
 0x446   :  { %v1348_v31 = vadd.f32 0.5, %v1347_v22  ;;  %v1351_v38 = vmul.f32 0.5, %v3694_v23  ;;  %v3696_v29 = vpop.eup %3695  ;;  %v6686_v22 = vld [vmem:[%s8825_s1 + $0x1a8] sm:$0xff]  ;;  %v6692_v23 = vld [vmem:[%s8825_s1 + $0x1b8] sm:$0xff] }
 0x447   :  { %v3698_v32 = vpop.eup %3697 }
 0x448   :  { %v1352_v40 = vadd.f32 0.5, %v1351_v38  ;;  %v1360_v25 = vmul.f32 %v3696_v29, %v1348_v31  ;;  %v1356_v37 = vmul.f32 0.5, %v3698_v32  ;;  %v6698_v31 = vld [vmem:[%s8825_s1 + $0x1a0] sm:$0xff]  ;;  %v6704_v38 = vld [vmem:[%s8825_s1 + $0x1b0] sm:$0xff]  ;;  %v6716_v29 = vld [vmem:[%s8825_s1 + $0x198] sm:$0xff] }
 0x449   :  { %v6758_v32 = vld [vmem:[%s8825_s1 + $0x148] sm:$0xff] }
 0x44a   :  { %v1359_v28 = vmul.f32 %v1358_v35, %v1352_v40  ;;  %v1357_v42 = vadd.f32 0.5, %v1356_v37  ;;  %v6710_v40 = vld [vmem:[%s8825_s1 + $0x188] sm:$0xff]  ;;  %v6722_v35 = vld [vmem:[%s8825_s1 + $0x180] sm:$0xff]  ;;  %v6788_v37 = vld [vmem:[%s8825_s1 + $0x138] sm:$0xff] }
 0x44c   :  { %v1361_v27 = vadd.f32 %v1360_v25, %v1359_v28  ;;  %v6728_v28 = vld [vmem:[%s8825_s1 + $0x190] sm:$0xff]  ;;  %v6734_v25 = vld [vmem:[%s8825_s1 + $0x168] sm:$0xff] }
 0x44e   :  { %3699 = vtanh.f32 %v1361_v27  ;;  %1364 = vst [vmem:[#allocation3 + $0x2] sm:$0x3] %v1361_v27  ;;  %v6740_v27 = vld [vmem:[%s8825_s1 + $0x178] sm:$0xff] }
 0x452   :  { %v1437_v24 = vpop.f32.mrf.mxu0  ;;  %v1508_v30 = vpop.f32.mrf.mxu1 }
 0x454   :  { %v1439_v26 = vpop.f32.mrf.mxu0  ;;  %v1510_v36 = vpop.f32.mrf.mxu1 }
 0x455   :  { %v1517_v39 = vcombine.low %v1437_v24, %v1439_v26  ;;  %v1518_v19 = vcombine.low %v1508_v30, %v1510_v36  ;;  %v6746_v24 = vld [vmem:[%s8825_s1 + $0x160] sm:$0xff]  ;;  %v6752_v30 = vld [vmem:[%s8825_s1 + $0x170] sm:$0xff]  ;;  %v6764_v26 = vld [vmem:[%s8825_s1 + $0x158] sm:$0xff] }
 0x456   :  { %v6770_v36 = vld [vmem:[%s8825_s1 + $0x140] sm:$0xff] }
 0x457   :  { %v1525_v34 = vrot.slane %v1517_v39, %v9735_v63  ;;  %v1532_v43 = vrot.slane %v1518_v19, %v9735_v63  ;;  %v6776_v39 = vld [vmem:[%s8825_s1 + $0x150] sm:$0xff]  ;;  %v6782_v19 = vld [vmem:[%s8825_s1 + $0x128] sm:$0xff] }
 0x459   :  { %v1533_v41 = vcombine.low %v1525_v34, %v1532_v43  ;;  %v6794_v34 = vld [vmem:[%s8825_s1 + $0x120] sm:$0xff]  ;;  %v6800_v43 = vld [vmem:[%s8825_s1 + $0x130] sm:$0xff] }
 0x45b   :  { %v3700_v44 = vpop.eup %3699  ;;  %v1535_v45 = vadd.f32 %v3618_v33, %v1533_v41  ;;  %v6806_v33 = vld [vmem:[%s8825_s1 + $0x108] sm:$0xff]  ;;  %v6812_v41 = vld [vmem:[%s8825_s1 + $0x118] sm:$0xff] }
 0x45c   :  { %v1363_v46 = vmul.f32 %v3700_v44, %v1357_v42  ;;  %v6818_v42 = vld [vmem:[%s8825_s1 + $0x100] sm:$0xff]  ;;  %v6824_v44 = vld [vmem:[%s8825_s1 + $0x110] sm:$0xff] }
 0x45d   :  { %v1536_v47 = vmul.f32 0.5, %v1535_v45  ;;  %v1541_v48 = vrot.slane %v1535_v45, 2  ;;  %v1547_v61 = vrot.slane %v1535_v45, 4  ;;  %v1550_v55 = vrot.slane %v1535_v45, 6  ;;  %v6830_v45 = vld [vmem:[%s8825_s1 + $0xe8] sm:$0xff] }
 0x45e   :  { %1365 = vst [vmem:[#allocation2 + $0x2] sm:$0x3] %v1363_v46  ;;  %3617 = vst [vmem:[%s8828_s4 + $0x4] sm:$0x3] %v1363_v46  ;;  %v6836_v46 = vld [vmem:[%s8825_s1 + $0xf8] sm:$0xff] }
 0x45f   :  { %3701 = vtanh.f32 %v1536_v47  ;;  %v1543_v49 = vmul.f32 0.5, %v1541_v48  ;;  %v1552_v53 = vmul.f32 0.5, %v1550_v55  ;;  %v6842_v47 = vld [vmem:[%s8825_s1 + $0xe0] sm:$0xff]  ;;  %v6848_v48 = vld [vmem:[%s8825_s1 + $0xf0] sm:$0xff] }
 0x460   :  { %v6866_v55 = vld [vmem:[%s8825_s1 + $0xc0] sm:$0xff] }
 0x461   :  { %3703 = vtanh.f32 %v1543_v49  ;;  %v6854_v49 = vld [vmem:[%s8825_s1 + $0xc8] sm:$0xff] }
 0x462   :  { %3705 = vtanh.f32 %v1547_v61  ;;  %v6860_v61 = vld [vmem:[%s8825_s1 + $0xd8] sm:$0xff] }
 0x463   :  { %3707 = vtanh.f32 %v1552_v53  ;;  %v6872_v53 = vld [vmem:[%s8825_s1 + $0xd0] sm:$0xff] }
 0x46c   :  { %v3702_v54 = vpop.eup %3701 }
 0x46d   :  { %v1538_v58 = vmul.f32 0.5, %v3702_v54  ;;  %v6878_v54 = vld [vmem:[%s8825_s1 + $0xa8] sm:$0xff] }
 0x46e   :  { %v3704_v56 = vpop.eup %3703 }
 0x46f   :  { %v1539_v52 = vadd.f32 0.5, %v1538_v58  ;;  %v1545_v0 = vmul.f32 0.5, %v3704_v56  ;;  %v3706_v51 = vpop.eup %3705  ;;  %v6884_v58 = vld [vmem:[%s8825_s1 + $0xb8] sm:$0xff]  ;;  %v6890_v56 = vld [vmem:[%s8825_s1 + $0xa0] sm:$0xff] }
 0x470   :  { %v3708_v57 = vpop.eup %3707 }
 0x471   :  { %v1546_v1 = vadd.f32 0.5, %v1545_v0  ;;  %v1558_v60 = vmul.f32 %v3706_v51, %v1539_v52  ;;  %v1554_v5 = vmul.f32 0.5, %v3708_v57  ;;  %v6896_v52 = vld [vmem:[%s8825_s1 + $0xb0] sm:$0xff]  ;;  %v6902_v0 = vld [vmem:[%s8825_s1 + $0x88] sm:$0xff]  ;;  %v6914_v51 = vld [vmem:[%s8825_s1 + $0x80] sm:$0xff] }
 0x472   :  { %10033 = vst [vmem:[#allocation11_spill] sm:$0xff] %v6914_v51  ;;  %v6944_v57 = vld [vmem:[%s8825_s1 + $0x70] sm:$0xff] }
 0x473   :  { %v1557_v59 = vmul.f32 %v1556_v50, %v1546_v1  ;;  %v1555_v7 = vadd.f32 0.5, %v1554_v5  ;;  %v6908_v1 = vld [vmem:[%s8825_s1 + $0x98] sm:$0xff]  ;;  %v6920_v50 = vld [vmem:[%s8825_s1 + $0x90] sm:$0xff]  ;;  %10038 = vst [vmem:[#allocation16_spill] sm:$0xff] %v6944_v57  ;;  %v6950_v5 = vld [vmem:[%s8825_s1 + $0x48] sm:$0xff] }
 0x474   :  { %10034 = vst [vmem:[#allocation12_spill] sm:$0xff] %v6920_v50  ;;  %10039 = vst [vmem:[#allocation17_spill] sm:$0xff] %v6950_v5 }
 0x475   :  { %v1559_v62 = vadd.f32 %v1558_v60, %v1557_v59  ;;  %v6926_v59 = vld [vmem:[%s8825_s1 + $0x68] sm:$0xff]  ;;  %v6932_v60 = vld [vmem:[%s8825_s1 + $0x78] sm:$0xff] }
 0x476   :  { %10035 = vst [vmem:[#allocation13_spill] sm:$0xff] %v6926_v59  ;;  %10036 = vst [vmem:[#allocation14_spill] sm:$0xff] %v6932_v60 }
 0x477   :  { %3709 = vtanh.f32 %v1559_v62  ;;  %1562 = vst [vmem:[#allocation3] sm:$0x3] %v1559_v62  ;;  %v6938_v62 = vld [vmem:[%s8825_s1 + $0x60] sm:$0xff] }
 0x478   :  { %10037 = vst [vmem:[#allocation15_spill] sm:$0xff] %v6938_v62 }
 0x484   :  { %v3710_v8 = vpop.eup %3709 }
 0x485   :  { %v1561_v9 = vmul.f32 %v3710_v8, %v1555_v7  ;;  %v6956_v7 = vld [vmem:[%s8825_s1 + $0x58] sm:$0xff]  ;;  %v6962_v8 = vld [vmem:[%s8825_s1 + $0x40] sm:$0xff] }
 0x486   :  { %10040 = vst [vmem:[#allocation18_spill] sm:$0xff] %v6956_v7  ;;  %10041 = vst [vmem:[#allocation19_spill] sm:$0xff] %v6962_v8 }
 0x487   :  { %1563 = vst [vmem:[#allocation2] sm:$0x3] %v1561_v9  ;;  %v6968_v9 = vld [vmem:[%s8825_s1 + $0x50] sm:$0xff] }
 0x488   :  { %10042 = vst [vmem:[#allocation20_spill] sm:$0xff] %v6968_v9 }
 0x48e   :  { %v3619_v11 = vld.sshfl [vmem:[#allocation2] sm:$0x33 pattern:$0x76325410] }
 0x48f   :  { %v1573_v12 = vcombine.high %v3619_v11, %v3619_v11 }
 0x491   :  { %1640 = vmatprep.mubr.f32.mxu0 %v1573_v12  ;;  %1711 = vmatprep.mubr.f32.mxu1 %v1573_v12  ;;  %v6980_v12 = vld [vmem:[%s8825_s1 + $0x38] sm:$0xff] }
 0x492   :  { %1641 = vmatmul.mubr.f32.vlgmr.msra.gmra.mxu0 %v3619_v11  ;;  %1712 = vmatmul.mubr.f32.vlgmr.msra.gmra.mxu1 %v3619_v11  ;;  %v6974_v11 = vld [vmem:[%s8825_s1 + $0x28] sm:$0xff]  ;;  %10044 = vst [vmem:[#allocation22_spill] sm:$0xff] %v6980_v12 }
 0x493   :  { %1745 = vmatpush1.msra.mxu0 %v6650_v13  ;;  %1816 = vmatpush1.msra.mxu1 %v6656_v15  ;;  %10043 = vst [vmem:[#allocation21_spill] sm:$0xff] %v6974_v11 }
 0x494   :  { %1746 = vmatprep.subr.mxu0 %v6662_v16  ;;  %1817 = vmatprep.subr.mxu1 %v6668_v18 }
 0x495   :  { %1747 = vmatpush1.msra.mxu0 %v6674_v20  ;;  %1818 = vmatpush1.msra.mxu1 %v6680_v21 }
 0x496   :  { %1748 = vmatprep.subr.mxu0 %v6686_v22  ;;  %1819 = vmatprep.subr.mxu1 %v6692_v23 }
 0x497   :  { %1749 = vmatpush1.msra.mxu0 %v6698_v31  ;;  %1820 = vmatpush1.msra.mxu1 %v6704_v38 }
 0x498   :  { %1750 = vmatprep.subr.mxu0 %v6710_v40  ;;  %1821 = vmatprep.subr.mxu1 %v6716_v29 }
 0x499   :  { %1751 = vmatpush1.msra.mxu0 %v6722_v35  ;;  %1822 = vmatpush1.msra.mxu1 %v6728_v28 }
 0x49a   :  { %1752 = vmatprep.subr.mxu0 %v6734_v25  ;;  %1823 = vmatprep.subr.mxu1 %v6740_v27 }
 0x49b   :  { %1753 = vmatpush1.msra.mxu0 %v6746_v24  ;;  %1824 = vmatpush1.msra.mxu1 %v6752_v30 }
 0x49c   :  { %1754 = vmatprep.subr.mxu0 %v6758_v32  ;;  %1825 = vmatprep.subr.mxu1 %v6764_v26 }
 0x49d   :  { %1755 = vmatpush1.msra.mxu0 %v6770_v36  ;;  %1826 = vmatpush1.msra.mxu1 %v6776_v39 }
 0x49e   :  { %1756 = vmatprep.subr.mxu0 %v6782_v19  ;;  %1827 = vmatprep.subr.mxu1 %v6788_v37 }
 0x49f   :  { %1757 = vmatpush1.msra.mxu0 %v6794_v34  ;;  %1828 = vmatpush1.msra.mxu1 %v6800_v43 }
 0x4a0   :  { %1758 = vmatprep.subr.mxu0 %v6806_v33  ;;  %1829 = vmatprep.subr.mxu1 %v6812_v41 }
 0x4a1   :  { %1759 = vmatpush1.msra.mxu0 %v6818_v42  ;;  %1830 = vmatpush1.msra.mxu1 %v6824_v44 }
 0x4a2   :  { %1760 = vmatprep.subr.mxu0 %v6830_v45  ;;  %1831 = vmatprep.subr.mxu1 %v6836_v46 }
 0x4a3   :  { %1761 = vmatpush1.msra.mxu0 %v6842_v47  ;;  %1832 = vmatpush1.msra.mxu1 %v6848_v48 }
 0x4a4   :  { %1762 = vmatprep.subr.mxu0 %v6854_v49  ;;  %1833 = vmatprep.subr.mxu1 %v6860_v61 }
 0x4a5   :  { %1763 = vmatpush1.msra.mxu0 %v6866_v55  ;;  %1834 = vmatpush1.msra.mxu1 %v6872_v53 }
 0x4a6   :  { %1764 = vmatprep.subr.mxu0 %v6878_v54  ;;  %1835 = vmatprep.subr.mxu1 %v6884_v58 }
 0x4a7   :  { %1765 = vmatpush1.msra.mxu0 %v6890_v56  ;;  %1836 = vmatpush1.msra.mxu1 %v6896_v52 }
 0x4a8   :  { %1766 = vmatprep.subr.mxu0 %v6902_v0  ;;  %1837 = vmatprep.subr.mxu1 %v6908_v1 }
 0x4a9   :  { %1767 = vmatpush1.msra.mxu0 %v6914_v51  ;;  %1838 = vmatpush1.msra.mxu1 %v6920_v50 }
 0x4aa   :  { %1768 = vmatprep.subr.mxu0 %v6926_v59  ;;  %1839 = vmatprep.subr.mxu1 %v6932_v60 }
 0x4ab   :  { %1769 = vmatpush1.msra.mxu0 %v6938_v62  ;;  %1840 = vmatpush1.msra.mxu1 %v6944_v57 }
 0x4ac   :  { %1770 = vmatprep.subr.mxu0 %v6950_v5  ;;  %1841 = vmatprep.subr.mxu1 %v6956_v7  ;;  %v7024_v7 = vld [vmem:[#allocation4 + $0x1f8] sm:$0xff]  ;;  %v7030_v5 = vld [vmem:[#allocation4 + $0x1f0] sm:$0xff] }
 0x4ad   :  { %1771 = vmatpush1.msra.mxu0 %v6962_v8  ;;  %1842 = vmatpush1.msra.mxu1 %v6968_v9  ;;  %v6986_v8 = vld [vmem:[%s8825_s1 + $0x20] sm:$0xff]  ;;  %v6992_v9 = vld [vmem:[%s8825_s1 + $0x30] sm:$0xff]  ;;  %10052 = vst [vmem:[#allocation30_spill] sm:$0xff] %v7024_v7  ;;  %10054 = vst [vmem:[#allocation32_spill] sm:$0xff] %v7030_v5 }
 0x4ae   :  { %1772 = vmatprep.subr.mxu0 %v6974_v11  ;;  %1843 = vmatprep.subr.mxu1 %v6980_v12  ;;  %10045 = vst [vmem:[#allocation23_spill] sm:$0xff] %v6986_v8  ;;  %10046 = vst [vmem:[#allocation24_spill] sm:$0xff] %v6992_v9  ;;  %v6998_v11 = vld [vmem:[%s8825_s1 + $0x8] sm:$0xff]  ;;  %v7004_v12 = vld [vmem:[%s8825_s1 + $0x18] sm:$0xff] }
 0x4af   :  { %1773 = vmatpush1.msra.mxu0 %v6986_v8  ;;  %1844 = vmatpush1.msra.mxu1 %v6992_v9  ;;  %10047 = vst [vmem:[#allocation25_spill] sm:$0xff] %v6998_v11  ;;  %10048 = vst [vmem:[#allocation26_spill] sm:$0xff] %v7004_v12  ;;  %v7010_v8 = vld [vmem:[%s8825_s1] sm:$0xff] }
 0x4b0   :  { %1774 = vmatprep.subr.mxu0 %v6998_v11  ;;  %1845 = vmatprep.subr.mxu1 %v7004_v12  ;;  %10049 = vst [vmem:[#allocation27_spill] sm:$0xff] %v7010_v8  ;;  %v7017_v11 = vld [vmem:[%s8825_s1 + $0x10] sm:$0xff]  ;;  %v1743_v9 = vld [vmem:[#allocation2] sm:$0x3] }
 0x4b1   :  { %1775 = vmatpush1.msra.mxu0 %v7010_v8  ;;  %1808 = vmatprep.mubr.f32.mxu0 %v9899_v2  ;;  %10050 = vst [vmem:[#allocation28_spill] sm:$0xff] %v7017_v11  ;;  %v7021_v12 = vld [vmem:[#allocation4 + $0x1e8] sm:$0xff]  ;;  %v7027_v8 = vld [vmem:[#allocation4 + $0x1e0] sm:$0xff] }
 0x4b2   :  { %1846 = vmatpush1.msra.mxu1 %v7017_v11  ;;  %1879 = vmatprep.mubr.f32.mxu1 %v9899_v2  ;;  %10051 = vst [vmem:[#allocation29_spill] sm:$0xff] %v7021_v12  ;;  %10053 = vst [vmem:[#allocation31_spill] sm:$0xff] %v7027_v8  ;;  %v7033_v11 = vld [vmem:[#allocation4 + $0x1c8] sm:$0xff] }
 0x4b3   :  { %1809 = vmatmul.mubr.f32.vlgmr.msra.gmra.mxu0 %v1743_v9  ;;  %1880 = vmatmul.mubr.f32.vlgmr.msra.gmra.mxu1 %v1743_v9  ;;  %10055 = vst [vmem:[#allocation33_spill] sm:$0xff] %v7033_v11  ;;  %v7036_v9 = vld [vmem:[#allocation4 + $0x1d8] sm:$0xff] }
 0x4b4   :  { %1949 = vmatprep.subr.mxu0 %v7021_v12  ;;  %2020 = vmatprep.subr.mxu1 %v7024_v7  ;;  %10056 = vst [vmem:[#allocation34_spill] sm:$0xff] %v7036_v9  ;;  %v7039_v12 = vld [vmem:[#allocation4 + $0x1c0] sm:$0xff]  ;;  %v7042_v7 = vld [vmem:[#allocation4 + $0x1d0] sm:$0xff] }
 0x4b5   :  { %1950 = vmatpush1.msra.mxu0 %v7027_v8  ;;  %2021 = vmatpush1.msra.mxu1 %v7030_v5  ;;  %10057 = vst [vmem:[#allocation35_spill] sm:$0xff] %v7039_v12  ;;  %10058 = vst [vmem:[#allocation36_spill] sm:$0xff] %v7042_v7  ;;  %v7045_v8 = vld [vmem:[#allocation4 + $0x1a8] sm:$0xff]  ;;  %v7048_v5 = vld [vmem:[#allocation4 + $0x1b8] sm:$0xff] }
 0x4b6   :  { %1951 = vmatprep.subr.mxu0 %v7033_v11  ;;  %2022 = vmatprep.subr.mxu1 %v7036_v9  ;;  %10059 = vst [vmem:[#allocation37_spill] sm:$0xff] %v7045_v8  ;;  %10060 = vst [vmem:[#allocation38_spill] sm:$0xff] %v7048_v5  ;;  %v7051_v11 = vld [vmem:[#allocation4 + $0x1a0] sm:$0xff]  ;;  %v7054_v9 = vld [vmem:[#allocation4 + $0x1b0] sm:$0xff] }
 0x4b7   :  { %1952 = vmatpush1.msra.mxu0 %v7039_v12  ;;  %2023 = vmatpush1.msra.mxu1 %v7042_v7  ;;  %10061 = vst [vmem:[#allocation39_spill] sm:$0xff] %v7051_v11  ;;  %10062 = vst [vmem:[#allocation40_spill] sm:$0xff] %v7054_v9  ;;  %v7057_v12 = vld [vmem:[#allocation4 + $0x188] sm:$0xff]  ;;  %v7060_v7 = vld [vmem:[#allocation4 + $0x198] sm:$0xff] }
 0x4b8   :  { %1953 = vmatprep.subr.mxu0 %v7045_v8  ;;  %2024 = vmatprep.subr.mxu1 %v7048_v5  ;;  %10063 = vst [vmem:[#allocation41_spill] sm:$0xff] %v7057_v12  ;;  %10064 = vst [vmem:[#allocation42_spill] sm:$0xff] %v7060_v7  ;;  %v7063_v8 = vld [vmem:[#allocation4 + $0x180] sm:$0xff]  ;;  %v7066_v5 = vld [vmem:[#allocation4 + $0x190] sm:$0xff] }
 0x4b9   :  { %1954 = vmatpush1.msra.mxu0 %v7051_v11  ;;  %2025 = vmatpush1.msra.mxu1 %v7054_v9  ;;  %10065 = vst [vmem:[#allocation43_spill] sm:$0xff] %v7063_v8  ;;  %10066 = vst [vmem:[#allocation44_spill] sm:$0xff] %v7066_v5  ;;  %v7069_v11 = vld [vmem:[#allocation4 + $0x168] sm:$0xff]  ;;  %v7072_v9 = vld [vmem:[#allocation4 + $0x178] sm:$0xff] }
 0x4ba   :  { %1955 = vmatprep.subr.mxu0 %v7057_v12  ;;  %2026 = vmatprep.subr.mxu1 %v7060_v7  ;;  %10067 = vst [vmem:[#allocation45_spill] sm:$0xff] %v7069_v11  ;;  %10068 = vst [vmem:[#allocation46_spill] sm:$0xff] %v7072_v9  ;;  %v7075_v12 = vld [vmem:[#allocation4 + $0x160] sm:$0xff]  ;;  %v7078_v7 = vld [vmem:[#allocation4 + $0x170] sm:$0xff] }
 0x4bb   :  { %1956 = vmatpush1.msra.mxu0 %v7063_v8  ;;  %2027 = vmatpush1.msra.mxu1 %v7066_v5  ;;  %10069 = vst [vmem:[#allocation47_spill] sm:$0xff] %v7075_v12  ;;  %10070 = vst [vmem:[#allocation48_spill] sm:$0xff] %v7078_v7  ;;  %v7081_v8 = vld [vmem:[#allocation4 + $0x148] sm:$0xff]  ;;  %v7084_v5 = vld [vmem:[#allocation4 + $0x158] sm:$0xff] }
 0x4bc   :  { %1957 = vmatprep.subr.mxu0 %v7069_v11  ;;  %2028 = vmatprep.subr.mxu1 %v7072_v9  ;;  %10071 = vst [vmem:[#allocation49_spill] sm:$0xff] %v7081_v8  ;;  %10072 = vst [vmem:[#allocation50_spill] sm:$0xff] %v7084_v5  ;;  %v7087_v11 = vld [vmem:[#allocation4 + $0x140] sm:$0xff]  ;;  %v7090_v9 = vld [vmem:[#allocation4 + $0x150] sm:$0xff] }
 0x4bd   :  { %1958 = vmatpush1.msra.mxu0 %v7075_v12  ;;  %2029 = vmatpush1.msra.mxu1 %v7078_v7  ;;  %10073 = vst [vmem:[#allocation51_spill] sm:$0xff] %v7087_v11  ;;  %10074 = vst [vmem:[#allocation52_spill] sm:$0xff] %v7090_v9  ;;  %v7093_v12 = vld [vmem:[#allocation4 + $0x128] sm:$0xff]  ;;  %v7096_v7 = vld [vmem:[#allocation4 + $0x138] sm:$0xff] }
 0x4be   :  { %1959 = vmatprep.subr.mxu0 %v7081_v8  ;;  %2030 = vmatprep.subr.mxu1 %v7084_v5  ;;  %10075 = vst [vmem:[#allocation53_spill] sm:$0xff] %v7093_v12  ;;  %10076 = vst [vmem:[#allocation54_spill] sm:$0xff] %v7096_v7  ;;  %v7099_v8 = vld [vmem:[#allocation4 + $0x120] sm:$0xff]  ;;  %v7102_v5 = vld [vmem:[#allocation4 + $0x130] sm:$0xff] }
 0x4bf   :  { %1960 = vmatpush1.msra.mxu0 %v7087_v11  ;;  %2031 = vmatpush1.msra.mxu1 %v7090_v9  ;;  %10077 = vst [vmem:[#allocation55_spill] sm:$0xff] %v7099_v8  ;;  %10078 = vst [vmem:[#allocation56_spill] sm:$0xff] %v7102_v5  ;;  %v7105_v11 = vld [vmem:[#allocation4 + $0x108] sm:$0xff]  ;;  %v7108_v9 = vld [vmem:[#allocation4 + $0x118] sm:$0xff] }
 0x4c0   :  { %1961 = vmatprep.subr.mxu0 %v7093_v12  ;;  %2032 = vmatprep.subr.mxu1 %v7096_v7  ;;  %10079 = vst [vmem:[#allocation57_spill] sm:$0xff] %v7105_v11  ;;  %10080 = vst [vmem:[#allocation58_spill] sm:$0xff] %v7108_v9  ;;  %v7111_v12 = vld [vmem:[#allocation4 + $0x100] sm:$0xff]  ;;  %v7114_v7 = vld [vmem:[#allocation4 + $0x110] sm:$0xff] }
 0x4c1   :  { %1962 = vmatpush1.msra.mxu0 %v7099_v8  ;;  %2033 = vmatpush1.msra.mxu1 %v7102_v5  ;;  %10081 = vst [vmem:[#allocation59_spill] sm:$0xff] %v7111_v12  ;;  %10082 = vst [vmem:[#allocation60_spill] sm:$0xff] %v7114_v7  ;;  %v7117_v8 = vld [vmem:[#allocation4 + $0xe8] sm:$0xff]  ;;  %v7120_v5 = vld [vmem:[#allocation4 + $0xf8] sm:$0xff] }
 0x4c2   :  { %1963 = vmatprep.subr.mxu0 %v7105_v11  ;;  %2034 = vmatprep.subr.mxu1 %v7108_v9  ;;  %10083 = vst [vmem:[#allocation61_spill] sm:$0xff] %v7117_v8  ;;  %10084 = vst [vmem:[#allocation62_spill] sm:$0xff] %v7120_v5  ;;  %v7123_v11 = vld [vmem:[#allocation4 + $0xe0] sm:$0xff]  ;;  %v7126_v9 = vld [vmem:[#allocation4 + $0xf0] sm:$0xff] }
 0x4c3   :  { %1964 = vmatpush1.msra.mxu0 %v7111_v12  ;;  %2035 = vmatpush1.msra.mxu1 %v7114_v7  ;;  %10085 = vst [vmem:[#allocation63_spill] sm:$0xff] %v7123_v11  ;;  %10086 = vst [vmem:[#allocation64_spill] sm:$0xff] %v7126_v9  ;;  %v7129_v12 = vld [vmem:[#allocation4 + $0xc8] sm:$0xff]  ;;  %v7132_v7 = vld [vmem:[#allocation4 + $0xd8] sm:$0xff] }
 0x4c4   :  { %1965 = vmatprep.subr.mxu0 %v7117_v8  ;;  %2036 = vmatprep.subr.mxu1 %v7120_v5  ;;  %10087 = vst [vmem:[#allocation65_spill] sm:$0xff] %v7129_v12  ;;  %10088 = vst [vmem:[#allocation66_spill] sm:$0xff] %v7132_v7  ;;  %v7135_v8 = vld [vmem:[#allocation4 + $0xc0] sm:$0xff]  ;;  %v7138_v5 = vld [vmem:[#allocation4 + $0xd0] sm:$0xff] }
 0x4c5   :  { %1966 = vmatpush1.msra.mxu0 %v7123_v11  ;;  %2037 = vmatpush1.msra.mxu1 %v7126_v9  ;;  %10089 = vst [vmem:[#allocation67_spill] sm:$0xff] %v7135_v8  ;;  %10090 = vst [vmem:[#allocation68_spill] sm:$0xff] %v7138_v5  ;;  %v7141_v11 = vld [vmem:[#allocation4 + $0xa8] sm:$0xff]  ;;  %v7144_v9 = vld [vmem:[#allocation4 + $0xb8] sm:$0xff] }
 0x4c6   :  { %1967 = vmatprep.subr.mxu0 %v7129_v12  ;;  %2038 = vmatprep.subr.mxu1 %v7132_v7  ;;  %10091 = vst [vmem:[#allocation69_spill] sm:$0xff] %v7141_v11  ;;  %10092 = vst [vmem:[#allocation70_spill] sm:$0xff] %v7144_v9  ;;  %v7147_v12 = vld [vmem:[#allocation4 + $0xa0] sm:$0xff]  ;;  %v7150_v7 = vld [vmem:[#allocation4 + $0xb0] sm:$0xff] }
 0x4c7   :  { %1968 = vmatpush1.msra.mxu0 %v7135_v8  ;;  %2039 = vmatpush1.msra.mxu1 %v7138_v5  ;;  %10093 = vst [vmem:[#allocation71_spill] sm:$0xff] %v7147_v12  ;;  %10094 = vst [vmem:[#allocation72_spill] sm:$0xff] %v7150_v7  ;;  %v7153_v8 = vld [vmem:[#allocation4 + $0x88] sm:$0xff]  ;;  %v7156_v5 = vld [vmem:[#allocation4 + $0x98] sm:$0xff] }
 0x4c8   :  { %1969 = vmatprep.subr.mxu0 %v7141_v11  ;;  %2040 = vmatprep.subr.mxu1 %v7144_v9  ;;  %10095 = vst [vmem:[#allocation73_spill] sm:$0xff] %v7153_v8  ;;  %10096 = vst [vmem:[#allocation74_spill] sm:$0xff] %v7156_v5  ;;  %v7159_v11 = vld [vmem:[#allocation4 + $0x80] sm:$0xff]  ;;  %v7162_v9 = vld [vmem:[#allocation4 + $0x90] sm:$0xff] }
 0x4c9   :  { %1970 = vmatpush1.msra.mxu0 %v7147_v12  ;;  %2041 = vmatpush1.msra.mxu1 %v7150_v7  ;;  %10097 = vst [vmem:[#allocation75_spill] sm:$0xff] %v7159_v11  ;;  %10098 = vst [vmem:[#allocation76_spill] sm:$0xff] %v7162_v9  ;;  %v7165_v12 = vld [vmem:[#allocation4 + $0x68] sm:$0xff]  ;;  %v7168_v7 = vld [vmem:[#allocation4 + $0x78] sm:$0xff] }
 0x4ca   :  { %1971 = vmatprep.subr.mxu0 %v7153_v8  ;;  %2042 = vmatprep.subr.mxu1 %v7156_v5  ;;  %10099 = vst [vmem:[#allocation77_spill] sm:$0xff] %v7165_v12  ;;  %10100 = vst [vmem:[#allocation78_spill] sm:$0xff] %v7168_v7  ;;  %v7171_v8 = vld [vmem:[#allocation4 + $0x60] sm:$0xff]  ;;  %v7174_v5 = vld [vmem:[#allocation4 + $0x70] sm:$0xff] }
 0x4cb   :  { %1972 = vmatpush1.msra.mxu0 %v7159_v11  ;;  %2043 = vmatpush1.msra.mxu1 %v7162_v9  ;;  %10101 = vst [vmem:[#allocation79_spill] sm:$0xff] %v7171_v8  ;;  %10102 = vst [vmem:[#allocation80_spill] sm:$0xff] %v7174_v5  ;;  %v7177_v11 = vld [vmem:[#allocation4 + $0x48] sm:$0xff]  ;;  %v7180_v9 = vld [vmem:[#allocation4 + $0x58] sm:$0xff] }
 0x4cc   :  { %1973 = vmatprep.subr.mxu0 %v7165_v12  ;;  %2044 = vmatprep.subr.mxu1 %v7168_v7  ;;  %10103 = vst [vmem:[#allocation81_spill] sm:$0xff] %v7177_v11  ;;  %10104 = vst [vmem:[#allocation82_spill] sm:$0xff] %v7180_v9  ;;  %v7183_v12 = vld [vmem:[#allocation4 + $0x40] sm:$0xff]  ;;  %v7186_v7 = vld [vmem:[#allocation4 + $0x50] sm:$0xff] }
 0x4cd   :  { %1974 = vmatpush1.msra.mxu0 %v7171_v8  ;;  %2045 = vmatpush1.msra.mxu1 %v7174_v5  ;;  %10105 = vst [vmem:[#allocation83_spill] sm:$0xff] %v7183_v12  ;;  %10106 = vst [vmem:[#allocation84_spill] sm:$0xff] %v7186_v7  ;;  %v7189_v8 = vld [vmem:[#allocation4 + $0x28] sm:$0xff]  ;;  %v7192_v5 = vld [vmem:[#allocation4 + $0x38] sm:$0xff] }
 0x4ce   :  { %1975 = vmatprep.subr.mxu0 %v7177_v11  ;;  %2046 = vmatprep.subr.mxu1 %v7180_v9  ;;  %10107 = vst [vmem:[#allocation85_spill] sm:$0xff] %v7189_v8  ;;  %10108 = vst [vmem:[#allocation86_spill] sm:$0xff] %v7192_v5  ;;  %v7195_v11 = vld [vmem:[#allocation4 + $0x20] sm:$0xff]  ;;  %v7198_v9 = vld [vmem:[#allocation4 + $0x30] sm:$0xff] }
 0x4cf   :  { %1976 = vmatpush1.msra.mxu0 %v7183_v12  ;;  %2047 = vmatpush1.msra.mxu1 %v7186_v7  ;;  %10109 = vst [vmem:[#allocation87_spill] sm:$0xff] %v7195_v11  ;;  %10110 = vst [vmem:[#allocation88_spill] sm:$0xff] %v7198_v9  ;;  %v7201_v12 = vld [vmem:[#allocation4 + $0x8] sm:$0xff]  ;;  %v7204_v7 = vld [vmem:[#allocation4 + $0x18] sm:$0xff] }
 0x4d0   :  { %1977 = vmatprep.subr.mxu0 %v7189_v8  ;;  %2048 = vmatprep.subr.mxu1 %v7192_v5  ;;  %10111 = vst [vmem:[#allocation89_spill] sm:$0xff] %v7201_v12  ;;  %10112 = vst [vmem:[#allocation90_spill] sm:$0xff] %v7204_v7  ;;  %v7207_v8 = vld [vmem:[#allocation4] sm:$0xff]  ;;  %v7210_v5 = vld [vmem:[#allocation4 + $0x10] sm:$0xff] }
 0x4d1   :  { %1978 = vmatpush1.msra.mxu0 %v7195_v11  ;;  %2049 = vmatpush1.msra.mxu1 %v7198_v9  ;;  %10113 = vst [vmem:[#allocation91_spill] sm:$0xff] %v7207_v8  ;;  %10114 = vst [vmem:[#allocation92_spill] sm:$0xff] %v7210_v5  ;;  %v7213_v11 = vld [vmem:[#allocation4 + $0x3e8] sm:$0xff]  ;;  %v7216_v9 = vld [vmem:[#allocation4 + $0x3f8] sm:$0xff] }
 0x4d2   :  { %1979 = vmatprep.subr.mxu0 %v7201_v12  ;;  %2050 = vmatprep.subr.mxu1 %v7204_v7  ;;  %10115 = vst [vmem:[#allocation93_spill] sm:$0xff] %v7213_v11  ;;  %10116 = vst [vmem:[#allocation94_spill] sm:$0xff] %v7216_v9  ;;  %v7219_v12 = vld [vmem:[#allocation4 + $0x3e0] sm:$0xff]  ;;  %v7222_v7 = vld [vmem:[#allocation4 + $0x3f0] sm:$0xff] }
 0x4d3   :  { %1980 = vmatpush1.msra.mxu0 %v7207_v8  ;;  %2051 = vmatpush1.msra.mxu1 %v7210_v5  ;;  %10117 = vst [vmem:[#allocation95_spill] sm:$0xff] %v7219_v12  ;;  %10118 = vst [vmem:[#allocation96_spill] sm:$0xff] %v7222_v7  ;;  %v7225_v8 = vld [vmem:[#allocation4 + $0x3c8] sm:$0xff]  ;;  %v7228_v5 = vld [vmem:[#allocation4 + $0x3d8] sm:$0xff] }
 0x4d4   :  { %1981 = vmatprep.subr.mxu0 %v7213_v11  ;;  %2052 = vmatprep.subr.mxu1 %v7216_v9  ;;  %10119 = vst [vmem:[#allocation97_spill] sm:$0xff] %v7225_v8  ;;  %10120 = vst [vmem:[#allocation98_spill] sm:$0xff] %v7228_v5  ;;  %v7231_v11 = vld [vmem:[#allocation4 + $0x3c0] sm:$0xff]  ;;  %v7234_v9 = vld [vmem:[#allocation4 + $0x3d0] sm:$0xff] }
 0x4d5   :  { %1982 = vmatpush2.msra.mxu0 %v7219_v12  ;;  %2053 = vmatpush2.msra.mxu1 %v7222_v7  ;;  %10121 = vst [vmem:[#allocation99_spill] sm:$0xff] %v7231_v11  ;;  %10122 = vst [vmem:[#allocation100_spill] sm:$0xff] %v7234_v9  ;;  %v7237_v12 = vld [vmem:[#allocation4 + $0x3a8] sm:$0xff]  ;;  %v7240_v7 = vld [vmem:[#allocation4 + $0x3b8] sm:$0xff] }
 0x4d6   :  { %1983 = vmatprep.subr.mxu0 %v7225_v8  ;;  %2054 = vmatprep.subr.mxu1 %v7228_v5  ;;  %10123 = vst [vmem:[#allocation101_spill] sm:$0xff] %v7237_v12  ;;  %10124 = vst [vmem:[#allocation102_spill] sm:$0xff] %v7240_v7  ;;  %v7243_v8 = vld [vmem:[#allocation4 + $0x3a0] sm:$0xff]  ;;  %v7246_v5 = vld [vmem:[#allocation4 + $0x3b0] sm:$0xff] }
 0x4d7   :  { %1984 = vmatpush2.msra.mxu0 %v7231_v11  ;;  %2055 = vmatpush2.msra.mxu1 %v7234_v9  ;;  %10125 = vst [vmem:[#allocation103_spill] sm:$0xff] %v7243_v8  ;;  %10126 = vst [vmem:[#allocation104_spill] sm:$0xff] %v7246_v5  ;;  %v7249_v11 = vld [vmem:[#allocation4 + $0x388] sm:$0xff]  ;;  %v7252_v9 = vld [vmem:[#allocation4 + $0x398] sm:$0xff] }
 0x4d8   :  { %1985 = vmatprep.subr.mxu0 %v7237_v12  ;;  %2056 = vmatprep.subr.mxu1 %v7240_v7  ;;  %10127 = vst [vmem:[#allocation105_spill] sm:$0xff] %v7249_v11  ;;  %10128 = vst [vmem:[#allocation106_spill] sm:$0xff] %v7252_v9  ;;  %v7255_v12 = vld [vmem:[#allocation4 + $0x380] sm:$0xff]  ;;  %v7258_v7 = vld [vmem:[#allocation4 + $0x390] sm:$0xff] }
 0x4d9   :  { %1986 = vmatpush2.msra.mxu0 %v7243_v8  ;;  %2057 = vmatpush2.msra.mxu1 %v7246_v5  ;;  %10129 = vst [vmem:[#allocation107_spill] sm:$0xff] %v7255_v12  ;;  %10130 = vst [vmem:[#allocation108_spill] sm:$0xff] %v7258_v7  ;;  %v7261_v8 = vld [vmem:[#allocation4 + $0x368] sm:$0xff]  ;;  %v7264_v5 = vld [vmem:[#allocation4 + $0x378] sm:$0xff] }
 0x4da   :  { %1987 = vmatprep.subr.mxu0 %v7249_v11  ;;  %2058 = vmatprep.subr.mxu1 %v7252_v9  ;;  %10131 = vst [vmem:[#allocation109_spill] sm:$0xff] %v7261_v8  ;;  %10132 = vst [vmem:[#allocation110_spill] sm:$0xff] %v7264_v5  ;;  %v7267_v11 = vld [vmem:[#allocation4 + $0x360] sm:$0xff]  ;;  %v7270_v9 = vld [vmem:[#allocation4 + $0x370] sm:$0xff] }
 0x4db   :  { %1988 = vmatpush2.msra.mxu0 %v7255_v12  ;;  %2059 = vmatpush2.msra.mxu1 %v7258_v7  ;;  %10133 = vst [vmem:[#allocation111_spill] sm:$0xff] %v7267_v11  ;;  %10134 = vst [vmem:[#allocation112_spill] sm:$0xff] %v7270_v9  ;;  %v7273_v12 = vld [vmem:[#allocation4 + $0x348] sm:$0xff]  ;;  %v7276_v7 = vld [vmem:[#allocation4 + $0x358] sm:$0xff] }
 0x4dc   :  { %1989 = vmatprep.subr.mxu0 %v7261_v8  ;;  %2060 = vmatprep.subr.mxu1 %v7264_v5  ;;  %10135 = vst [vmem:[#allocation113_spill] sm:$0xff] %v7273_v12  ;;  %10136 = vst [vmem:[#allocation114_spill] sm:$0xff] %v7276_v7  ;;  %v7279_v8 = vld [vmem:[#allocation4 + $0x340] sm:$0xff]  ;;  %v7282_v5 = vld [vmem:[#allocation4 + $0x350] sm:$0xff] }
 0x4dd   :  { %1990 = vmatpush2.msra.mxu0 %v7267_v11  ;;  %2061 = vmatpush2.msra.mxu1 %v7270_v9  ;;  %10137 = vst [vmem:[#allocation115_spill] sm:$0xff] %v7279_v8  ;;  %10138 = vst [vmem:[#allocation116_spill] sm:$0xff] %v7282_v5  ;;  %v7285_v11 = vld [vmem:[#allocation4 + $0x328] sm:$0xff]  ;;  %v7288_v9 = vld [vmem:[#allocation4 + $0x338] sm:$0xff] }
 0x4de   :  { %1991 = vmatprep.subr.mxu0 %v7273_v12  ;;  %2062 = vmatprep.subr.mxu1 %v7276_v7  ;;  %10139 = vst [vmem:[#allocation117_spill] sm:$0xff] %v7285_v11  ;;  %10140 = vst [vmem:[#allocation118_spill] sm:$0xff] %v7288_v9  ;;  %v7291_v12 = vld [vmem:[#allocation4 + $0x320] sm:$0xff]  ;;  %v7294_v7 = vld [vmem:[#allocation4 + $0x330] sm:$0xff] }
 0x4df   :  { %1992 = vmatpush2.msra.mxu0 %v7279_v8  ;;  %2063 = vmatpush2.msra.mxu1 %v7282_v5  ;;  %10141 = vst [vmem:[#allocation119_spill] sm:$0xff] %v7291_v12  ;;  %10142 = vst [vmem:[#allocation120_spill] sm:$0xff] %v7294_v7  ;;  %v7297_v8 = vld [vmem:[#allocation4 + $0x308] sm:$0xff]  ;;  %v7300_v5 = vld [vmem:[#allocation4 + $0x318] sm:$0xff] }
 0x4e0   :  { %1993 = vmatprep.subr.mxu0 %v7285_v11  ;;  %2064 = vmatprep.subr.mxu1 %v7288_v9  ;;  %10143 = vst [vmem:[#allocation121_spill] sm:$0xff] %v7297_v8  ;;  %10144 = vst [vmem:[#allocation122_spill] sm:$0xff] %v7300_v5  ;;  %v7303_v11 = vld [vmem:[#allocation4 + $0x300] sm:$0xff]  ;;  %v7306_v9 = vld [vmem:[#allocation4 + $0x310] sm:$0xff] }
 0x4e1   :  { %1994 = vmatpush2.msra.mxu0 %v7291_v12  ;;  %2065 = vmatpush2.msra.mxu1 %v7294_v7  ;;  %10145 = vst [vmem:[#allocation123_spill] sm:$0xff] %v7303_v11  ;;  %10146 = vst [vmem:[#allocation124_spill] sm:$0xff] %v7306_v9  ;;  %v7309_v12 = vld [vmem:[#allocation4 + $0x2e8] sm:$0xff]  ;;  %v7312_v7 = vld [vmem:[#allocation4 + $0x2f8] sm:$0xff] }
 0x4e2   :  { %1995 = vmatprep.subr.mxu0 %v7297_v8  ;;  %2066 = vmatprep.subr.mxu1 %v7300_v5  ;;  %10147 = vst [vmem:[#allocation125_spill] sm:$0xff] %v7309_v12  ;;  %10148 = vst [vmem:[#allocation126_spill] sm:$0xff] %v7312_v7  ;;  %v7315_v8 = vld [vmem:[#allocation4 + $0x2e0] sm:$0xff]  ;;  %v7318_v5 = vld [vmem:[#allocation4 + $0x2f0] sm:$0xff] }
 0x4e3   :  { %1996 = vmatpush2.msra.mxu0 %v7303_v11  ;;  %2067 = vmatpush2.msra.mxu1 %v7306_v9  ;;  %10149 = vst [vmem:[#allocation127_spill] sm:$0xff] %v7315_v8  ;;  %10150 = vst [vmem:[#allocation128_spill] sm:$0xff] %v7318_v5  ;;  %v7321_v11 = vld [vmem:[#allocation4 + $0x2c8] sm:$0xff]  ;;  %v7324_v9 = vld [vmem:[#allocation4 + $0x2d8] sm:$0xff] }
 0x4e4   :  { %1997 = vmatprep.subr.mxu0 %v7309_v12  ;;  %2068 = vmatprep.subr.mxu1 %v7312_v7  ;;  %10151 = vst [vmem:[#allocation129_spill] sm:$0xff] %v7321_v11  ;;  %10152 = vst [vmem:[#allocation130_spill] sm:$0xff] %v7324_v9  ;;  %v7327_v12 = vld [vmem:[#allocation4 + $0x2c0] sm:$0xff]  ;;  %v7330_v7 = vld [vmem:[#allocation4 + $0x2d0] sm:$0xff] }
 0x4e5   :  { %1998 = vmatpush2.msra.mxu0 %v7315_v8  ;;  %2069 = vmatpush2.msra.mxu1 %v7318_v5  ;;  %10153 = vst [vmem:[#allocation131_spill] sm:$0xff] %v7327_v12  ;;  %10154 = vst [vmem:[#allocation132_spill] sm:$0xff] %v7330_v7  ;;  %v7333_v8 = vld [vmem:[#allocation4 + $0x2a8] sm:$0xff]  ;;  %v7336_v5 = vld [vmem:[#allocation4 + $0x2b8] sm:$0xff] }
 0x4e6   :  { %1999 = vmatprep.subr.mxu0 %v7321_v11  ;;  %2070 = vmatprep.subr.mxu1 %v7324_v9  ;;  %10155 = vst [vmem:[#allocation133_spill] sm:$0xff] %v7333_v8  ;;  %10156 = vst [vmem:[#allocation134_spill] sm:$0xff] %v7336_v5  ;;  %v7339_v11 = vld [vmem:[#allocation4 + $0x2a0] sm:$0xff]  ;;  %v7342_v9 = vld [vmem:[#allocation4 + $0x2b0] sm:$0xff] }
 0x4e7   :  { %2000 = vmatpush2.msra.mxu0 %v7327_v12  ;;  %2071 = vmatpush2.msra.mxu1 %v7330_v7  ;;  %10157 = vst [vmem:[#allocation135_spill] sm:$0xff] %v7339_v11  ;;  %10158 = vst [vmem:[#allocation136_spill] sm:$0xff] %v7342_v9  ;;  %v7345_v12 = vld [vmem:[#allocation4 + $0x288] sm:$0xff]  ;;  %v7348_v7 = vld [vmem:[#allocation4 + $0x298] sm:$0xff] }
 0x4e8   :  { %2001 = vmatprep.subr.mxu0 %v7333_v8  ;;  %2072 = vmatprep.subr.mxu1 %v7336_v5  ;;  %10159 = vst [vmem:[#allocation137_spill] sm:$0xff] %v7345_v12  ;;  %10160 = vst [vmem:[#allocation138_spill] sm:$0xff] %v7348_v7  ;;  %v7351_v8 = vld [vmem:[#allocation4 + $0x280] sm:$0xff]  ;;  %v7354_v5 = vld [vmem:[#allocation4 + $0x290] sm:$0xff] }
 0x4e9   :  { %2002 = vmatpush2.msra.mxu0 %v7339_v11  ;;  %2073 = vmatpush2.msra.mxu1 %v7342_v9  ;;  %10161 = vst [vmem:[#allocation139_spill] sm:$0xff] %v7351_v8  ;;  %10162 = vst [vmem:[#allocation140_spill] sm:$0xff] %v7354_v5  ;;  %v7357_v11 = vld [vmem:[#allocation4 + $0x268] sm:$0xff]  ;;  %v7360_v9 = vld [vmem:[#allocation4 + $0x278] sm:$0xff] }
 0x4ea   :  { %2003 = vmatprep.subr.mxu0 %v7345_v12  ;;  %2074 = vmatprep.subr.mxu1 %v7348_v7  ;;  %10163 = vst [vmem:[#allocation141_spill] sm:$0xff] %v7357_v11  ;;  %10164 = vst [vmem:[#allocation142_spill] sm:$0xff] %v7360_v9  ;;  %v7363_v12 = vld [vmem:[#allocation4 + $0x260] sm:$0xff]  ;;  %v7366_v7 = vld [vmem:[#allocation4 + $0x270] sm:$0xff] }
 0x4eb   :  { %2004 = vmatpush2.msra.mxu0 %v7351_v8  ;;  %2075 = vmatpush2.msra.mxu1 %v7354_v5  ;;  %10165 = vst [vmem:[#allocation143_spill] sm:$0xff] %v7363_v12  ;;  %10166 = vst [vmem:[#allocation144_spill] sm:$0xff] %v7366_v7  ;;  %v7369_v8 = vld [vmem:[#allocation4 + $0x248] sm:$0xff]  ;;  %v7372_v5 = vld [vmem:[#allocation4 + $0x258] sm:$0xff] }
 0x4ec   :  { %2005 = vmatprep.subr.mxu0 %v7357_v11  ;;  %2076 = vmatprep.subr.mxu1 %v7360_v9  ;;  %10167 = vst [vmem:[#allocation145_spill] sm:$0xff] %v7369_v8  ;;  %10168 = vst [vmem:[#allocation146_spill] sm:$0xff] %v7372_v5  ;;  %v7375_v11 = vld [vmem:[#allocation4 + $0x240] sm:$0xff]  ;;  %v7378_v9 = vld [vmem:[#allocation4 + $0x250] sm:$0xff] }
 0x4ed   :  { %2006 = vmatpush2.msra.mxu0 %v7363_v12  ;;  %2077 = vmatpush2.msra.mxu1 %v7366_v7  ;;  %10169 = vst [vmem:[#allocation147_spill] sm:$0xff] %v7375_v11  ;;  %10170 = vst [vmem:[#allocation148_spill] sm:$0xff] %v7378_v9  ;;  %v7381_v12 = vld [vmem:[#allocation4 + $0x228] sm:$0xff]  ;;  %v7384_v7 = vld [vmem:[#allocation4 + $0x238] sm:$0xff] }
 0x4ee   :  { %2007 = vmatprep.subr.mxu0 %v7369_v8  ;;  %2078 = vmatprep.subr.mxu1 %v7372_v5  ;;  %10171 = vst [vmem:[#allocation149_spill] sm:$0xff] %v7381_v12  ;;  %10172 = vst [vmem:[#allocation150_spill] sm:$0xff] %v7384_v7  ;;  %v7387_v8 = vld [vmem:[#allocation4 + $0x220] sm:$0xff]  ;;  %v7390_v5 = vld [vmem:[#allocation4 + $0x230] sm:$0xff] }
 0x4ef   :  { %2008 = vmatpush2.msra.mxu0 %v7375_v11  ;;  %2079 = vmatpush2.msra.mxu1 %v7378_v9  ;;  %10173 = vst [vmem:[#allocation151_spill] sm:$0xff] %v7387_v8  ;;  %10174 = vst [vmem:[#allocation152_spill] sm:$0xff] %v7390_v5  ;;  %v7393_v11 = vld [vmem:[#allocation4 + $0x208] sm:$0xff]  ;;  %v7396_v9 = vld [vmem:[#allocation4 + $0x218] sm:$0xff] }
 0x4f0   :  { %2009 = vmatprep.subr.mxu0 %v7381_v12  ;;  %2080 = vmatprep.subr.mxu1 %v7384_v7  ;;  %10175 = vst [vmem:[#allocation153_spill] sm:$0xff] %v7393_v11  ;;  %10176 = vst [vmem:[#allocation154_spill] sm:$0xff] %v7396_v9  ;;  %v7399_v12 = vld [vmem:[#allocation4 + $0x200] sm:$0xff]  ;;  %v7402_v7 = vld [vmem:[#allocation4 + $0x210] sm:$0xff] }
 0x4f1   :  { %2010 = vmatpush2.msra.mxu0 %v7387_v8  ;;  %2081 = vmatpush2.msra.mxu1 %v7390_v5  ;;  %10177 = vst [vmem:[#allocation155_spill] sm:$0xff] %v7399_v12  ;;  %10178 = vst [vmem:[#allocation156_spill] sm:$0xff] %v7402_v7 }
 0x4f2   :  { %2011 = vmatprep.subr.mxu0 %v7393_v11  ;;  %2082 = vmatprep.subr.mxu1 %v7396_v9 }
 0x4f3   :  { %2012 = vmatpush2.msra.mxu0 %v7399_v12  ;;  %2083 = vmatpush2.msra.mxu1 %v7402_v7 }
 0x4f4   :  { %2117 = vmatprep.subr.mxu0 %v6626_v3  ;;  %2188 = vmatprep.subr.mxu1 %v6632_v4 }
 0x552   :  { %v1642_v5 = vpop.f32.mrf.mxu0  ;;  %v1713_v9 = vpop.f32.mrf.mxu1 }
 0x553   :  { %v1643_v8 = vadd.f32 %v1642_v5, %v10029_v6  ;;  %v1714_v12 = vadd.f32 %v1713_v9, %v10031_v14 }
 0x554   :  { %v1644_v11 = vpop.f32.mrf.mxu0  ;;  %v1715_v60 = vpop.f32.mrf.mxu1 }
 0x555   :  { %v1718_v2 = vmul.f32 0.5, %v1643_v8  ;;  %v1645_v57 = vadd.f32 %v1644_v11, %v10030_v10  ;;  %v1716_v7 = vadd.f32 %v1715_v60, %v10032_v17  ;;  %v1731_v11 = vld [vmem:[#allocation3 + $0x2] sm:$0x3] }
 0x557   :  { %3711 = vtanh.f32 %v1718_v2  ;;  %v1722_v62 = vmul.f32 0.5, %v1645_v57  ;;  %v1727_v3 = vmul.f32 0.5, %v1716_v7 }
 0x559   :  { %3713 = vtanh.f32 %v1722_v62 }
 0x55a   :  { %3715 = vtanh.f32 %v1714_v12 }
 0x55b   :  { %3717 = vtanh.f32 %v1727_v3  ;;  %v3621_v3 = vld [vmem:[%s8824_s0 + $0x20] sm:$0xff] }
 0x564   :  { %v3712_v59 = vpop.eup %3711 }
 0x565   :  { %v1720_v4 = vmul.f32 0.5, %v3712_v59 }
 0x566   :  { %v3714_v50 = vpop.eup %3713 }
 0x567   :  { %v1721_v51 = vadd.f32 0.5, %v1720_v4  ;;  %v1724_v5 = vmul.f32 0.5, %v3714_v50  ;;  %v3716_v6 = vpop.eup %3715 }
 0x568   :  { %v3718_v12 = vpop.eup %3717 }
 0x569   :  { %v1725_v8 = vadd.f32 0.5, %v1724_v5  ;;  %v1733_v2 = vmul.f32 %v3716_v6, %v1721_v51  ;;  %v1729_v59 = vmul.f32 0.5, %v3718_v12 }
 0x56b   :  { %v1732_v10 = vmul.f32 %v1731_v11, %v1725_v8 }
 0x56d   :  { %v1734_v57 = vadd.f32 %v1733_v2, %v1732_v10  ;;  %v1730_v10 = vadd.f32 0.5, %v1729_v59 }
 0x56f   :  { %3719 = vtanh.f32 %v1734_v57  ;;  %1737 = vst [vmem:[#allocation3 + $0x2] sm:$0x3] %v1734_v57 }
 0x573   :  { %v1810_v62 = vpop.f32.mrf.mxu0  ;;  %v1881_v9 = vpop.f32.mrf.mxu1 }
 0x575   :  { %v1812_v14 = vpop.f32.mrf.mxu0  ;;  %v1883_v60 = vpop.f32.mrf.mxu1 }
 0x576   :  { %v1890_v7 = vcombine.low %v1810_v62, %v1812_v14  ;;  %v1891_v17 = vcombine.low %v1881_v9, %v1883_v60 }
 0x578   :  { %v1898_v4 = vrot.slane %v1890_v7, %v9735_v63  ;;  %v1905_v50 = vrot.slane %v1891_v17, %v9735_v63 }
 0x57a   :  { %v1906_v6 = vcombine.low %v1898_v4, %v1905_v50 }
 0x57c   :  { %v3720_v51 = vpop.eup %3719  ;;  %v1908_v5 = vadd.f32 %v3621_v3, %v1906_v6  ;;  %v1929_v3 = vld [vmem:[#allocation3] sm:$0x3] }
 0x57d   :  { %v1736_v8 = vmul.f32 %v3720_v51, %v1730_v10 }
 0x57e   :  { %v1909_v11 = vmul.f32 0.5, %v1908_v5  ;;  %v1914_v2 = vrot.slane %v1908_v5, 2  ;;  %v1920_v17 = vrot.slane %v1908_v5, 4  ;;  %v1923_v57 = vrot.slane %v1908_v5, 6 }
 0x57f   :  { %1738 = vst [vmem:[#allocation2 + $0x2] sm:$0x3] %v1736_v8  ;;  %3620 = vst [vmem:[%s8828_s4 + $0x6] sm:$0x3] %v1736_v8 }
 0x580   :  { %3721 = vtanh.f32 %v1909_v11  ;;  %v1916_v14 = vmul.f32 0.5, %v1914_v2  ;;  %v1925_v62 = vmul.f32 0.5, %v1923_v57 }
 0x582   :  { %3723 = vtanh.f32 %v1916_v14 }
 0x583   :  { %3725 = vtanh.f32 %v1920_v17 }
 0x584   :  { %3727 = vtanh.f32 %v1925_v62  ;;  %v10222_v62 = vld [vmem:[#allocation53_spill] sm:$0xff] }
 0x58d   :  { %v3722_v9 = vpop.eup %3721 }
 0x58e   :  { %v1911_v12 = vmul.f32 0.5, %v3722_v9  ;;  %v10223_v9 = vld [vmem:[#allocation54_spill] sm:$0xff] }
 0x58f   :  { %v3724_v60 = vpop.eup %3723 }
 0x590   :  { %v1912_v7 = vadd.f32 0.5, %v1911_v12  ;;  %v1918_v59 = vmul.f32 0.5, %v3724_v60  ;;  %v3726_v50 = vpop.eup %3725  ;;  %v10224_v12 = vld [vmem:[#allocation55_spill] sm:$0xff]  ;;  %v10225_v60 = vld [vmem:[#allocation56_spill] sm:$0xff] }
 0x591   :  { %v3728_v8 = vpop.eup %3727 }
 0x592   :  { %v1919_v4 = vadd.f32 0.5, %v1918_v59  ;;  %v1931_v10 = vmul.f32 %v3726_v50, %v1912_v7  ;;  %v1927_v11 = vmul.f32 0.5, %v3728_v8  ;;  %v10226_v7 = vld [vmem:[#allocation57_spill] sm:$0xff]  ;;  %v10227_v59 = vld [vmem:[#allocation58_spill] sm:$0xff]  ;;  %v10229_v50 = vld [vmem:[#allocation60_spill] sm:$0xff] }
 0x593   :  { %v10234_v8 = vld [vmem:[#allocation65_spill] sm:$0xff] }
 0x594   :  { %v1930_v6 = vmul.f32 %v1929_v3, %v1919_v4  ;;  %v1928_v2 = vadd.f32 0.5, %v1927_v11  ;;  %v10228_v4 = vld [vmem:[#allocation59_spill] sm:$0xff]  ;;  %v10230_v3 = vld [vmem:[#allocation61_spill] sm:$0xff]  ;;  %v10235_v11 = vld [vmem:[#allocation66_spill] sm:$0xff] }
 0x596   :  { %v1932_v51 = vadd.f32 %v1931_v10, %v1930_v6  ;;  %v10231_v6 = vld [vmem:[#allocation62_spill] sm:$0xff]  ;;  %v10232_v10 = vld [vmem:[#allocation63_spill] sm:$0xff] }
 0x598   :  { %3729 = vtanh.f32 %v1932_v51  ;;  %1935 = vst [vmem:[#allocation3] sm:$0x3] %v1932_v51  ;;  %v10233_v51 = vld [vmem:[#allocation64_spill] sm:$0xff] }
 0x5a5   :  { %v3730_v14 = vpop.eup %3729 }
 0x5a6   :  { %v1934_v5 = vmul.f32 %v3730_v14, %v1928_v2  ;;  %v10236_v2 = vld [vmem:[#allocation67_spill] sm:$0xff]  ;;  %v10237_v14 = vld [vmem:[#allocation68_spill] sm:$0xff] }
 0x5a8   :  { %1936 = vst [vmem:[#allocation2] sm:$0x3] %v1934_v5  ;;  %v10238_v5 = vld [vmem:[#allocation69_spill] sm:$0xff] }
 0x5af   :  { %v3622_v17 = vld.sshfl [vmem:[#allocation2] sm:$0x33 pattern:$0x76325410] }
 0x5b0   :  { %v1946_v57 = vcombine.high %v3622_v17, %v3622_v17 }
 0x5b2   :  { %2013 = vmatprep.mubr.f32.mxu0 %v1946_v57  ;;  %2084 = vmatprep.mubr.f32.mxu1 %v1946_v57  ;;  %v10240_v57 = vld [vmem:[#allocation71_spill] sm:$0xff] }
 0x5b3   :  { %2014 = vmatmul.mubr.f32.vlgmr.msra.gmra.mxu0 %v3622_v17  ;;  %2085 = vmatmul.mubr.f32.vlgmr.msra.gmra.mxu1 %v3622_v17  ;;  %v10239_v17 = vld [vmem:[#allocation70_spill] sm:$0xff] }
 0x5b4   :  { %2118 = vmatpush1.msra.mxu0 %v6650_v13  ;;  %2189 = vmatpush1.msra.mxu1 %v6656_v15  ;;  %v10179_v13 = vld [vmem:[#allocation11_spill] sm:$0xff]  ;;  %v10180_v15 = vld [vmem:[#allocation12_spill] sm:$0xff] }
 0x5b5   :  { %2119 = vmatprep.subr.mxu0 %v6662_v16  ;;  %2190 = vmatprep.subr.mxu1 %v6668_v18  ;;  %v10181_v16 = vld [vmem:[#allocation13_spill] sm:$0xff]  ;;  %v10182_v18 = vld [vmem:[#allocation14_spill] sm:$0xff] }
 0x5b6   :  { %2120 = vmatpush1.msra.mxu0 %v6674_v20  ;;  %2191 = vmatpush1.msra.mxu1 %v6680_v21  ;;  %v10183_v20 = vld [vmem:[#allocation15_spill] sm:$0xff]  ;;  %v10184_v21 = vld [vmem:[#allocation16_spill] sm:$0xff] }
 0x5b7   :  { %2121 = vmatprep.subr.mxu0 %v6686_v22  ;;  %2192 = vmatprep.subr.mxu1 %v6692_v23  ;;  %v10185_v22 = vld [vmem:[#allocation17_spill] sm:$0xff]  ;;  %v10186_v23 = vld [vmem:[#allocation18_spill] sm:$0xff] }
 0x5b8   :  { %2122 = vmatpush1.msra.mxu0 %v6698_v31  ;;  %2193 = vmatpush1.msra.mxu1 %v6704_v38  ;;  %v10187_v31 = vld [vmem:[#allocation19_spill] sm:$0xff]  ;;  %v10188_v38 = vld [vmem:[#allocation20_spill] sm:$0xff] }
 0x5b9   :  { %2123 = vmatprep.subr.mxu0 %v6710_v40  ;;  %2194 = vmatprep.subr.mxu1 %v6716_v29  ;;  %v10189_v40 = vld [vmem:[#allocation21_spill] sm:$0xff]  ;;  %v10190_v29 = vld [vmem:[#allocation22_spill] sm:$0xff] }
 0x5ba   :  { %2124 = vmatpush1.msra.mxu0 %v6722_v35  ;;  %2195 = vmatpush1.msra.mxu1 %v6728_v28  ;;  %v10191_v35 = vld [vmem:[#allocation23_spill] sm:$0xff]  ;;  %v10192_v28 = vld [vmem:[#allocation24_spill] sm:$0xff] }
 0x5bb   :  { %2125 = vmatprep.subr.mxu0 %v6734_v25  ;;  %2196 = vmatprep.subr.mxu1 %v6740_v27  ;;  %v10193_v25 = vld [vmem:[#allocation25_spill] sm:$0xff]  ;;  %v10194_v27 = vld [vmem:[#allocation26_spill] sm:$0xff] }
 0x5bc   :  { %2126 = vmatpush1.msra.mxu0 %v6746_v24  ;;  %2197 = vmatpush1.msra.mxu1 %v6752_v30  ;;  %v10195_v24 = vld [vmem:[#allocation27_spill] sm:$0xff]  ;;  %v10196_v30 = vmov 0.0  }
 0x5bd   :  { %2127 = vmatprep.subr.mxu0 %v6758_v32  ;;  %2198 = vmatprep.subr.mxu1 %v6764_v26  ;;  %v10197_v32 = vld [vmem:[#allocation28_spill] sm:$0xff]  ;;  %v2116_v26 = vld [vmem:[#allocation2] sm:$0x3] }
 0x5be   :  { %2128 = vmatpush1.msra.mxu0 %v6770_v36  ;;  %2199 = vmatpush1.msra.mxu1 %v6776_v39  ;;  %v10198_v36 = vld [vmem:[#allocation29_spill] sm:$0xff]  ;;  %v10199_v39 = vld [vmem:[#allocation30_spill] sm:$0xff] }
 0x5bf   :  { %2129 = vmatprep.subr.mxu0 %v6782_v19  ;;  %2200 = vmatprep.subr.mxu1 %v6788_v37  ;;  %v10200_v19 = vld [vmem:[#allocation31_spill] sm:$0xff]  ;;  %v10201_v37 = vld [vmem:[#allocation32_spill] sm:$0xff] }
 0x5c0   :  { %2130 = vmatpush1.msra.mxu0 %v6794_v34  ;;  %2201 = vmatpush1.msra.mxu1 %v6800_v43  ;;  %v10202_v34 = vld [vmem:[#allocation33_spill] sm:$0xff]  ;;  %v10203_v43 = vld [vmem:[#allocation34_spill] sm:$0xff] }
 0x5c1   :  { %2131 = vmatprep.subr.mxu0 %v6806_v33  ;;  %2202 = vmatprep.subr.mxu1 %v6812_v41  ;;  %v10204_v33 = vld [vmem:[#allocation35_spill] sm:$0xff]  ;;  %v10205_v41 = vld [vmem:[#allocation36_spill] sm:$0xff] }
 0x5c2   :  { %2132 = vmatpush1.msra.mxu0 %v6818_v42  ;;  %2203 = vmatpush1.msra.mxu1 %v6824_v44  ;;  %v10206_v42 = vld [vmem:[#allocation37_spill] sm:$0xff]  ;;  %v10207_v44 = vld [vmem:[#allocation38_spill] sm:$0xff] }
 0x5c3   :  { %2133 = vmatprep.subr.mxu0 %v6830_v45  ;;  %2204 = vmatprep.subr.mxu1 %v6836_v46  ;;  %v10208_v45 = vld [vmem:[#allocation39_spill] sm:$0xff]  ;;  %v10209_v46 = vld [vmem:[#allocation40_spill] sm:$0xff] }
 0x5c4   :  { %2134 = vmatpush1.msra.mxu0 %v6842_v47  ;;  %2205 = vmatpush1.msra.mxu1 %v6848_v48  ;;  %v10210_v47 = vld [vmem:[#allocation41_spill] sm:$0xff]  ;;  %v10211_v48 = vld [vmem:[#allocation42_spill] sm:$0xff] }
 0x5c5   :  { %2135 = vmatprep.subr.mxu0 %v6854_v49  ;;  %2206 = vmatprep.subr.mxu1 %v6860_v61  ;;  %v10212_v49 = vld [vmem:[#allocation43_spill] sm:$0xff]  ;;  %v10213_v61 = vld [vmem:[#allocation44_spill] sm:$0xff] }
 0x5c6   :  { %2136 = vmatpush1.msra.mxu0 %v6866_v55  ;;  %2207 = vmatpush1.msra.mxu1 %v6872_v53  ;;  %v10214_v55 = vld [vmem:[#allocation45_spill] sm:$0xff]  ;;  %v10215_v53 = vld [vmem:[#allocation46_spill] sm:$0xff] }
 0x5c7   :  { %2137 = vmatprep.subr.mxu0 %v6878_v54  ;;  %2208 = vmatprep.subr.mxu1 %v6884_v58  ;;  %v10216_v54 = vld [vmem:[#allocation47_spill] sm:$0xff]  ;;  %v10217_v58 = vld [vmem:[#allocation48_spill] sm:$0xff] }
 0x5c8   :  { %2138 = vmatpush1.msra.mxu0 %v6890_v56  ;;  %2209 = vmatpush1.msra.mxu1 %v6896_v52  ;;  %v10218_v56 = vld [vmem:[#allocation49_spill] sm:$0xff]  ;;  %v10219_v52 = vld [vmem:[#allocation50_spill] sm:$0xff] }
 0x5c9   :  { %2139 = vmatprep.subr.mxu0 %v6902_v0  ;;  %2210 = vmatprep.subr.mxu1 %v6908_v1  ;;  %v10220_v0 = vld [vmem:[#allocation51_spill] sm:$0xff]  ;;  %v10221_v1 = vld [vmem:[#allocation52_spill] sm:$0xff] }
 0x5ca   :  { %2140 = vmatpush1.msra.mxu0 %v10179_v13  ;;  %2211 = vmatpush1.msra.mxu1 %v10180_v15  ;;  %v10241_v13 = vld [vmem:[#allocation72_spill] sm:$0xff]  ;;  %v10242_v15 = vld [vmem:[#allocation73_spill] sm:$0xff] }
 0x5cb   :  { %2141 = vmatprep.subr.mxu0 %v10181_v16  ;;  %2212 = vmatprep.subr.mxu1 %v10182_v18  ;;  %v10243_v16 = vld [vmem:[#allocation74_spill] sm:$0xff]  ;;  %v10244_v18 = vld [vmem:[#allocation75_spill] sm:$0xff] }
 0x5cc   :  { %2142 = vmatpush1.msra.mxu0 %v10183_v20  ;;  %2213 = vmatpush1.msra.mxu1 %v10184_v21  ;;  %v10245_v20 = vld [vmem:[#allocation76_spill] sm:$0xff]  ;;  %v10246_v21 = vld [vmem:[#allocation77_spill] sm:$0xff] }
 0x5cd   :  { %2143 = vmatprep.subr.mxu0 %v10185_v22  ;;  %2214 = vmatprep.subr.mxu1 %v10186_v23  ;;  %v10247_v22 = vld [vmem:[#allocation78_spill] sm:$0xff]  ;;  %v10248_v23 = vld [vmem:[#allocation79_spill] sm:$0xff] }
 0x5ce   :  { %2144 = vmatpush1.msra.mxu0 %v10187_v31  ;;  %2215 = vmatpush1.msra.mxu1 %v10188_v38  ;;  %v10249_v31 = vld [vmem:[#allocation80_spill] sm:$0xff]  ;;  %v10250_v38 = vld [vmem:[#allocation81_spill] sm:$0xff] }
 0x5cf   :  { %2145 = vmatprep.subr.mxu0 %v10189_v40  ;;  %2216 = vmatprep.subr.mxu1 %v10190_v29  ;;  %v10251_v40 = vld [vmem:[#allocation82_spill] sm:$0xff]  ;;  %v10252_v29 = vld [vmem:[#allocation83_spill] sm:$0xff] }
 0x5d0   :  { %2146 = vmatpush1.msra.mxu0 %v10191_v35  ;;  %2217 = vmatpush1.msra.mxu1 %v10192_v28  ;;  %v10253_v35 = vld [vmem:[#allocation84_spill] sm:$0xff]  ;;  %v10254_v28 = vld [vmem:[#allocation85_spill] sm:$0xff] }
 0x5d1   :  { %2147 = vmatprep.subr.mxu0 %v10193_v25  ;;  %2218 = vmatprep.subr.mxu1 %v10194_v27  ;;  %v10255_v25 = vld [vmem:[#allocation86_spill] sm:$0xff]  ;;  %v10256_v27 = vld [vmem:[#allocation87_spill] sm:$0xff] }
 0x5d2   :  { %2148 = vmatpush1.msra.mxu0 %v10195_v24  ;;  %2181 = vmatprep.mubr.f32.mxu0 %v10196_v30  ;;  %v10257_v24 = vld [vmem:[#allocation88_spill] sm:$0xff] }
 0x5d3   :  { %2219 = vmatpush1.msra.mxu1 %v10197_v32  ;;  %2252 = vmatprep.mubr.f32.mxu1 %v10196_v30  ;;  %v10258_v32 = vld [vmem:[#allocation89_spill] sm:$0xff] }
 0x5d4   :  { %2182 = vmatmul.mubr.f32.vlgmr.msra.gmra.mxu0 %v2116_v26  ;;  %2253 = vmatmul.mubr.f32.vlgmr.msra.gmra.mxu1 %v2116_v26  ;;  %v10259_v26 = vld [vmem:[#allocation90_spill] sm:$0xff] }
 0x5d5   :  { %2322 = vmatprep.subr.mxu0 %v10198_v36  ;;  %2393 = vmatprep.subr.mxu1 %v10199_v39  ;;  %v10260_v36 = vld [vmem:[#allocation91_spill] sm:$0xff]  ;;  %v10261_v39 = vld [vmem:[#allocation92_spill] sm:$0xff] }
 0x5d6   :  { %2323 = vmatpush1.msra.mxu0 %v10200_v19  ;;  %2394 = vmatpush1.msra.mxu1 %v10201_v37  ;;  %v10262_v19 = vld [vmem:[#allocation93_spill] sm:$0xff]  ;;  %v10263_v37 = vld [vmem:[#allocation94_spill] sm:$0xff] }
 0x5d7   :  { %2324 = vmatprep.subr.mxu0 %v10202_v34  ;;  %2395 = vmatprep.subr.mxu1 %v10203_v43  ;;  %v10264_v34 = vld [vmem:[#allocation95_spill] sm:$0xff]  ;;  %v10265_v43 = vld [vmem:[#allocation96_spill] sm:$0xff] }
 0x5d8   :  { %2325 = vmatpush1.msra.mxu0 %v10204_v33  ;;  %2396 = vmatpush1.msra.mxu1 %v10205_v41  ;;  %v10266_v33 = vld [vmem:[#allocation97_spill] sm:$0xff]  ;;  %v10267_v41 = vld [vmem:[#allocation98_spill] sm:$0xff] }
 0x5d9   :  { %2326 = vmatprep.subr.mxu0 %v10206_v42  ;;  %2397 = vmatprep.subr.mxu1 %v10207_v44  ;;  %v10268_v42 = vld [vmem:[#allocation99_spill] sm:$0xff]  ;;  %v10269_v44 = vld [vmem:[#allocation100_spill] sm:$0xff] }
 0x5da   :  { %2327 = vmatpush1.msra.mxu0 %v10208_v45  ;;  %2398 = vmatpush1.msra.mxu1 %v10209_v46  ;;  %v10270_v45 = vld [vmem:[#allocation101_spill] sm:$0xff]  ;;  %v10271_v46 = vld [vmem:[#allocation102_spill] sm:$0xff] }
 0x5db   :  { %2328 = vmatprep.subr.mxu0 %v10210_v47  ;;  %2399 = vmatprep.subr.mxu1 %v10211_v48  ;;  %v10272_v47 = vld [vmem:[#allocation103_spill] sm:$0xff]  ;;  %v10273_v48 = vld [vmem:[#allocation104_spill] sm:$0xff] }
 0x5dc   :  { %2329 = vmatpush1.msra.mxu0 %v10212_v49  ;;  %2400 = vmatpush1.msra.mxu1 %v10213_v61  ;;  %v10274_v49 = vld [vmem:[#allocation105_spill] sm:$0xff]  ;;  %v10275_v61 = vld [vmem:[#allocation106_spill] sm:$0xff] }
 0x5dd   :  { %2330 = vmatprep.subr.mxu0 %v10214_v55  ;;  %2401 = vmatprep.subr.mxu1 %v10215_v53  ;;  %v10276_v55 = vld [vmem:[#allocation107_spill] sm:$0xff]  ;;  %v10277_v53 = vld [vmem:[#allocation108_spill] sm:$0xff] }
 0x5de   :  { %2331 = vmatpush1.msra.mxu0 %v10216_v54  ;;  %2402 = vmatpush1.msra.mxu1 %v10217_v58  ;;  %v10278_v54 = vld [vmem:[#allocation109_spill] sm:$0xff]  ;;  %v10279_v58 = vld [vmem:[#allocation110_spill] sm:$0xff] }
 0x5df   :  { %2332 = vmatprep.subr.mxu0 %v10218_v56  ;;  %2403 = vmatprep.subr.mxu1 %v10219_v52  ;;  %v10280_v56 = vld [vmem:[#allocation111_spill] sm:$0xff]  ;;  %v10281_v52 = vld [vmem:[#allocation112_spill] sm:$0xff] }
 0x5e0   :  { %2333 = vmatpush1.msra.mxu0 %v10220_v0  ;;  %2404 = vmatpush1.msra.mxu1 %v10221_v1  ;;  %v10282_v0 = vld [vmem:[#allocation113_spill] sm:$0xff]  ;;  %v10283_v1 = vld [vmem:[#allocation114_spill] sm:$0xff] }
 0x5e1   :  { %2334 = vmatprep.subr.mxu0 %v10222_v62  ;;  %2405 = vmatprep.subr.mxu1 %v10223_v9  ;;  %v10284_v62 = vld [vmem:[#allocation115_spill] sm:$0xff]  ;;  %v10285_v9 = vld [vmem:[#allocation116_spill] sm:$0xff] }
 0x5e2   :  { %2335 = vmatpush1.msra.mxu0 %v10224_v12  ;;  %2406 = vmatpush1.msra.mxu1 %v10225_v60  ;;  %v10286_v12 = vld [vmem:[#allocation117_spill] sm:$0xff]  ;;  %v10287_v60 = vld [vmem:[#allocation118_spill] sm:$0xff] }
 0x5e3   :  { %2336 = vmatprep.subr.mxu0 %v10226_v7  ;;  %2407 = vmatprep.subr.mxu1 %v10227_v59  ;;  %v10288_v7 = vld [vmem:[#allocation119_spill] sm:$0xff]  ;;  %v10289_v59 = vld [vmem:[#allocation120_spill] sm:$0xff] }
 0x5e4   :  { %2337 = vmatpush1.msra.mxu0 %v10228_v4  ;;  %2408 = vmatpush1.msra.mxu1 %v10229_v50  ;;  %v10290_v4 = vld [vmem:[#allocation121_spill] sm:$0xff]  ;;  %v10291_v50 = vld [vmem:[#allocation122_spill] sm:$0xff] }
 0x5e5   :  { %2338 = vmatprep.subr.mxu0 %v10230_v3  ;;  %2409 = vmatprep.subr.mxu1 %v10231_v6  ;;  %v10292_v3 = vld [vmem:[#allocation123_spill] sm:$0xff]  ;;  %v10293_v6 = vld [vmem:[#allocation124_spill] sm:$0xff] }
 0x5e6   :  { %2339 = vmatpush1.msra.mxu0 %v10232_v10  ;;  %2410 = vmatpush1.msra.mxu1 %v10233_v51  ;;  %v10294_v10 = vld [vmem:[#allocation125_spill] sm:$0xff]  ;;  %v10295_v51 = vld [vmem:[#allocation126_spill] sm:$0xff] }
 0x5e7   :  { %2340 = vmatprep.subr.mxu0 %v10234_v8  ;;  %2411 = vmatprep.subr.mxu1 %v10235_v11  ;;  %v10296_v8 = vld [vmem:[#allocation127_spill] sm:$0xff]  ;;  %v10297_v11 = vld [vmem:[#allocation128_spill] sm:$0xff] }
 0x5e8   :  { %2341 = vmatpush1.msra.mxu0 %v10236_v2  ;;  %2412 = vmatpush1.msra.mxu1 %v10237_v14  ;;  %v10298_v2 = vld [vmem:[#allocation129_spill] sm:$0xff]  ;;  %v10299_v14 = vld [vmem:[#allocation130_spill] sm:$0xff] }
 0x5e9   :  { %2342 = vmatprep.subr.mxu0 %v10238_v5  ;;  %2413 = vmatprep.subr.mxu1 %v10239_v17  ;;  %v10300_v5 = vld [vmem:[#allocation131_spill] sm:$0xff]  ;;  %v10301_v17 = vld [vmem:[#allocation132_spill] sm:$0xff] }
 0x5ea   :  { %2343 = vmatpush1.msra.mxu0 %v10240_v57  ;;  %2414 = vmatpush1.msra.mxu1 %v10241_v13  ;;  %v10302_v57 = vld [vmem:[#allocation133_spill] sm:$0xff]  ;;  %v10303_v13 = vld [vmem:[#allocation134_spill] sm:$0xff] }
 0x5eb   :  { %2344 = vmatprep.subr.mxu0 %v10242_v15  ;;  %2415 = vmatprep.subr.mxu1 %v10243_v16  ;;  %v10304_v15 = vld [vmem:[#allocation135_spill] sm:$0xff]  ;;  %v10305_v16 = vld [vmem:[#allocation136_spill] sm:$0xff] }
 0x5ec   :  { %2345 = vmatpush1.msra.mxu0 %v10244_v18  ;;  %2416 = vmatpush1.msra.mxu1 %v10245_v20  ;;  %v10306_v18 = vld [vmem:[#allocation137_spill] sm:$0xff]  ;;  %v10307_v20 = vld [vmem:[#allocation138_spill] sm:$0xff] }
 0x5ed   :  { %2346 = vmatprep.subr.mxu0 %v10246_v21  ;;  %2417 = vmatprep.subr.mxu1 %v10247_v22  ;;  %v10308_v21 = vld [vmem:[#allocation139_spill] sm:$0xff]  ;;  %v10309_v22 = vld [vmem:[#allocation140_spill] sm:$0xff] }
 0x5ee   :  { %2347 = vmatpush1.msra.mxu0 %v10248_v23  ;;  %2418 = vmatpush1.msra.mxu1 %v10249_v31  ;;  %v10310_v23 = vld [vmem:[#allocation141_spill] sm:$0xff]  ;;  %v10311_v31 = vld [vmem:[#allocation142_spill] sm:$0xff] }
 0x5ef   :  { %2348 = vmatprep.subr.mxu0 %v10250_v38  ;;  %2419 = vmatprep.subr.mxu1 %v10251_v40  ;;  %v10312_v38 = vld [vmem:[#allocation143_spill] sm:$0xff]  ;;  %v10313_v40 = vld [vmem:[#allocation144_spill] sm:$0xff] }
 0x5f0   :  { %2349 = vmatpush1.msra.mxu0 %v10252_v29  ;;  %2420 = vmatpush1.msra.mxu1 %v10253_v35  ;;  %v10314_v29 = vld [vmem:[#allocation145_spill] sm:$0xff]  ;;  %v10315_v35 = vld [vmem:[#allocation146_spill] sm:$0xff] }
 0x5f1   :  { %2350 = vmatprep.subr.mxu0 %v10254_v28  ;;  %2421 = vmatprep.subr.mxu1 %v10255_v25  ;;  %v10316_v28 = vld [vmem:[#allocation147_spill] sm:$0xff]  ;;  %v10317_v25 = vld [vmem:[#allocation148_spill] sm:$0xff] }
 0x5f2   :  { %2351 = vmatpush1.msra.mxu0 %v10256_v27  ;;  %2422 = vmatpush1.msra.mxu1 %v10257_v24  ;;  %v10318_v27 = vld [vmem:[#allocation149_spill] sm:$0xff]  ;;  %v10319_v24 = vld [vmem:[#allocation150_spill] sm:$0xff] }
 0x5f3   :  { %2352 = vmatprep.subr.mxu0 %v10258_v32  ;;  %2423 = vmatprep.subr.mxu1 %v10259_v26  ;;  %v10320_v32 = vld [vmem:[#allocation151_spill] sm:$0xff]  ;;  %v10321_v26 = vld [vmem:[#allocation152_spill] sm:$0xff] }
 0x5f4   :  { %2353 = vmatpush1.msra.mxu0 %v10260_v36  ;;  %2424 = vmatpush1.msra.mxu1 %v10261_v39  ;;  %v10322_v36 = vld [vmem:[#allocation153_spill] sm:$0xff]  ;;  %v10323_v39 = vld [vmem:[#allocation154_spill] sm:$0xff] }
 0x5f5   :  { %2354 = vmatprep.subr.mxu0 %v10262_v19  ;;  %2425 = vmatprep.subr.mxu1 %v10263_v37  ;;  %v10324_v19 = vld [vmem:[#allocation155_spill] sm:$0xff]  ;;  %v10325_v37 = vld [vmem:[#allocation156_spill] sm:$0xff] }
 0x5f6   :  { %2355 = vmatpush2.msra.mxu0 %v10264_v34  ;;  %2426 = vmatpush2.msra.mxu1 %v10265_v43  ;;  %v7614_v34 = vld [vmem:[%s8825_s1 + $0x1e8] sm:$0xff]  ;;  %v7620_v43 = vld [vmem:[%s8825_s1 + $0x1f8] sm:$0xff] }
 0x5f7   :  { %2356 = vmatprep.subr.mxu0 %v10266_v33  ;;  %2427 = vmatprep.subr.mxu1 %v10267_v41  ;;  %v10326_v41 = vld [vmem:[#allocation7_spill] sm:$0xff] }
 0x5f8   :  { %2357 = vmatpush2.msra.mxu0 %v10268_v42  ;;  %2428 = vmatpush2.msra.mxu1 %v10269_v44 }
 0x5f9   :  { %2358 = vmatprep.subr.mxu0 %v10270_v45  ;;  %2429 = vmatprep.subr.mxu1 %v10271_v46  ;;  %v10327_v46 = vld [vmem:[#allocation8_spill] sm:$0xff] }
 0x5fa   :  { %2359 = vmatpush2.msra.mxu0 %v10272_v47  ;;  %2430 = vmatpush2.msra.mxu1 %v10273_v48 }
 0x5fb   :  { %2360 = vmatprep.subr.mxu0 %v10274_v49  ;;  %2431 = vmatprep.subr.mxu1 %v10275_v61  ;;  %v10328_v61 = vld [vmem:[#allocation9_spill] sm:$0xff] }
 0x5fc   :  { %2361 = vmatpush2.msra.mxu0 %v10276_v55  ;;  %2432 = vmatpush2.msra.mxu1 %v10277_v53 }
 0x5fd   :  { %2362 = vmatprep.subr.mxu0 %v10278_v54  ;;  %2433 = vmatprep.subr.mxu1 %v10279_v58  ;;  %v10329_v54 = vld [vmem:[#allocation10_spill] sm:$0xff] }
 0x5fe   :  { %2363 = vmatpush2.msra.mxu0 %v10280_v56  ;;  %2434 = vmatpush2.msra.mxu1 %v10281_v52 }
 0x5ff   :  { %2364 = vmatprep.subr.mxu0 %v10282_v0  ;;  %2435 = vmatprep.subr.mxu1 %v10283_v1 }
 0x600   :  { %2365 = vmatpush2.msra.mxu0 %v10284_v62  ;;  %2436 = vmatpush2.msra.mxu1 %v10285_v9 }
 0x601   :  { %2366 = vmatprep.subr.mxu0 %v10286_v12  ;;  %2437 = vmatprep.subr.mxu1 %v10287_v60 }
 0x602   :  { %2367 = vmatpush2.msra.mxu0 %v10288_v7  ;;  %2438 = vmatpush2.msra.mxu1 %v10289_v59  ;;  %v2104_v7 = vld [vmem:[#allocation3 + $0x2] sm:$0x3] }
 0x603   :  { %2368 = vmatprep.subr.mxu0 %v10290_v4  ;;  %2439 = vmatprep.subr.mxu1 %v10291_v50 }
 0x604   :  { %2369 = vmatpush2.msra.mxu0 %v10292_v3  ;;  %2440 = vmatpush2.msra.mxu1 %v10293_v6 }
 0x605   :  { %2370 = vmatprep.subr.mxu0 %v10294_v10  ;;  %2441 = vmatprep.subr.mxu1 %v10295_v51 }
 0x606   :  { %2371 = vmatpush2.msra.mxu0 %v10296_v8  ;;  %2442 = vmatpush2.msra.mxu1 %v10297_v11 }
 0x607   :  { %2372 = vmatprep.subr.mxu0 %v10298_v2  ;;  %2443 = vmatprep.subr.mxu1 %v10299_v14 }
 0x608   :  { %2373 = vmatpush2.msra.mxu0 %v10300_v5  ;;  %2444 = vmatpush2.msra.mxu1 %v10301_v17 }
 0x609   :  { %2374 = vmatprep.subr.mxu0 %v10302_v57  ;;  %2445 = vmatprep.subr.mxu1 %v10303_v13  ;;  %v3624_v57 = vld [vmem:[%s8824_s0 + $0x28] sm:$0xff] }
 0x60a   :  { %2375 = vmatpush2.msra.mxu0 %v10304_v15  ;;  %2446 = vmatpush2.msra.mxu1 %v10305_v16 }
 0x60b   :  { %2376 = vmatprep.subr.mxu0 %v10306_v18  ;;  %2447 = vmatprep.subr.mxu1 %v10307_v20 }
 0x60c   :  { %2377 = vmatpush2.msra.mxu0 %v10308_v21  ;;  %2448 = vmatpush2.msra.mxu1 %v10309_v22 }
 0x60d   :  { %2378 = vmatprep.subr.mxu0 %v10310_v23  ;;  %2449 = vmatprep.subr.mxu1 %v10311_v31 }
 0x60e   :  { %2379 = vmatpush2.msra.mxu0 %v10312_v38  ;;  %2450 = vmatpush2.msra.mxu1 %v10313_v40 }
 0x60f   :  { %2380 = vmatprep.subr.mxu0 %v10314_v29  ;;  %2451 = vmatprep.subr.mxu1 %v10315_v35 }
 0x610   :  { %2381 = vmatpush2.msra.mxu0 %v10316_v28  ;;  %2452 = vmatpush2.msra.mxu1 %v10317_v25 }
 0x611   :  { %2382 = vmatprep.subr.mxu0 %v10318_v27  ;;  %2453 = vmatprep.subr.mxu1 %v10319_v24 }
 0x612   :  { %2383 = vmatpush2.msra.mxu0 %v10320_v32  ;;  %2454 = vmatpush2.msra.mxu1 %v10321_v26  ;;  %v2302_v26 = vld [vmem:[#allocation3] sm:$0x3] }
 0x613   :  { %2384 = vmatprep.subr.mxu0 %v10322_v36  ;;  %2455 = vmatprep.subr.mxu1 %v10323_v39 }
 0x614   :  { %2385 = vmatpush2.msra.mxu0 %v10324_v19  ;;  %2456 = vmatpush2.msra.mxu1 %v10325_v37 }
 0x615   :  { %2490 = vmatprep.subr.mxu0 %v7614_v34  ;;  %2561 = vmatprep.subr.mxu1 %v7620_v43 }
 0x673   :  { %v2015_v33 = vpop.f32.mrf.mxu0  ;;  %v2086_v48 = vpop.f32.mrf.mxu1 }
 0x674   :  { %v2016_v42 = vadd.f32 %v2015_v33, %v10326_v41  ;;  %v2087_v55 = vadd.f32 %v2086_v48, %v10328_v61 }
 0x675   :  { %v2017_v44 = vpop.f32.mrf.mxu0  ;;  %v2088_v53 = vpop.f32.mrf.mxu1 }
 0x676   :  { %v2091_v45 = vmul.f32 0.5, %v2016_v42  ;;  %v2018_v47 = vadd.f32 %v2017_v44, %v10327_v46  ;;  %v2089_v58 = vadd.f32 %v2088_v53, %v10329_v54  ;;  %v7650_v53 = vld [vmem:[%s8825_s1 + $0x1c8] sm:$0xff] }
 0x678   :  { %3731 = vtanh.f32 %v2091_v45  ;;  %v2095_v49 = vmul.f32 0.5, %v2018_v47  ;;  %v2100_v56 = vmul.f32 0.5, %v2089_v58  ;;  %v7656_v58 = vld [vmem:[%s8825_s1 + $0x1d8] sm:$0xff] }
 0x67a   :  { %3733 = vtanh.f32 %v2095_v49  ;;  %v7638_v49 = vld [vmem:[%s8825_s1 + $0x1e0] sm:$0xff] }
 0x67b   :  { %3735 = vtanh.f32 %v2087_v55  ;;  %v7644_v55 = vld [vmem:[%s8825_s1 + $0x1f0] sm:$0xff] }
 0x67c   :  { %3737 = vtanh.f32 %v2100_v56  ;;  %v7662_v56 = vld [vmem:[%s8825_s1 + $0x1c0] sm:$0xff] }
 0x685   :  { %v3732_v52 = vpop.eup %3731 }
 0x686   :  { %v2093_v0 = vmul.f32 0.5, %v3732_v52  ;;  %v7668_v52 = vld [vmem:[%s8825_s1 + $0x1d0] sm:$0xff] }
 0x687   :  { %v3734_v1 = vpop.eup %3733 }
 0x688   :  { %v2094_v62 = vadd.f32 0.5, %v2093_v0  ;;  %v2097_v9 = vmul.f32 0.5, %v3734_v1  ;;  %v3736_v60 = vpop.eup %3735  ;;  %v7674_v0 = vld [vmem:[%s8825_s1 + $0x1a8] sm:$0xff]  ;;  %v7680_v1 = vld [vmem:[%s8825_s1 + $0x1b8] sm:$0xff] }
 0x689   :  { %v3738_v10 = vpop.eup %3737 }
 0x68a   :  { %v2098_v12 = vadd.f32 0.5, %v2097_v9  ;;  %v2106_v4 = vmul.f32 %v3736_v60, %v2094_v62  ;;  %v2102_v14 = vmul.f32 0.5, %v3738_v10  ;;  %v7686_v62 = vld [vmem:[%s8825_s1 + $0x1a0] sm:$0xff]  ;;  %v7692_v9 = vld [vmem:[%s8825_s1 + $0x1b0] sm:$0xff]  ;;  %v7704_v60 = vld [vmem:[%s8825_s1 + $0x198] sm:$0xff] }
 0x68b   :  { %v7746_v10 = vld [vmem:[%s8825_s1 + $0x148] sm:$0xff] }
 0x68c   :  { %v2105_v59 = vmul.f32 %v2104_v7, %v2098_v12  ;;  %v2103_v15 = vadd.f32 0.5, %v2102_v14  ;;  %v7698_v12 = vld [vmem:[%s8825_s1 + $0x188] sm:$0xff]  ;;  %v7710_v7 = vld [vmem:[%s8825_s1 + $0x180] sm:$0xff]  ;;  %v7776_v14 = vld [vmem:[%s8825_s1 + $0x138] sm:$0xff] }
 0x68e   :  { %v2107_v50 = vadd.f32 %v2106_v4, %v2105_v59  ;;  %v7716_v59 = vld [vmem:[%s8825_s1 + $0x190] sm:$0xff]  ;;  %v7722_v4 = vld [vmem:[%s8825_s1 + $0x168] sm:$0xff] }
 0x690   :  { %3739 = vtanh.f32 %v2107_v50  ;;  %2110 = vst [vmem:[#allocation3 + $0x2] sm:$0x3] %v2107_v50  ;;  %v7728_v50 = vld [vmem:[%s8825_s1 + $0x178] sm:$0xff] }
 0x694   :  { %v2183_v3 = vpop.f32.mrf.mxu0  ;;  %v2254_v6 = vpop.f32.mrf.mxu1 }
 0x696   :  { %v2185_v51 = vpop.f32.mrf.mxu0  ;;  %v2256_v8 = vpop.f32.mrf.mxu1 }
 0x697   :  { %v2263_v11 = vcombine.low %v2183_v3, %v2185_v51  ;;  %v2264_v2 = vcombine.low %v2254_v6, %v2256_v8  ;;  %v7734_v3 = vld [vmem:[%s8825_s1 + $0x160] sm:$0xff]  ;;  %v7740_v6 = vld [vmem:[%s8825_s1 + $0x170] sm:$0xff]  ;;  %v7752_v51 = vld [vmem:[%s8825_s1 + $0x158] sm:$0xff] }
 0x698   :  { %v7758_v8 = vld [vmem:[%s8825_s1 + $0x140] sm:$0xff] }
 0x699   :  { %v2271_v5 = vrot.slane %v2263_v11, %v9735_v63  ;;  %v2278_v17 = vrot.slane %v2264_v2, %v9735_v63  ;;  %v7764_v11 = vld [vmem:[%s8825_s1 + $0x150] sm:$0xff]  ;;  %v7770_v2 = vld [vmem:[%s8825_s1 + $0x128] sm:$0xff] }
 0x69b   :  { %v2279_v13 = vcombine.low %v2271_v5, %v2278_v17  ;;  %v7782_v5 = vld [vmem:[%s8825_s1 + $0x120] sm:$0xff]  ;;  %v7788_v17 = vld [vmem:[%s8825_s1 + $0x130] sm:$0xff] }
 0x69d   :  { %v3740_v16 = vpop.eup %3739  ;;  %v2281_v18 = vadd.f32 %v3624_v57, %v2279_v13  ;;  %v7794_v57 = vld [vmem:[%s8825_s1 + $0x108] sm:$0xff]  ;;  %v7800_v13 = vld [vmem:[%s8825_s1 + $0x118] sm:$0xff] }
 0x69e   :  { %v2109_v20 = vmul.f32 %v3740_v16, %v2103_v15  ;;  %v7806_v15 = vld [vmem:[%s8825_s1 + $0x100] sm:$0xff]  ;;  %v7812_v16 = vld [vmem:[%s8825_s1 + $0x110] sm:$0xff] }
 0x69f   :  { %v2282_v21 = vmul.f32 0.5, %v2281_v18  ;;  %v2287_v22 = vrot.slane %v2281_v18, 2  ;;  %v2293_v31 = vrot.slane %v2281_v18, 4  ;;  %v2296_v38 = vrot.slane %v2281_v18, 6  ;;  %v7818_v18 = vld [vmem:[%s8825_s1 + $0xe8] sm:$0xff] }
 0x6a0   :  { %2111 = vst [vmem:[#allocation2 + $0x2] sm:$0x3] %v2109_v20  ;;  %3623 = vst [vmem:[%s8828_s4 + $0x8] sm:$0x3] %v2109_v20  ;;  %v7824_v20 = vld [vmem:[%s8825_s1 + $0xf8] sm:$0xff] }
 0x6a1   :  { %3741 = vtanh.f32 %v2282_v21  ;;  %v2289_v23 = vmul.f32 0.5, %v2287_v22  ;;  %v2298_v40 = vmul.f32 0.5, %v2296_v38  ;;  %v7830_v21 = vld [vmem:[%s8825_s1 + $0xe0] sm:$0xff]  ;;  %v7836_v22 = vld [vmem:[%s8825_s1 + $0xf0] sm:$0xff] }
 0x6a2   :  { %v7854_v38 = vld [vmem:[%s8825_s1 + $0xc0] sm:$0xff] }
 0x6a3   :  { %3743 = vtanh.f32 %v2289_v23  ;;  %v7842_v23 = vld [vmem:[%s8825_s1 + $0xc8] sm:$0xff] }
 0x6a4   :  { %3745 = vtanh.f32 %v2293_v31  ;;  %v7848_v31 = vld [vmem:[%s8825_s1 + $0xd8] sm:$0xff] }
 0x6a5   :  { %3747 = vtanh.f32 %v2298_v40  ;;  %v7860_v40 = vld [vmem:[%s8825_s1 + $0xd0] sm:$0xff] }
 0x6ae   :  { %v3742_v29 = vpop.eup %3741 }
 0x6af   :  { %v2284_v35 = vmul.f32 0.5, %v3742_v29  ;;  %v7866_v29 = vld [vmem:[%s8825_s1 + $0xa8] sm:$0xff] }
 0x6b0   :  { %v3744_v28 = vpop.eup %3743 }
 0x6b1   :  { %v2285_v25 = vadd.f32 0.5, %v2284_v35  ;;  %v2291_v27 = vmul.f32 0.5, %v3744_v28  ;;  %v3746_v32 = vpop.eup %3745  ;;  %v7872_v35 = vld [vmem:[%s8825_s1 + $0xb8] sm:$0xff]  ;;  %v7878_v28 = vld [vmem:[%s8825_s1 + $0xa0] sm:$0xff] }
 0x6b2   :  { %v3748_v37 = vpop.eup %3747 }
 0x6b3   :  { %v2292_v24 = vadd.f32 0.5, %v2291_v27  ;;  %v2304_v39 = vmul.f32 %v3746_v32, %v2285_v25  ;;  %v2300_v33 = vmul.f32 0.5, %v3748_v37  ;;  %v7884_v25 = vld [vmem:[%s8825_s1 + $0xb0] sm:$0xff]  ;;  %v7890_v27 = vld [vmem:[%s8825_s1 + $0x88] sm:$0xff]  ;;  %v7902_v32 = vld [vmem:[%s8825_s1 + $0x80] sm:$0xff] }
 0x6b4   :  { %10330 = vst [vmem:[#allocation11_spill] sm:$0xff] %v7902_v32  ;;  %v7932_v37 = vld [vmem:[%s8825_s1 + $0x70] sm:$0xff] }
 0x6b5   :  { %v2303_v36 = vmul.f32 %v2302_v26, %v2292_v24  ;;  %v2301_v42 = vadd.f32 0.5, %v2300_v33  ;;  %v7896_v24 = vld [vmem:[%s8825_s1 + $0x98] sm:$0xff]  ;;  %v7908_v26 = vld [vmem:[%s8825_s1 + $0x90] sm:$0xff]  ;;  %10335 = vst [vmem:[#allocation16_spill] sm:$0xff] %v7932_v37  ;;  %v7938_v33 = vld [vmem:[%s8825_s1 + $0x48] sm:$0xff] }
 0x6b6   :  { %10331 = vst [vmem:[#allocation12_spill] sm:$0xff] %v7908_v26  ;;  %10336 = vst [vmem:[#allocation17_spill] sm:$0xff] %v7938_v33 }
 0x6b7   :  { %v2305_v19 = vadd.f32 %v2304_v39, %v2303_v36  ;;  %v7914_v36 = vld [vmem:[%s8825_s1 + $0x68] sm:$0xff]  ;;  %v7920_v39 = vld [vmem:[%s8825_s1 + $0x78] sm:$0xff] }
 0x6b8   :  { %10332 = vst [vmem:[#allocation13_spill] sm:$0xff] %v7914_v36  ;;  %10333 = vst [vmem:[#allocation14_spill] sm:$0xff] %v7920_v39 }
 0x6b9   :  { %3749 = vtanh.f32 %v2305_v19  ;;  %2308 = vst [vmem:[#allocation3] sm:$0x3] %v2305_v19  ;;  %v7926_v19 = vld [vmem:[%s8825_s1 + $0x60] sm:$0xff] }
 0x6ba   :  { %10334 = vst [vmem:[#allocation15_spill] sm:$0xff] %v7926_v19 }
 0x6c6   :  { %v3750_v44 = vpop.eup %3749 }
 0x6c7   :  { %v2307_v45 = vmul.f32 %v3750_v44, %v2301_v42  ;;  %v7944_v42 = vld [vmem:[%s8825_s1 + $0x58] sm:$0xff]  ;;  %v7950_v44 = vld [vmem:[%s8825_s1 + $0x40] sm:$0xff] }
 0x6c8   :  { %10337 = vst [vmem:[#allocation18_spill] sm:$0xff] %v7944_v42  ;;  %10338 = vst [vmem:[#allocation19_spill] sm:$0xff] %v7950_v44 }
 0x6c9   :  { %2309 = vst [vmem:[#allocation2] sm:$0x3] %v2307_v45  ;;  %v7956_v45 = vld [vmem:[%s8825_s1 + $0x50] sm:$0xff] }
 0x6ca   :  { %10339 = vst [vmem:[#allocation20_spill] sm:$0xff] %v7956_v45 }
 0x6d0   :  { %v3625_v47 = vld.sshfl [vmem:[#allocation2] sm:$0x33 pattern:$0x76325410] }
 0x6d1   :  { %v2319_v48 = vcombine.high %v3625_v47, %v3625_v47 }
 0x6d3   :  { %2386 = vmatprep.mubr.f32.mxu0 %v2319_v48  ;;  %2457 = vmatprep.mubr.f32.mxu1 %v2319_v48  ;;  %v7968_v48 = vld [vmem:[%s8825_s1 + $0x38] sm:$0xff] }
 0x6d4   :  { %2387 = vmatmul.mubr.f32.vlgmr.msra.gmra.mxu0 %v3625_v47  ;;  %2458 = vmatmul.mubr.f32.vlgmr.msra.gmra.mxu1 %v3625_v47  ;;  %v7962_v47 = vld [vmem:[%s8825_s1 + $0x28] sm:$0xff]  ;;  %10341 = vst [vmem:[#allocation22_spill] sm:$0xff] %v7968_v48 }
 0x6d5   :  { %2491 = vmatpush1.msra.mxu0 %v7638_v49  ;;  %2562 = vmatpush1.msra.mxu1 %v7644_v55  ;;  %10340 = vst [vmem:[#allocation21_spill] sm:$0xff] %v7962_v47 }
 0x6d6   :  { %2492 = vmatprep.subr.mxu0 %v7650_v53  ;;  %2563 = vmatprep.subr.mxu1 %v7656_v58 }
 0x6d7   :  { %2493 = vmatpush1.msra.mxu0 %v7662_v56  ;;  %2564 = vmatpush1.msra.mxu1 %v7668_v52 }
 0x6d8   :  { %2494 = vmatprep.subr.mxu0 %v7674_v0  ;;  %2565 = vmatprep.subr.mxu1 %v7680_v1 }
 0x6d9   :  { %2495 = vmatpush1.msra.mxu0 %v7686_v62  ;;  %2566 = vmatpush1.msra.mxu1 %v7692_v9 }
 0x6da   :  { %2496 = vmatprep.subr.mxu0 %v7698_v12  ;;  %2567 = vmatprep.subr.mxu1 %v7704_v60 }
 0x6db   :  { %2497 = vmatpush1.msra.mxu0 %v7710_v7  ;;  %2568 = vmatpush1.msra.mxu1 %v7716_v59 }
 0x6dc   :  { %2498 = vmatprep.subr.mxu0 %v7722_v4  ;;  %2569 = vmatprep.subr.mxu1 %v7728_v50 }
 0x6dd   :  { %2499 = vmatpush1.msra.mxu0 %v7734_v3  ;;  %2570 = vmatpush1.msra.mxu1 %v7740_v6 }
 0x6de   :  { %2500 = vmatprep.subr.mxu0 %v7746_v10  ;;  %2571 = vmatprep.subr.mxu1 %v7752_v51 }
 0x6df   :  { %2501 = vmatpush1.msra.mxu0 %v7758_v8  ;;  %2572 = vmatpush1.msra.mxu1 %v7764_v11 }
 0x6e0   :  { %2502 = vmatprep.subr.mxu0 %v7770_v2  ;;  %2573 = vmatprep.subr.mxu1 %v7776_v14 }
 0x6e1   :  { %2503 = vmatpush1.msra.mxu0 %v7782_v5  ;;  %2574 = vmatpush1.msra.mxu1 %v7788_v17 }
 0x6e2   :  { %2504 = vmatprep.subr.mxu0 %v7794_v57  ;;  %2575 = vmatprep.subr.mxu1 %v7800_v13 }
 0x6e3   :  { %2505 = vmatpush1.msra.mxu0 %v7806_v15  ;;  %2576 = vmatpush1.msra.mxu1 %v7812_v16 }
 0x6e4   :  { %2506 = vmatprep.subr.mxu0 %v7818_v18  ;;  %2577 = vmatprep.subr.mxu1 %v7824_v20 }
 0x6e5   :  { %2507 = vmatpush1.msra.mxu0 %v7830_v21  ;;  %2578 = vmatpush1.msra.mxu1 %v7836_v22 }
 0x6e6   :  { %2508 = vmatprep.subr.mxu0 %v7842_v23  ;;  %2579 = vmatprep.subr.mxu1 %v7848_v31 }
 0x6e7   :  { %2509 = vmatpush1.msra.mxu0 %v7854_v38  ;;  %2580 = vmatpush1.msra.mxu1 %v7860_v40 }
 0x6e8   :  { %2510 = vmatprep.subr.mxu0 %v7866_v29  ;;  %2581 = vmatprep.subr.mxu1 %v7872_v35 }
 0x6e9   :  { %2511 = vmatpush1.msra.mxu0 %v7878_v28  ;;  %2582 = vmatpush1.msra.mxu1 %v7884_v25 }
 0x6ea   :  { %2512 = vmatprep.subr.mxu0 %v7890_v27  ;;  %2583 = vmatprep.subr.mxu1 %v7896_v24 }
 0x6eb   :  { %2513 = vmatpush1.msra.mxu0 %v7902_v32  ;;  %2584 = vmatpush1.msra.mxu1 %v7908_v26 }
 0x6ec   :  { %2514 = vmatprep.subr.mxu0 %v7914_v36  ;;  %2585 = vmatprep.subr.mxu1 %v7920_v39 }
 0x6ed   :  { %2515 = vmatpush1.msra.mxu0 %v7926_v19  ;;  %2586 = vmatpush1.msra.mxu1 %v7932_v37 }
 0x6ee   :  { %2516 = vmatprep.subr.mxu0 %v7938_v33  ;;  %2587 = vmatprep.subr.mxu1 %v7944_v42  ;;  %v8012_v42 = vld [vmem:[#allocation4 + $0x1f8] sm:$0xff]  ;;  %v8018_v33 = vld [vmem:[#allocation4 + $0x1f0] sm:$0xff] }
 0x6ef   :  { %2517 = vmatpush1.msra.mxu0 %v7950_v44  ;;  %2588 = vmatpush1.msra.mxu1 %v7956_v45  ;;  %v7974_v44 = vld [vmem:[%s8825_s1 + $0x20] sm:$0xff]  ;;  %v7980_v45 = vld [vmem:[%s8825_s1 + $0x30] sm:$0xff]  ;;  %10349 = vst [vmem:[#allocation30_spill] sm:$0xff] %v8012_v42  ;;  %10351 = vst [vmem:[#allocation32_spill] sm:$0xff] %v8018_v33 }
 0x6f0   :  { %2518 = vmatprep.subr.mxu0 %v7962_v47  ;;  %2589 = vmatprep.subr.mxu1 %v7968_v48  ;;  %10342 = vst [vmem:[#allocation23_spill] sm:$0xff] %v7974_v44  ;;  %10343 = vst [vmem:[#allocation24_spill] sm:$0xff] %v7980_v45  ;;  %v7986_v47 = vld [vmem:[%s8825_s1 + $0x8] sm:$0xff]  ;;  %v7992_v48 = vld [vmem:[%s8825_s1 + $0x18] sm:$0xff] }
 0x6f1   :  { %2519 = vmatpush1.msra.mxu0 %v7974_v44  ;;  %2590 = vmatpush1.msra.mxu1 %v7980_v45  ;;  %10344 = vst [vmem:[#allocation25_spill] sm:$0xff] %v7986_v47  ;;  %10345 = vst [vmem:[#allocation26_spill] sm:$0xff] %v7992_v48  ;;  %v7998_v44 = vld [vmem:[%s8825_s1] sm:$0xff] }
 0x6f2   :  { %2520 = vmatprep.subr.mxu0 %v7986_v47  ;;  %2591 = vmatprep.subr.mxu1 %v7992_v48  ;;  %10346 = vst [vmem:[#allocation27_spill] sm:$0xff] %v7998_v44  ;;  %v8005_v47 = vld [vmem:[%s8825_s1 + $0x10] sm:$0xff]  ;;  %v2489_v45 = vld [vmem:[#allocation2] sm:$0x3] }
 0x6f3   :  { %2521 = vmatpush1.msra.mxu0 %v7998_v44  ;;  %2554 = vmatprep.mubr.f32.mxu0 %v10196_v30  ;;  %10347 = vst [vmem:[#allocation28_spill] sm:$0xff] %v8005_v47  ;;  %v8009_v48 = vld [vmem:[#allocation4 + $0x1e8] sm:$0xff]  ;;  %v8015_v44 = vld [vmem:[#allocation4 + $0x1e0] sm:$0xff] }
 0x6f4   :  { %2592 = vmatpush1.msra.mxu1 %v8005_v47  ;;  %2625 = vmatprep.mubr.f32.mxu1 %v10196_v30  ;;  %10348 = vst [vmem:[#allocation29_spill] sm:$0xff] %v8009_v48  ;;  %10350 = vst [vmem:[#allocation31_spill] sm:$0xff] %v8015_v44  ;;  %v8021_v47 = vld [vmem:[#allocation4 + $0x1c8] sm:$0xff] }
 0x6f5   :  { %2555 = vmatmul.mubr.f32.vlgmr.msra.gmra.mxu0 %v2489_v45  ;;  %2626 = vmatmul.mubr.f32.vlgmr.msra.gmra.mxu1 %v2489_v45  ;;  %10352 = vst [vmem:[#allocation33_spill] sm:$0xff] %v8021_v47  ;;  %v8024_v45 = vld [vmem:[#allocation4 + $0x1d8] sm:$0xff] }
 0x6f6   :  { %2695 = vmatprep.subr.mxu0 %v8009_v48  ;;  %2766 = vmatprep.subr.mxu1 %v8012_v42  ;;  %10353 = vst [vmem:[#allocation34_spill] sm:$0xff] %v8024_v45  ;;  %v8027_v48 = vld [vmem:[#allocation4 + $0x1c0] sm:$0xff]  ;;  %v8030_v42 = vld [vmem:[#allocation4 + $0x1d0] sm:$0xff] }
 0x6f7   :  { %2696 = vmatpush1.msra.mxu0 %v8015_v44  ;;  %2767 = vmatpush1.msra.mxu1 %v8018_v33  ;;  %10354 = vst [vmem:[#allocation35_spill] sm:$0xff] %v8027_v48  ;;  %10355 = vst [vmem:[#allocation36_spill] sm:$0xff] %v8030_v42  ;;  %v8033_v44 = vld [vmem:[#allocation4 + $0x1a8] sm:$0xff]  ;;  %v8036_v33 = vld [vmem:[#allocation4 + $0x1b8] sm:$0xff] }
 0x6f8   :  { %2697 = vmatprep.subr.mxu0 %v8021_v47  ;;  %2768 = vmatprep.subr.mxu1 %v8024_v45  ;;  %10356 = vst [vmem:[#allocation37_spill] sm:$0xff] %v8033_v44  ;;  %10357 = vst [vmem:[#allocation38_spill] sm:$0xff] %v8036_v33  ;;  %v8039_v47 = vld [vmem:[#allocation4 + $0x1a0] sm:$0xff]  ;;  %v8042_v45 = vld [vmem:[#allocation4 + $0x1b0] sm:$0xff] }
 0x6f9   :  { %2698 = vmatpush1.msra.mxu0 %v8027_v48  ;;  %2769 = vmatpush1.msra.mxu1 %v8030_v42  ;;  %10358 = vst [vmem:[#allocation39_spill] sm:$0xff] %v8039_v47  ;;  %10359 = vst [vmem:[#allocation40_spill] sm:$0xff] %v8042_v45  ;;  %v8045_v48 = vld [vmem:[#allocation4 + $0x188] sm:$0xff]  ;;  %v8048_v42 = vld [vmem:[#allocation4 + $0x198] sm:$0xff] }
 0x6fa   :  { %2699 = vmatprep.subr.mxu0 %v8033_v44  ;;  %2770 = vmatprep.subr.mxu1 %v8036_v33  ;;  %10360 = vst [vmem:[#allocation41_spill] sm:$0xff] %v8045_v48  ;;  %10361 = vst [vmem:[#allocation42_spill] sm:$0xff] %v8048_v42  ;;  %v8051_v44 = vld [vmem:[#allocation4 + $0x180] sm:$0xff]  ;;  %v8054_v33 = vld [vmem:[#allocation4 + $0x190] sm:$0xff] }
 0x6fb   :  { %2700 = vmatpush1.msra.mxu0 %v8039_v47  ;;  %2771 = vmatpush1.msra.mxu1 %v8042_v45  ;;  %10362 = vst [vmem:[#allocation43_spill] sm:$0xff] %v8051_v44  ;;  %10363 = vst [vmem:[#allocation44_spill] sm:$0xff] %v8054_v33  ;;  %v8057_v47 = vld [vmem:[#allocation4 + $0x168] sm:$0xff]  ;;  %v8060_v45 = vld [vmem:[#allocation4 + $0x178] sm:$0xff] }
 0x6fc   :  { %2701 = vmatprep.subr.mxu0 %v8045_v48  ;;  %2772 = vmatprep.subr.mxu1 %v8048_v42  ;;  %10364 = vst [vmem:[#allocation45_spill] sm:$0xff] %v8057_v47  ;;  %10365 = vst [vmem:[#allocation46_spill] sm:$0xff] %v8060_v45  ;;  %v8063_v48 = vld [vmem:[#allocation4 + $0x160] sm:$0xff]  ;;  %v8066_v42 = vld [vmem:[#allocation4 + $0x170] sm:$0xff] }
 0x6fd   :  { %2702 = vmatpush1.msra.mxu0 %v8051_v44  ;;  %2773 = vmatpush1.msra.mxu1 %v8054_v33  ;;  %10366 = vst [vmem:[#allocation47_spill] sm:$0xff] %v8063_v48  ;;  %10367 = vst [vmem:[#allocation48_spill] sm:$0xff] %v8066_v42  ;;  %v8069_v44 = vld [vmem:[#allocation4 + $0x148] sm:$0xff]  ;;  %v8072_v33 = vld [vmem:[#allocation4 + $0x158] sm:$0xff] }
 0x6fe   :  { %2703 = vmatprep.subr.mxu0 %v8057_v47  ;;  %2774 = vmatprep.subr.mxu1 %v8060_v45  ;;  %10368 = vst [vmem:[#allocation49_spill] sm:$0xff] %v8069_v44  ;;  %10369 = vst [vmem:[#allocation50_spill] sm:$0xff] %v8072_v33  ;;  %v8075_v47 = vld [vmem:[#allocation4 + $0x140] sm:$0xff]  ;;  %v8078_v45 = vld [vmem:[#allocation4 + $0x150] sm:$0xff] }
 0x6ff   :  { %2704 = vmatpush1.msra.mxu0 %v8063_v48  ;;  %2775 = vmatpush1.msra.mxu1 %v8066_v42  ;;  %10370 = vst [vmem:[#allocation51_spill] sm:$0xff] %v8075_v47  ;;  %10371 = vst [vmem:[#allocation52_spill] sm:$0xff] %v8078_v45  ;;  %v8081_v48 = vld [vmem:[#allocation4 + $0x128] sm:$0xff]  ;;  %v8084_v42 = vld [vmem:[#allocation4 + $0x138] sm:$0xff] }
 0x700   :  { %2705 = vmatprep.subr.mxu0 %v8069_v44  ;;  %2776 = vmatprep.subr.mxu1 %v8072_v33  ;;  %10372 = vst [vmem:[#allocation53_spill] sm:$0xff] %v8081_v48  ;;  %10373 = vst [vmem:[#allocation54_spill] sm:$0xff] %v8084_v42  ;;  %v8087_v44 = vld [vmem:[#allocation4 + $0x120] sm:$0xff]  ;;  %v8090_v33 = vld [vmem:[#allocation4 + $0x130] sm:$0xff] }
 0x701   :  { %2706 = vmatpush1.msra.mxu0 %v8075_v47  ;;  %2777 = vmatpush1.msra.mxu1 %v8078_v45  ;;  %10374 = vst [vmem:[#allocation55_spill] sm:$0xff] %v8087_v44  ;;  %10375 = vst [vmem:[#allocation56_spill] sm:$0xff] %v8090_v33  ;;  %v8093_v47 = vld [vmem:[#allocation4 + $0x108] sm:$0xff]  ;;  %v8096_v45 = vld [vmem:[#allocation4 + $0x118] sm:$0xff] }
 0x702   :  { %2707 = vmatprep.subr.mxu0 %v8081_v48  ;;  %2778 = vmatprep.subr.mxu1 %v8084_v42  ;;  %10376 = vst [vmem:[#allocation57_spill] sm:$0xff] %v8093_v47  ;;  %10377 = vst [vmem:[#allocation58_spill] sm:$0xff] %v8096_v45  ;;  %v8099_v48 = vld [vmem:[#allocation4 + $0x100] sm:$0xff]  ;;  %v8102_v42 = vld [vmem:[#allocation4 + $0x110] sm:$0xff] }
 0x703   :  { %2708 = vmatpush1.msra.mxu0 %v8087_v44  ;;  %2779 = vmatpush1.msra.mxu1 %v8090_v33  ;;  %10378 = vst [vmem:[#allocation59_spill] sm:$0xff] %v8099_v48  ;;  %10379 = vst [vmem:[#allocation60_spill] sm:$0xff] %v8102_v42  ;;  %v8105_v44 = vld [vmem:[#allocation4 + $0xe8] sm:$0xff]  ;;  %v8108_v33 = vld [vmem:[#allocation4 + $0xf8] sm:$0xff] }
 0x704   :  { %2709 = vmatprep.subr.mxu0 %v8093_v47  ;;  %2780 = vmatprep.subr.mxu1 %v8096_v45  ;;  %10380 = vst [vmem:[#allocation61_spill] sm:$0xff] %v8105_v44  ;;  %10381 = vst [vmem:[#allocation62_spill] sm:$0xff] %v8108_v33  ;;  %v8111_v47 = vld [vmem:[#allocation4 + $0xe0] sm:$0xff]  ;;  %v8114_v45 = vld [vmem:[#allocation4 + $0xf0] sm:$0xff] }
 0x705   :  { %2710 = vmatpush1.msra.mxu0 %v8099_v48  ;;  %2781 = vmatpush1.msra.mxu1 %v8102_v42  ;;  %10382 = vst [vmem:[#allocation63_spill] sm:$0xff] %v8111_v47  ;;  %10383 = vst [vmem:[#allocation64_spill] sm:$0xff] %v8114_v45  ;;  %v8117_v48 = vld [vmem:[#allocation4 + $0xc8] sm:$0xff]  ;;  %v8120_v42 = vld [vmem:[#allocation4 + $0xd8] sm:$0xff] }
 0x706   :  { %2711 = vmatprep.subr.mxu0 %v8105_v44  ;;  %2782 = vmatprep.subr.mxu1 %v8108_v33  ;;  %10384 = vst [vmem:[#allocation65_spill] sm:$0xff] %v8117_v48  ;;  %10385 = vst [vmem:[#allocation66_spill] sm:$0xff] %v8120_v42  ;;  %v8123_v44 = vld [vmem:[#allocation4 + $0xc0] sm:$0xff]  ;;  %v8126_v33 = vld [vmem:[#allocation4 + $0xd0] sm:$0xff] }
 0x707   :  { %2712 = vmatpush1.msra.mxu0 %v8111_v47  ;;  %2783 = vmatpush1.msra.mxu1 %v8114_v45  ;;  %10386 = vst [vmem:[#allocation67_spill] sm:$0xff] %v8123_v44  ;;  %10387 = vst [vmem:[#allocation68_spill] sm:$0xff] %v8126_v33  ;;  %v8129_v47 = vld [vmem:[#allocation4 + $0xa8] sm:$0xff]  ;;  %v8132_v45 = vld [vmem:[#allocation4 + $0xb8] sm:$0xff] }
 0x708   :  { %2713 = vmatprep.subr.mxu0 %v8117_v48  ;;  %2784 = vmatprep.subr.mxu1 %v8120_v42  ;;  %10388 = vst [vmem:[#allocation69_spill] sm:$0xff] %v8129_v47  ;;  %10389 = vst [vmem:[#allocation70_spill] sm:$0xff] %v8132_v45  ;;  %v8135_v48 = vld [vmem:[#allocation4 + $0xa0] sm:$0xff]  ;;  %v8138_v42 = vld [vmem:[#allocation4 + $0xb0] sm:$0xff] }
 0x709   :  { %2714 = vmatpush1.msra.mxu0 %v8123_v44  ;;  %2785 = vmatpush1.msra.mxu1 %v8126_v33  ;;  %10390 = vst [vmem:[#allocation71_spill] sm:$0xff] %v8135_v48  ;;  %10391 = vst [vmem:[#allocation72_spill] sm:$0xff] %v8138_v42  ;;  %v8141_v44 = vld [vmem:[#allocation4 + $0x88] sm:$0xff]  ;;  %v8144_v33 = vld [vmem:[#allocation4 + $0x98] sm:$0xff] }
 0x70a   :  { %2715 = vmatprep.subr.mxu0 %v8129_v47  ;;  %2786 = vmatprep.subr.mxu1 %v8132_v45  ;;  %10392 = vst [vmem:[#allocation73_spill] sm:$0xff] %v8141_v44  ;;  %10393 = vst [vmem:[#allocation74_spill] sm:$0xff] %v8144_v33  ;;  %v8147_v47 = vld [vmem:[#allocation4 + $0x80] sm:$0xff]  ;;  %v8150_v45 = vld [vmem:[#allocation4 + $0x90] sm:$0xff] }
 0x70b   :  { %2716 = vmatpush1.msra.mxu0 %v8135_v48  ;;  %2787 = vmatpush1.msra.mxu1 %v8138_v42  ;;  %10394 = vst [vmem:[#allocation75_spill] sm:$0xff] %v8147_v47  ;;  %10395 = vst [vmem:[#allocation76_spill] sm:$0xff] %v8150_v45  ;;  %v8153_v48 = vld [vmem:[#allocation4 + $0x68] sm:$0xff]  ;;  %v8156_v42 = vld [vmem:[#allocation4 + $0x78] sm:$0xff] }
 0x70c   :  { %2717 = vmatprep.subr.mxu0 %v8141_v44  ;;  %2788 = vmatprep.subr.mxu1 %v8144_v33  ;;  %10396 = vst [vmem:[#allocation77_spill] sm:$0xff] %v8153_v48  ;;  %10397 = vst [vmem:[#allocation78_spill] sm:$0xff] %v8156_v42  ;;  %v8159_v44 = vld [vmem:[#allocation4 + $0x60] sm:$0xff]  ;;  %v8162_v33 = vld [vmem:[#allocation4 + $0x70] sm:$0xff] }
 0x70d   :  { %2718 = vmatpush1.msra.mxu0 %v8147_v47  ;;  %2789 = vmatpush1.msra.mxu1 %v8150_v45  ;;  %10398 = vst [vmem:[#allocation79_spill] sm:$0xff] %v8159_v44  ;;  %10399 = vst [vmem:[#allocation80_spill] sm:$0xff] %v8162_v33  ;;  %v8165_v47 = vld [vmem:[#allocation4 + $0x48] sm:$0xff]  ;;  %v8168_v45 = vld [vmem:[#allocation4 + $0x58] sm:$0xff] }
 0x70e   :  { %2719 = vmatprep.subr.mxu0 %v8153_v48  ;;  %2790 = vmatprep.subr.mxu1 %v8156_v42  ;;  %10400 = vst [vmem:[#allocation81_spill] sm:$0xff] %v8165_v47  ;;  %10401 = vst [vmem:[#allocation82_spill] sm:$0xff] %v8168_v45  ;;  %v8171_v48 = vld [vmem:[#allocation4 + $0x40] sm:$0xff]  ;;  %v8174_v42 = vld [vmem:[#allocation4 + $0x50] sm:$0xff] }
 0x70f   :  { %2720 = vmatpush1.msra.mxu0 %v8159_v44  ;;  %2791 = vmatpush1.msra.mxu1 %v8162_v33  ;;  %10402 = vst [vmem:[#allocation83_spill] sm:$0xff] %v8171_v48  ;;  %10403 = vst [vmem:[#allocation84_spill] sm:$0xff] %v8174_v42  ;;  %v8177_v44 = vld [vmem:[#allocation4 + $0x28] sm:$0xff]  ;;  %v8180_v33 = vld [vmem:[#allocation4 + $0x38] sm:$0xff] }
 0x710   :  { %2721 = vmatprep.subr.mxu0 %v8165_v47  ;;  %2792 = vmatprep.subr.mxu1 %v8168_v45  ;;  %10404 = vst [vmem:[#allocation85_spill] sm:$0xff] %v8177_v44  ;;  %10405 = vst [vmem:[#allocation86_spill] sm:$0xff] %v8180_v33  ;;  %v8183_v47 = vld [vmem:[#allocation4 + $0x20] sm:$0xff]  ;;  %v8186_v45 = vld [vmem:[#allocation4 + $0x30] sm:$0xff] }
 0x711   :  { %2722 = vmatpush1.msra.mxu0 %v8171_v48  ;;  %2793 = vmatpush1.msra.mxu1 %v8174_v42  ;;  %10406 = vst [vmem:[#allocation87_spill] sm:$0xff] %v8183_v47  ;;  %10407 = vst [vmem:[#allocation88_spill] sm:$0xff] %v8186_v45  ;;  %v8189_v48 = vld [vmem:[#allocation4 + $0x8] sm:$0xff]  ;;  %v8192_v42 = vld [vmem:[#allocation4 + $0x18] sm:$0xff] }
 0x712   :  { %2723 = vmatprep.subr.mxu0 %v8177_v44  ;;  %2794 = vmatprep.subr.mxu1 %v8180_v33  ;;  %10408 = vst [vmem:[#allocation89_spill] sm:$0xff] %v8189_v48  ;;  %10409 = vst [vmem:[#allocation90_spill] sm:$0xff] %v8192_v42  ;;  %v8195_v44 = vld [vmem:[#allocation4] sm:$0xff]  ;;  %v8198_v33 = vld [vmem:[#allocation4 + $0x10] sm:$0xff] }
 0x713   :  { %2724 = vmatpush1.msra.mxu0 %v8183_v47  ;;  %2795 = vmatpush1.msra.mxu1 %v8186_v45  ;;  %10410 = vst [vmem:[#allocation91_spill] sm:$0xff] %v8195_v44  ;;  %10411 = vst [vmem:[#allocation92_spill] sm:$0xff] %v8198_v33  ;;  %v8201_v47 = vld [vmem:[#allocation4 + $0x3e8] sm:$0xff]  ;;  %v8204_v45 = vld [vmem:[#allocation4 + $0x3f8] sm:$0xff] }
 0x714   :  { %2725 = vmatprep.subr.mxu0 %v8189_v48  ;;  %2796 = vmatprep.subr.mxu1 %v8192_v42  ;;  %10412 = vst [vmem:[#allocation93_spill] sm:$0xff] %v8201_v47  ;;  %10413 = vst [vmem:[#allocation94_spill] sm:$0xff] %v8204_v45  ;;  %v8207_v48 = vld [vmem:[#allocation4 + $0x3e0] sm:$0xff]  ;;  %v8210_v42 = vld [vmem:[#allocation4 + $0x3f0] sm:$0xff] }
 0x715   :  { %2726 = vmatpush1.msra.mxu0 %v8195_v44  ;;  %2797 = vmatpush1.msra.mxu1 %v8198_v33  ;;  %10414 = vst [vmem:[#allocation95_spill] sm:$0xff] %v8207_v48  ;;  %10415 = vst [vmem:[#allocation96_spill] sm:$0xff] %v8210_v42  ;;  %v8213_v44 = vld [vmem:[#allocation4 + $0x3c8] sm:$0xff]  ;;  %v8216_v33 = vld [vmem:[#allocation4 + $0x3d8] sm:$0xff] }
 0x716   :  { %2727 = vmatprep.subr.mxu0 %v8201_v47  ;;  %2798 = vmatprep.subr.mxu1 %v8204_v45  ;;  %10416 = vst [vmem:[#allocation97_spill] sm:$0xff] %v8213_v44  ;;  %10417 = vst [vmem:[#allocation98_spill] sm:$0xff] %v8216_v33  ;;  %v8219_v47 = vld [vmem:[#allocation4 + $0x3c0] sm:$0xff]  ;;  %v8222_v45 = vld [vmem:[#allocation4 + $0x3d0] sm:$0xff] }
 0x717   :  { %2728 = vmatpush2.msra.mxu0 %v8207_v48  ;;  %2799 = vmatpush2.msra.mxu1 %v8210_v42  ;;  %10418 = vst [vmem:[#allocation99_spill] sm:$0xff] %v8219_v47  ;;  %10419 = vst [vmem:[#allocation100_spill] sm:$0xff] %v8222_v45  ;;  %v8225_v48 = vld [vmem:[#allocation4 + $0x3a8] sm:$0xff]  ;;  %v8228_v42 = vld [vmem:[#allocation4 + $0x3b8] sm:$0xff] }
 0x718   :  { %2729 = vmatprep.subr.mxu0 %v8213_v44  ;;  %2800 = vmatprep.subr.mxu1 %v8216_v33  ;;  %10420 = vst [vmem:[#allocation101_spill] sm:$0xff] %v8225_v48  ;;  %10421 = vst [vmem:[#allocation102_spill] sm:$0xff] %v8228_v42  ;;  %v8231_v44 = vld [vmem:[#allocation4 + $0x3a0] sm:$0xff]  ;;  %v8234_v33 = vld [vmem:[#allocation4 + $0x3b0] sm:$0xff] }
 0x719   :  { %2730 = vmatpush2.msra.mxu0 %v8219_v47  ;;  %2801 = vmatpush2.msra.mxu1 %v8222_v45  ;;  %10422 = vst [vmem:[#allocation103_spill] sm:$0xff] %v8231_v44  ;;  %10423 = vst [vmem:[#allocation104_spill] sm:$0xff] %v8234_v33  ;;  %v8237_v47 = vld [vmem:[#allocation4 + $0x388] sm:$0xff]  ;;  %v8240_v45 = vld [vmem:[#allocation4 + $0x398] sm:$0xff] }
 0x71a   :  { %2731 = vmatprep.subr.mxu0 %v8225_v48  ;;  %2802 = vmatprep.subr.mxu1 %v8228_v42  ;;  %10424 = vst [vmem:[#allocation105_spill] sm:$0xff] %v8237_v47  ;;  %10425 = vst [vmem:[#allocation106_spill] sm:$0xff] %v8240_v45  ;;  %v8243_v48 = vld [vmem:[#allocation4 + $0x380] sm:$0xff]  ;;  %v8246_v42 = vld [vmem:[#allocation4 + $0x390] sm:$0xff] }
 0x71b   :  { %2732 = vmatpush2.msra.mxu0 %v8231_v44  ;;  %2803 = vmatpush2.msra.mxu1 %v8234_v33  ;;  %10426 = vst [vmem:[#allocation107_spill] sm:$0xff] %v8243_v48  ;;  %10427 = vst [vmem:[#allocation108_spill] sm:$0xff] %v8246_v42  ;;  %v8249_v44 = vld [vmem:[#allocation4 + $0x368] sm:$0xff]  ;;  %v8252_v33 = vld [vmem:[#allocation4 + $0x378] sm:$0xff] }
 0x71c   :  { %2733 = vmatprep.subr.mxu0 %v8237_v47  ;;  %2804 = vmatprep.subr.mxu1 %v8240_v45  ;;  %10428 = vst [vmem:[#allocation109_spill] sm:$0xff] %v8249_v44  ;;  %10429 = vst [vmem:[#allocation110_spill] sm:$0xff] %v8252_v33  ;;  %v8255_v47 = vld [vmem:[#allocation4 + $0x360] sm:$0xff]  ;;  %v8258_v45 = vld [vmem:[#allocation4 + $0x370] sm:$0xff] }
 0x71d   :  { %2734 = vmatpush2.msra.mxu0 %v8243_v48  ;;  %2805 = vmatpush2.msra.mxu1 %v8246_v42  ;;  %10430 = vst [vmem:[#allocation111_spill] sm:$0xff] %v8255_v47  ;;  %10431 = vst [vmem:[#allocation112_spill] sm:$0xff] %v8258_v45  ;;  %v8261_v48 = vld [vmem:[#allocation4 + $0x348] sm:$0xff]  ;;  %v8264_v42 = vld [vmem:[#allocation4 + $0x358] sm:$0xff] }
 0x71e   :  { %2735 = vmatprep.subr.mxu0 %v8249_v44  ;;  %2806 = vmatprep.subr.mxu1 %v8252_v33  ;;  %10432 = vst [vmem:[#allocation113_spill] sm:$0xff] %v8261_v48  ;;  %10433 = vst [vmem:[#allocation114_spill] sm:$0xff] %v8264_v42  ;;  %v8267_v44 = vld [vmem:[#allocation4 + $0x340] sm:$0xff]  ;;  %v8270_v33 = vld [vmem:[#allocation4 + $0x350] sm:$0xff] }
 0x71f   :  { %2736 = vmatpush2.msra.mxu0 %v8255_v47  ;;  %2807 = vmatpush2.msra.mxu1 %v8258_v45  ;;  %10434 = vst [vmem:[#allocation115_spill] sm:$0xff] %v8267_v44  ;;  %10435 = vst [vmem:[#allocation116_spill] sm:$0xff] %v8270_v33  ;;  %v8273_v47 = vld [vmem:[#allocation4 + $0x328] sm:$0xff]  ;;  %v8276_v45 = vld [vmem:[#allocation4 + $0x338] sm:$0xff] }
 0x720   :  { %2737 = vmatprep.subr.mxu0 %v8261_v48  ;;  %2808 = vmatprep.subr.mxu1 %v8264_v42  ;;  %10436 = vst [vmem:[#allocation117_spill] sm:$0xff] %v8273_v47  ;;  %10437 = vst [vmem:[#allocation118_spill] sm:$0xff] %v8276_v45  ;;  %v8279_v48 = vld [vmem:[#allocation4 + $0x320] sm:$0xff]  ;;  %v8282_v42 = vld [vmem:[#allocation4 + $0x330] sm:$0xff] }
 0x721   :  { %2738 = vmatpush2.msra.mxu0 %v8267_v44  ;;  %2809 = vmatpush2.msra.mxu1 %v8270_v33  ;;  %10438 = vst [vmem:[#allocation119_spill] sm:$0xff] %v8279_v48  ;;  %10439 = vst [vmem:[#allocation120_spill] sm:$0xff] %v8282_v42  ;;  %v8285_v44 = vld [vmem:[#allocation4 + $0x308] sm:$0xff]  ;;  %v8288_v33 = vld [vmem:[#allocation4 + $0x318] sm:$0xff] }
 0x722   :  { %2739 = vmatprep.subr.mxu0 %v8273_v47  ;;  %2810 = vmatprep.subr.mxu1 %v8276_v45  ;;  %10440 = vst [vmem:[#allocation121_spill] sm:$0xff] %v8285_v44  ;;  %10441 = vst [vmem:[#allocation122_spill] sm:$0xff] %v8288_v33  ;;  %v8291_v47 = vld [vmem:[#allocation4 + $0x300] sm:$0xff]  ;;  %v8294_v45 = vld [vmem:[#allocation4 + $0x310] sm:$0xff] }
 0x723   :  { %2740 = vmatpush2.msra.mxu0 %v8279_v48  ;;  %2811 = vmatpush2.msra.mxu1 %v8282_v42  ;;  %10442 = vst [vmem:[#allocation123_spill] sm:$0xff] %v8291_v47  ;;  %10443 = vst [vmem:[#allocation124_spill] sm:$0xff] %v8294_v45  ;;  %v8297_v48 = vld [vmem:[#allocation4 + $0x2e8] sm:$0xff]  ;;  %v8300_v42 = vld [vmem:[#allocation4 + $0x2f8] sm:$0xff] }
 0x724   :  { %2741 = vmatprep.subr.mxu0 %v8285_v44  ;;  %2812 = vmatprep.subr.mxu1 %v8288_v33  ;;  %10444 = vst [vmem:[#allocation125_spill] sm:$0xff] %v8297_v48  ;;  %10445 = vst [vmem:[#allocation126_spill] sm:$0xff] %v8300_v42  ;;  %v8303_v44 = vld [vmem:[#allocation4 + $0x2e0] sm:$0xff]  ;;  %v8306_v33 = vld [vmem:[#allocation4 + $0x2f0] sm:$0xff] }
 0x725   :  { %2742 = vmatpush2.msra.mxu0 %v8291_v47  ;;  %2813 = vmatpush2.msra.mxu1 %v8294_v45  ;;  %10446 = vst [vmem:[#allocation127_spill] sm:$0xff] %v8303_v44  ;;  %10447 = vst [vmem:[#allocation128_spill] sm:$0xff] %v8306_v33  ;;  %v8309_v47 = vld [vmem:[#allocation4 + $0x2c8] sm:$0xff]  ;;  %v8312_v45 = vld [vmem:[#allocation4 + $0x2d8] sm:$0xff] }
 0x726   :  { %2743 = vmatprep.subr.mxu0 %v8297_v48  ;;  %2814 = vmatprep.subr.mxu1 %v8300_v42  ;;  %10448 = vst [vmem:[#allocation129_spill] sm:$0xff] %v8309_v47  ;;  %10449 = vst [vmem:[#allocation130_spill] sm:$0xff] %v8312_v45  ;;  %v8315_v48 = vld [vmem:[#allocation4 + $0x2c0] sm:$0xff]  ;;  %v8318_v42 = vld [vmem:[#allocation4 + $0x2d0] sm:$0xff] }
 0x727   :  { %2744 = vmatpush2.msra.mxu0 %v8303_v44  ;;  %2815 = vmatpush2.msra.mxu1 %v8306_v33  ;;  %10450 = vst [vmem:[#allocation131_spill] sm:$0xff] %v8315_v48  ;;  %10451 = vst [vmem:[#allocation132_spill] sm:$0xff] %v8318_v42  ;;  %v8321_v44 = vld [vmem:[#allocation4 + $0x2a8] sm:$0xff]  ;;  %v8324_v33 = vld [vmem:[#allocation4 + $0x2b8] sm:$0xff] }
 0x728   :  { %2745 = vmatprep.subr.mxu0 %v8309_v47  ;;  %2816 = vmatprep.subr.mxu1 %v8312_v45  ;;  %10452 = vst [vmem:[#allocation133_spill] sm:$0xff] %v8321_v44  ;;  %10453 = vst [vmem:[#allocation134_spill] sm:$0xff] %v8324_v33  ;;  %v8327_v47 = vld [vmem:[#allocation4 + $0x2a0] sm:$0xff]  ;;  %v8330_v45 = vld [vmem:[#allocation4 + $0x2b0] sm:$0xff] }
 0x729   :  { %2746 = vmatpush2.msra.mxu0 %v8315_v48  ;;  %2817 = vmatpush2.msra.mxu1 %v8318_v42  ;;  %10454 = vst [vmem:[#allocation135_spill] sm:$0xff] %v8327_v47  ;;  %10455 = vst [vmem:[#allocation136_spill] sm:$0xff] %v8330_v45  ;;  %v8333_v48 = vld [vmem:[#allocation4 + $0x288] sm:$0xff]  ;;  %v8336_v42 = vld [vmem:[#allocation4 + $0x298] sm:$0xff] }
 0x72a   :  { %2747 = vmatprep.subr.mxu0 %v8321_v44  ;;  %2818 = vmatprep.subr.mxu1 %v8324_v33  ;;  %10456 = vst [vmem:[#allocation137_spill] sm:$0xff] %v8333_v48  ;;  %10457 = vst [vmem:[#allocation138_spill] sm:$0xff] %v8336_v42  ;;  %v8339_v44 = vld [vmem:[#allocation4 + $0x280] sm:$0xff]  ;;  %v8342_v33 = vld [vmem:[#allocation4 + $0x290] sm:$0xff] }
 0x72b   :  { %2748 = vmatpush2.msra.mxu0 %v8327_v47  ;;  %2819 = vmatpush2.msra.mxu1 %v8330_v45  ;;  %10458 = vst [vmem:[#allocation139_spill] sm:$0xff] %v8339_v44  ;;  %10459 = vst [vmem:[#allocation140_spill] sm:$0xff] %v8342_v33  ;;  %v8345_v47 = vld [vmem:[#allocation4 + $0x268] sm:$0xff]  ;;  %v8348_v45 = vld [vmem:[#allocation4 + $0x278] sm:$0xff] }
 0x72c   :  { %2749 = vmatprep.subr.mxu0 %v8333_v48  ;;  %2820 = vmatprep.subr.mxu1 %v8336_v42  ;;  %10460 = vst [vmem:[#allocation141_spill] sm:$0xff] %v8345_v47  ;;  %10461 = vst [vmem:[#allocation142_spill] sm:$0xff] %v8348_v45  ;;  %v8351_v48 = vld [vmem:[#allocation4 + $0x260] sm:$0xff]  ;;  %v8354_v42 = vld [vmem:[#allocation4 + $0x270] sm:$0xff] }
 0x72d   :  { %2750 = vmatpush2.msra.mxu0 %v8339_v44  ;;  %2821 = vmatpush2.msra.mxu1 %v8342_v33  ;;  %10462 = vst [vmem:[#allocation143_spill] sm:$0xff] %v8351_v48  ;;  %10463 = vst [vmem:[#allocation144_spill] sm:$0xff] %v8354_v42  ;;  %v8357_v44 = vld [vmem:[#allocation4 + $0x248] sm:$0xff]  ;;  %v8360_v33 = vld [vmem:[#allocation4 + $0x258] sm:$0xff] }
 0x72e   :  { %2751 = vmatprep.subr.mxu0 %v8345_v47  ;;  %2822 = vmatprep.subr.mxu1 %v8348_v45  ;;  %10464 = vst [vmem:[#allocation145_spill] sm:$0xff] %v8357_v44  ;;  %10465 = vst [vmem:[#allocation146_spill] sm:$0xff] %v8360_v33  ;;  %v8363_v47 = vld [vmem:[#allocation4 + $0x240] sm:$0xff]  ;;  %v8366_v45 = vld [vmem:[#allocation4 + $0x250] sm:$0xff] }
 0x72f   :  { %2752 = vmatpush2.msra.mxu0 %v8351_v48  ;;  %2823 = vmatpush2.msra.mxu1 %v8354_v42  ;;  %10466 = vst [vmem:[#allocation147_spill] sm:$0xff] %v8363_v47  ;;  %10467 = vst [vmem:[#allocation148_spill] sm:$0xff] %v8366_v45  ;;  %v8369_v48 = vld [vmem:[#allocation4 + $0x228] sm:$0xff]  ;;  %v8372_v42 = vld [vmem:[#allocation4 + $0x238] sm:$0xff] }
 0x730   :  { %2753 = vmatprep.subr.mxu0 %v8357_v44  ;;  %2824 = vmatprep.subr.mxu1 %v8360_v33  ;;  %10468 = vst [vmem:[#allocation149_spill] sm:$0xff] %v8369_v48  ;;  %10469 = vst [vmem:[#allocation150_spill] sm:$0xff] %v8372_v42  ;;  %v8375_v44 = vld [vmem:[#allocation4 + $0x220] sm:$0xff]  ;;  %v8378_v33 = vld [vmem:[#allocation4 + $0x230] sm:$0xff] }
 0x731   :  { %2754 = vmatpush2.msra.mxu0 %v8363_v47  ;;  %2825 = vmatpush2.msra.mxu1 %v8366_v45  ;;  %10470 = vst [vmem:[#allocation151_spill] sm:$0xff] %v8375_v44  ;;  %10471 = vst [vmem:[#allocation152_spill] sm:$0xff] %v8378_v33  ;;  %v8381_v47 = vld [vmem:[#allocation4 + $0x208] sm:$0xff]  ;;  %v8384_v45 = vld [vmem:[#allocation4 + $0x218] sm:$0xff] }
 0x732   :  { %2755 = vmatprep.subr.mxu0 %v8369_v48  ;;  %2826 = vmatprep.subr.mxu1 %v8372_v42  ;;  %10472 = vst [vmem:[#allocation153_spill] sm:$0xff] %v8381_v47  ;;  %10473 = vst [vmem:[#allocation154_spill] sm:$0xff] %v8384_v45  ;;  %v8387_v48 = vld [vmem:[#allocation4 + $0x200] sm:$0xff]  ;;  %v8390_v42 = vld [vmem:[#allocation4 + $0x210] sm:$0xff] }
 0x733   :  { %2756 = vmatpush2.msra.mxu0 %v8375_v44  ;;  %2827 = vmatpush2.msra.mxu1 %v8378_v33  ;;  %10474 = vst [vmem:[#allocation155_spill] sm:$0xff] %v8387_v48  ;;  %10475 = vst [vmem:[#allocation156_spill] sm:$0xff] %v8390_v42 }
 0x734   :  { %2757 = vmatprep.subr.mxu0 %v8381_v47  ;;  %2828 = vmatprep.subr.mxu1 %v8384_v45 }
 0x735   :  { %2758 = vmatpush2.msra.mxu0 %v8387_v48  ;;  %2829 = vmatpush2.msra.mxu1 %v8390_v42 }
 0x736   :  { %2863 = vmatprep.subr.mxu0 %v7614_v34  ;;  %2934 = vmatprep.subr.mxu1 %v7620_v43 }
 0x794   :  { %v2388_v33 = vpop.f32.mrf.mxu0  ;;  %v2459_v45 = vpop.f32.mrf.mxu1 }
 0x795   :  { %v2389_v44 = vadd.f32 %v2388_v33, %v10326_v41  ;;  %v2460_v48 = vadd.f32 %v2459_v45, %v10328_v61 }
 0x796   :  { %v2390_v47 = vpop.f32.mrf.mxu0  ;;  %v2461_v39 = vpop.f32.mrf.mxu1 }
 0x797   :  { %v2464_v30 = vmul.f32 0.5, %v2389_v44  ;;  %v2391_v37 = vadd.f32 %v2390_v47, %v10327_v46  ;;  %v2462_v42 = vadd.f32 %v2461_v39, %v10329_v54  ;;  %v2477_v47 = vld [vmem:[#allocation3 + $0x2] sm:$0x3] }
 0x799   :  { %3751 = vtanh.f32 %v2464_v30  ;;  %v2468_v19 = vmul.f32 0.5, %v2391_v37  ;;  %v2473_v34 = vmul.f32 0.5, %v2462_v42 }
 0x79b   :  { %3753 = vtanh.f32 %v2468_v19 }
 0x79c   :  { %3755 = vtanh.f32 %v2460_v48 }
 0x79d   :  { %3757 = vtanh.f32 %v2473_v34  ;;  %v3627_v34 = vld [vmem:[%s8824_s0 + $0x30] sm:$0xff] }
 0x7a6   :  { %v3752_v36 = vpop.eup %3751 }
 0x7a7   :  { %v2466_v43 = vmul.f32 0.5, %v3752_v36 }
 0x7a8   :  { %v3754_v26 = vpop.eup %3753 }
 0x7a9   :  { %v2467_v32 = vadd.f32 0.5, %v2466_v43  ;;  %v2470_v33 = vmul.f32 0.5, %v3754_v26  ;;  %v3756_v41 = vpop.eup %3755 }
 0x7aa   :  { %v3758_v48 = vpop.eup %3757 }
 0x7ab   :  { %v2471_v44 = vadd.f32 0.5, %v2470_v33  ;;  %v2479_v30 = vmul.f32 %v3756_v41, %v2467_v32  ;;  %v2475_v36 = vmul.f32 0.5, %v3758_v48 }
 0x7ad   :  { %v2478_v46 = vmul.f32 %v2477_v47, %v2471_v44 }
 0x7af   :  { %v2480_v37 = vadd.f32 %v2479_v30, %v2478_v46  ;;  %v2476_v46 = vadd.f32 0.5, %v2475_v36 }
 0x7b1   :  { %3759 = vtanh.f32 %v2480_v37  ;;  %2483 = vst [vmem:[#allocation3 + $0x2] sm:$0x3] %v2480_v37 }
 0x7b5   :  { %v2556_v19 = vpop.f32.mrf.mxu0  ;;  %v2627_v45 = vpop.f32.mrf.mxu1 }
 0x7b7   :  { %v2558_v61 = vpop.f32.mrf.mxu0  ;;  %v2629_v39 = vpop.f32.mrf.mxu1 }
 0x7b8   :  { %v2636_v42 = vcombine.low %v2556_v19, %v2558_v61  ;;  %v2637_v54 = vcombine.low %v2627_v45, %v2629_v39 }
 0x7ba   :  { %v2644_v43 = vrot.slane %v2636_v42, %v9735_v63  ;;  %v2651_v26 = vrot.slane %v2637_v54, %v9735_v63 }
 0x7bc   :  { %v2652_v41 = vcombine.low %v2644_v43, %v2651_v26 }
 0x7be   :  { %v3760_v32 = vpop.eup %3759  ;;  %v2654_v33 = vadd.f32 %v3627_v34, %v2652_v41  ;;  %v2675_v34 = vld [vmem:[#allocation3] sm:$0x3] }
 0x7bf   :  { %v2482_v44 = vmul.f32 %v3760_v32, %v2476_v46 }
 0x7c0   :  { %v2655_v47 = vmul.f32 0.5, %v2654_v33  ;;  %v2660_v30 = vrot.slane %v2654_v33, 2  ;;  %v2666_v54 = vrot.slane %v2654_v33, 4  ;;  %v2669_v37 = vrot.slane %v2654_v33, 6 }
 0x7c1   :  { %2484 = vst [vmem:[#allocation2 + $0x2] sm:$0x3] %v2482_v44  ;;  %3626 = vst [vmem:[%s8828_s4 + $0xa] sm:$0x3] %v2482_v44 }
 0x7c2   :  { %3761 = vtanh.f32 %v2655_v47  ;;  %v2662_v61 = vmul.f32 0.5, %v2660_v30  ;;  %v2671_v19 = vmul.f32 0.5, %v2669_v37 }
 0x7c4   :  { %3763 = vtanh.f32 %v2662_v61 }
 0x7c5   :  { %3765 = vtanh.f32 %v2666_v54 }
 0x7c6   :  { %3767 = vtanh.f32 %v2671_v19  ;;  %v10519_v19 = vld [vmem:[#allocation53_spill] sm:$0xff] }
 0x7cf   :  { %v3762_v45 = vpop.eup %3761 }
 0x7d0   :  { %v2657_v48 = vmul.f32 0.5, %v3762_v45  ;;  %v10520_v45 = vld [vmem:[#allocation54_spill] sm:$0xff] }
 0x7d1   :  { %v3764_v39 = vpop.eup %3763 }
 0x7d2   :  { %v2658_v42 = vadd.f32 0.5, %v2657_v48  ;;  %v2664_v36 = vmul.f32 0.5, %v3764_v39  ;;  %v3766_v26 = vpop.eup %3765  ;;  %v10521_v48 = vld [vmem:[#allocation55_spill] sm:$0xff]  ;;  %v10522_v39 = vld [vmem:[#allocation56_spill] sm:$0xff] }
 0x7d3   :  { %v3768_v44 = vpop.eup %3767 }
 0x7d4   :  { %v2665_v43 = vadd.f32 0.5, %v2664_v36  ;;  %v2677_v46 = vmul.f32 %v3766_v26, %v2658_v42  ;;  %v2673_v47 = vmul.f32 0.5, %v3768_v44  ;;  %v10523_v42 = vld [vmem:[#allocation57_spill] sm:$0xff]  ;;  %v10524_v36 = vld [vmem:[#allocation58_spill] sm:$0xff]  ;;  %v10526_v26 = vld [vmem:[#allocation60_spill] sm:$0xff] }
 0x7d5   :  { %v10531_v44 = vld [vmem:[#allocation65_spill] sm:$0xff] }
 0x7d6   :  { %v2676_v41 = vmul.f32 %v2675_v34, %v2665_v43  ;;  %v2674_v30 = vadd.f32 0.5, %v2673_v47  ;;  %v10525_v43 = vld [vmem:[#allocation59_spill] sm:$0xff]  ;;  %v10527_v34 = vld [vmem:[#allocation61_spill] sm:$0xff]  ;;  %v10532_v47 = vld [vmem:[#allocation66_spill] sm:$0xff] }
 0x7d8   :  { %v2678_v32 = vadd.f32 %v2677_v46, %v2676_v41  ;;  %v10528_v41 = vld [vmem:[#allocation62_spill] sm:$0xff]  ;;  %v10529_v46 = vld [vmem:[#allocation63_spill] sm:$0xff] }
 0x7da   :  { %3769 = vtanh.f32 %v2678_v32  ;;  %2681 = vst [vmem:[#allocation3] sm:$0x3] %v2678_v32  ;;  %v10530_v32 = vld [vmem:[#allocation64_spill] sm:$0xff] }
 0x7e7   :  { %v3770_v61 = vpop.eup %3769 }
 0x7e8   :  { %v2680_v33 = vmul.f32 %v3770_v61, %v2674_v30  ;;  %v10533_v30 = vld [vmem:[#allocation67_spill] sm:$0xff]  ;;  %v10534_v61 = vld [vmem:[#allocation68_spill] sm:$0xff] }
 0x7ea   :  { %2682 = vst [vmem:[#allocation2] sm:$0x3] %v2680_v33  ;;  %v10535_v33 = vld [vmem:[#allocation69_spill] sm:$0xff] }
 0x7f1   :  { %v3628_v54 = vld.sshfl [vmem:[#allocation2] sm:$0x33 pattern:$0x76325410] }
 0x7f2   :  { %v2692_v37 = vcombine.high %v3628_v54, %v3628_v54 }
 0x7f4   :  { %2759 = vmatprep.mubr.f32.mxu0 %v2692_v37  ;;  %2830 = vmatprep.mubr.f32.mxu1 %v2692_v37  ;;  %v10537_v37 = vld [vmem:[#allocation71_spill] sm:$0xff] }
 0x7f5   :  { %2760 = vmatmul.mubr.f32.vlgmr.msra.gmra.mxu0 %v3628_v54  ;;  %2831 = vmatmul.mubr.f32.vlgmr.msra.gmra.mxu1 %v3628_v54  ;;  %v10536_v54 = vld [vmem:[#allocation70_spill] sm:$0xff] }
 0x7f6   :  { %2864 = vmatpush1.msra.mxu0 %v7638_v49  ;;  %2935 = vmatpush1.msra.mxu1 %v7644_v55  ;;  %v10476_v49 = vld [vmem:[#allocation11_spill] sm:$0xff]  ;;  %v10477_v55 = vld [vmem:[#allocation12_spill] sm:$0xff] }
 0x7f7   :  { %2865 = vmatprep.subr.mxu0 %v7650_v53  ;;  %2936 = vmatprep.subr.mxu1 %v7656_v58  ;;  %v10478_v53 = vld [vmem:[#allocation13_spill] sm:$0xff]  ;;  %v10479_v58 = vld [vmem:[#allocation14_spill] sm:$0xff] }
 0x7f8   :  { %2866 = vmatpush1.msra.mxu0 %v7662_v56  ;;  %2937 = vmatpush1.msra.mxu1 %v7668_v52  ;;  %v10480_v56 = vld [vmem:[#allocation15_spill] sm:$0xff]  ;;  %v10481_v52 = vld [vmem:[#allocation16_spill] sm:$0xff] }
 0x7f9   :  { %2867 = vmatprep.subr.mxu0 %v7674_v0  ;;  %2938 = vmatprep.subr.mxu1 %v7680_v1  ;;  %v10482_v0 = vld [vmem:[#allocation17_spill] sm:$0xff]  ;;  %v10483_v1 = vld [vmem:[#allocation18_spill] sm:$0xff] }
 0x7fa   :  { %2868 = vmatpush1.msra.mxu0 %v7686_v62  ;;  %2939 = vmatpush1.msra.mxu1 %v7692_v9  ;;  %v10484_v62 = vld [vmem:[#allocation19_spill] sm:$0xff]  ;;  %v10485_v9 = vld [vmem:[#allocation20_spill] sm:$0xff] }
 0x7fb   :  { %2869 = vmatprep.subr.mxu0 %v7698_v12  ;;  %2940 = vmatprep.subr.mxu1 %v7704_v60  ;;  %v10486_v12 = vld [vmem:[#allocation21_spill] sm:$0xff]  ;;  %v10487_v60 = vld [vmem:[#allocation22_spill] sm:$0xff] }
 0x7fc   :  { %2870 = vmatpush1.msra.mxu0 %v7710_v7  ;;  %2941 = vmatpush1.msra.mxu1 %v7716_v59  ;;  %v10488_v7 = vld [vmem:[#allocation23_spill] sm:$0xff]  ;;  %v10489_v59 = vld [vmem:[#allocation24_spill] sm:$0xff] }
 0x7fd   :  { %2871 = vmatprep.subr.mxu0 %v7722_v4  ;;  %2942 = vmatprep.subr.mxu1 %v7728_v50  ;;  %v10490_v4 = vld [vmem:[#allocation25_spill] sm:$0xff]  ;;  %v10491_v50 = vld [vmem:[#allocation26_spill] sm:$0xff] }
 0x7fe   :  { %2872 = vmatpush1.msra.mxu0 %v7734_v3  ;;  %2943 = vmatpush1.msra.mxu1 %v7740_v6  ;;  %v10492_v3 = vld [vmem:[#allocation27_spill] sm:$0xff]  ;;  %v10493_v6 = vmov 0.0  }
 0x7ff   :  { %2873 = vmatprep.subr.mxu0 %v7746_v10  ;;  %2944 = vmatprep.subr.mxu1 %v7752_v51  ;;  %v10494_v10 = vld [vmem:[#allocation28_spill] sm:$0xff]  ;;  %v2862_v51 = vld [vmem:[#allocation2] sm:$0x3] }
 0x800   :  { %2874 = vmatpush1.msra.mxu0 %v7758_v8  ;;  %2945 = vmatpush1.msra.mxu1 %v7764_v11  ;;  %v10495_v8 = vld [vmem:[#allocation29_spill] sm:$0xff]  ;;  %v10496_v11 = vld [vmem:[#allocation30_spill] sm:$0xff] }
 0x801   :  { %2875 = vmatprep.subr.mxu0 %v7770_v2  ;;  %2946 = vmatprep.subr.mxu1 %v7776_v14  ;;  %v10497_v2 = vld [vmem:[#allocation31_spill] sm:$0xff]  ;;  %v10498_v14 = vld [vmem:[#allocation32_spill] sm:$0xff] }
 0x802   :  { %2876 = vmatpush1.msra.mxu0 %v7782_v5  ;;  %2947 = vmatpush1.msra.mxu1 %v7788_v17  ;;  %v10499_v5 = vld [vmem:[#allocation33_spill] sm:$0xff]  ;;  %v10500_v17 = vld [vmem:[#allocation34_spill] sm:$0xff] }
 0x803   :  { %2877 = vmatprep.subr.mxu0 %v7794_v57  ;;  %2948 = vmatprep.subr.mxu1 %v7800_v13  ;;  %v10501_v57 = vld [vmem:[#allocation35_spill] sm:$0xff]  ;;  %v10502_v13 = vld [vmem:[#allocation36_spill] sm:$0xff] }
 0x804   :  { %2878 = vmatpush1.msra.mxu0 %v7806_v15  ;;  %2949 = vmatpush1.msra.mxu1 %v7812_v16  ;;  %v10503_v15 = vld [vmem:[#allocation37_spill] sm:$0xff]  ;;  %v10504_v16 = vld [vmem:[#allocation38_spill] sm:$0xff] }
 0x805   :  { %2879 = vmatprep.subr.mxu0 %v7818_v18  ;;  %2950 = vmatprep.subr.mxu1 %v7824_v20  ;;  %v10505_v18 = vld [vmem:[#allocation39_spill] sm:$0xff]  ;;  %v10506_v20 = vld [vmem:[#allocation40_spill] sm:$0xff] }
 0x806   :  { %2880 = vmatpush1.msra.mxu0 %v7830_v21  ;;  %2951 = vmatpush1.msra.mxu1 %v7836_v22  ;;  %v10507_v21 = vld [vmem:[#allocation41_spill] sm:$0xff]  ;;  %v10508_v22 = vld [vmem:[#allocation42_spill] sm:$0xff] }
 0x807   :  { %2881 = vmatprep.subr.mxu0 %v7842_v23  ;;  %2952 = vmatprep.subr.mxu1 %v7848_v31  ;;  %v10509_v23 = vld [vmem:[#allocation43_spill] sm:$0xff]  ;;  %v10510_v31 = vld [vmem:[#allocation44_spill] sm:$0xff] }
 0x808   :  { %2882 = vmatpush1.msra.mxu0 %v7854_v38  ;;  %2953 = vmatpush1.msra.mxu1 %v7860_v40  ;;  %v10511_v38 = vld [vmem:[#allocation45_spill] sm:$0xff]  ;;  %v10512_v40 = vld [vmem:[#allocation46_spill] sm:$0xff] }
 0x809   :  { %2883 = vmatprep.subr.mxu0 %v7866_v29  ;;  %2954 = vmatprep.subr.mxu1 %v7872_v35  ;;  %v10513_v29 = vld [vmem:[#allocation47_spill] sm:$0xff]  ;;  %v10514_v35 = vld [vmem:[#allocation48_spill] sm:$0xff] }
 0x80a   :  { %2884 = vmatpush1.msra.mxu0 %v7878_v28  ;;  %2955 = vmatpush1.msra.mxu1 %v7884_v25  ;;  %v10515_v28 = vld [vmem:[#allocation49_spill] sm:$0xff]  ;;  %v10516_v25 = vld [vmem:[#allocation50_spill] sm:$0xff] }
 0x80b   :  { %2885 = vmatprep.subr.mxu0 %v7890_v27  ;;  %2956 = vmatprep.subr.mxu1 %v7896_v24  ;;  %v10517_v27 = vld [vmem:[#allocation51_spill] sm:$0xff]  ;;  %v10518_v24 = vld [vmem:[#allocation52_spill] sm:$0xff] }
 0x80c   :  { %2886 = vmatpush1.msra.mxu0 %v10476_v49  ;;  %2957 = vmatpush1.msra.mxu1 %v10477_v55  ;;  %v10538_v49 = vld [vmem:[#allocation72_spill] sm:$0xff]  ;;  %v10539_v55 = vld [vmem:[#allocation73_spill] sm:$0xff] }
 0x80d   :  { %2887 = vmatprep.subr.mxu0 %v10478_v53  ;;  %2958 = vmatprep.subr.mxu1 %v10479_v58  ;;  %v10540_v53 = vld [vmem:[#allocation74_spill] sm:$0xff]  ;;  %v10541_v58 = vld [vmem:[#allocation75_spill] sm:$0xff] }
 0x80e   :  { %2888 = vmatpush1.msra.mxu0 %v10480_v56  ;;  %2959 = vmatpush1.msra.mxu1 %v10481_v52  ;;  %v10542_v56 = vld [vmem:[#allocation76_spill] sm:$0xff]  ;;  %v10543_v52 = vld [vmem:[#allocation77_spill] sm:$0xff] }
 0x80f   :  { %2889 = vmatprep.subr.mxu0 %v10482_v0  ;;  %2960 = vmatprep.subr.mxu1 %v10483_v1  ;;  %v10544_v0 = vld [vmem:[#allocation78_spill] sm:$0xff]  ;;  %v10545_v1 = vld [vmem:[#allocation79_spill] sm:$0xff] }
 0x810   :  { %2890 = vmatpush1.msra.mxu0 %v10484_v62  ;;  %2961 = vmatpush1.msra.mxu1 %v10485_v9  ;;  %v10546_v62 = vld [vmem:[#allocation80_spill] sm:$0xff]  ;;  %v10547_v9 = vld [vmem:[#allocation81_spill] sm:$0xff] }
 0x811   :  { %2891 = vmatprep.subr.mxu0 %v10486_v12  ;;  %2962 = vmatprep.subr.mxu1 %v10487_v60  ;;  %v10548_v12 = vld [vmem:[#allocation82_spill] sm:$0xff]  ;;  %v10549_v60 = vld [vmem:[#allocation83_spill] sm:$0xff] }
 0x812   :  { %2892 = vmatpush1.msra.mxu0 %v10488_v7  ;;  %2963 = vmatpush1.msra.mxu1 %v10489_v59  ;;  %v10550_v7 = vld [vmem:[#allocation84_spill] sm:$0xff]  ;;  %v10551_v59 = vld [vmem:[#allocation85_spill] sm:$0xff] }
 0x813   :  { %2893 = vmatprep.subr.mxu0 %v10490_v4  ;;  %2964 = vmatprep.subr.mxu1 %v10491_v50  ;;  %v10552_v4 = vld [vmem:[#allocation86_spill] sm:$0xff]  ;;  %v10553_v50 = vld [vmem:[#allocation87_spill] sm:$0xff] }
 0x814   :  { %2894 = vmatpush1.msra.mxu0 %v10492_v3  ;;  %2927 = vmatprep.mubr.f32.mxu0 %v10493_v6  ;;  %v10554_v3 = vld [vmem:[#allocation88_spill] sm:$0xff] }
 0x815   :  { %2965 = vmatpush1.msra.mxu1 %v10494_v10  ;;  %2998 = vmatprep.mubr.f32.mxu1 %v10493_v6  ;;  %v10555_v10 = vld [vmem:[#allocation89_spill] sm:$0xff] }
 0x816   :  { %2928 = vmatmul.mubr.f32.vlgmr.msra.gmra.mxu0 %v2862_v51  ;;  %2999 = vmatmul.mubr.f32.vlgmr.msra.gmra.mxu1 %v2862_v51  ;;  %v10556_v51 = vld [vmem:[#allocation90_spill] sm:$0xff] }
 0x817   :  { %3068 = vmatprep.subr.mxu0 %v10495_v8  ;;  %3139 = vmatprep.subr.mxu1 %v10496_v11  ;;  %v10557_v8 = vld [vmem:[#allocation91_spill] sm:$0xff]  ;;  %v10558_v11 = vld [vmem:[#allocation92_spill] sm:$0xff] }
 0x818   :  { %3069 = vmatpush1.msra.mxu0 %v10497_v2  ;;  %3140 = vmatpush1.msra.mxu1 %v10498_v14  ;;  %v10559_v2 = vld [vmem:[#allocation93_spill] sm:$0xff]  ;;  %v10560_v14 = vld [vmem:[#allocation94_spill] sm:$0xff] }
 0x819   :  { %3070 = vmatprep.subr.mxu0 %v10499_v5  ;;  %3141 = vmatprep.subr.mxu1 %v10500_v17  ;;  %v10561_v5 = vld [vmem:[#allocation95_spill] sm:$0xff]  ;;  %v10562_v17 = vld [vmem:[#allocation96_spill] sm:$0xff] }
 0x81a   :  { %3071 = vmatpush1.msra.mxu0 %v10501_v57  ;;  %3142 = vmatpush1.msra.mxu1 %v10502_v13  ;;  %v10563_v57 = vld [vmem:[#allocation97_spill] sm:$0xff]  ;;  %v10564_v13 = vld [vmem:[#allocation98_spill] sm:$0xff] }
 0x81b   :  { %3072 = vmatprep.subr.mxu0 %v10503_v15  ;;  %3143 = vmatprep.subr.mxu1 %v10504_v16  ;;  %v10565_v15 = vld [vmem:[#allocation99_spill] sm:$0xff]  ;;  %v10566_v16 = vld [vmem:[#allocation100_spill] sm:$0xff] }
 0x81c   :  { %3073 = vmatpush1.msra.mxu0 %v10505_v18  ;;  %3144 = vmatpush1.msra.mxu1 %v10506_v20  ;;  %v10567_v18 = vld [vmem:[#allocation101_spill] sm:$0xff]  ;;  %v10568_v20 = vld [vmem:[#allocation102_spill] sm:$0xff] }
 0x81d   :  { %3074 = vmatprep.subr.mxu0 %v10507_v21  ;;  %3145 = vmatprep.subr.mxu1 %v10508_v22  ;;  %v10569_v21 = vld [vmem:[#allocation103_spill] sm:$0xff]  ;;  %v10570_v22 = vld [vmem:[#allocation104_spill] sm:$0xff] }
 0x81e   :  { %3075 = vmatpush1.msra.mxu0 %v10509_v23  ;;  %3146 = vmatpush1.msra.mxu1 %v10510_v31  ;;  %v10571_v23 = vld [vmem:[#allocation105_spill] sm:$0xff]  ;;  %v10572_v31 = vld [vmem:[#allocation106_spill] sm:$0xff] }
 0x81f   :  { %3076 = vmatprep.subr.mxu0 %v10511_v38  ;;  %3147 = vmatprep.subr.mxu1 %v10512_v40  ;;  %v10573_v38 = vld [vmem:[#allocation107_spill] sm:$0xff]  ;;  %v10574_v40 = vld [vmem:[#allocation108_spill] sm:$0xff] }
 0x820   :  { %3077 = vmatpush1.msra.mxu0 %v10513_v29  ;;  %3148 = vmatpush1.msra.mxu1 %v10514_v35  ;;  %v10575_v29 = vld [vmem:[#allocation109_spill] sm:$0xff]  ;;  %v10576_v35 = vld [vmem:[#allocation110_spill] sm:$0xff] }
 0x821   :  { %3078 = vmatprep.subr.mxu0 %v10515_v28  ;;  %3149 = vmatprep.subr.mxu1 %v10516_v25  ;;  %v10577_v28 = vld [vmem:[#allocation111_spill] sm:$0xff]  ;;  %v10578_v25 = vld [vmem:[#allocation112_spill] sm:$0xff] }
 0x822   :  { %3079 = vmatpush1.msra.mxu0 %v10517_v27  ;;  %3150 = vmatpush1.msra.mxu1 %v10518_v24  ;;  %v10579_v27 = vld [vmem:[#allocation113_spill] sm:$0xff]  ;;  %v10580_v24 = vld [vmem:[#allocation114_spill] sm:$0xff] }
 0x823   :  { %3080 = vmatprep.subr.mxu0 %v10519_v19  ;;  %3151 = vmatprep.subr.mxu1 %v10520_v45  ;;  %v10581_v19 = vld [vmem:[#allocation115_spill] sm:$0xff]  ;;  %v10582_v45 = vld [vmem:[#allocation116_spill] sm:$0xff] }
 0x824   :  { %3081 = vmatpush1.msra.mxu0 %v10521_v48  ;;  %3152 = vmatpush1.msra.mxu1 %v10522_v39  ;;  %v10583_v48 = vld [vmem:[#allocation117_spill] sm:$0xff]  ;;  %v10584_v39 = vld [vmem:[#allocation118_spill] sm:$0xff] }
 0x825   :  { %3082 = vmatprep.subr.mxu0 %v10523_v42  ;;  %3153 = vmatprep.subr.mxu1 %v10524_v36  ;;  %v10585_v42 = vld [vmem:[#allocation119_spill] sm:$0xff]  ;;  %v10586_v36 = vld [vmem:[#allocation120_spill] sm:$0xff] }
 0x826   :  { %3083 = vmatpush1.msra.mxu0 %v10525_v43  ;;  %3154 = vmatpush1.msra.mxu1 %v10526_v26  ;;  %v10587_v43 = vld [vmem:[#allocation121_spill] sm:$0xff]  ;;  %v10588_v26 = vld [vmem:[#allocation122_spill] sm:$0xff] }
 0x827   :  { %3084 = vmatprep.subr.mxu0 %v10527_v34  ;;  %3155 = vmatprep.subr.mxu1 %v10528_v41  ;;  %v10589_v34 = vld [vmem:[#allocation123_spill] sm:$0xff]  ;;  %v10590_v41 = vld [vmem:[#allocation124_spill] sm:$0xff] }
 0x828   :  { %3085 = vmatpush1.msra.mxu0 %v10529_v46  ;;  %3156 = vmatpush1.msra.mxu1 %v10530_v32  ;;  %v10591_v46 = vld [vmem:[#allocation125_spill] sm:$0xff]  ;;  %v10592_v32 = vld [vmem:[#allocation126_spill] sm:$0xff] }
 0x829   :  { %3086 = vmatprep.subr.mxu0 %v10531_v44  ;;  %3157 = vmatprep.subr.mxu1 %v10532_v47  ;;  %v10593_v44 = vld [vmem:[#allocation127_spill] sm:$0xff]  ;;  %v10594_v47 = vld [vmem:[#allocation128_spill] sm:$0xff] }
 0x82a   :  { %3087 = vmatpush1.msra.mxu0 %v10533_v30  ;;  %3158 = vmatpush1.msra.mxu1 %v10534_v61  ;;  %v10595_v30 = vld [vmem:[#allocation129_spill] sm:$0xff]  ;;  %v10596_v61 = vld [vmem:[#allocation130_spill] sm:$0xff] }
 0x82b   :  { %3088 = vmatprep.subr.mxu0 %v10535_v33  ;;  %3159 = vmatprep.subr.mxu1 %v10536_v54  ;;  %v10597_v33 = vld [vmem:[#allocation131_spill] sm:$0xff]  ;;  %v10598_v54 = vld [vmem:[#allocation132_spill] sm:$0xff] }
 0x82c   :  { %3089 = vmatpush1.msra.mxu0 %v10537_v37  ;;  %3160 = vmatpush1.msra.mxu1 %v10538_v49  ;;  %v10599_v37 = vld [vmem:[#allocation133_spill] sm:$0xff]  ;;  %v10600_v49 = vld [vmem:[#allocation134_spill] sm:$0xff] }
 0x82d   :  { %3090 = vmatprep.subr.mxu0 %v10539_v55  ;;  %3161 = vmatprep.subr.mxu1 %v10540_v53  ;;  %v10601_v55 = vld [vmem:[#allocation135_spill] sm:$0xff]  ;;  %v10602_v53 = vld [vmem:[#allocation136_spill] sm:$0xff] }
 0x82e   :  { %3091 = vmatpush1.msra.mxu0 %v10541_v58  ;;  %3162 = vmatpush1.msra.mxu1 %v10542_v56  ;;  %v10603_v58 = vld [vmem:[#allocation137_spill] sm:$0xff]  ;;  %v10604_v56 = vld [vmem:[#allocation138_spill] sm:$0xff] }
 0x82f   :  { %3092 = vmatprep.subr.mxu0 %v10543_v52  ;;  %3163 = vmatprep.subr.mxu1 %v10544_v0  ;;  %v10605_v52 = vld [vmem:[#allocation139_spill] sm:$0xff]  ;;  %v10606_v0 = vld [vmem:[#allocation140_spill] sm:$0xff] }
 0x830   :  { %3093 = vmatpush1.msra.mxu0 %v10545_v1  ;;  %3164 = vmatpush1.msra.mxu1 %v10546_v62  ;;  %v10607_v1 = vld [vmem:[#allocation141_spill] sm:$0xff]  ;;  %v10608_v62 = vld [vmem:[#allocation142_spill] sm:$0xff] }
 0x831   :  { %3094 = vmatprep.subr.mxu0 %v10547_v9  ;;  %3165 = vmatprep.subr.mxu1 %v10548_v12  ;;  %v10609_v9 = vld [vmem:[#allocation143_spill] sm:$0xff]  ;;  %v10610_v12 = vld [vmem:[#allocation144_spill] sm:$0xff] }
 0x832   :  { %3095 = vmatpush1.msra.mxu0 %v10549_v60  ;;  %3166 = vmatpush1.msra.mxu1 %v10550_v7  ;;  %v10611_v60 = vld [vmem:[#allocation145_spill] sm:$0xff]  ;;  %v10612_v7 = vld [vmem:[#allocation146_spill] sm:$0xff] }
 0x833   :  { %3096 = vmatprep.subr.mxu0 %v10551_v59  ;;  %3167 = vmatprep.subr.mxu1 %v10552_v4  ;;  %v10613_v59 = vld [vmem:[#allocation147_spill] sm:$0xff]  ;;  %v10614_v4 = vld [vmem:[#allocation148_spill] sm:$0xff] }
 0x834   :  { %3097 = vmatpush1.msra.mxu0 %v10553_v50  ;;  %3168 = vmatpush1.msra.mxu1 %v10554_v3  ;;  %v10615_v50 = vld [vmem:[#allocation149_spill] sm:$0xff]  ;;  %v10616_v3 = vld [vmem:[#allocation150_spill] sm:$0xff] }
 0x835   :  { %3098 = vmatprep.subr.mxu0 %v10555_v10  ;;  %3169 = vmatprep.subr.mxu1 %v10556_v51  ;;  %v10617_v10 = vld [vmem:[#allocation151_spill] sm:$0xff]  ;;  %v10618_v51 = vld [vmem:[#allocation152_spill] sm:$0xff] }
 0x836   :  { %3099 = vmatpush1.msra.mxu0 %v10557_v8  ;;  %3170 = vmatpush1.msra.mxu1 %v10558_v11  ;;  %v10619_v8 = vld [vmem:[#allocation153_spill] sm:$0xff]  ;;  %v10620_v11 = vld [vmem:[#allocation154_spill] sm:$0xff] }
 0x837   :  { %3100 = vmatprep.subr.mxu0 %v10559_v2  ;;  %3171 = vmatprep.subr.mxu1 %v10560_v14  ;;  %v10621_v2 = vld [vmem:[#allocation155_spill] sm:$0xff]  ;;  %v10622_v14 = vld [vmem:[#allocation156_spill] sm:$0xff] }
 0x838   :  { %3101 = vmatpush2.msra.mxu0 %v10561_v5  ;;  %3172 = vmatpush2.msra.mxu1 %v10562_v17  ;;  %v4397_v5 = vld [vmem:[%s8825_s1 + $0x1e8] sm:$0xff]  ;;  %v4398_v17 = vld [vmem:[%s8825_s1 + $0x1f8] sm:$0xff] }
 0x839   :  { %3102 = vmatprep.subr.mxu0 %v10563_v57  ;;  %3173 = vmatprep.subr.mxu1 %v10564_v13  ;;  %v10623_v13 = vld [vmem:[#allocation7_spill] sm:$0xff] }
 0x83a   :  { %3103 = vmatpush2.msra.mxu0 %v10565_v15  ;;  %3174 = vmatpush2.msra.mxu1 %v10566_v16 }
 0x83b   :  { %3104 = vmatprep.subr.mxu0 %v10567_v18  ;;  %3175 = vmatprep.subr.mxu1 %v10568_v20  ;;  %v10624_v20 = vld [vmem:[#allocation8_spill] sm:$0xff] }
 0x83c   :  { %3105 = vmatpush2.msra.mxu0 %v10569_v21  ;;  %3176 = vmatpush2.msra.mxu1 %v10570_v22 }
 0x83d   :  { %3106 = vmatprep.subr.mxu0 %v10571_v23  ;;  %3177 = vmatprep.subr.mxu1 %v10572_v31  ;;  %v10625_v31 = vld [vmem:[#allocation9_spill] sm:$0xff] }
 0x83e   :  { %3107 = vmatpush2.msra.mxu0 %v10573_v38  ;;  %3178 = vmatpush2.msra.mxu1 %v10574_v40 }
 0x83f   :  { %3108 = vmatprep.subr.mxu0 %v10575_v29  ;;  %3179 = vmatprep.subr.mxu1 %v10576_v35  ;;  %v10626_v29 = vld [vmem:[#allocation10_spill] sm:$0xff] }
 0x840   :  { %3109 = vmatpush2.msra.mxu0 %v10577_v28  ;;  %3180 = vmatpush2.msra.mxu1 %v10578_v25 }
 0x841   :  { %3110 = vmatprep.subr.mxu0 %v10579_v27  ;;  %3181 = vmatprep.subr.mxu1 %v10580_v24 }
 0x842   :  { %3111 = vmatpush2.msra.mxu0 %v10581_v19  ;;  %3182 = vmatpush2.msra.mxu1 %v10582_v45 }
 0x843   :  { %3112 = vmatprep.subr.mxu0 %v10583_v48  ;;  %3183 = vmatprep.subr.mxu1 %v10584_v39 }
 0x844   :  { %3113 = vmatpush2.msra.mxu0 %v10585_v42  ;;  %3184 = vmatpush2.msra.mxu1 %v10586_v36  ;;  %v2850_v42 = vld [vmem:[#allocation3 + $0x2] sm:$0x3] }
 0x845   :  { %3114 = vmatprep.subr.mxu0 %v10587_v43  ;;  %3185 = vmatprep.subr.mxu1 %v10588_v26 }
 0x846   :  { %3115 = vmatpush2.msra.mxu0 %v10589_v34  ;;  %3186 = vmatpush2.msra.mxu1 %v10590_v41 }
 0x847   :  { %3116 = vmatprep.subr.mxu0 %v10591_v46  ;;  %3187 = vmatprep.subr.mxu1 %v10592_v32 }
 0x848   :  { %3117 = vmatpush2.msra.mxu0 %v10593_v44  ;;  %3188 = vmatpush2.msra.mxu1 %v10594_v47 }
 0x849   :  { %3118 = vmatprep.subr.mxu0 %v10595_v30  ;;  %3189 = vmatprep.subr.mxu1 %v10596_v61 }
 0x84a   :  { %3119 = vmatpush2.msra.mxu0 %v10597_v33  ;;  %3190 = vmatpush2.msra.mxu1 %v10598_v54 }
 0x84b   :  { %3120 = vmatprep.subr.mxu0 %v10599_v37  ;;  %3191 = vmatprep.subr.mxu1 %v10600_v49  ;;  %v3630_v37 = vld [vmem:[%s8824_s0 + $0x38] sm:$0xff] }
 0x84c   :  { %3121 = vmatpush2.msra.mxu0 %v10601_v55  ;;  %3192 = vmatpush2.msra.mxu1 %v10602_v53 }
 0x84d   :  { %3122 = vmatprep.subr.mxu0 %v10603_v58  ;;  %3193 = vmatprep.subr.mxu1 %v10604_v56 }
 0x84e   :  { %3123 = vmatpush2.msra.mxu0 %v10605_v52  ;;  %3194 = vmatpush2.msra.mxu1 %v10606_v0 }
 0x84f   :  { %3124 = vmatprep.subr.mxu0 %v10607_v1  ;;  %3195 = vmatprep.subr.mxu1 %v10608_v62 }
 0x850   :  { %3125 = vmatpush2.msra.mxu0 %v10609_v9  ;;  %3196 = vmatpush2.msra.mxu1 %v10610_v12 }
 0x851   :  { %3126 = vmatprep.subr.mxu0 %v10611_v60  ;;  %3197 = vmatprep.subr.mxu1 %v10612_v7 }
 0x852   :  { %3127 = vmatpush2.msra.mxu0 %v10613_v59  ;;  %3198 = vmatpush2.msra.mxu1 %v10614_v4 }
 0x853   :  { %3128 = vmatprep.subr.mxu0 %v10615_v50  ;;  %3199 = vmatprep.subr.mxu1 %v10616_v3 }
 0x854   :  { %3129 = vmatpush2.msra.mxu0 %v10617_v10  ;;  %3200 = vmatpush2.msra.mxu1 %v10618_v51  ;;  %v3048_v51 = vld [vmem:[#allocation3] sm:$0x3] }
 0x855   :  { %3130 = vmatprep.subr.mxu0 %v10619_v8  ;;  %3201 = vmatprep.subr.mxu1 %v10620_v11 }
 0x856   :  { %3131 = vmatpush2.msra.mxu0 %v10621_v2  ;;  %3202 = vmatpush2.msra.mxu1 %v10622_v14 }
 0x857   :  { %3236 = vmatprep.subr.mxu0 %v4397_v5  ;;  %3307 = vmatprep.subr.mxu1 %v4398_v17 }
 0x8b5   :  { %v2761_v57 = vpop.f32.mrf.mxu0  ;;  %v2832_v22 = vpop.f32.mrf.mxu1 }
 0x8b6   :  { %v2762_v15 = vadd.f32 %v2761_v57, %v10623_v13  ;;  %v2833_v38 = vadd.f32 %v2832_v22, %v10625_v31  ;;  %v4400_v22 = vld [vmem:[%s8825_s1 + $0x1f0] sm:$0xff] }
 0x8b7   :  { %v2763_v16 = vpop.f32.mrf.mxu0  ;;  %v2834_v40 = vpop.f32.mrf.mxu1 }
 0x8b8   :  { %v2837_v18 = vmul.f32 0.5, %v2762_v15  ;;  %v2764_v21 = vadd.f32 %v2763_v16, %v10624_v20  ;;  %v2835_v35 = vadd.f32 %v2834_v40, %v10626_v29  ;;  %v4403_v40 = vld [vmem:[%s8825_s1 + $0x1c0] sm:$0xff] }
 0x8ba   :  { %3771 = vtanh.f32 %v2837_v18  ;;  %v2841_v23 = vmul.f32 0.5, %v2764_v21  ;;  %v2846_v28 = vmul.f32 0.5, %v2835_v35  ;;  %v4399_v21 = vld [vmem:[%s8825_s1 + $0x1e0] sm:$0xff]  ;;  %v4404_v35 = vld [vmem:[%s8825_s1 + $0x1d0] sm:$0xff] }
 0x8bc   :  { %3773 = vtanh.f32 %v2841_v23  ;;  %v4401_v23 = vld [vmem:[%s8825_s1 + $0x1c8] sm:$0xff] }
 0x8bd   :  { %3775 = vtanh.f32 %v2833_v38  ;;  %v4402_v38 = vld [vmem:[%s8825_s1 + $0x1d8] sm:$0xff] }
 0x8be   :  { %3777 = vtanh.f32 %v2846_v28  ;;  %v4405_v28 = vld [vmem:[%s8825_s1 + $0x1a8] sm:$0xff] }
 0x8c7   :  { %v3772_v25 = vpop.eup %3771 }
 0x8c8   :  { %v2839_v27 = vmul.f32 0.5, %v3772_v25  ;;  %v4406_v25 = vld [vmem:[%s8825_s1 + $0x1b8] sm:$0xff] }
 0x8c9   :  { %v3774_v24 = vpop.eup %3773 }
 0x8ca   :  { %v2840_v19 = vadd.f32 0.5, %v2839_v27  ;;  %v2843_v45 = vmul.f32 0.5, %v3774_v24  ;;  %v3776_v39 = vpop.eup %3775  ;;  %v4407_v27 = vld [vmem:[%s8825_s1 + $0x1a0] sm:$0xff]  ;;  %v4408_v24 = vld [vmem:[%s8825_s1 + $0x1b0] sm:$0xff] }
 0x8cb   :  { %v3778_v46 = vpop.eup %3777 }
 0x8cc   :  { %v2844_v48 = vadd.f32 0.5, %v2843_v45  ;;  %v2852_v43 = vmul.f32 %v3776_v39, %v2840_v19  ;;  %v2848_v61 = vmul.f32 0.5, %v3778_v46  ;;  %v4409_v19 = vld [vmem:[%s8825_s1 + $0x188] sm:$0xff]  ;;  %v4410_v45 = vld [vmem:[%s8825_s1 + $0x198] sm:$0xff]  ;;  %v4412_v39 = vld [vmem:[%s8825_s1 + $0x190] sm:$0xff] }
 0x8cd   :  { %v4419_v46 = vld [vmem:[%s8825_s1 + $0x140] sm:$0xff] }
 0x8ce   :  { %v2851_v36 = vmul.f32 %v2850_v42, %v2844_v48  ;;  %v2849_v55 = vadd.f32 0.5, %v2848_v61  ;;  %v4411_v48 = vld [vmem:[%s8825_s1 + $0x180] sm:$0xff]  ;;  %v4413_v42 = vld [vmem:[%s8825_s1 + $0x168] sm:$0xff]  ;;  %v4424_v61 = vld [vmem:[%s8825_s1 + $0x130] sm:$0xff] }
 0x8d0   :  { %v2853_v26 = vadd.f32 %v2852_v43, %v2851_v36  ;;  %v4414_v36 = vld [vmem:[%s8825_s1 + $0x178] sm:$0xff]  ;;  %v4415_v43 = vld [vmem:[%s8825_s1 + $0x160] sm:$0xff] }
 0x8d2   :  { %3779 = vtanh.f32 %v2853_v26  ;;  %2856 = vst [vmem:[#allocation3 + $0x2] sm:$0x3] %v2853_v26  ;;  %v4416_v26 = vld [vmem:[%s8825_s1 + $0x170] sm:$0xff] }
 0x8d6   :  { %v2929_v34 = vpop.f32.mrf.mxu0  ;;  %v3000_v41 = vpop.f32.mrf.mxu1 }
 0x8d8   :  { %v2931_v32 = vpop.f32.mrf.mxu0  ;;  %v3002_v44 = vpop.f32.mrf.mxu1 }
 0x8d9   :  { %v3009_v47 = vcombine.low %v2929_v34, %v2931_v32  ;;  %v3010_v30 = vcombine.low %v3000_v41, %v3002_v44  ;;  %v4417_v34 = vld [vmem:[%s8825_s1 + $0x148] sm:$0xff]  ;;  %v4418_v41 = vld [vmem:[%s8825_s1 + $0x158] sm:$0xff]  ;;  %v4420_v32 = vld [vmem:[%s8825_s1 + $0x150] sm:$0xff] }
 0x8da   :  { %v4421_v44 = vld [vmem:[%s8825_s1 + $0x128] sm:$0xff] }
 0x8db   :  { %v3017_v33 = vrot.slane %v3009_v47, %v9735_v63  ;;  %v3024_v54 = vrot.slane %v3010_v30, %v9735_v63  ;;  %v4422_v47 = vld [vmem:[%s8825_s1 + $0x138] sm:$0xff]  ;;  %v4423_v30 = vld [vmem:[%s8825_s1 + $0x120] sm:$0xff] }
 0x8dd   :  { %v3025_v49 = vcombine.low %v3017_v33, %v3024_v54  ;;  %v4425_v33 = vld [vmem:[%s8825_s1 + $0x108] sm:$0xff]  ;;  %v4426_v54 = vld [vmem:[%s8825_s1 + $0x118] sm:$0xff] }
 0x8df   :  { %v3780_v53 = vpop.eup %3779  ;;  %v3027_v58 = vadd.f32 %v3630_v37, %v3025_v49  ;;  %v4427_v37 = vld [vmem:[%s8825_s1 + $0x100] sm:$0xff]  ;;  %v4428_v49 = vld [vmem:[%s8825_s1 + $0x110] sm:$0xff] }
 0x8e0   :  { %v2855_v56 = vmul.f32 %v3780_v53, %v2849_v55  ;;  %v4429_v55 = vld [vmem:[%s8825_s1 + $0xe8] sm:$0xff]  ;;  %v4430_v53 = vld [vmem:[%s8825_s1 + $0xf8] sm:$0xff] }
 0x8e1   :  { %v3028_v52 = vmul.f32 0.5, %v3027_v58  ;;  %v3033_v0 = vrot.slane %v3027_v58, 2  ;;  %v3039_v62 = vrot.slane %v3027_v58, 4  ;;  %v3042_v9 = vrot.slane %v3027_v58, 6  ;;  %v4431_v58 = vld [vmem:[%s8825_s1 + $0xe0] sm:$0xff] }
 0x8e2   :  { %3629 = vst [vmem:[%s8828_s4 + $0xc] sm:$0x3] %v2855_v56  ;;  %2857 = vst [vmem:[#allocation2 + $0x2] sm:$0x3] %v2855_v56  ;;  %v4432_v56 = vld [vmem:[%s8825_s1 + $0xf0] sm:$0xff] }
 0x8e3   :  { %3781 = vtanh.f32 %v3028_v52  ;;  %v3035_v1 = vmul.f32 0.5, %v3033_v0  ;;  %v3044_v12 = vmul.f32 0.5, %v3042_v9  ;;  %v4433_v52 = vld [vmem:[%s8825_s1 + $0xc8] sm:$0xff]  ;;  %v4434_v0 = vld [vmem:[%s8825_s1 + $0xd8] sm:$0xff] }
 0x8e4   :  { %v4437_v9 = vld [vmem:[%s8825_s1 + $0xa8] sm:$0xff] }
 0x8e5   :  { %3783 = vtanh.f32 %v3035_v1  ;;  %v4435_v1 = vld [vmem:[%s8825_s1 + $0xc0] sm:$0xff] }
 0x8e6   :  { %3785 = vtanh.f32 %v3039_v62  ;;  %v4436_v62 = vld [vmem:[%s8825_s1 + $0xd0] sm:$0xff] }
 0x8e7   :  { %3787 = vtanh.f32 %v3044_v12  ;;  %v4438_v12 = vld [vmem:[%s8825_s1 + $0xb8] sm:$0xff] }
 0x8f0   :  { %v3782_v60 = vpop.eup %3781 }
 0x8f1   :  { %v3030_v7 = vmul.f32 0.5, %v3782_v60  ;;  %v4439_v60 = vld [vmem:[%s8825_s1 + $0xa0] sm:$0xff] }
 0x8f2   :  { %v3784_v59 = vpop.eup %3783 }
 0x8f3   :  { %v3031_v4 = vadd.f32 0.5, %v3030_v7  ;;  %v3037_v50 = vmul.f32 0.5, %v3784_v59  ;;  %v3786_v10 = vpop.eup %3785  ;;  %v4440_v7 = vld [vmem:[%s8825_s1 + $0xb0] sm:$0xff]  ;;  %v4441_v59 = vld [vmem:[%s8825_s1 + $0x88] sm:$0xff] }
 0x8f4   :  { %v3788_v14 = vpop.eup %3787 }
 0x8f5   :  { %v3038_v3 = vadd.f32 0.5, %v3037_v50  ;;  %v3050_v11 = vmul.f32 %v3786_v10, %v3031_v4  ;;  %v3046_v5 = vmul.f32 0.5, %v3788_v14  ;;  %v4442_v4 = vld [vmem:[%s8825_s1 + $0x98] sm:$0xff]  ;;  %v4443_v50 = vld [vmem:[%s8825_s1 + $0x80] sm:$0xff]  ;;  %v4445_v10 = vld [vmem:[%s8825_s1 + $0x68] sm:$0xff] }
 0x8f6   :  { %v4450_v14 = vld [vmem:[%s8825_s1 + $0x58] sm:$0xff] }
 0x8f7   :  { %v3049_v8 = vmul.f32 %v3048_v51, %v3038_v3  ;;  %v3047_v17 = vadd.f32 0.5, %v3046_v5  ;;  %v4444_v3 = vld [vmem:[%s8825_s1 + $0x90] sm:$0xff]  ;;  %v4446_v51 = vld [vmem:[%s8825_s1 + $0x78] sm:$0xff]  ;;  %v4451_v5 = vld [vmem:[%s8825_s1 + $0x40] sm:$0xff] }
 0x8f9   :  { %v3051_v2 = vadd.f32 %v3050_v11, %v3049_v8  ;;  %v4447_v8 = vld [vmem:[%s8825_s1 + $0x60] sm:$0xff]  ;;  %v4448_v11 = vld [vmem:[%s8825_s1 + $0x70] sm:$0xff] }
 0x8fb   :  { %3789 = vtanh.f32 %v3051_v2  ;;  %3054 = vst [vmem:[#allocation3] sm:$0x3] %v3051_v2  ;;  %v4449_v2 = vld [vmem:[%s8825_s1 + $0x48] sm:$0xff] }
 0x908   :  { %v3790_v57 = vpop.eup %3789 }
 0x909   :  { %v3053_v15 = vmul.f32 %v3790_v57, %v3047_v17  ;;  %v4452_v17 = vld [vmem:[%s8825_s1 + $0x50] sm:$0xff]  ;;  %v4453_v57 = vld [vmem:[%s8825_s1 + $0x28] sm:$0xff] }
 0x90b   :  { %3055 = vst [vmem:[#allocation2] sm:$0x3] %v3053_v15  ;;  %v4454_v15 = vld [vmem:[%s8825_s1 + $0x38] sm:$0xff] }
 0x912   :  { %v3631_v16 = vld.sshfl [vmem:[#allocation2] sm:$0x33 pattern:$0x76325410] }
 0x913   :  { %v3065_v18 = vcombine.high %v3631_v16, %v3631_v16 }
 0x915   :  { %3132 = vmatprep.mubr.f32.mxu0 %v3065_v18  ;;  %3203 = vmatprep.mubr.f32.mxu1 %v3065_v18  ;;  %v4456_v18 = vld [vmem:[%s8825_s1 + $0x30] sm:$0xff] }
 0x916   :  { %3133 = vmatmul.mubr.f32.vlgmr.msra.gmra.mxu0 %v3631_v16  ;;  %3204 = vmatmul.mubr.f32.vlgmr.msra.gmra.mxu1 %v3631_v16  ;;  %v4455_v16 = vld [vmem:[%s8825_s1 + $0x20] sm:$0xff] }
 0x917   :  { %3237 = vmatpush1.msra.mxu0 %v4399_v21  ;;  %3308 = vmatpush1.msra.mxu1 %v4400_v22  ;;  %v4457_v21 = vld [vmem:[%s8825_s1 + $0x8] sm:$0xff]  ;;  %v4458_v22 = vld [vmem:[%s8825_s1 + $0x18] sm:$0xff] }
 0x918   :  { %3238 = vmatprep.subr.mxu0 %v4401_v23  ;;  %3309 = vmatprep.subr.mxu1 %v4402_v38  ;;  %v4459_v23 = vld [vmem:[%s8825_s1] sm:$0xff]  ;;  %v4460_v38 = vld [vmem:[%s8825_s1 + $0x10] sm:$0xff] }
 0x919   :  { %3239 = vmatpush1.msra.mxu0 %v4403_v40  ;;  %3310 = vmatpush1.msra.mxu1 %v4404_v35  ;;  %v3235_v40 = vld [vmem:[#allocation2] sm:$0x3]  ;;  %v4461_v35 = vld [vmem:[#allocation4 + $0x1e8] sm:$0xff] }
 0x91a   :  { %3240 = vmatprep.subr.mxu0 %v4405_v28  ;;  %3311 = vmatprep.subr.mxu1 %v4406_v25  ;;  %v4462_v28 = vld [vmem:[#allocation4 + $0x1f8] sm:$0xff]  ;;  %v4463_v25 = vld [vmem:[#allocation4 + $0x1e0] sm:$0xff] }
 0x91b   :  { %3241 = vmatpush1.msra.mxu0 %v4407_v27  ;;  %3312 = vmatpush1.msra.mxu1 %v4408_v24  ;;  %v4464_v27 = vld [vmem:[#allocation4 + $0x1f0] sm:$0xff]  ;;  %v4465_v24 = vld [vmem:[#allocation4 + $0x1c8] sm:$0xff] }
 0x91c   :  { %3242 = vmatprep.subr.mxu0 %v4409_v19  ;;  %3313 = vmatprep.subr.mxu1 %v4410_v45  ;;  %v4466_v19 = vld [vmem:[#allocation4 + $0x1d8] sm:$0xff]  ;;  %v4467_v45 = vld [vmem:[#allocation4 + $0x1c0] sm:$0xff] }
 0x91d   :  { %3243 = vmatpush1.msra.mxu0 %v4411_v48  ;;  %3314 = vmatpush1.msra.mxu1 %v4412_v39  ;;  %v4468_v48 = vld [vmem:[#allocation4 + $0x1d0] sm:$0xff]  ;;  %v4470_v39 = vld [vmem:[#allocation4 + $0x1b8] sm:$0xff] }
 0x91e   :  { %3244 = vmatprep.subr.mxu0 %v4413_v42  ;;  %3315 = vmatprep.subr.mxu1 %v4414_v36  ;;  %v4471_v42 = vld [vmem:[#allocation4 + $0x1a0] sm:$0xff]  ;;  %v4472_v36 = vld [vmem:[#allocation4 + $0x1b0] sm:$0xff] }
 0x91f   :  { %3245 = vmatpush1.msra.mxu0 %v4415_v43  ;;  %3316 = vmatpush1.msra.mxu1 %v4416_v26  ;;  %v4473_v43 = vld [vmem:[#allocation4 + $0x188] sm:$0xff]  ;;  %v4474_v26 = vld [vmem:[#allocation4 + $0x198] sm:$0xff] }
 0x920   :  { %3246 = vmatprep.subr.mxu0 %v4417_v34  ;;  %3317 = vmatprep.subr.mxu1 %v4418_v41  ;;  %v4475_v34 = vld [vmem:[#allocation4 + $0x180] sm:$0xff]  ;;  %v4476_v41 = vld [vmem:[#allocation4 + $0x190] sm:$0xff] }
 0x921   :  { %3247 = vmatpush1.msra.mxu0 %v4419_v46  ;;  %3318 = vmatpush1.msra.mxu1 %v4420_v32  ;;  %v4477_v46 = vld [vmem:[#allocation4 + $0x168] sm:$0xff]  ;;  %v4478_v32 = vld [vmem:[#allocation4 + $0x178] sm:$0xff] }
 0x922   :  { %3248 = vmatprep.subr.mxu0 %v4421_v44  ;;  %3319 = vmatprep.subr.mxu1 %v4422_v47  ;;  %v4479_v44 = vld [vmem:[#allocation4 + $0x160] sm:$0xff]  ;;  %v4480_v47 = vld [vmem:[#allocation4 + $0x170] sm:$0xff] }
 0x923   :  { %3249 = vmatpush1.msra.mxu0 %v4423_v30  ;;  %3320 = vmatpush1.msra.mxu1 %v4424_v61  ;;  %v4481_v30 = vld [vmem:[#allocation4 + $0x148] sm:$0xff]  ;;  %v4482_v61 = vld [vmem:[#allocation4 + $0x158] sm:$0xff] }
 0x924   :  { %3250 = vmatprep.subr.mxu0 %v4425_v33  ;;  %3321 = vmatprep.subr.mxu1 %v4426_v54  ;;  %v4483_v33 = vld [vmem:[#allocation4 + $0x140] sm:$0xff]  ;;  %v4484_v54 = vld [vmem:[#allocation4 + $0x150] sm:$0xff] }
 0x925   :  { %3251 = vmatpush1.msra.mxu0 %v4427_v37  ;;  %3322 = vmatpush1.msra.mxu1 %v4428_v49  ;;  %v4485_v37 = vld [vmem:[#allocation4 + $0x128] sm:$0xff]  ;;  %v4486_v49 = vld [vmem:[#allocation4 + $0x138] sm:$0xff] }
 0x926   :  { %3252 = vmatprep.subr.mxu0 %v4429_v55  ;;  %3323 = vmatprep.subr.mxu1 %v4430_v53  ;;  %v4487_v55 = vld [vmem:[#allocation4 + $0x120] sm:$0xff]  ;;  %v4488_v53 = vld [vmem:[#allocation4 + $0x130] sm:$0xff] }
 0x927   :  { %3253 = vmatpush1.msra.mxu0 %v4431_v58  ;;  %3324 = vmatpush1.msra.mxu1 %v4432_v56  ;;  %v4489_v58 = vld [vmem:[#allocation4 + $0x108] sm:$0xff]  ;;  %v4490_v56 = vld [vmem:[#allocation4 + $0x118] sm:$0xff] }
 0x928   :  { %3254 = vmatprep.subr.mxu0 %v4433_v52  ;;  %3325 = vmatprep.subr.mxu1 %v4434_v0  ;;  %v4491_v52 = vld [vmem:[#allocation4 + $0x100] sm:$0xff]  ;;  %v4492_v0 = vld [vmem:[#allocation4 + $0x110] sm:$0xff] }
 0x929   :  { %3255 = vmatpush1.msra.mxu0 %v4435_v1  ;;  %3326 = vmatpush1.msra.mxu1 %v4436_v62  ;;  %v4493_v1 = vld [vmem:[#allocation4 + $0xe8] sm:$0xff]  ;;  %v4494_v62 = vld [vmem:[#allocation4 + $0xf8] sm:$0xff] }
 0x92a   :  { %3256 = vmatprep.subr.mxu0 %v4437_v9  ;;  %3327 = vmatprep.subr.mxu1 %v4438_v12  ;;  %v4495_v9 = vld [vmem:[#allocation4 + $0xe0] sm:$0xff]  ;;  %v4496_v12 = vld [vmem:[#allocation4 + $0xf0] sm:$0xff] }
 0x92b   :  { %3257 = vmatpush1.msra.mxu0 %v4439_v60  ;;  %3328 = vmatpush1.msra.mxu1 %v4440_v7  ;;  %v4497_v60 = vld [vmem:[#allocation4 + $0xc8] sm:$0xff]  ;;  %v4498_v7 = vld [vmem:[#allocation4 + $0xd8] sm:$0xff] }
 0x92c   :  { %3258 = vmatprep.subr.mxu0 %v4441_v59  ;;  %3329 = vmatprep.subr.mxu1 %v4442_v4  ;;  %v4499_v59 = vld [vmem:[#allocation4 + $0xc0] sm:$0xff]  ;;  %v4500_v4 = vld [vmem:[#allocation4 + $0xd0] sm:$0xff] }
 0x92d   :  { %3259 = vmatpush1.msra.mxu0 %v4443_v50  ;;  %3330 = vmatpush1.msra.mxu1 %v4444_v3  ;;  %v4501_v50 = vld [vmem:[#allocation4 + $0xa8] sm:$0xff]  ;;  %v4502_v3 = vld [vmem:[#allocation4 + $0xb8] sm:$0xff] }
 0x92e   :  { %3260 = vmatprep.subr.mxu0 %v4445_v10  ;;  %3331 = vmatprep.subr.mxu1 %v4446_v51  ;;  %v4503_v10 = vld [vmem:[#allocation4 + $0xa0] sm:$0xff]  ;;  %v4504_v51 = vld [vmem:[#allocation4 + $0xb0] sm:$0xff] }
 0x92f   :  { %3261 = vmatpush1.msra.mxu0 %v4447_v8  ;;  %3332 = vmatpush1.msra.mxu1 %v4448_v11  ;;  %v4505_v8 = vld [vmem:[#allocation4 + $0x88] sm:$0xff]  ;;  %v4506_v11 = vld [vmem:[#allocation4 + $0x98] sm:$0xff] }
 0x930   :  { %3262 = vmatprep.subr.mxu0 %v4449_v2  ;;  %3333 = vmatprep.subr.mxu1 %v4450_v14  ;;  %v4507_v2 = vld [vmem:[#allocation4 + $0x80] sm:$0xff]  ;;  %v4508_v14 = vld [vmem:[#allocation4 + $0x90] sm:$0xff] }
 0x931   :  { %3263 = vmatpush1.msra.mxu0 %v4451_v5  ;;  %3334 = vmatpush1.msra.mxu1 %v4452_v17  ;;  %v4509_v5 = vld [vmem:[#allocation4 + $0x68] sm:$0xff]  ;;  %v4510_v17 = vld [vmem:[#allocation4 + $0x78] sm:$0xff] }
 0x932   :  { %3264 = vmatprep.subr.mxu0 %v4453_v57  ;;  %3335 = vmatprep.subr.mxu1 %v4454_v15  ;;  %v4511_v57 = vld [vmem:[#allocation4 + $0x60] sm:$0xff]  ;;  %v4512_v15 = vld [vmem:[#allocation4 + $0x70] sm:$0xff] }
 0x933   :  { %3265 = vmatpush1.msra.mxu0 %v4455_v16  ;;  %3336 = vmatpush1.msra.mxu1 %v4456_v18  ;;  %v4513_v16 = vld [vmem:[#allocation4 + $0x48] sm:$0xff]  ;;  %v4514_v18 = vld [vmem:[#allocation4 + $0x58] sm:$0xff] }
 0x934   :  { %3266 = vmatprep.subr.mxu0 %v4457_v21  ;;  %3337 = vmatprep.subr.mxu1 %v4458_v22  ;;  %v4515_v21 = vld [vmem:[#allocation4 + $0x40] sm:$0xff]  ;;  %v4516_v22 = vld [vmem:[#allocation4 + $0x50] sm:$0xff] }
 0x935   :  { %3267 = vmatpush1.msra.mxu0 %v4459_v23  ;;  %3300 = vmatprep.mubr.f32.mxu0 %v10493_v6  ;;  %v4517_v23 = vld [vmem:[#allocation4 + $0x28] sm:$0xff] }
 0x936   :  { %3338 = vmatpush1.msra.mxu1 %v4460_v38  ;;  %3371 = vmatprep.mubr.f32.mxu1 %v10493_v6  ;;  %v4469_v6 = vld [vmem:[#allocation4 + $0x1a8] sm:$0xff]  ;;  %v4518_v38 = vld [vmem:[#allocation4 + $0x38] sm:$0xff] }
 0x937   :  { %3301 = vmatmul.mubr.f32.vlgmr.msra.gmra.mxu0 %v3235_v40  ;;  %3372 = vmatmul.mubr.f32.vlgmr.msra.gmra.mxu1 %v3235_v40  ;;  %v4519_v40 = vld [vmem:[#allocation4 + $0x20] sm:$0xff] }
 0x938   :  { %3441 = vmatprep.subr.mxu0 %v4461_v35  ;;  %3512 = vmatprep.subr.mxu1 %v4462_v28  ;;  %v4520_v35 = vld [vmem:[#allocation4 + $0x30] sm:$0xff]  ;;  %v4521_v28 = vld [vmem:[#allocation4 + $0x8] sm:$0xff] }
 0x939   :  { %3442 = vmatpush1.msra.mxu0 %v4463_v25  ;;  %3513 = vmatpush1.msra.mxu1 %v4464_v27  ;;  %v4522_v25 = vld [vmem:[#allocation4 + $0x18] sm:$0xff]  ;;  %v4523_v27 = vld [vmem:[#allocation4] sm:$0xff] }
 0x93a   :  { %3443 = vmatprep.subr.mxu0 %v4465_v24  ;;  %3514 = vmatprep.subr.mxu1 %v4466_v19  ;;  %v4524_v24 = vld [vmem:[#allocation4 + $0x10] sm:$0xff]  ;;  %v4525_v19 = vld [vmem:[#allocation4 + $0x3e8] sm:$0xff] }
 0x93b   :  { %3444 = vmatpush1.msra.mxu0 %v4467_v45  ;;  %3515 = vmatpush1.msra.mxu1 %v4468_v48  ;;  %v4526_v45 = vld [vmem:[#allocation4 + $0x3f8] sm:$0xff]  ;;  %v4527_v48 = vld [vmem:[#allocation4 + $0x3e0] sm:$0xff] }
 0x93c   :  { %3445 = vmatprep.subr.mxu0 %v4469_v6  ;;  %3516 = vmatprep.subr.mxu1 %v4470_v39  ;;  %v4528_v6 = vld [vmem:[#allocation4 + $0x3f0] sm:$0xff]  ;;  %v4529_v39 = vld [vmem:[#allocation4 + $0x3c8] sm:$0xff] }
 0x93d   :  { %3446 = vmatpush1.msra.mxu0 %v4471_v42  ;;  %3517 = vmatpush1.msra.mxu1 %v4472_v36  ;;  %v4530_v42 = vld [vmem:[#allocation4 + $0x3d8] sm:$0xff]  ;;  %v4531_v36 = vld [vmem:[#allocation4 + $0x3c0] sm:$0xff] }
 0x93e   :  { %3447 = vmatprep.subr.mxu0 %v4473_v43  ;;  %3518 = vmatprep.subr.mxu1 %v4474_v26  ;;  %v4532_v43 = vld [vmem:[#allocation4 + $0x3d0] sm:$0xff]  ;;  %v4533_v26 = vld [vmem:[#allocation4 + $0x3a8] sm:$0xff] }
 0x93f   :  { %3448 = vmatpush1.msra.mxu0 %v4475_v34  ;;  %3519 = vmatpush1.msra.mxu1 %v4476_v41  ;;  %v4534_v34 = vld [vmem:[#allocation4 + $0x3b8] sm:$0xff]  ;;  %v4535_v41 = vld [vmem:[#allocation4 + $0x3a0] sm:$0xff] }
 0x940   :  { %3449 = vmatprep.subr.mxu0 %v4477_v46  ;;  %3520 = vmatprep.subr.mxu1 %v4478_v32  ;;  %v4536_v46 = vld [vmem:[#allocation4 + $0x3b0] sm:$0xff]  ;;  %v4537_v32 = vld [vmem:[#allocation4 + $0x388] sm:$0xff] }
 0x941   :  { %3450 = vmatpush1.msra.mxu0 %v4479_v44  ;;  %3521 = vmatpush1.msra.mxu1 %v4480_v47  ;;  %v4538_v44 = vld [vmem:[#allocation4 + $0x398] sm:$0xff]  ;;  %v4539_v47 = vld [vmem:[#allocation4 + $0x380] sm:$0xff] }
 0x942   :  { %3451 = vmatprep.subr.mxu0 %v4481_v30  ;;  %3522 = vmatprep.subr.mxu1 %v4482_v61  ;;  %v4540_v30 = vld [vmem:[#allocation4 + $0x390] sm:$0xff]  ;;  %v4541_v61 = vld [vmem:[#allocation4 + $0x368] sm:$0xff] }
 0x943   :  { %3452 = vmatpush1.msra.mxu0 %v4483_v33  ;;  %3523 = vmatpush1.msra.mxu1 %v4484_v54  ;;  %v4542_v33 = vld [vmem:[#allocation4 + $0x378] sm:$0xff]  ;;  %v4543_v54 = vld [vmem:[#allocation4 + $0x360] sm:$0xff] }
 0x944   :  { %3453 = vmatprep.subr.mxu0 %v4485_v37  ;;  %3524 = vmatprep.subr.mxu1 %v4486_v49  ;;  %v4544_v37 = vld [vmem:[#allocation4 + $0x370] sm:$0xff]  ;;  %v4545_v49 = vld [vmem:[#allocation4 + $0x348] sm:$0xff] }
 0x945   :  { %3454 = vmatpush1.msra.mxu0 %v4487_v55  ;;  %3525 = vmatpush1.msra.mxu1 %v4488_v53  ;;  %v4546_v55 = vld [vmem:[#allocation4 + $0x358] sm:$0xff]  ;;  %v4547_v53 = vld [vmem:[#allocation4 + $0x340] sm:$0xff] }
 0x946   :  { %3455 = vmatprep.subr.mxu0 %v4489_v58  ;;  %3526 = vmatprep.subr.mxu1 %v4490_v56  ;;  %v4548_v58 = vld [vmem:[#allocation4 + $0x350] sm:$0xff]  ;;  %v4549_v56 = vld [vmem:[#allocation4 + $0x328] sm:$0xff] }
 0x947   :  { %3456 = vmatpush1.msra.mxu0 %v4491_v52  ;;  %3527 = vmatpush1.msra.mxu1 %v4492_v0  ;;  %v4550_v52 = vld [vmem:[#allocation4 + $0x338] sm:$0xff]  ;;  %v4551_v0 = vld [vmem:[#allocation4 + $0x320] sm:$0xff] }
 0x948   :  { %3457 = vmatprep.subr.mxu0 %v4493_v1  ;;  %3528 = vmatprep.subr.mxu1 %v4494_v62  ;;  %v4552_v1 = vld [vmem:[#allocation4 + $0x330] sm:$0xff]  ;;  %v4553_v62 = vld [vmem:[#allocation4 + $0x308] sm:$0xff] }
 0x949   :  { %3458 = vmatpush1.msra.mxu0 %v4495_v9  ;;  %3529 = vmatpush1.msra.mxu1 %v4496_v12  ;;  %v4554_v9 = vld [vmem:[#allocation4 + $0x318] sm:$0xff]  ;;  %v4555_v12 = vld [vmem:[#allocation4 + $0x300] sm:$0xff] }
 0x94a   :  { %3459 = vmatprep.subr.mxu0 %v4497_v60  ;;  %3530 = vmatprep.subr.mxu1 %v4498_v7  ;;  %v4556_v60 = vld [vmem:[#allocation4 + $0x310] sm:$0xff]  ;;  %v4557_v7 = vld [vmem:[#allocation4 + $0x2e8] sm:$0xff] }
 0x94b   :  { %3460 = vmatpush1.msra.mxu0 %v4499_v59  ;;  %3531 = vmatpush1.msra.mxu1 %v4500_v4  ;;  %v4558_v59 = vld [vmem:[#allocation4 + $0x2f8] sm:$0xff]  ;;  %v4559_v4 = vld [vmem:[#allocation4 + $0x2e0] sm:$0xff] }
 0x94c   :  { %3461 = vmatprep.subr.mxu0 %v4501_v50  ;;  %3532 = vmatprep.subr.mxu1 %v4502_v3  ;;  %v4560_v50 = vld [vmem:[#allocation4 + $0x2f0] sm:$0xff]  ;;  %v4561_v3 = vld [vmem:[#allocation4 + $0x2c8] sm:$0xff] }
 0x94d   :  { %3462 = vmatpush1.msra.mxu0 %v4503_v10  ;;  %3533 = vmatpush1.msra.mxu1 %v4504_v51  ;;  %v4562_v10 = vld [vmem:[#allocation4 + $0x2d8] sm:$0xff]  ;;  %v4563_v51 = vld [vmem:[#allocation4 + $0x2c0] sm:$0xff] }
 0x94e   :  { %3463 = vmatprep.subr.mxu0 %v4505_v8  ;;  %3534 = vmatprep.subr.mxu1 %v4506_v11  ;;  %v4564_v8 = vld [vmem:[#allocation4 + $0x2d0] sm:$0xff]  ;;  %v4565_v11 = vld [vmem:[#allocation4 + $0x2a8] sm:$0xff] }
 0x94f   :  { %3464 = vmatpush1.msra.mxu0 %v4507_v2  ;;  %3535 = vmatpush1.msra.mxu1 %v4508_v14  ;;  %v4566_v2 = vld [vmem:[#allocation4 + $0x2b8] sm:$0xff]  ;;  %v4567_v14 = vld [vmem:[#allocation4 + $0x2a0] sm:$0xff] }
 0x950   :  { %3465 = vmatprep.subr.mxu0 %v4509_v5  ;;  %3536 = vmatprep.subr.mxu1 %v4510_v17  ;;  %v4568_v5 = vld [vmem:[#allocation4 + $0x2b0] sm:$0xff]  ;;  %v4569_v17 = vld [vmem:[#allocation4 + $0x288] sm:$0xff] }
 0x951   :  { %3466 = vmatpush1.msra.mxu0 %v4511_v57  ;;  %3537 = vmatpush1.msra.mxu1 %v4512_v15  ;;  %v4570_v57 = vld [vmem:[#allocation4 + $0x298] sm:$0xff]  ;;  %v4571_v15 = vld [vmem:[#allocation4 + $0x280] sm:$0xff] }
 0x952   :  { %3467 = vmatprep.subr.mxu0 %v4513_v16  ;;  %3538 = vmatprep.subr.mxu1 %v4514_v18  ;;  %v4572_v16 = vld [vmem:[#allocation4 + $0x290] sm:$0xff]  ;;  %v4573_v18 = vld [vmem:[#allocation4 + $0x268] sm:$0xff] }
 0x953   :  { %3468 = vmatpush1.msra.mxu0 %v4515_v21  ;;  %3539 = vmatpush1.msra.mxu1 %v4516_v22  ;;  %v4574_v21 = vld [vmem:[#allocation4 + $0x278] sm:$0xff]  ;;  %v4575_v22 = vld [vmem:[#allocation4 + $0x260] sm:$0xff] }
 0x954   :  { %3469 = vmatprep.subr.mxu0 %v4517_v23  ;;  %3540 = vmatprep.subr.mxu1 %v4518_v38  ;;  %v4576_v23 = vld [vmem:[#allocation4 + $0x270] sm:$0xff]  ;;  %v4577_v38 = vld [vmem:[#allocation4 + $0x248] sm:$0xff] }
 0x955   :  { %3470 = vmatpush1.msra.mxu0 %v4519_v40  ;;  %3541 = vmatpush1.msra.mxu1 %v4520_v35  ;;  %v4578_v40 = vld [vmem:[#allocation4 + $0x258] sm:$0xff]  ;;  %v4579_v35 = vld [vmem:[#allocation4 + $0x240] sm:$0xff] }
 0x956   :  { %3471 = vmatprep.subr.mxu0 %v4521_v28  ;;  %3542 = vmatprep.subr.mxu1 %v4522_v25  ;;  %v4580_v28 = vld [vmem:[#allocation4 + $0x250] sm:$0xff]  ;;  %v4581_v25 = vld [vmem:[#allocation4 + $0x228] sm:$0xff] }
 0x957   :  { %3472 = vmatpush1.msra.mxu0 %v4523_v27  ;;  %3543 = vmatpush1.msra.mxu1 %v4524_v24  ;;  %v4582_v27 = vld [vmem:[#allocation4 + $0x238] sm:$0xff]  ;;  %v4583_v24 = vld [vmem:[#allocation4 + $0x220] sm:$0xff] }
 0x958   :  { %3473 = vmatprep.subr.mxu0 %v4525_v19  ;;  %3544 = vmatprep.subr.mxu1 %v4526_v45  ;;  %v4584_v19 = vld [vmem:[#allocation4 + $0x230] sm:$0xff]  ;;  %v4585_v45 = vld [vmem:[#allocation4 + $0x208] sm:$0xff] }
 0x959   :  { %3474 = vmatpush2.msra.mxu0 %v4527_v48  ;;  %3545 = vmatpush2.msra.mxu1 %v4528_v6  ;;  %v4586_v48 = vld [vmem:[#allocation4 + $0x218] sm:$0xff]  ;;  %v4587_v6 = vld [vmem:[#allocation4 + $0x200] sm:$0xff] }
 0x95a   :  { %3475 = vmatprep.subr.mxu0 %v4529_v39  ;;  %3546 = vmatprep.subr.mxu1 %v4530_v42  ;;  %v4588_v39 = vld [vmem:[#allocation4 + $0x210] sm:$0xff] }
 0x95b   :  { %3476 = vmatpush2.msra.mxu0 %v4531_v36  ;;  %3547 = vmatpush2.msra.mxu1 %v4532_v43 }
 0x95c   :  { %3477 = vmatprep.subr.mxu0 %v4533_v26  ;;  %3548 = vmatprep.subr.mxu1 %v4534_v34 }
 0x95d   :  { %3478 = vmatpush2.msra.mxu0 %v4535_v41  ;;  %3549 = vmatpush2.msra.mxu1 %v4536_v46 }
 0x95e   :  { %3479 = vmatprep.subr.mxu0 %v4537_v32  ;;  %3550 = vmatprep.subr.mxu1 %v4538_v44 }
 0x95f   :  { %3480 = vmatpush2.msra.mxu0 %v4539_v47  ;;  %3551 = vmatpush2.msra.mxu1 %v4540_v30 }
 0x960   :  { %3481 = vmatprep.subr.mxu0 %v4541_v61  ;;  %3552 = vmatprep.subr.mxu1 %v4542_v33 }
 0x961   :  { %3482 = vmatpush2.msra.mxu0 %v4543_v54  ;;  %3553 = vmatpush2.msra.mxu1 %v4544_v37 }
 0x962   :  { %3483 = vmatprep.subr.mxu0 %v4545_v49  ;;  %3554 = vmatprep.subr.mxu1 %v4546_v55 }
 0x963   :  { %3484 = vmatpush2.msra.mxu0 %v4547_v53  ;;  %3555 = vmatpush2.msra.mxu1 %v4548_v58  ;;  %v3223_v58 = vld [vmem:[#allocation3 + $0x2] sm:$0x3] }
 0x964   :  { %3485 = vmatprep.subr.mxu0 %v4549_v56  ;;  %3556 = vmatprep.subr.mxu1 %v4550_v52 }
 0x965   :  { %3486 = vmatpush2.msra.mxu0 %v4551_v0  ;;  %3557 = vmatpush2.msra.mxu1 %v4552_v1 }
 0x966   :  { %3487 = vmatprep.subr.mxu0 %v4553_v62  ;;  %3558 = vmatprep.subr.mxu1 %v4554_v9 }
 0x967   :  { %3488 = vmatpush2.msra.mxu0 %v4555_v12  ;;  %3559 = vmatpush2.msra.mxu1 %v4556_v60 }
 0x968   :  { %3489 = vmatprep.subr.mxu0 %v4557_v7  ;;  %3560 = vmatprep.subr.mxu1 %v4558_v59 }
 0x969   :  { %3490 = vmatpush2.msra.mxu0 %v4559_v4  ;;  %3561 = vmatpush2.msra.mxu1 %v4560_v50 }
 0x96a   :  { %3491 = vmatprep.subr.mxu0 %v4561_v3  ;;  %3562 = vmatprep.subr.mxu1 %v4562_v10  ;;  %v3633_v10 = vld [vmem:[%s8824_s0 + $0x40] sm:$0xff] }
 0x96b   :  { %3492 = vmatpush2.msra.mxu0 %v4563_v51  ;;  %3563 = vmatpush2.msra.mxu1 %v4564_v8 }
 0x96c   :  { %3493 = vmatprep.subr.mxu0 %v4565_v11  ;;  %3564 = vmatprep.subr.mxu1 %v4566_v2 }
 0x96d   :  { %3494 = vmatpush2.msra.mxu0 %v4567_v14  ;;  %3565 = vmatpush2.msra.mxu1 %v4568_v5 }
 0x96e   :  { %3495 = vmatprep.subr.mxu0 %v4569_v17  ;;  %3566 = vmatprep.subr.mxu1 %v4570_v57 }
 0x96f   :  { %3496 = vmatpush2.msra.mxu0 %v4571_v15  ;;  %3567 = vmatpush2.msra.mxu1 %v4572_v16 }
 0x970   :  { %3497 = vmatprep.subr.mxu0 %v4573_v18  ;;  %3568 = vmatprep.subr.mxu1 %v4574_v21 }
 0x971   :  { %3498 = vmatpush2.msra.mxu0 %v4575_v22  ;;  %3569 = vmatpush2.msra.mxu1 %v4576_v23 }
 0x972   :  { %3499 = vmatprep.subr.mxu0 %v4577_v38  ;;  %3570 = vmatprep.subr.mxu1 %v4578_v40 }
 0x973   :  { %3500 = vmatpush2.msra.mxu0 %v4579_v35  ;;  %3571 = vmatpush2.msra.mxu1 %v4580_v28  ;;  %v3421_v28 = vld [vmem:[#allocation3] sm:$0x3] }
 0x974   :  { %3501 = vmatprep.subr.mxu0 %v4581_v25  ;;  %3572 = vmatprep.subr.mxu1 %v4582_v27 }
 0x975   :  { %3502 = vmatpush2.msra.mxu0 %v4583_v24  ;;  %3573 = vmatpush2.msra.mxu1 %v4584_v19 }
 0x976   :  { %3503 = vmatprep.subr.mxu0 %v4585_v45  ;;  %3574 = vmatprep.subr.mxu1 %v4586_v48 }
 0x977   :  { %3504 = vmatpush2.msra.mxu0 %v4587_v6  ;;  %3575 = vmatpush2.msra.mxu1 %v4588_v39 }
 0x9d6   :  { %v3134_v42 = vpop.f32.mrf.mxu0  ;;  %v3205_v41 = vpop.f32.mrf.mxu1 }
 0x9d7   :  { %v3135_v36 = vadd.f32 %v3134_v42, %v10623_v13  ;;  %v3206_v32 = vadd.f32 %v3205_v41, %v10625_v31 }
 0x9d8   :  { %v3136_v43 = vpop.f32.mrf.mxu0  ;;  %v3207_v44 = vpop.f32.mrf.mxu1 }
 0x9d9   :  { %v3210_v26 = vmul.f32 0.5, %v3135_v36  ;;  %v3137_v34 = vadd.f32 %v3136_v43, %v10624_v20  ;;  %v3208_v47 = vadd.f32 %v3207_v44, %v10626_v29 }
 0x9db   :  { %3791 = vtanh.f32 %v3210_v26  ;;  %v3214_v46 = vmul.f32 0.5, %v3137_v34  ;;  %v3219_v30 = vmul.f32 0.5, %v3208_v47 }
 0x9dd   :  { %3793 = vtanh.f32 %v3214_v46 }
 0x9de   :  { %3795 = vtanh.f32 %v3206_v32 }
 0x9df   :  { %3797 = vtanh.f32 %v3219_v30 }
 0x9e8   :  { %v3792_v61 = vpop.eup %3791 }
 0x9e9   :  { %v3212_v33 = vmul.f32 0.5, %v3792_v61 }
 0x9ea   :  { %v3794_v54 = vpop.eup %3793 }
 0x9eb   :  { %v3213_v37 = vadd.f32 0.5, %v3212_v33  ;;  %v3216_v49 = vmul.f32 0.5, %v3794_v54  ;;  %v3796_v53 = vpop.eup %3795 }
 0x9ec   :  { %v3798_v9 = vpop.eup %3797 }
 0x9ed   :  { %v3217_v55 = vadd.f32 0.5, %v3216_v49  ;;  %v3225_v52 = vmul.f32 %v3796_v53, %v3213_v37  ;;  %v3221_v4 = vmul.f32 0.5, %v3798_v9 }
 0x9ef   :  { %v3224_v56 = vmul.f32 %v3223_v58, %v3217_v55  ;;  %v3222_v8 = vadd.f32 0.5, %v3221_v4 }
 0x9f1   :  { %v3226_v0 = vadd.f32 %v3225_v52, %v3224_v56 }
 0x9f3   :  { %3799 = vtanh.f32 %v3226_v0  ;;  %3229 = vst [vmem:[#allocation3 + $0x2] sm:$0x3] %v3226_v0 }
 0x9f7   :  { %v3302_v1 = vpop.f32.mrf.mxu0  ;;  %v3373_v62 = vpop.f32.mrf.mxu1 }
 0x9f9   :  { %v3304_v12 = vpop.f32.mrf.mxu0  ;;  %v3375_v60 = vpop.f32.mrf.mxu1 }
 0x9fa   :  { %v3382_v7 = vcombine.low %v3302_v1, %v3304_v12  ;;  %v3383_v59 = vcombine.low %v3373_v62, %v3375_v60 }
 0x9fc   :  { %v3390_v50 = vrot.slane %v3382_v7, %v9735_v63  ;;  %v3397_v3 = vrot.slane %v3383_v59, %v9735_v63 }
 0x9fe   :  { %v3398_v51 = vcombine.low %v3390_v50, %v3397_v3 }
 0xa00   :  { %v3800_v11 = vpop.eup %3799  ;;  %v3400_v2 = vadd.f32 %v3633_v10, %v3398_v51 }
 0xa01   :  { %v3228_v14 = vmul.f32 %v3800_v11, %v3222_v8 }
 0xa02   :  { %v3401_v5 = vmul.f32 0.5, %v3400_v2  ;;  %v3406_v17 = vrot.slane %v3400_v2, 2  ;;  %v3412_v63 = vrot.slane %v3400_v2, 4  ;;  %v3415_v15 = vrot.slane %v3400_v2, 6 }
 0xa03   :  { %3632 = vst [vmem:[%s8828_s4 + $0xe] sm:$0x3] %v3228_v14  ;;  %3230 = vst [vmem:[#allocation2 + $0x2] sm:$0x3] %v3228_v14 }
 0xa04   :  { %3801 = vtanh.f32 %v3401_v5  ;;  %v3408_v57 = vmul.f32 0.5, %v3406_v17  ;;  %v3417_v16 = vmul.f32 0.5, %v3415_v15 }
 0xa06   :  { %3803 = vtanh.f32 %v3408_v57 }
 0xa07   :  { %3805 = vtanh.f32 %v3412_v63 }
 0xa08   :  { %3807 = vtanh.f32 %v3417_v16 }
 0xa11   :  { %v3802_v18 = vpop.eup %3801 }
 0xa12   :  { %v3403_v21 = vmul.f32 0.5, %v3802_v18 }
 0xa13   :  { %v3804_v22 = vpop.eup %3803 }
 0xa14   :  { %v3404_v23 = vadd.f32 0.5, %v3403_v21  ;;  %v3410_v38 = vmul.f32 0.5, %v3804_v22  ;;  %v3806_v35 = vpop.eup %3805 }
 0xa15   :  { %v3808_v19 = vpop.eup %3807 }
 0xa16   :  { %v3411_v40 = vadd.f32 0.5, %v3410_v38  ;;  %v3423_v27 = vmul.f32 %v3806_v35, %v3404_v23  ;;  %v3419_v45 = vmul.f32 0.5, %v3808_v19 }
 0xa18   :  { %v3422_v25 = vmul.f32 %v3421_v28, %v3411_v40  ;;  %v3420_v48 = vadd.f32 0.5, %v3419_v45 }
 0xa1a   :  { %v3424_v24 = vadd.f32 %v3423_v27, %v3422_v25 }
 0xa1c   :  { %3809 = vtanh.f32 %v3424_v24  ;;  %3427 = vst [vmem:[#allocation3] sm:$0x3] %v3424_v24 }
 0xa29   :  { %v3810_v6 = vpop.eup %3809 }
 0xa2a   :  { %v3426_v39 = vmul.f32 %v3810_v6, %v3420_v48 }
 0xa2c   :  { %3428 = vst [vmem:[#allocation2] sm:$0x3] %v3426_v39 }
 0xa33   :  { %v3634_v42 = vld.sshfl [vmem:[#allocation2] sm:$0x33 pattern:$0x76325410] }
 0xa34   :  { %v3438_v36 = vcombine.high %v3634_v42, %v3634_v42 }
 0xa36   :  { %3505 = vmatprep.mubr.f32.mxu0 %v3438_v36  ;;  %3576 = vmatprep.mubr.f32.mxu1 %v3438_v36 }
 0xa37   :  { %3506 = vmatmul.mubr.f32.vlgmr.msra.gmra.mxu0 %v3634_v42  ;;  %3577 = vmatmul.mubr.f32.vlgmr.msra.gmra.mxu1 %v3634_v42 }
 0xaf7   :  { %v3507_v43 = vpop.f32.mrf.mxu0  ;;  %v3578_v32 = vpop.f32.mrf.mxu1 }
 0xaf8   :  { %v3508_v26 = vadd.f32 %v3507_v43, %v10623_v13  ;;  %v3579_v47 = vadd.f32 %v3578_v32, %v10625_v31 }
 0xaf9   :  { %v3509_v34 = vpop.f32.mrf.mxu0  ;;  %v3580_v30 = vpop.f32.mrf.mxu1 }
 0xafa   :  { %v3583_v41 = vmul.f32 0.5, %v3508_v26  ;;  %v3510_v46 = vadd.f32 %v3509_v34, %v10624_v20  ;;  %v3581_v61 = vadd.f32 %v3580_v30, %v10626_v29  ;;  %v3596_v20 = vld [vmem:[#allocation3 + $0x2] sm:$0x3] }
 0xafc   :  { %3811 = vtanh.f32 %v3583_v41  ;;  %v3587_v44 = vmul.f32 0.5, %v3510_v46  ;;  %v3592_v33 = vmul.f32 0.5, %v3581_v61 }
 0xafe   :  { %3813 = vtanh.f32 %v3587_v44 }
 0xaff   :  { %3815 = vtanh.f32 %v3579_v47 }
 0xb00   :  { %3817 = vtanh.f32 %v3592_v33 }
 0xb09   :  { %v3812_v54 = vpop.eup %3811 }
 0xb0a   :  { %v3585_v37 = vmul.f32 0.5, %v3812_v54 }
 0xb0b   :  { %v3814_v49 = vpop.eup %3813 }
 0xb0c   :  { %v3586_v55 = vadd.f32 0.5, %v3585_v37  ;;  %v3589_v13 = vmul.f32 0.5, %v3814_v49  ;;  %v3816_v58 = vpop.eup %3815 }
 0xb0d   :  { %v3818_v31 = vpop.eup %3817 }
 0xb0e   :  { %v3590_v53 = vadd.f32 0.5, %v3589_v13  ;;  %v3598_v52 = vmul.f32 %v3816_v58, %v3586_v55  ;;  %v3594_v1 = vmul.f32 0.5, %v3818_v31 }
 0xb10   :  { %v3597_v56 = vmul.f32 %v3596_v20, %v3590_v53  ;;  %v3595_v62 = vadd.f32 0.5, %v3594_v1 }
 0xb12   :  { %v3599_v0 = vadd.f32 %v3598_v52, %v3597_v56 }
 0xb14   :  { %3819 = vtanh.f32 %v3599_v0  ;;  %3602 = vst [vmem:[#allocation3 + $0x2] sm:$0x3] %v3599_v0 }
 0xb21   :  { %v3820_v9 = vpop.eup %3819 }
 0xb22   :  { %v3601_v29 = vmul.f32 %v3820_v9, %v3595_v62 }
 0xb24   :  { %3603 = vst [vmem:[#allocation2 + $0x2] sm:$0x3] %v3601_v29  ;;  %3635 = vst [vmem:[%s8828_s4 + $0x10] sm:$0x3] %v3601_v29 }
 0xb25   :  { %3610 = vsyncpa [#allocation5], 1 }

</bundles_post_ra>
